<compile_context>
chip_gen: v5e
topology: v5e:2x2
jax: 0.10.0
libtpu: 0.0.40
codegen_flags: <defaults>
</compile_context>

<pallas_src>
import jax
import jax.numpy as jnp
from jax.experimental import pallas as pl
from jax.experimental.pallas import tpu as pltpu

# Lane/sublane-aligned (padded) feature dims.
D_IN = 128        # 100 -> 128
D_H1 = 128
D_H2 = 256
D_H3 = 512
D_OUT = 784
D_OUT_PAD = 896   # 784 -> 896 = 7 * 128


# ----------------------------------------------------------------------------
# Pallas kernel: fused 4-layer MLP forward for one batch tile
# ----------------------------------------------------------------------------
def generator_kernel(x_ref,
                     w1_ref, b1_ref,
                     w2_ref, b2_ref,
                     w3_ref, b3_ref,
                     w4_ref, b4_ref,
                     out_ref):
    def leaky_relu(h, slope=0.2):
        return jnp.where(h > 0, h, slope * h)

    x = x_ref[...]                                              # (TM, 128) bf16

    # Linear(128 -> 128) + LeakyReLU(0.2)   [padded from 100 -> 128]
    h = jnp.dot(x, w1_ref[...], preferred_element_type=jnp.float32)
    h = leaky_relu(h + b1_ref[...])                             # f32
    h = h.astype(jnp.bfloat16)

    # Linear(128 -> 256) + LeakyReLU(0.2)
    h = jnp.dot(h, w2_ref[...], preferred_element_type=jnp.float32)
    h = leaky_relu(h + b2_ref[...])
    h = h.astype(jnp.bfloat16)

    # Linear(256 -> 512) + LeakyReLU(0.2)
    h = jnp.dot(h, w3_ref[...], preferred_element_type=jnp.float32)
    h = leaky_relu(h + b3_ref[...])
    h = h.astype(jnp.bfloat16)

    # Linear(512 -> 896[784]) + Sigmoid
    h = jnp.dot(h, w4_ref[...], preferred_element_type=jnp.float32)
    h = h + b4_ref[...]                                         # (TM, 896) f32
    out_ref[...] = pl.reciprocal(1.0 + jnp.exp(-h), approx=True)


# ----------------------------------------------------------------------------
# Wrapper: pad/cast, build the grid, slice the padding back off
# ----------------------------------------------------------------------------
def generator_forward(x, params, *, tm=256):
    """x: (B, 100) float32. params: dict of (in,out) f32 weights, (1,out) f32 biases."""
    B, d_in = x.shape
    n_tiles = pl.cdiv(B, tm)
    b_pad = n_tiles * tm

    # Pad batch to a multiple of TM, pad K 100 -> 128, cast to bf16 for the MXU.
    x_p = (jnp.zeros((b_pad, D_IN), jnp.float32)
           .at[:B, :d_in].set(x)
           .astype(jnp.bfloat16))

    # Weights: bf16, zero-padded where needed (extra rows/cols don't change math).
    w1 = (jnp.zeros((D_IN, D_H1), jnp.float32)
          .at[:d_in, :].set(params["w1"]).astype(jnp.bfloat16))
    w2 = params["w2"].astype(jnp.bfloat16)
    w3 = params["w3"].astype(jnp.bfloat16)
    w4 = (jnp.zeros((D_H3, D_OUT_PAD), jnp.float32)
          .at[:, :D_OUT].set(params["w4"]).astype(jnp.bfloat16))
    # Biases stay f32 (added post-accumulation).
    b1, b2, b3 = params["b1"], params["b2"], params["b3"]
    b4 = jnp.zeros((1, D_OUT_PAD), jnp.float32).at[:, :D_OUT].set(params["b4"])

    # Weights/biases: whole-array blocks, constant index_map -> VMEM-resident.
    def resident(shape):
        return pl.BlockSpec(shape, lambda i: (0, 0))

    flops = 2 * b_pad * (D_IN * D_H1 + D_H1 * D_H2 + D_H2 * D_H3 + D_H3 * D_OUT_PAD)
    weight_bytes = 2 * (w1.size + w2.size + w3.size + w4.size)
    bias_bytes = 4 * (b1.size + b2.size + b3.size + b4.size)
    bytes_accessed = 2 * x_p.size + weight_bytes + bias_bytes + 4 * b_pad * D_OUT_PAD

    out = pl.pallas_call(
        generator_kernel,
        out_shape=jax.ShapeDtypeStruct((b_pad, D_OUT_PAD), jnp.float32),
        grid=(n_tiles,),
        in_specs=[
            pl.BlockSpec((tm, D_IN), lambda i: (i, 0)),   # activation tile
            resident((D_IN, D_H1)), resident((1, D_H1)),
            resident((D_H1, D_H2)), resident((1, D_H2)),
            resident((D_H2, D_H3)), resident((1, D_H3)),
            resident((D_H3, D_OUT_PAD)), resident((1, D_OUT_PAD)),
        ],
        out_specs=pl.BlockSpec((tm, D_OUT_PAD), lambda i: (i, 0)),
        compiler_params=pltpu.CompilerParams(
            dimension_semantics=("parallel",),       # shard batch tiles on v7x's 2 TCs
            vmem_limit_bytes=64 * 1024 * 1024,       # headroom for tm up to ~1024
        ),
        cost_estimate=pl.CostEstimate(
            flops=flops,
            transcendentals=b_pad * D_OUT_PAD,
            bytes_accessed=bytes_accessed),
    )(x_p, w1, b1, w2, b2, w3, b3, w4, b4)

    return out[:B, :D_OUT]


# ----------------------------------------------------------------------------
# Deterministic parameter init (mirrors nn.Linear default: U(-1/sqrt(in), 1/sqrt(in)))
# ----------------------------------------------------------------------------
def init_params(key):
    dims = [(100, 128), (128, 256), (256, 512), (512, 784)]
    params = {}
    for i, (fin, fout) in enumerate(dims, start=1):
        key, kw, kb = jax.random.split(key, 3)
        bound = 1.0 / (fin ** 0.5)
        # Stored as (in, out), i.e. transposed relative to PyTorch's (out, in).
        params[f"w{i}"] = jax.random.uniform(
            kw, (fin, fout), jnp.float32, minval=-bound, maxval=bound)
        params[f"b{i}"] = jax.random.uniform(
            kb, (1, fout), jnp.float32, minval=-bound, maxval=bound)
    return params


# Pure-JAX f32 reference for a sanity check.
def reference_forward(x, p):
    h = x
    for i in range(1, 4):
        h = h @ p[f"w{i}"] + p[f"b{i}"]
        h = jnp.where(h > 0, h, 0.2 * h)
    h = h @ p["w4"] + p["b4"]
    return jax.nn.sigmoid(h)


if __name__ == "__main__":
    key = jax.random.PRNGKey(0)
    key, kx = jax.random.split(key)

    B = 8  # small batch (padded to one TM=256 tile inside the wrapper)
    x = jax.random.normal(kx, (B, 100), jnp.float32)   # latent noise vector z
    params = init_params(key)

    out = generator_forward(x, params)
    out = jax.block_until_ready(out)

    ref = reference_forward(x, params)
    assert out.shape == (B, 784), out.shape
    # bf16 matmul operands (f32 accumulate) -> looser tolerance than pure f32.
    assert jnp.allclose(out, ref, atol=3e-2, rtol=3e-2), "mismatch vs reference"

    print("KERNEL_OK")
</pallas_src>

<mosaic_0001>
module attributes {stable_mosaic.version = 11 : i64} {
  func.func @generator_kernel(%arg0: i32, %arg1: memref<256x128xbf16, #tpu.memory_space<vmem>>, %arg2: memref<128x128xbf16, #tpu.memory_space<vmem>>, %arg3: memref<1x128xf32, #tpu.memory_space<vmem>>, %arg4: memref<128x256xbf16, #tpu.memory_space<vmem>>, %arg5: memref<1x256xf32, #tpu.memory_space<vmem>>, %arg6: memref<256x512xbf16, #tpu.memory_space<vmem>>, %arg7: memref<1x512xf32, #tpu.memory_space<vmem>>, %arg8: memref<512x896xbf16, #tpu.memory_space<vmem>>, %arg9: memref<1x896xf32, #tpu.memory_space<vmem>>, %arg10: memref<256x896xf32, #tpu.memory_space<vmem>>) attributes {dimension_semantics = [#tpu.dimension_semantics<parallel>], iteration_bounds = array<i64: 1>, scalar_prefetch = 0 : i64, scratch_operands = 0 : i64, tpu.core_type = #tpu.core_type<tc>, window_params = [{transform_indices = @transform_0, window_bounds = array<i64: 256, 128>}, {pipeline_mode = #tpu.pipeline_mode<synchronous>, transform_indices = @transform_1, window_bounds = array<i64: 128, 128>}, {pipeline_mode = #tpu.pipeline_mode<synchronous>, transform_indices = @transform_2, window_bounds = array<i64: 1, 128>}, {pipeline_mode = #tpu.pipeline_mode<synchronous>, transform_indices = @transform_3, window_bounds = array<i64: 128, 256>}, {pipeline_mode = #tpu.pipeline_mode<synchronous>, transform_indices = @transform_4, window_bounds = array<i64: 1, 256>}, {pipeline_mode = #tpu.pipeline_mode<synchronous>, transform_indices = @transform_5, window_bounds = array<i64: 256, 512>}, {pipeline_mode = #tpu.pipeline_mode<synchronous>, transform_indices = @transform_6, window_bounds = array<i64: 1, 512>}, {pipeline_mode = #tpu.pipeline_mode<synchronous>, transform_indices = @transform_7, window_bounds = array<i64: 512, 896>}, {pipeline_mode = #tpu.pipeline_mode<synchronous>, transform_indices = @transform_8, window_bounds = array<i64: 1, 896>}, {transform_indices = @transform_9, window_bounds = array<i64: 256, 896>}]} {
    %c0 = arith.constant 0 : index
    %c0_0 = arith.constant 0 : index
    %0 = vector.load %arg1[%c0, %c0_0] : memref<256x128xbf16, #tpu.memory_space<vmem>>, vector<256x128xbf16>
    %c0_1 = arith.constant 0 : index
    %c0_2 = arith.constant 0 : index
    %1 = vector.load %arg2[%c0_1, %c0_2] : memref<128x128xbf16, #tpu.memory_space<vmem>>, vector<128x128xbf16>
    %cst = arith.constant dense<0.000000e+00> : vector<256x128xf32>
    %2 = tpu.matmul %0, %1, %cst {dimension_numbers = #tpu.dot_dimension_numbers<[1], [0], [0], [1], [0, 0, 1, 1], [], []>} : vector<256x128xbf16>, vector<128x128xbf16>, vector<256x128xf32> -> vector<256x128xf32>
    %c0_3 = arith.constant 0 : index
    %c0_4 = arith.constant 0 : index
    %3 = vector.load %arg3[%c0_3, %c0_4] : memref<1x128xf32, #tpu.memory_space<vmem>>, vector<1x128xf32>
    %4 = vector.broadcast %3 : vector<1x128xf32> to vector<256x128xf32>
    %5 = arith.addf %2, %4 : vector<256x128xf32>
    %cst_5 = arith.constant 0.000000e+00 : f32
    %6 = vector.broadcast %cst_5 : f32 to vector<256x128xf32>
    %7 = arith.cmpf ogt, %5, %6 : vector<256x128xf32>
    %cst_6 = arith.constant 2.000000e-01 : f32
    %8 = vector.broadcast %cst_6 : f32 to vector<256x128xf32>
    %9 = arith.mulf %8, %5 : vector<256x128xf32>
    %10 = arith.select %7, %5, %9 : vector<256x128xi1>, vector<256x128xf32>
    %11 = arith.truncf %10 : vector<256x128xf32> to vector<256x128xbf16>
    %c0_7 = arith.constant 0 : index
    %c0_8 = arith.constant 0 : index
    %12 = vector.load %arg4[%c0_7, %c0_8] : memref<128x256xbf16, #tpu.memory_space<vmem>>, vector<128x256xbf16>
    %cst_9 = arith.constant dense<0.000000e+00> : vector<256x256xf32>
    %13 = tpu.matmul %11, %12, %cst_9 {dimension_numbers = #tpu.dot_dimension_numbers<[1], [0], [0], [1], [0, 0, 1, 1], [], []>} : vector<256x128xbf16>, vector<128x256xbf16>, vector<256x256xf32> -> vector<256x256xf32>
    %c0_10 = arith.constant 0 : index
    %c0_11 = arith.constant 0 : index
    %14 = vector.load %arg5[%c0_10, %c0_11] : memref<1x256xf32, #tpu.memory_space<vmem>>, vector<1x256xf32>
    %15 = vector.broadcast %14 : vector<1x256xf32> to vector<256x256xf32>
    %16 = arith.addf %13, %15 : vector<256x256xf32>
    %cst_12 = arith.constant 0.000000e+00 : f32
    %17 = vector.broadcast %cst_12 : f32 to vector<256x256xf32>
    %18 = arith.cmpf ogt, %16, %17 : vector<256x256xf32>
    %cst_13 = arith.constant 2.000000e-01 : f32
    %19 = vector.broadcast %cst_13 : f32 to vector<256x256xf32>
    %20 = arith.mulf %19, %16 : vector<256x256xf32>
    %21 = arith.select %18, %16, %20 : vector<256x256xi1>, vector<256x256xf32>
    %22 = arith.truncf %21 : vector<256x256xf32> to vector<256x256xbf16>
    %c0_14 = arith.constant 0 : index
    %c0_15 = arith.constant 0 : index
    %23 = vector.load %arg6[%c0_14, %c0_15] : memref<256x512xbf16, #tpu.memory_space<vmem>>, vector<256x512xbf16>
    %cst_16 = arith.constant dense<0.000000e+00> : vector<256x512xf32>
    %24 = tpu.matmul %22, %23, %cst_16 {dimension_numbers = #tpu.dot_dimension_numbers<[1], [0], [0], [1], [0, 0, 1, 1], [], []>} : vector<256x256xbf16>, vector<256x512xbf16>, vector<256x512xf32> -> vector<256x512xf32>
    %c0_17 = arith.constant 0 : index
    %c0_18 = arith.constant 0 : index
    %25 = vector.load %arg7[%c0_17, %c0_18] : memref<1x512xf32, #tpu.memory_space<vmem>>, vector<1x512xf32>
    %26 = vector.broadcast %25 : vector<1x512xf32> to vector<256x512xf32>
    %27 = arith.addf %24, %26 : vector<256x512xf32>
    %cst_19 = arith.constant 0.000000e+00 : f32
    %28 = vector.broadcast %cst_19 : f32 to vector<256x512xf32>
    %29 = arith.cmpf ogt, %27, %28 : vector<256x512xf32>
    %cst_20 = arith.constant 2.000000e-01 : f32
    %30 = vector.broadcast %cst_20 : f32 to vector<256x512xf32>
    %31 = arith.mulf %30, %27 : vector<256x512xf32>
    %32 = arith.select %29, %27, %31 : vector<256x512xi1>, vector<256x512xf32>
    %33 = arith.truncf %32 : vector<256x512xf32> to vector<256x512xbf16>
    %c0_21 = arith.constant 0 : index
    %c0_22 = arith.constant 0 : index
    %34 = vector.load %arg8[%c0_21, %c0_22] : memref<512x896xbf16, #tpu.memory_space<vmem>>, vector<512x896xbf16>
    %cst_23 = arith.constant dense<0.000000e+00> : vector<256x896xf32>
    %35 = tpu.matmul %33, %34, %cst_23 {dimension_numbers = #tpu.dot_dimension_numbers<[1], [0], [0], [1], [0, 0, 1, 1], [], []>} : vector<256x512xbf16>, vector<512x896xbf16>, vector<256x896xf32> -> vector<256x896xf32>
    %c0_24 = arith.constant 0 : index
    %c0_25 = arith.constant 0 : index
    %36 = vector.load %arg9[%c0_24, %c0_25] : memref<1x896xf32, #tpu.memory_space<vmem>>, vector<1x896xf32>
    %37 = vector.broadcast %36 : vector<1x896xf32> to vector<256x896xf32>
    %38 = arith.addf %35, %37 : vector<256x896xf32>
    %cst_26 = arith.constant 0.000000e+00 : f32
    %39 = vector.broadcast %cst_26 : f32 to vector<256x896xf32>
    %40 = arith.subf %39, %38 : vector<256x896xf32>
    %41 = math.exp %40 : vector<256x896xf32>
    %cst_27 = arith.constant 1.000000e+00 : f32
    %42 = vector.broadcast %cst_27 : f32 to vector<256x896xf32>
    %43 = arith.addf %42, %41 : vector<256x896xf32>
    %44 = tpu.reciprocal %43 {approx = true} : vector<256x896xf32> -> vector<256x896xf32>
    %c0_28 = arith.constant 0 : index
    %c0_29 = arith.constant 0 : index
    %45 = vector.load %arg10[%c0_28, %c0_29] : memref<256x896xf32, #tpu.memory_space<vmem>>, vector<256x896xf32>
    tpu.vector_store %arg10[%c0_28, %c0_29], %44 {strides = array<i32>} : memref<256x896xf32, #tpu.memory_space<vmem>>, vector<256x896xf32>,
    return
  }
  func.func @transform_0(%arg0: i32) -> (i32, i32) {
    %c0_i32 = arith.constant 0 : i32
    %c0_i32_0 = arith.constant 0 : i32
    return %arg0, %c0_i32 : i32, i32
  }
  func.func @transform_1(%arg0: i32) -> (i32, i32) {
    %c0_i32 = arith.constant 0 : i32
    %c0_i32_0 = arith.constant 0 : i32
    %c0_i32_1 = arith.constant 0 : i32
    return %c0_i32, %c0_i32_0 : i32, i32
  }
  func.func @transform_2(%arg0: i32) -> (i32, i32) {
    %c0_i32 = arith.constant 0 : i32
    %c0_i32_0 = arith.constant 0 : i32
    %c0_i32_1 = arith.constant 0 : i32
    return %c0_i32, %c0_i32_0 : i32, i32
  }
  func.func @transform_3(%arg0: i32) -> (i32, i32) {
    %c0_i32 = arith.constant 0 : i32
    %c0_i32_0 = arith.constant 0 : i32
    %c0_i32_1 = arith.constant 0 : i32
    return %c0_i32, %c0_i32_0 : i32, i32
  }
  func.func @transform_4(%arg0: i32) -> (i32, i32) {
    %c0_i32 = arith.constant 0 : i32
    %c0_i32_0 = arith.constant 0 : i32
    %c0_i32_1 = arith.constant 0 : i32
    return %c0_i32, %c0_i32_0 : i32, i32
  }
  func.func @transform_5(%arg0: i32) -> (i32, i32) {
    %c0_i32 = arith.constant 0 : i32
    %c0_i32_0 = arith.constant 0 : i32
    %c0_i32_1 = arith.constant 0 : i32
    return %c0_i32, %c0_i32_0 : i32, i32
  }
  func.func @transform_6(%arg0: i32) -> (i32, i32) {
    %c0_i32 = arith.constant 0 : i32
    %c0_i32_0 = arith.constant 0 : i32
    %c0_i32_1 = arith.constant 0 : i32
    return %c0_i32, %c0_i32_0 : i32, i32
  }
  func.func @transform_7(%arg0: i32) -> (i32, i32) {
    %c0_i32 = arith.constant 0 : i32
    %c0_i32_0 = arith.constant 0 : i32
    %c0_i32_1 = arith.constant 0 : i32
    return %c0_i32, %c0_i32_0 : i32, i32
  }
  func.func @transform_8(%arg0: i32) -> (i32, i32) {
    %c0_i32 = arith.constant 0 : i32
    %c0_i32_0 = arith.constant 0 : i32
    %c0_i32_1 = arith.constant 0 : i32
    return %c0_i32, %c0_i32_0 : i32, i32
  }
  func.func @transform_9(%arg0: i32) -> (i32, i32) {
    %c0_i32 = arith.constant 0 : i32
    %c0_i32_0 = arith.constant 0 : i32
    return %arg0, %c0_i32 : i32, i32
  }
}

</mosaic_0001>

<bundles_post_ra>
// kernel: tpu_custom_call.1
= control target key start
LH: loop header
LB: loop body
LE: loop exit
PB: predicated region body
PF: predicated region fallthrough
CT: control target
= control target key end

     0   :  { %14 = vsyncpa [#allocation3], 0  ;;  %s13353_s0 = inlined_call_operand.hbm [shape: bf16[256,128], index: 0, kind: input, shape index: {}]   ;;  %s13354_s1 = inlined_call_operand.hbm [shape: bf16[128,128], index: 1, kind: input, shape index: {}]   ;;  %s13355_s2 = inlined_call_operand.hbm [shape: f32[1,128], index: 2, kind: input, shape index: {}]   ;;  %s13356_s3 = inlined_call_operand.hbm [shape: bf16[128,256], index: 3, kind: input, shape index: {}]   ;;  %s13357_s4 = inlined_call_operand.hbm [shape: f32[1,256], index: 4, kind: input, shape index: {}]   ;;  %s13358_s5 = inlined_call_operand.hbm [shape: bf16[256,512], index: 5, kind: input, shape index: {}]   ;;  %s13359_s6 = inlined_call_operand.hbm [shape: f32[1,512], index: 6, kind: input, shape index: {}]   ;;  %s13360_s7 = inlined_call_operand.hbm [shape: bf16[512,896], index: 7, kind: input, shape index: {}]   ;;  %s13361_s8 = inlined_call_operand.vmem [shape: f32[1,896], index: 8, kind: input, shape index: {}]   ;;  %s13362_s9 = inlined_call_operand.hbm [shape: f32[256,896], index: 9, kind: output, shape index: {}]  }
   0x1   :  { %15 = vsyncpa [#allocation6], 0 }
   0x2   :  { %16 = vsyncpa [#allocation9], 0 }
   0x3   :  { %17 = vsyncpa [#allocation12], 0 }
   0x4   :  { %18 = vsyncpa [#allocation15], 0 }
   0x5   :  { %19 = vsyncpa [#allocation4], 0  ;;  %s37_s11 = sshll.u32 %s13354_s1, 4  ;;  %s10705_s12 = smov [#allocation5]   ;;  %s38_s11 = int_to_ptr.hbm [resolvable:$true] %s37_s11 }
   0x6   :  { %s39_s13 = sshll.u32 %s10705_s12, 4  ;;  %s61_s16 = sshll.u32 %s13356_s3, 4  ;;  %s40_s13 = int_to_ptr.vmem [resolvable:$true] %s39_s13  ;;  %s62_s16 = int_to_ptr.hbm [resolvable:$true] %s61_s16 }
   0x7   :  { %s10706_s17 = smov 64   ;;  %s10707_s18 = smov 4  }
   0x8   :  { %45 = dma.hbm_to_vmem [thread:$0]  %s38_s11, 1024, %s40_s13, [#allocation6], %s10706_s17, %s10706_s17, %s10707_s18  }
   0x9   :  { %s10708_s19 = smov [#allocation8]   ;;  %s10709_s21 = smov 128  }
   0xa   :  { %s63_s20 = sshll.u32 %s10708_s19, 4  ;;  %s10710_s22 = smov 8   ;;  %s64_s20 = int_to_ptr.vmem [resolvable:$true] %s63_s20 }
   0xb   :  { %69 = dma.hbm_to_vmem [thread:$0]  %s62_s16, 2048, %s64_s20, [#allocation9], %s10709_s21, %s10709_s21, %s10710_s22  }
   0xc   :  { %s85_s24 = sshll.u32 %s13358_s5, 4  ;;  %s10711_s25 = smov [#allocation11]   ;;  %s86_s24 = int_to_ptr.hbm [resolvable:$true] %s85_s24 }
   0xd   :  { %s87_s26 = sshll.u32 %s10711_s25, 4  ;;  %s24_s28 = sshll.u32 %s13353_s0, 4  ;;  %s88_s26 = int_to_ptr.vmem [resolvable:$true] %s87_s26  ;;  %s25_s28 = int_to_ptr.hbm [resolvable:$true] %s24_s28 }
   0xe   :  { %s10712_s29 = smov 256   ;;  %s10713_s30 = smov 16  }
   0xf   :  { %93 = dma.hbm_to_vmem [thread:$0]  %s86_s24, 8192, %s88_s26, [#allocation12], %s10712_s29, %s10712_s29, %s10713_s30  }
  0x10   :  { %s10714_s10 = smov [#allocation2]   ;;  %s51_s14 = sshll.u32 %s13355_s2, 4  ;;  %s52_s14 = int_to_ptr.hbm [resolvable:$true] %s51_s14 }
  0x11   :  { %s26_s11 = sshll.u32 %s10714_s10, 4  ;;  %s75_s16 = sshll.u32 %s13357_s4, 4  ;;  %s27_s11 = int_to_ptr.vmem [resolvable:$true] %s26_s11  ;;  %s76_s16 = int_to_ptr.hbm [resolvable:$true] %s75_s16 }
  0x12   :  { %32 = dma.hbm_to_vmem [thread:$0]  %s25_s28, 2048, %s27_s11, [#allocation3], %s10706_s17, %s10706_s17, %s10707_s18  }
  0x13   :  { %s10715_s19 = smov [#allocation7]   ;;  %s10716_s0 = smov [#allocation10]  }
  0x14   :  { %s53_s20 = sshll.u32 %s10715_s19, 4  ;;  %s77_s21 = sshll.u32 %s10716_s0, 4  ;;  %s54_s20 = int_to_ptr.vmem [resolvable:$true] %s53_s20  ;;  %s78_s21 = int_to_ptr.vmem [resolvable:$true] %s77_s21 }
  0x15   :  { %56 = dma.hbm_to_vmem [thread:$0]  %s52_s14, 16, %s54_s20, [#allocation6]  }
  0x16   :  { %s99_s1 = sshll.u32 %s13359_s6, 4  ;;  %s109_s18 = sshll.u32 %s13360_s7, 4  ;;  %s100_s1 = int_to_ptr.hbm [resolvable:$true] %s99_s1  ;;  %s110_s18 = int_to_ptr.hbm [resolvable:$true] %s109_s18 }
  0x17   :  { %80 = dma.hbm_to_vmem [thread:$0]  %s76_s16, 32, %s78_s21, [#allocation9]  }
  0x18   :  { %s10717_s24 = smov [#allocation13]   ;;  %s10718_s25 = smov [#allocation14]  }
  0x19   :  { %s101_s4 = sshll.u32 %s10717_s24, 4  ;;  %s111_s26 = sshll.u32 %s10718_s25, 4  ;;  %s102_s4 = int_to_ptr.vmem [resolvable:$true] %s101_s4  ;;  %s112_s26 = int_to_ptr.vmem [resolvable:$true] %s111_s26 }
  0x1a   :  { %104 = dma.hbm_to_vmem [thread:$0]  %s100_s1, 64, %s102_s4, [#allocation12]  }
  0x1b   :  { %s10719_s27 = smov 448   ;;  %s10720_s3 = smov 28  }
  0x1c   :  { %117 = dma.hbm_to_vmem [thread:$0]  %s110_s18, 28672, %s112_s26, [#allocation15], %s10719_s27, %s10719_s27, %s10720_s3  }
  0x1d   :  { %10693 = dma.done.wait [#allocation3], 2048  }
  0x1e   :  { %10694 = vsyncadd [#allocation3], 4294965248 }
  0x1f   :  { %10695 = dma.done.wait [#allocation6], 1040  }
  0x20   :  { %10696 = vsyncadd [#allocation6], 4294966256 }
  0x21   :  { %10697 = dma.done.wait [#allocation9], 2080  }
  0x22   :  { %10698 = vsyncadd [#allocation9], 4294965216 }
  0x23   :  { %10699 = dma.done.wait [#allocation12], 8256  }
  0x24   :  { %10700 = vsyncadd [#allocation12], 4294959040 }
  0x25   :  { %10701 = dma.done.wait [#allocation15], 28672  }
  0x26   :  { %10702 = vsyncadd [#allocation15], 4294938624  ;;  %v9225_v0 = vld [vmem:[#allocation5 + $0x38] sm:$0xff]  ;;  %v9224_v1 = vld [vmem:[#allocation5 + $0x30] sm:$0xff]  ;;  %s7873_s22 = sshll.u32 %s13362_s9, 4  ;;  %s10722_s23 = smov 896   ;;  %s7874_s22 = int_to_ptr.hbm [resolvable:$true] %s7873_s22 }
  0x27   :  { %348 = vmatpush.bf16.msra.mxu0 %v9225_v0  ;;  %9530 = vmatpush.bf16.msra.mxu3 %v9225_v0  ;;  %v9223_v2 = vld [vmem:[#allocation5 + $0x28] sm:$0xff]  ;;  %v9222_v3 = vld [vmem:[#allocation5 + $0x20] sm:$0xff]  ;;  %v9221_v4 = vld [vmem:[#allocation5 + $0x18] sm:$0xff]  ;;  %s10723_s1 = smov 56  }
  0x28   :  { %v9220_v5 = vld [vmem:[#allocation5 + $0x10] sm:$0xff]  ;;  %v9219_v6 = vld [vmem:[#allocation5 + $0x8] sm:$0xff]  ;;  %v9218_v7 = vld [vmem:[#allocation5] sm:$0xff] }
  0x29   :  { %v9202_v8 = vld [vmem:[#allocation2] sm:$0xff]  ;;  %v9203_v10 = vld [vmem:[#allocation2 + $0x8] sm:$0xff]  ;;  %v9204_v12 = vld [vmem:[#allocation2 + $0x10] sm:$0xff] }
  0x2a   :  { %v9214_v9 = vld [vmem:[#allocation2 + $0x60] sm:$0xff]  ;;  %v9215_v11 = vld [vmem:[#allocation2 + $0x68] sm:$0xff]  ;;  %v9216_v13 = vld [vmem:[#allocation2 + $0x70] sm:$0xff] }
  0x2b   :  { %349 = vmatpush.bf16.msra.mxu0 %v9224_v1  ;;  %9531 = vmatpush.bf16.msra.mxu3 %v9224_v1  ;;  %v9205_v14 = vld [vmem:[#allocation2 + $0x18] sm:$0xff]  ;;  %v9206_v16 = vld [vmem:[#allocation2 + $0x20] sm:$0xff]  ;;  %v8044_v17 = vld [vmem:[#allocation8 + $0x70] sm:$0xf] }
  0x2c   :  { %v9217_v15 = vld [vmem:[#allocation2 + $0x78] sm:$0xff]  ;;  %v9207_v23 = vld [vmem:[#allocation2 + $0x28] sm:$0xff]  ;;  %v8036_v24 = vld [vmem:[#allocation8 + $0x60] sm:$0xf] }
  0x2d   :  { %v9241_v18 = vld [vmem:[#allocation8 + $0x74] sm:$0xf0]  ;;  %v9240_v19 = vld [vmem:[#allocation8 + $0x74] sm:$0xf]  ;;  %v8046_v21 = vld [vmem:[#allocation8 + $0x78] sm:$0xf0] }
  0x2e   :  { %v8045_v20 = vor.u32 %v9241_v18, %v8044_v17  ;;  %v10798_v22 = vor.u32 %v9240_v19, %v8046_v21  ;;  %v9239_v25 = vld [vmem:[#allocation8 + $0x64] sm:$0xf0]  ;;  %v9238_v26 = vld [vmem:[#allocation8 + $0x64] sm:$0xf]  ;;  %v8038_v28 = vld [vmem:[#allocation8 + $0x68] sm:$0xf0] }
  0x2f   :  { %350 = vmatpush.bf16.msra.mxu0 %v9223_v2  ;;  %9532 = vmatpush.bf16.msra.mxu3 %v9223_v2  ;;  %v8037_v27 = vor.u32 %v9239_v25, %v8036_v24  ;;  %v8028_v29 = vld [vmem:[#allocation8 + $0x50] sm:$0xf]  ;;  %v9237_v30 = vld [vmem:[#allocation8 + $0x54] sm:$0xf0]  ;;  %v8041_v31 = vor.u32 %v9238_v26, %v8038_v28  ;;  %v9236_v32 = vld [vmem:[#allocation8 + $0x54] sm:$0xf] }
  0x30   :  { %651 = vmatpush.bf16.msra.mxu1 %v8045_v20  ;;  %740 = vmatpush.bf16.msra.mxu2 %v10798_v22  ;;  %v8030_v33 = vld [vmem:[#allocation8 + $0x58] sm:$0xf0]  ;;  %v8029_v34 = vor.u32 %v9237_v30, %v8028_v29  ;;  %v8020_v36 = vld [vmem:[#allocation8 + $0x40] sm:$0xf]  ;;  %v9235_v37 = vld [vmem:[#allocation8 + $0x44] sm:$0xf0] }
  0x31   :  { %v10801_v35 = vor.u32 %v9236_v32, %v8030_v33  ;;  %v9234_v38 = vld [vmem:[#allocation8 + $0x44] sm:$0xf]  ;;  %v8022_v39 = vld [vmem:[#allocation8 + $0x48] sm:$0xf0]  ;;  %v8021_v40 = vor.u32 %v9235_v37, %v8020_v36  ;;  %v8012_v42 = vld [vmem:[#allocation8 + $0x30] sm:$0xf] }
  0x32   :  { %v8025_v41 = vor.u32 %v9234_v38, %v8022_v39  ;;  %v9233_v43 = vld [vmem:[#allocation8 + $0x34] sm:$0xf0]  ;;  %v9232_v44 = vld [vmem:[#allocation8 + $0x34] sm:$0xf]  ;;  %v8014_v47 = vld [vmem:[#allocation8 + $0x38] sm:$0xf0] }
  0x33   :  { %351 = vmatpush.bf16.msra.mxu0 %v9222_v3  ;;  %9533 = vmatpush.bf16.msra.mxu3 %v9222_v3  ;;  %v9208_v45 = vld [vmem:[#allocation2 + $0x30] sm:$0xff]  ;;  %v8013_v46 = vor.u32 %v9233_v43, %v8012_v42  ;;  %v8017_v48 = vor.u32 %v9232_v44, %v8014_v47  ;;  %v8004_v49 = vld [vmem:[#allocation8 + $0x20] sm:$0xf]  ;;  %v9231_v50 = vld [vmem:[#allocation8 + $0x24] sm:$0xf0] }
  0x34   :  { %652 = vmatpush.bf16.msra.mxu1 %v8037_v27  ;;  %741 = vmatpush.bf16.msra.mxu2 %v8041_v31  ;;  %v9230_v51 = vld [vmem:[#allocation8 + $0x24] sm:$0xf]  ;;  %v8005_v52 = vor.u32 %v9231_v50, %v8004_v49  ;;  %v8006_v53 = vld [vmem:[#allocation8 + $0x28] sm:$0xf0]  ;;  %v7996_v55 = vld [vmem:[#allocation8 + $0x10] sm:$0xf] }
  0x35   :  { %v8009_v54 = vor.u32 %v9230_v51, %v8006_v53  ;;  %v9229_v56 = vld [vmem:[#allocation8 + $0x14] sm:$0xf0]  ;;  %v9228_v57 = vld [vmem:[#allocation8 + $0x14] sm:$0xf]  ;;  %v7998_v59 = vld [vmem:[#allocation8 + $0x18] sm:$0xf0] }
  0x36   :  { %v7997_v58 = vor.u32 %v9229_v56, %v7996_v55  ;;  %v8001_v60 = vor.u32 %v9228_v57, %v7998_v59  ;;  %v7988_v61 = vld [vmem:[#allocation8] sm:$0xf]  ;;  %v9227_v62 = vld [vmem:[#allocation8 + $0x4] sm:$0xf0]  ;;  %v9226_v63 = vld [vmem:[#allocation8 + $0x4] sm:$0xf] }
  0x37   :  { %352 = vmatpush.bf16.msra.mxu0 %v9221_v4  ;;  %9534 = vmatpush.bf16.msra.mxu3 %v9221_v4  ;;  %v7989_v0 = vor.u32 %v9227_v62, %v7988_v61  ;;  %v7990_v1 = vld [vmem:[#allocation8 + $0x8] sm:$0xf0]  ;;  %v9209_v3 = vld [vmem:[#allocation2 + $0x38] sm:$0xff]  ;;  %v9302_v4 = vld [vmem:[#allocation11 + $0x1e4] sm:$0xf] }
  0x38   :  { %653 = vmatpush.bf16.msra.mxu1 %v8029_v34  ;;  %742 = vmatpush.bf16.msra.mxu2 %v10801_v35  ;;  %v7993_v2 = vor.u32 %v9226_v63, %v7990_v1  ;;  %v8278_v25 = vld [vmem:[#allocation11 + $0x1d0] sm:$0xf0]  ;;  %v8276_v26 = vld [vmem:[#allocation11 + $0x1c0] sm:$0xf]  ;;  %v9266_v32 = vld [vmem:[#allocation11 + $0xc4] sm:$0xf] }
  0x39   :  { %v8150_v33 = vld [vmem:[#allocation11 + $0xd0] sm:$0xf0]  ;;  %v9211_v38 = vld [vmem:[#allocation2 + $0x48] sm:$0xff]  ;;  %v9212_v57 = vld [vmem:[#allocation2 + $0x50] sm:$0xff] }
  0x3a   :  { %v8153_v36 = vor.u32 %v9266_v32, %v8150_v33  ;;  %v9294_v62 = vld [vmem:[#allocation11 + $0x1a4] sm:$0xf]  ;;  %v8260_v1 = vld [vmem:[#allocation11 + $0x1a0] sm:$0xf] }
  0x3b   :  { %353 = vmatpush.bf16.msra.mxu0 %v9220_v5  ;;  %9535 = vmatpush.bf16.msra.mxu3 %v9220_v5  ;;  %v8294_v5 = vld [vmem:[#allocation11 + $0x1f0] sm:$0xf0] }
  0x3c   :  { %654 = vmatpush.bf16.msra.mxu1 %v8021_v40  ;;  %743 = vmatpush.bf16.msra.mxu2 %v8025_v41 }
  0x3f   :  { %354 = vmatpush.bf16.msra.mxu0 %v9219_v6  ;;  %9536 = vmatpush.bf16.msra.mxu3 %v9219_v6  ;;  %v8292_v6 = vld [vmem:[#allocation11 + $0x1e0] sm:$0xf] }
  0x40   :  { %655 = vmatpush.bf16.msra.mxu1 %v8013_v46  ;;  %744 = vmatpush.bf16.msra.mxu2 %v8017_v48 }
  0x43   :  { %355 = vmatpush.bf16.msra.mxu0 %v9218_v7  ;;  %9537 = vmatpush.bf16.msra.mxu3 %v9218_v7  ;;  %v8297_v7 = vor.u32 %v9302_v4, %v8294_v5 }
  0x44   :  { %656 = vmatpush.bf16.msra.mxu1 %v8005_v52  ;;  %745 = vmatpush.bf16.msra.mxu2 %v8009_v54 }
  0x46   :  { %356 = vmatmul.bf16.vlgmr.msra.gmra.mxu0 %v9202_v8  ;;  %416 = vmatmul.bf16.vlgmr.msra.gmra.mxu3 %v9214_v9  ;;  %v9304_v8 = vld [vmem:[#allocation11 + $0x1ec] sm:$0xf0]  ;;  %v9270_v9 = vld [vmem:[#allocation11 + $0xe4] sm:$0xf] }
  0x47   :  { %9538 = vmatpush.bf16.msrb.mxu3 %v8045_v20 }
  0x48   :  { %657 = vmatpush.bf16.msra.mxu1 %v7997_v58  ;;  %746 = vmatpush.bf16.msra.mxu2 %v8001_v60 }
  0x4b   :  { %9539 = vmatpush.bf16.msrb.mxu3 %v8037_v27  ;;  %v9300_v27 = vld [vmem:[#allocation11 + $0x1cc] sm:$0xf0] }
  0x4c   :  { %658 = vmatpush.bf16.msra.mxu1 %v7989_v0  ;;  %747 = vmatpush.bf16.msra.mxu2 %v7993_v2 }
  0x4f   :  { %9540 = vmatpush.bf16.msrb.mxu3 %v8029_v34 }
  0x50   :  { %1714 = vmatpush.bf16.msrb.mxu2 %v8297_v7  ;;  %v8134_v7 = vld [vmem:[#allocation11 + $0xb0] sm:$0xf0] }
  0x53   :  { %9541 = vmatpush.bf16.msrb.mxu3 %v8021_v40 }
  0x56   :  { %361 = vmatmul.bf16.gmra.mxu0 %v9203_v10  ;;  %421 = vmatmul.bf16.gmra.mxu3 %v9215_v11  ;;  %v8166_v10 = vld [vmem:[#allocation11 + $0xf0] sm:$0xf0]  ;;  %v8293_v11 = vor.u32 %v9304_v8, %v8292_v6  ;;  %v9262_v6 = vld [vmem:[#allocation11 + $0xa4] sm:$0xf] }
  0x57   :  { %9542 = vmatpush.bf16.msrb.mxu3 %v8013_v46 }
  0x58   :  { %1536 = vmatpush.bf16.msrb.mxu0 %v8293_v11 }
  0x5b   :  { %9543 = vmatpush.bf16.msrb.mxu3 %v8005_v52 }
  0x5f   :  { %9544 = vmatpush.bf16.msrb.mxu3 %v7997_v58 }
  0x63   :  { %9545 = vmatpush.bf16.msrb.mxu3 %v7989_v0  ;;  %v8262_v0 = vld [vmem:[#allocation11 + $0x1b0] sm:$0xf0] }
  0x64   :  { %v8265_v4 = vor.u32 %v9294_v62, %v8262_v0 }
  0x66   :  { %366 = vmatmul.bf16.gmra.mxu0 %v9204_v12  ;;  %426 = vmatmul.bf16.gmra.mxu3 %v9216_v13  ;;  %v8169_v12 = vor.u32 %v9270_v9, %v8166_v10  ;;  %v9210_v13 = vld [vmem:[#allocation2 + $0x40] sm:$0xff]  ;;  %v8137_v9 = vor.u32 %v9262_v6, %v8134_v7 }
  0x67   :  { %9546 = vmatpush.bf16.msra.mxu3 %v10798_v22 }
  0x68   :  { %1625 = vmatpush.bf16.msrb.mxu1 %v8169_v12 }
  0x6b   :  { %9547 = vmatpush.bf16.msra.mxu3 %v8041_v31  ;;  %v8277_v31 = vor.u32 %v9300_v27, %v8276_v26 }
  0x6c   :  { %1626 = vmatpush.bf16.msrb.mxu1 %v8153_v36 }
  0x6d   :  { %1537 = vmatpush.bf16.msrb.mxu0 %v8277_v31 }
  0x6f   :  { %9548 = vmatpush.bf16.msra.mxu3 %v10801_v35 }
  0x70   :  { %1627 = vmatpush.bf16.msrb.mxu1 %v8137_v9  ;;  %v9254_v9 = vld [vmem:[#allocation11 + $0x64] sm:$0xf] }
  0x73   :  { %9549 = vmatpush.bf16.msra.mxu3 %v8025_v41 }
  0x76   :  { %371 = vmatmul.bf16.gmra.mxu0 %v9205_v14  ;;  %431 = vmatmul.bf16.gmra.mxu3 %v9217_v15  ;;  %v10806_v14 = vld [vmem:[#allocation7] ss:$0 sm:$0xff] }
  0x77   :  { %9550 = vmatpush.bf16.msra.mxu3 %v8017_v48 }
  0x7b   :  { %9551 = vmatpush.bf16.msra.mxu3 %v8009_v54 }
  0x7f   :  { %9552 = vmatpush.bf16.msra.mxu3 %v8001_v60 }
  0x83   :  { %9553 = vmatpush.bf16.msra.mxu3 %v7993_v2  ;;  %v9296_v2 = vld [vmem:[#allocation11 + $0x1ac] sm:$0xf0] }
  0x84   :  { %v8261_v5 = vor.u32 %v9296_v2, %v8260_v1  ;;  %v9286_v2 = vld [vmem:[#allocation11 + $0x164] sm:$0xf] }
  0x86   :  { %376 = vmatmul.bf16.gmra.mxu0 %v9206_v16 }
  0x87   :  { %1538 = vmatpush.bf16.msrb.mxu0 %v8261_v5  ;;  %v9288_v5 = vld [vmem:[#allocation11 + $0x16c] sm:$0xf0] }
  0x96   :  { %381 = vmatmul.bf16.gmra.mxu0 %v9207_v23  ;;  %v9298_v23 = vld [vmem:[#allocation11 + $0x1c4] sm:$0xf] }
  0x97   :  { %v8281_v30 = vor.u32 %v9298_v23, %v8278_v25 }
  0x99   :  { %1715 = vmatpush.bf16.msrb.mxu2 %v8281_v30 }
  0x9d   :  { %1716 = vmatpush.bf16.msrb.mxu2 %v8265_v4  ;;  %v8228_v4 = vld [vmem:[#allocation11 + $0x160] sm:$0xf] }
  0xa6   :  { %386 = vmatmul.bf16.gmra.mxu0 %v9208_v45 }
  0xb6   :  { %391 = vmatmul.bf16.gmra.mxu0 %v9209_v3 }
  0xc3   :  { %v357_v15 = vpop.f32.mrf.mxu0 }
  0xc4   :  { %v358_v16 = vadd.f32 %v10806_v14, %v357_v15 }
  0xc6   :  { %396 = vmatmul.bf16.gmra.mxu0 %v9210_v13  ;;  %v469_v18 = vmul.f32 0.2, %v358_v16  ;;  %vm437_vm0 = vcmp.gt.f32.partialorder %v358_v16, 0.0 }
  0xc8   :  { %v501_v24 = vsel %vm437_vm0, %v358_v16, %v469_v18 }
  0xc9   :  { %v417_v17 = vpop.f32.mrf.mxu3 }
  0xca   :  { %v418_v20 = vadd.f32 %v10806_v14, %v417_v17 }
  0xcb   :  { %v359_v19 = vpop.f32.mrf.mxu0 }
  0xcc   :  { %v360_v21 = vadd.f32 %v10806_v14, %v359_v19  ;;  %v493_v28 = vmul.f32 0.2, %v418_v20  ;;  %vm461_vm2 = vcmp.gt.f32.partialorder %v418_v20, 0.0 }
  0xce   :  { %v470_v22 = vmul.f32 0.2, %v360_v21  ;;  %vm438_vm1 = vcmp.gt.f32.partialorder %v360_v21, 0.0  ;;  %v525_v41 = vsel %vm461_vm2, %v418_v20, %v493_v28 }
  0xd0   :  { %v502_v29 = vsel %vm438_vm1, %v360_v21, %v470_v22  ;;  %v9213_v22 = vld [vmem:[#allocation2 + $0x58] sm:$0xff] }
  0xd1   :  { %v419_v34 = vpop.f32.mrf.mxu3  ;;  %v533_v35 = vpack.c.bf16 %v502_v29, %v501_v24 }
  0xd2   :  { %v420_v37 = vadd.f32 %v10806_v14, %v419_v34 }
  0xd3   :  { %v362_v39 = vpop.f32.mrf.mxu0  ;;  %659 = vmatmul.bf16.vlgmr.msra.gmra.mxu1 %v533_v35  ;;  %748 = vmatmul.bf16.vlgmr.msra.gmra.mxu2 %v533_v35  ;;  %v9290_v35 = vld [vmem:[#allocation11 + $0x184] sm:$0xf] }
  0xd4   :  { %vm462_vm3 = vcmp.gt.f32.partialorder %v420_v37, 0.0  ;;  %v494_v40 = vmul.f32 0.2, %v420_v37  ;;  %v363_v44 = vadd.f32 %v10806_v14, %v362_v39  ;;  %v9292_v39 = vld [vmem:[#allocation11 + $0x18c] sm:$0xf0] }
  0xd6   :  { %401 = vmatmul.bf16.gmra.mxu0 %v9211_v38  ;;  %v526_v42 = vsel %vm462_vm3, %v420_v37, %v494_v40  ;;  %v471_v47 = vmul.f32 0.2, %v363_v44  ;;  %vm439_vm4 = vcmp.gt.f32.partialorder %v363_v44, 0.0  ;;  %v8246_v37 = vld [vmem:[#allocation11 + $0x190] sm:$0xf0] }
  0xd7   :  { %v10812_v43 = vpack.c.bf16 %v526_v42, %v525_v41  ;;  %v8244_v38 = vld [vmem:[#allocation11 + $0x180] sm:$0xf]  ;;  %v8249_v42 = vor.u32 %v9290_v35, %v8246_v37 }
  0xd8   :  { %v503_v52 = vsel %vm439_vm4, %v363_v44, %v471_v47  ;;  %v8245_v44 = vor.u32 %v9292_v39, %v8244_v38  ;;  %v9282_v38 = vld [vmem:[#allocation11 + $0x144] sm:$0xf]  ;;  %v8214_v39 = vld [vmem:[#allocation11 + $0x150] sm:$0xf0] }
  0xd9   :  { %v422_v45 = vpop.f32.mrf.mxu3  ;;  %719 = vmatmul.bf16.vlgmr.msrb.gmra.mxu3 %v10812_v43  ;;  %1717 = vmatpush.bf16.msrb.mxu2 %v8249_v42 }
  0xda   :  { %v423_v48 = vadd.f32 %v10806_v14, %v422_v45  ;;  %v9258_v45 = vld [vmem:[#allocation11 + $0x84] sm:$0xf]  ;;  %1539 = vmatpush.bf16.msrb.mxu0 %v8245_v44 }
  0xdb   :  { %v364_v46 = vpop.f32.mrf.mxu0 }
  0xdc   :  { %v365_v49 = vadd.f32 %v10806_v14, %v364_v46  ;;  %v495_v51 = vmul.f32 0.2, %v423_v48  ;;  %vm463_vm6 = vcmp.gt.f32.partialorder %v423_v48, 0.0  ;;  %v8118_v46 = vld [vmem:[#allocation11 + $0x90] sm:$0xf0] }
  0xde   :  { %v472_v50 = vmul.f32 0.2, %v365_v49  ;;  %vm440_vm5 = vcmp.gt.f32.partialorder %v365_v49, 0.0  ;;  %v527_v60 = vsel %vm463_vm6, %v423_v48, %v495_v51 }
  0xe0   :  { %v504_v53 = vsel %vm440_vm5, %v365_v49, %v472_v50  ;;  %v8121_v49 = vor.u32 %v9258_v45, %v8118_v46  ;;  %v8217_v45 = vor.u32 %v9282_v38, %v8214_v39  ;;  %v9250_v46 = vld [vmem:[#allocation11 + $0x44] sm:$0xf] }
  0xe1   :  { %v424_v54 = vpop.f32.mrf.mxu3  ;;  %v534_v55 = vpack.c.bf16 %v504_v53, %v503_v52 }
  0xe2   :  { %v425_v56 = vadd.f32 %v10806_v14, %v424_v54  ;;  %1628 = vmatpush.bf16.msrb.mxu1 %v8121_v49 }
  0xe3   :  { %v367_v58 = vpop.f32.mrf.mxu0  ;;  %664 = vmatmul.bf16.gmra.mxu1 %v534_v55  ;;  %753 = vmatmul.bf16.gmra.mxu2 %v534_v55 }
  0xe4   :  { %v496_v59 = vmul.f32 0.2, %v425_v56  ;;  %vm464_vm7 = vcmp.gt.f32.partialorder %v425_v56, 0.0  ;;  %v368_v3 = vadd.f32 %v10806_v14, %v367_v58 }
  0xe6   :  { %406 = vmatmul.bf16.gmra.mxu0 %v9212_v57  ;;  %v528_v61 = vsel %vm464_vm7, %v425_v56, %v496_v59  ;;  %v473_v11 = vmul.f32 0.2, %v368_v3  ;;  %vm441_vm8 = vcmp.gt.f32.partialorder %v368_v3, 0.0 }
  0xe7   :  { %v10819_v63 = vpack.c.bf16 %v528_v61, %v527_v60 }
  0xe8   :  { %v505_v17 = vsel %vm441_vm8, %v368_v3, %v473_v11  ;;  %v8230_v3 = vld [vmem:[#allocation11 + $0x170] sm:$0xf0] }
  0xe9   :  { %v427_v8 = vpop.f32.mrf.mxu3  ;;  %724 = vmatmul.bf16.gmra.mxu3 %v10819_v63  ;;  %v8233_v7 = vor.u32 %v9286_v2, %v8230_v3 }
  0xea   :  { %v428_v12 = vadd.f32 %v10806_v14, %v427_v8  ;;  %v8229_v8 = vor.u32 %v9288_v5, %v8228_v4  ;;  %v8196_v5 = vld [vmem:[#allocation11 + $0x120] sm:$0xf] }
  0xeb   :  { %v369_v10 = vpop.f32.mrf.mxu0  ;;  %1718 = vmatpush.bf16.msrb.mxu2 %v8233_v7 }
  0xec   :  { %v370_v13 = vadd.f32 %v10806_v14, %v369_v10  ;;  %v497_v16 = vmul.f32 0.2, %v428_v12  ;;  %vm465_vm10 = vcmp.gt.f32.partialorder %v428_v12, 0.0  ;;  %v8102_v10 = vld [vmem:[#allocation11 + $0x70] sm:$0xf0]  ;;  %1540 = vmatpush.bf16.msrb.mxu0 %v8229_v8 }
  0xed   :  { %v8105_v11 = vor.u32 %v9254_v9, %v8102_v10 }
  0xee   :  { %v474_v15 = vmul.f32 0.2, %v370_v13  ;;  %vm442_vm9 = vcmp.gt.f32.partialorder %v370_v13, 0.0  ;;  %v529_v25 = vsel %vm465_vm10, %v428_v12, %v497_v16 }
  0xef   :  { %1629 = vmatpush.bf16.msrb.mxu1 %v8105_v11  ;;  %1719 = vmatpush.bf16.msrb.mxu2 %v8217_v45 }
  0xf0   :  { %v506_v18 = vsel %vm442_vm9, %v370_v13, %v474_v15 }
  0xf1   :  { %v429_v19 = vpop.f32.mrf.mxu3  ;;  %v535_v20 = vpack.c.bf16 %v506_v18, %v505_v17  ;;  %v8164_v17 = vld [vmem:[#allocation11 + $0xe0] sm:$0xf]  ;;  %v9272_v18 = vld [vmem:[#allocation11 + $0xec] sm:$0xf0] }
  0xf2   :  { %v430_v21 = vadd.f32 %v10806_v14, %v429_v19 }
  0xf3   :  { %v372_v23 = vpop.f32.mrf.mxu0  ;;  %669 = vmatmul.bf16.gmra.mxu1 %v535_v20  ;;  %758 = vmatmul.bf16.gmra.mxu2 %v535_v20 }
  0xf4   :  { %v498_v24 = vmul.f32 0.2, %v430_v21  ;;  %vm466_vm11 = vcmp.gt.f32.partialorder %v430_v21, 0.0  ;;  %v373_v27 = vadd.f32 %v10806_v14, %v372_v23  ;;  %v8148_v23 = vld [vmem:[#allocation11 + $0xc0] sm:$0xf] }
  0xf6   :  { %411 = vmatmul.bf16.gmra.mxu0 %v9213_v22  ;;  %v530_v26 = vsel %vm466_vm11, %v430_v21, %v498_v24  ;;  %v475_v30 = vmul.f32 0.2, %v373_v27  ;;  %vm443_vm12 = vcmp.gt.f32.partialorder %v373_v27, 0.0  ;;  %v8165_v21 = vor.u32 %v9272_v18, %v8164_v17  ;;  %v8198_v17 = vld [vmem:[#allocation11 + $0x130] sm:$0xf0] }
  0xf7   :  { %v10827_v28 = vpack.c.bf16 %v530_v26, %v529_v25  ;;  %v8132_v26 = vld [vmem:[#allocation11 + $0xa0] sm:$0xf] }
  0xf8   :  { %v507_v36 = vsel %vm443_vm12, %v373_v27, %v475_v30  ;;  %1447 = vmatpush.bf16.msrb.mxu3 %v8165_v21  ;;  %v9264_v27 = vld [vmem:[#allocation11 + $0xac] sm:$0xf0]  ;;  %v9246_v21 = vld [vmem:[#allocation11 + $0x24] sm:$0xf] }
  0xf9   :  { %v432_v29 = vpop.f32.mrf.mxu3  ;;  %729 = vmatmul.bf16.gmra.mxu3 %v10827_v28  ;;  %v8133_v30 = vor.u32 %v9264_v27, %v8132_v26  ;;  %v565_v26 = vld [vmem:[#allocation10] sm:$0x3] }
  0xfa   :  { %v433_v32 = vadd.f32 %v10806_v14, %v432_v29 }
  0xfb   :  { %v374_v31 = vpop.f32.mrf.mxu0 }
  0xfc   :  { %v375_v33 = vadd.f32 %v10806_v14, %v374_v31  ;;  %v499_v40 = vmul.f32 0.2, %v433_v32  ;;  %vm467_vm14 = vcmp.gt.f32.partialorder %v433_v32, 0.0  ;;  %v8116_v31 = vld [vmem:[#allocation11 + $0x80] sm:$0xf] }
  0xfe   :  { %v476_v34 = vmul.f32 0.2, %v375_v33  ;;  %vm444_vm13 = vcmp.gt.f32.partialorder %v375_v33, 0.0  ;;  %v531_v53 = vsel %vm467_vm14, %v433_v32, %v499_v40  ;;  %v9260_v32 = vld [vmem:[#allocation11 + $0x8c] sm:$0xf0] }
  0xff   :  { %v8212_v40 = vld [vmem:[#allocation11 + $0x140] sm:$0xf] }
 0x100   :  { %v508_v41 = vsel %vm444_vm13, %v375_v33, %v476_v34  ;;  %v8117_v34 = vor.u32 %v9260_v32, %v8116_v31  ;;  %v10850_v31 = vperm.slane %v565_v26, 0 }
 0x101   :  { %v434_v47 = vpop.f32.mrf.mxu3  ;;  %v536_v48 = vpack.c.bf16 %v508_v41, %v507_v36  ;;  %v9284_v41 = vld [vmem:[#allocation11 + $0x14c] sm:$0xf0] }
 0x102   :  { %v435_v50 = vadd.f32 %v10806_v14, %v434_v47  ;;  %v8086_v47 = vld [vmem:[#allocation11 + $0x50] sm:$0xf0] }
 0x103   :  { %v377_v51 = vpop.f32.mrf.mxu0  ;;  %674 = vmatmul.bf16.gmra.mxu1 %v536_v48  ;;  %763 = vmatmul.bf16.gmra.mxu2 %v536_v48  ;;  %v8089_v49 = vor.u32 %v9250_v46, %v8086_v47 }
 0x104   :  { %v500_v52 = vmul.f32 0.2, %v435_v50  ;;  %vm468_vm15 = vcmp.gt.f32.partialorder %v435_v50, 0.0  ;;  %v378_v56 = vadd.f32 %v10806_v14, %v377_v51  ;;  %v9256_v51 = vld [vmem:[#allocation11 + $0x6c] sm:$0xf0] }
 0x105   :  { %1630 = vmatpush.bf16.msrb.mxu1 %v8089_v49 }
 0x106   :  { %v532_v54 = vsel %vm468_vm15, %v435_v50, %v500_v52  ;;  %v477_v58 = vmul.f32 0.2, %v378_v56  ;;  %vm445_vm0 = vcmp.gt.f32.partialorder %v378_v56, 0.0  ;;  %v8100_v50 = vld [vmem:[#allocation11 + $0x60] sm:$0xf] }
 0x107   :  { %v10833_v55 = vpack.c.bf16 %v532_v54, %v531_v53  ;;  %v8101_v52 = vor.u32 %v9256_v51, %v8100_v50  ;;  %v8084_v53 = vld [vmem:[#allocation11 + $0x40] sm:$0xf]  ;;  %v9252_v54 = vld [vmem:[#allocation11 + $0x4c] sm:$0xf0]  ;;  %v9274_v51 = vld [vmem:[#allocation11 + $0x104] sm:$0xf] }
 0x108   :  { %v509_v61 = vsel %vm445_vm0, %v378_v56, %v477_v58  ;;  %v8068_v58 = vld [vmem:[#allocation11 + $0x20] sm:$0xf] }
 0x109   :  { %734 = vmatmul.bf16.gmra.mxu3 %v10833_v55 }
 0x10b   :  { %v379_v57 = vpop.f32.mrf.mxu0 }
 0x10c   :  { %v380_v59 = vadd.f32 %v10806_v14, %v379_v57  ;;  %v8085_v57 = vor.u32 %v9252_v54, %v8084_v53 }
 0x10e   :  { %v478_v60 = vmul.f32 0.2, %v380_v59  ;;  %vm446_vm1 = vcmp.gt.f32.partialorder %v380_v59, 0.0 }
 0x110   :  { %v510_v62 = vsel %vm446_vm1, %v380_v59, %v478_v60  ;;  %v9248_v59 = vld [vmem:[#allocation11 + $0x2c] sm:$0xf0] }
 0x111   :  { %v537_v0 = vpack.c.bf16 %v510_v62, %v509_v61  ;;  %v8069_v61 = vor.u32 %v9248_v59, %v8068_v58  ;;  %v8052_v62 = vld [vmem:[#allocation11] sm:$0xf] }
 0x113   :  { %v382_v1 = vpop.f32.mrf.mxu0  ;;  %679 = vmatmul.bf16.gmra.mxu1 %v537_v0  ;;  %768 = vmatmul.bf16.gmra.mxu2 %v537_v0  ;;  %v9244_v0 = vld [vmem:[#allocation11 + $0xc] sm:$0xf0] }
 0x114   :  { %v383_v6 = vadd.f32 %v10806_v14, %v382_v1  ;;  %v8053_v4 = vor.u32 %v9244_v0, %v8052_v62 }
 0x116   :  { %v479_v13 = vmul.f32 0.2, %v383_v6  ;;  %vm447_vm2 = vcmp.gt.f32.partialorder %v383_v6, 0.0 }
 0x118   :  { %v511_v19 = vsel %vm447_vm2, %v383_v6, %v479_v13  ;;  %v9280_v6 = vld [vmem:[#allocation11 + $0x12c] sm:$0xf0] }
 0x119   :  { %808 = vmatmul.bf16.vlgmr.msra.gmra.mxu3 %v10812_v43  ;;  %v9268_v43 = vld [vmem:[#allocation11 + $0xcc] sm:$0xf0]  ;;  %v8197_v7 = vor.u32 %v9280_v6, %v8196_v5  ;;  %v9242_v6 = vld [vmem:[#allocation11 + $0x4] sm:$0xf] }
 0x11a   :  { %v8149_v25 = vor.u32 %v9268_v43, %v8148_v23 }
 0x11b   :  { %v384_v12 = vpop.f32.mrf.mxu0 }
 0x11c   :  { %v385_v15 = vadd.f32 %v10806_v14, %v384_v12  ;;  %1448 = vmatpush.bf16.msrb.mxu3 %v8149_v25  ;;  %v9276_v12 = vld [vmem:[#allocation11 + $0x10c] sm:$0xf0] }
 0x11e   :  { %v480_v16 = vmul.f32 0.2, %v385_v15  ;;  %vm448_vm3 = vcmp.gt.f32.partialorder %v385_v15, 0.0 }
 0x120   :  { %v512_v20 = vsel %vm448_vm3, %v385_v15, %v480_v16  ;;  %1449 = vmatpush.bf16.msrb.mxu3 %v8133_v30  ;;  %v9278_v16 = vld [vmem:[#allocation11 + $0x124] sm:$0xf] }
 0x121   :  { %v538_v22 = vpack.c.bf16 %v512_v20, %v511_v19  ;;  %v8201_v19 = vor.u32 %v9278_v16, %v8198_v17 }
 0x123   :  { %v387_v24 = vpop.f32.mrf.mxu0  ;;  %684 = vmatmul.bf16.gmra.mxu1 %v538_v22  ;;  %773 = vmatmul.bf16.gmra.mxu2 %v538_v22  ;;  %v8070_v22 = vld [vmem:[#allocation11 + $0x30] sm:$0xf0] }
 0x124   :  { %v388_v29 = vadd.f32 %v10806_v14, %v387_v24  ;;  %1450 = vmatpush.bf16.msrb.mxu3 %v8117_v34  ;;  %1720 = vmatpush.bf16.msrb.mxu2 %v8201_v19  ;;  %v8073_v24 = vor.u32 %v9246_v21, %v8070_v22 }
 0x126   :  { %v481_v35 = vmul.f32 0.2, %v388_v29  ;;  %vm449_vm4 = vcmp.gt.f32.partialorder %v388_v29, 0.0  ;;  %1631 = vmatpush.bf16.msrb.mxu1 %v8073_v24 }
 0x128   :  { %v513_v42 = vsel %vm449_vm4, %v388_v29, %v481_v35  ;;  %1451 = vmatpush.bf16.msrb.mxu3 %v8101_v52  ;;  %v10853_v35 = vperm.slane %v565_v26, 1 }
 0x129   :  { %813 = vmatmul.bf16.gmra.mxu3 %v10819_v63  ;;  %v8213_v63 = vor.u32 %v9284_v41, %v8212_v40 }
 0x12b   :  { %v389_v33 = vpop.f32.mrf.mxu0  ;;  %1541 = vmatpush.bf16.msrb.mxu0 %v8213_v63 }
 0x12c   :  { %v390_v36 = vadd.f32 %v10806_v14, %v389_v33  ;;  %1452 = vmatpush.bf16.msrb.mxu3 %v8085_v57 }
 0x12e   :  { %v482_v37 = vmul.f32 0.2, %v390_v36  ;;  %vm450_vm5 = vcmp.gt.f32.partialorder %v390_v36, 0.0 }
 0x12f   :  { %1542 = vmatpush.bf16.msrb.mxu0 %v8197_v7  ;;  %v8054_v7 = vld [vmem:[#allocation11 + $0x10] sm:$0xf0] }
 0x130   :  { %v514_v44 = vsel %vm450_vm5, %v390_v36, %v482_v37  ;;  %1453 = vmatpush.bf16.msrb.mxu3 %v8069_v61 }
 0x131   :  { %v539_v48 = vpack.c.bf16 %v514_v44, %v513_v42 }
 0x133   :  { %v392_v56 = vpop.f32.mrf.mxu0  ;;  %689 = vmatmul.bf16.gmra.mxu1 %v539_v48  ;;  %778 = vmatmul.bf16.gmra.mxu2 %v539_v48 }
 0x134   :  { %v393_v60 = vadd.f32 %v10806_v14, %v392_v56  ;;  %1454 = vmatpush.bf16.msrb.mxu3 %v8053_v4  ;;  %v8182_v56 = vld [vmem:[#allocation11 + $0x110] sm:$0xf0] }
 0x135   :  { %v8185_v59 = vor.u32 %v9274_v51, %v8182_v56 }
 0x136   :  { %v483_v2 = vmul.f32 0.2, %v393_v60  ;;  %vm451_vm6 = vcmp.gt.f32.partialorder %v393_v60, 0.0 }
 0x137   :  { %1721 = vmatpush.bf16.msrb.mxu2 %v8185_v59 }
 0x138   :  { %v515_v9 = vsel %vm451_vm6, %v393_v60, %v483_v2 }
 0x139   :  { %818 = vmatmul.bf16.gmra.mxu3 %v10827_v28  ;;  %v8180_v28 = vld [vmem:[#allocation11 + $0x100] sm:$0xf] }
 0x13a   :  { %v8181_v13 = vor.u32 %v9276_v12, %v8180_v28 }
 0x13b   :  { %v394_v1 = vpop.f32.mrf.mxu0 }
 0x13c   :  { %v395_v3 = vadd.f32 %v10806_v14, %v394_v1  ;;  %1543 = vmatpush.bf16.msrb.mxu0 %v8181_v13 }
 0x13e   :  { %v484_v8 = vmul.f32 0.2, %v395_v3  ;;  %vm452_vm7 = vcmp.gt.f32.partialorder %v395_v3, 0.0 }
 0x140   :  { %v516_v10 = vsel %vm452_vm7, %v395_v3, %v484_v8 }
 0x141   :  { %v540_v11 = vpack.c.bf16 %v516_v10, %v515_v9  ;;  %v8057_v10 = vor.u32 %v9242_v6, %v8054_v7 }
 0x143   :  { %v397_v15 = vpop.f32.mrf.mxu0  ;;  %694 = vmatmul.bf16.gmra.mxu1 %v540_v11  ;;  %783 = vmatmul.bf16.gmra.mxu2 %v540_v11 }
 0x144   :  { %v398_v18 = vadd.f32 %v10806_v14, %v397_v15  ;;  %1632 = vmatpush.bf16.msrb.mxu1 %v8057_v10 }
 0x146   :  { %v485_v23 = vmul.f32 0.2, %v398_v18  ;;  %vm453_vm8 = vcmp.gt.f32.partialorder %v398_v18, 0.0 }
 0x148   :  { %v517_v29 = vsel %vm453_vm8, %v398_v18, %v485_v23 }
 0x149   :  { %823 = vmatmul.bf16.gmra.mxu3 %v10833_v55 }
 0x14b   :  { %v399_v20 = vpop.f32.mrf.mxu0 }
 0x14c   :  { %v400_v43 = vadd.f32 %v10806_v14, %v399_v20 }
 0x14e   :  { %v486_v25 = vmul.f32 0.2, %v400_v43  ;;  %vm454_vm9 = vcmp.gt.f32.partialorder %v400_v43, 0.0 }
 0x150   :  { %v660_v27 = vpop.f32.mrf.mxu1  ;;  %v518_v30 = vsel %vm454_vm9, %v400_v43, %v486_v25 }
 0x151   :  { %v541_v32 = vpack.c.bf16 %v518_v30, %v517_v29  ;;  %v661_v33 = vadd.f32 %v660_v27, %v10850_v31 }
 0x153   :  { %v402_v55 = vpop.f32.mrf.mxu0  ;;  %699 = vmatmul.bf16.gmra.mxu1 %v541_v32  ;;  %788 = vmatmul.bf16.gmra.mxu2 %v541_v32  ;;  %v893_v37 = vmul.f32 0.2, %v661_v33  ;;  %vm829_vm10 = vcmp.gt.f32.partialorder %v661_v33, 0.0 }
 0x154   :  { %v403_v38 = vadd.f32 %v10806_v14, %v402_v55 }
 0x155   :  { %v957_v63 = vsel %vm829_vm10, %v661_v33, %v893_v37 }
 0x156   :  { %v749_v34 = vpop.f32.mrf.mxu2  ;;  %v487_v46 = vmul.f32 0.2, %v403_v38  ;;  %vm455_vm12 = vcmp.gt.f32.partialorder %v403_v38, 0.0 }
 0x157   :  { %v750_v40 = vadd.f32 %v749_v34, %v10853_v35 }
 0x158   :  { %v662_v36 = vpop.f32.mrf.mxu1  ;;  %v519_v61 = vsel %vm455_vm12, %v403_v38, %v487_v46 }
 0x159   :  { %v663_v39 = vadd.f32 %v662_v36, %v10850_v31  ;;  %v894_v52 = vmul.f32 0.2, %v750_v40  ;;  %vm830_vm14 = vcmp.gt.f32.partialorder %v750_v40, 0.0 }
 0x15b   :  { %vm831_vm11 = vcmp.gt.f32.partialorder %v663_v39, 0.0  ;;  %v895_v41 = vmul.f32 0.2, %v663_v39  ;;  %v404_v42 = vpop.f32.mrf.mxu0  ;;  %v958_v0 = vsel %vm830_vm14, %v750_v40, %v894_v52  ;;  %v9303_v52 = vld [vmem:[#allocation11 + $0x1ec] sm:$0xf] }
 0x15c   :  { %v405_v44 = vadd.f32 %v10806_v14, %v404_v42  ;;  %v720_v45 = vpop.f32.mrf.mxu3 }
 0x15d   :  { %v959_v47 = vsel %vm831_vm11, %v663_v39, %v895_v41  ;;  %v721_v53 = vadd.f32 %v720_v45, %v10850_v31  ;;  %v8172_v39 = vld [vmem:[#allocation11 + $0xe8] sm:$0xf]  ;;  %v9273_v41 = vld [vmem:[#allocation11 + $0xf4] sm:$0xf0] }
 0x15e   :  { %v10859_v48 = vpack.c.bf16 %v959_v47, %v957_v63  ;;  %v488_v49 = vmul.f32 0.2, %v405_v44  ;;  %v751_v50 = vpop.f32.mrf.mxu2  ;;  %vm456_vm13 = vcmp.gt.f32.partialorder %v405_v44, 0.0  ;;  %v8173_v46 = vor.u32 %v9273_v41, %v8172_v39 }
 0x15f   :  { %v752_v54 = vadd.f32 %v751_v50, %v10853_v35  ;;  %v941_v1 = vmul.f32 0.2, %v721_v53  ;;  %vm877_vm0 = vcmp.gt.f32.partialorder %v721_v53, 0.0 }
 0x160   :  { %v665_v57 = vpop.f32.mrf.mxu1  ;;  %1455 = vmatmul.bf16.vlgmr.msrb.gmra.mxu3 %v10859_v48  ;;  %v520_v58 = vsel %vm456_vm13, %v405_v44, %v488_v49 }
 0x161   :  { %vm832_vm15 = vcmp.gt.f32.partialorder %v752_v54, 0.0  ;;  %v896_v60 = vmul.f32 0.2, %v752_v54  ;;  %v542_v62 = vpack.c.bf16 %v520_v58, %v519_v61  ;;  %v666_v8 = vadd.f32 %v665_v57, %v10850_v31  ;;  %1803 = vmatpush.bf16.msra.mxu3 %v8173_v46 }
 0x162   :  { %v1005_v28 = vsel %vm877_vm0, %v721_v53, %v941_v1  ;;  %v8302_v53 = vld [vmem:[#allocation11 + $0x1f8] sm:$0xf0] }
 0x163   :  { %v960_v2 = vsel %vm832_vm15, %v752_v54, %v896_v60  ;;  %v407_v3 = vpop.f32.mrf.mxu0  ;;  %704 = vmatmul.bf16.gmra.mxu1 %v542_v62  ;;  %793 = vmatmul.bf16.gmra.mxu2 %v542_v62  ;;  %v897_v15 = vmul.f32 0.2, %v666_v8  ;;  %vm833_vm2 = vcmp.gt.f32.partialorder %v666_v8, 0.0  ;;  %v8305_v56 = vor.u32 %v9303_v52, %v8302_v53 }
 0x164   :  { %v10864_v4 = vpack.c.bf16 %v960_v2, %v958_v0  ;;  %v722_v5 = vpop.f32.mrf.mxu3  ;;  %v408_v16 = vadd.f32 %v10806_v14, %v407_v3  ;;  %v8300_v2 = vld [vmem:[#allocation11 + $0x1e8] sm:$0xf]  ;;  %v9305_v3 = vld [vmem:[#allocation11 + $0x1f4] sm:$0xf0] }
 0x165   :  { %v723_v9 = vadd.f32 %v722_v5, %v10850_v31  ;;  %v961_v24 = vsel %vm833_vm2, %v666_v8, %v897_v15  ;;  %2070 = vmatpush.bf16.msra.mxu2 %v8305_v56  ;;  %v8301_v8 = vor.u32 %v9305_v3, %v8300_v2 }
 0x166   :  { %v754_v11 = vpop.f32.mrf.mxu2  ;;  %1544 = vmatmul.bf16.vlgmr.msrb.gmra.mxu0 %v10864_v4  ;;  %v489_v25 = vmul.f32 0.2, %v408_v16  ;;  %vm457_vm4 = vcmp.gt.f32.partialorder %v408_v16, 0.0 }
 0x167   :  { %vm879_vm1 = vcmp.gt.f32.partialorder %v723_v9, 0.0  ;;  %v943_v12 = vmul.f32 0.2, %v723_v9  ;;  %v755_v20 = vadd.f32 %v754_v11, %v10853_v35  ;;  %1892 = vmatpush.bf16.msra.mxu0 %v8301_v8 }
 0x168   :  { %v667_v13 = vpop.f32.mrf.mxu1  ;;  %v521_v38 = vsel %vm457_vm4, %v408_v16, %v489_v25 }
 0x169   :  { %v1007_v17 = vsel %vm879_vm1, %v723_v9, %v943_v12  ;;  %v668_v18 = vadd.f32 %v667_v13, %v10850_v31  ;;  %v898_v32 = vmul.f32 0.2, %v755_v20  ;;  %vm834_vm6 = vcmp.gt.f32.partialorder %v755_v20, 0.0  ;;  %v9271_v9 = vld [vmem:[#allocation11 + $0xec] sm:$0xf] }
 0x16a   :  { %v10871_v19 = vpack.c.bf16 %v1007_v17, %v1005_v28  ;;  %v8174_v28 = vld [vmem:[#allocation11 + $0xf8] sm:$0xf0] }
 0x16b   :  { %vm835_vm3 = vcmp.gt.f32.partialorder %v668_v18, 0.0  ;;  %v899_v21 = vmul.f32 0.2, %v668_v18  ;;  %v409_v22 = vpop.f32.mrf.mxu0  ;;  %v962_v42 = vsel %vm834_vm6, %v755_v20, %v898_v32  ;;  %v8177_v16 = vor.u32 %v9271_v9, %v8174_v28  ;;  %v9299_v9 = vld [vmem:[#allocation11 + $0x1cc] sm:$0xf] }
 0x16c   :  { %v410_v23 = vadd.f32 %v10806_v14, %v409_v22  ;;  %v725_v43 = vpop.f32.mrf.mxu3 }
 0x16d   :  { %v963_v26 = vsel %vm835_vm3, %v668_v18, %v899_v21  ;;  %v726_v55 = vadd.f32 %v725_v43, %v10850_v31  ;;  %1981 = vmatpush.bf16.msra.mxu1 %v8177_v16 }
 0x16e   :  { %v10875_v27 = vpack.c.bf16 %v963_v26, %v961_v24  ;;  %v490_v29 = vmul.f32 0.2, %v410_v23  ;;  %v756_v30 = vpop.f32.mrf.mxu2  ;;  %vm458_vm5 = vcmp.gt.f32.partialorder %v410_v23, 0.0 }
 0x16f   :  { %v757_v33 = vadd.f32 %v756_v30, %v10853_v35  ;;  %v945_v44 = vmul.f32 0.2, %v726_v55  ;;  %vm881_vm8 = vcmp.gt.f32.partialorder %v726_v55, 0.0 }
 0x170   :  { %v670_v34 = vpop.f32.mrf.mxu1  ;;  %1460 = vmatmul.bf16.gmra.mxu3 %v10875_v27  ;;  %v522_v36 = vsel %vm458_vm5, %v410_v23, %v490_v29 }
 0x171   :  { %vm836_vm7 = vcmp.gt.f32.partialorder %v757_v33, 0.0  ;;  %v900_v37 = vmul.f32 0.2, %v757_v33  ;;  %v543_v40 = vpack.c.bf16 %v522_v36, %v521_v38  ;;  %v671_v50 = vadd.f32 %v670_v34, %v10850_v31 }
 0x172   :  { %v1009_v57 = vsel %vm881_vm8, %v726_v55, %v945_v44 }
 0x173   :  { %v964_v45 = vsel %vm836_vm7, %v757_v33, %v900_v37  ;;  %v412_v63 = vpop.f32.mrf.mxu0  ;;  %709 = vmatmul.bf16.gmra.mxu1 %v543_v40  ;;  %798 = vmatmul.bf16.gmra.mxu2 %v543_v40  ;;  %v901_v60 = vmul.f32 0.2, %v671_v50  ;;  %vm837_vm10 = vcmp.gt.f32.partialorder %v671_v50, 0.0 }
 0x174   :  { %v10880_v47 = vpack.c.bf16 %v964_v45, %v962_v42  ;;  %v727_v49 = vpop.f32.mrf.mxu3  ;;  %v413_v61 = vadd.f32 %v10806_v14, %v412_v63 }
 0x175   :  { %v728_v51 = vadd.f32 %v727_v49, %v10850_v31  ;;  %v965_v12 = vsel %vm837_vm10, %v671_v50, %v901_v60  ;;  %v8156_v60 = vld [vmem:[#allocation11 + $0xc8] sm:$0xf] }
 0x176   :  { %v759_v54 = vpop.f32.mrf.mxu2  ;;  %1549 = vmatmul.bf16.gmra.mxu0 %v10880_v47  ;;  %v491_v13 = vmul.f32 0.2, %v413_v61  ;;  %vm459_vm12 = vcmp.gt.f32.partialorder %v413_v61, 0.0 }
 0x177   :  { %vm883_vm9 = vcmp.gt.f32.partialorder %v728_v51, 0.0  ;;  %v947_v58 = vmul.f32 0.2, %v728_v51  ;;  %v760_v5 = vadd.f32 %v759_v54, %v10853_v35 }
 0x178   :  { %v672_v59 = vpop.f32.mrf.mxu1  ;;  %v523_v25 = vsel %vm459_vm12, %v413_v61, %v491_v13  ;;  %v9269_v61 = vld [vmem:[#allocation11 + $0xd4] sm:$0xf0] }
 0x179   :  { %v1011_v62 = vsel %vm883_vm9, %v728_v51, %v947_v58  ;;  %v673_v0 = vadd.f32 %v672_v59, %v10850_v31  ;;  %v902_v21 = vmul.f32 0.2, %v760_v5  ;;  %vm838_vm14 = vcmp.gt.f32.partialorder %v760_v5, 0.0 }
 0x17a   :  { %v10887_v1 = vpack.c.bf16 %v1011_v62, %v1009_v57  ;;  %v8157_v3 = vor.u32 %v9269_v61, %v8156_v60 }
 0x17b   :  { %vm839_vm11 = vcmp.gt.f32.partialorder %v673_v0, 0.0  ;;  %v903_v6 = vmul.f32 0.2, %v673_v0  ;;  %v414_v7 = vpop.f32.mrf.mxu0  ;;  %v966_v29 = vsel %vm838_vm14, %v760_v5, %v902_v21 }
 0x17c   :  { %v415_v10 = vadd.f32 %v10806_v14, %v414_v7  ;;  %v730_v11 = vpop.f32.mrf.mxu3  ;;  %1804 = vmatpush.bf16.msra.mxu3 %v8157_v3 }
 0x17d   :  { %v967_v15 = vsel %vm839_vm11, %v673_v0, %v903_v6  ;;  %v731_v22 = vadd.f32 %v730_v11, %v10850_v31 }
 0x17e   :  { %v10891_v17 = vpack.c.bf16 %v967_v15, %v965_v12  ;;  %v492_v18 = vmul.f32 0.2, %v415_v10  ;;  %v761_v20 = vpop.f32.mrf.mxu2  ;;  %vm460_vm13 = vcmp.gt.f32.partialorder %v415_v10, 0.0 }
 0x17f   :  { %v762_v23 = vadd.f32 %v761_v20, %v10853_v35  ;;  %v949_v30 = vmul.f32 0.2, %v731_v22  ;;  %vm885_vm0 = vcmp.gt.f32.partialorder %v731_v22, 0.0 }
 0x180   :  { %v675_v14 = vpop.f32.mrf.mxu1  ;;  %1465 = vmatmul.bf16.gmra.mxu3 %v10891_v17  ;;  %v524_v43 = vsel %vm460_vm13, %v415_v10, %v492_v18  ;;  %v8286_v10 = vld [vmem:[#allocation11 + $0x1d8] sm:$0xf0] }
 0x181   :  { %vm840_vm15 = vcmp.gt.f32.partialorder %v762_v23, 0.0  ;;  %v904_v24 = vmul.f32 0.2, %v762_v23  ;;  %v544_v26 = vpack.c.bf16 %v524_v43, %v523_v25  ;;  %v676_v34 = vadd.f32 %v675_v14, %v10850_v31  ;;  %v9267_v25 = vld [vmem:[#allocation11 + $0xcc] sm:$0xf] }
 0x182   :  { %v1013_v38 = vsel %vm885_vm0, %v731_v22, %v949_v30  ;;  %v8289_v28 = vor.u32 %v9299_v9, %v8286_v10  ;;  %v8284_v22 = vld [vmem:[#allocation11 + $0x1c8] sm:$0xf] }
 0x183   :  { %v968_v32 = vsel %vm840_vm15, %v762_v23, %v904_v24  ;;  %714 = vmatmul.bf16.gmra.mxu1 %v544_v26  ;;  %803 = vmatmul.bf16.gmra.mxu2 %v544_v26  ;;  %v905_v41 = vmul.f32 0.2, %v676_v34  ;;  %vm841_vm2 = vcmp.gt.f32.partialorder %v676_v34, 0.0  ;;  %v9301_v23 = vld [vmem:[#allocation11 + $0x1d4] sm:$0xf0] }
 0x184   :  { %v10896_v55 = vpack.c.bf16 %v968_v32, %v966_v29  ;;  %v732_v33 = vpop.f32.mrf.mxu3  ;;  %2071 = vmatpush.bf16.msra.mxu2 %v8289_v28  ;;  %v8285_v24 = vor.u32 %v9301_v23, %v8284_v22  ;;  %v8158_v29 = vld [vmem:[#allocation11 + $0xd8] sm:$0xf0] }
 0x185   :  { %v733_v36 = vadd.f32 %v732_v33, %v10850_v31  ;;  %v969_v50 = vsel %vm841_vm2, %v676_v34, %v905_v41  ;;  %v8161_v33 = vor.u32 %v9267_v25, %v8158_v29  ;;  %v9295_v25 = vld [vmem:[#allocation11 + $0x1ac] sm:$0xf] }
 0x186   :  { %v764_v37 = vpop.f32.mrf.mxu2  ;;  %1554 = vmatmul.bf16.gmra.mxu0 %v10896_v55 }
 0x187   :  { %vm887_vm1 = vcmp.gt.f32.partialorder %v733_v36, 0.0  ;;  %v951_v39 = vmul.f32 0.2, %v733_v36  ;;  %v765_v63 = vadd.f32 %v764_v37, %v10853_v35  ;;  %1893 = vmatpush.bf16.msra.mxu0 %v8285_v24  ;;  %1982 = vmatpush.bf16.msra.mxu1 %v8161_v33 }
 0x188   :  { %v677_v40 = vpop.f32.mrf.mxu1 }
 0x189   :  { %v1015_v42 = vsel %vm887_vm1, %v733_v36, %v951_v39  ;;  %v678_v44 = vadd.f32 %v677_v40, %v10850_v31  ;;  %v906_v54 = vmul.f32 0.2, %v765_v63  ;;  %vm842_vm4 = vcmp.gt.f32.partialorder %v765_v63, 0.0 }
 0x18a   :  { %v10902_v45 = vpack.c.bf16 %v1015_v42, %v1013_v38 }
 0x18b   :  { %vm843_vm3 = vcmp.gt.f32.partialorder %v678_v44, 0.0  ;;  %v907_v46 = vmul.f32 0.2, %v678_v44  ;;  %v970_v62 = vsel %vm842_vm4, %v765_v63, %v906_v54 }
 0x18c   :  { %v735_v49 = vpop.f32.mrf.mxu3 }
 0x18d   :  { %v971_v51 = vsel %vm843_vm3, %v678_v44, %v907_v46  ;;  %v736_v56 = vadd.f32 %v735_v49, %v10850_v31 }
 0x18e   :  { %v10905_v52 = vpack.c.bf16 %v971_v51, %v969_v50  ;;  %v766_v53 = vpop.f32.mrf.mxu2 }
 0x18f   :  { %v767_v57 = vadd.f32 %v766_v53, %v10853_v35  ;;  %v953_v0 = vmul.f32 0.2, %v736_v56  ;;  %vm889_vm6 = vcmp.gt.f32.partialorder %v736_v56, 0.0 }
 0x190   :  { %v680_v58 = vpop.f32.mrf.mxu1  ;;  %1470 = vmatmul.bf16.gmra.mxu3 %v10905_v52 }
 0x191   :  { %vm844_vm5 = vcmp.gt.f32.partialorder %v767_v57, 0.0  ;;  %v908_v59 = vmul.f32 0.2, %v767_v57  ;;  %v681_v7 = vadd.f32 %v680_v58, %v10850_v31  ;;  %v1017_v12 = vsel %vm889_vm6, %v736_v56, %v953_v0 }
 0x193   :  { %v972_v2 = vsel %vm844_vm5, %v767_v57, %v908_v59  ;;  %1633 = vmatmul.bf16.vlgmr.msrb.gmra.mxu1 %v10859_v48  ;;  %1722 = vmatmul.bf16.vlgmr.msrb.gmra.mxu2 %v10864_v4  ;;  %v909_v16 = vmul.f32 0.2, %v681_v7  ;;  %vm845_vm8 = vcmp.gt.f32.partialorder %v681_v7, 0.0 }
 0x194   :  { %v10910_v5 = vpack.c.bf16 %v972_v2, %v970_v62  ;;  %v737_v6 = vpop.f32.mrf.mxu3 }
 0x195   :  { %v738_v8 = vadd.f32 %v737_v6, %v10850_v31  ;;  %v973_v30 = vsel %vm845_vm8, %v681_v7, %v909_v16 }
 0x196   :  { %v769_v11 = vpop.f32.mrf.mxu2  ;;  %1559 = vmatmul.bf16.gmra.mxu0 %v10910_v5 }
 0x197   :  { %vm891_vm7 = vcmp.gt.f32.partialorder %v738_v8, 0.0  ;;  %v955_v13 = vmul.f32 0.2, %v738_v8  ;;  %v770_v14 = vadd.f32 %v769_v11, %v10853_v35 }
 0x198   :  { %v682_v15 = vpop.f32.mrf.mxu1 }
 0x199   :  { %v1019_v18 = vsel %vm891_vm7, %v738_v8, %v955_v13  ;;  %v683_v20 = vadd.f32 %v682_v15, %v10850_v31  ;;  %v910_v37 = vmul.f32 0.2, %v770_v14  ;;  %vm846_vm10 = vcmp.gt.f32.partialorder %v770_v14, 0.0  ;;  %v8140_v13 = vld [vmem:[#allocation11 + $0xa8] sm:$0xf] }
 0x19a   :  { %v10918_v21 = vpack.c.bf16 %v1019_v18, %v1017_v12  ;;  %v9265_v15 = vld [vmem:[#allocation11 + $0xb4] sm:$0xf0] }
 0x19b   :  { %vm847_vm9 = vcmp.gt.f32.partialorder %v683_v20, 0.0  ;;  %v911_v43 = vmul.f32 0.2, %v683_v20  ;;  %v974_v42 = vsel %vm846_vm10, %v770_v14, %v910_v37 }
 0x19c   :  { %v809_v26 = vpop.f32.mrf.mxu3 }
 0x19d   :  { %v975_v32 = vsel %vm847_vm9, %v683_v20, %v911_v43  ;;  %v810_v40 = vadd.f32 %v809_v26, %v10853_v35  ;;  %v8141_v20 = vor.u32 %v9265_v15, %v8140_v13  ;;  %v8270_v26 = vld [vmem:[#allocation11 + $0x1b8] sm:$0xf0] }
 0x19e   :  { %v10921_v34 = vpack.c.bf16 %v975_v32, %v973_v30  ;;  %v771_v36 = vpop.f32.mrf.mxu2  ;;  %v8273_v30 = vor.u32 %v9295_v25, %v8270_v26 }
 0x19f   :  { %v772_v38 = vadd.f32 %v771_v36, %v10853_v35  ;;  %v942_v49 = vmul.f32 0.2, %v810_v40  ;;  %vm878_vm12 = vcmp.gt.f32.partialorder %v810_v40, 0.0  ;;  %1805 = vmatpush.bf16.msra.mxu3 %v8141_v20 }
 0x1a0   :  { %v685_v39 = vpop.f32.mrf.mxu1  ;;  %1475 = vmatmul.bf16.gmra.mxu3 %v10921_v34  ;;  %2072 = vmatpush.bf16.msra.mxu2 %v8273_v30 }
 0x1a1   :  { %vm848_vm11 = vcmp.gt.f32.partialorder %v772_v38, 0.0  ;;  %v912_v41 = vmul.f32 0.2, %v772_v38  ;;  %v686_v50 = vadd.f32 %v685_v39, %v10850_v31  ;;  %v1006_v57 = vsel %vm878_vm12, %v810_v40, %v942_v49 }
 0x1a3   :  { %v976_v44 = vsel %vm848_vm11, %v772_v38, %v912_v41  ;;  %1638 = vmatmul.bf16.gmra.mxu1 %v10875_v27  ;;  %1727 = vmatmul.bf16.gmra.mxu2 %v10880_v47  ;;  %v913_v58 = vmul.f32 0.2, %v686_v50  ;;  %vm849_vm14 = vcmp.gt.f32.partialorder %v686_v50, 0.0  ;;  %v8268_v41 = vld [vmem:[#allocation11 + $0x1a8] sm:$0xf] }
 0x1a4   :  { %v10926_v63 = vpack.c.bf16 %v976_v44, %v974_v42  ;;  %v811_v46 = vpop.f32.mrf.mxu3  ;;  %v9297_v42 = vld [vmem:[#allocation11 + $0x1b4] sm:$0xf0] }
 0x1a5   :  { %v812_v51 = vadd.f32 %v811_v46, %v10853_v35  ;;  %v977_v3 = vsel %vm849_vm14, %v686_v50, %v913_v58  ;;  %v8269_v49 = vor.u32 %v9297_v42, %v8268_v41  ;;  %v9263_v50 = vld [vmem:[#allocation11 + $0xac] sm:$0xf] }
 0x1a6   :  { %v774_v53 = vpop.f32.mrf.mxu2  ;;  %1564 = vmatmul.bf16.gmra.mxu0 %v10926_v63 }
 0x1a7   :  { %vm880_vm13 = vcmp.gt.f32.partialorder %v812_v51, 0.0  ;;  %v944_v54 = vmul.f32 0.2, %v812_v51  ;;  %v775_v62 = vadd.f32 %v774_v53, %v10853_v35  ;;  %v8142_v53 = vld [vmem:[#allocation11 + $0xb8] sm:$0xf0]  ;;  %1894 = vmatpush.bf16.msra.mxu0 %v8269_v49 }
 0x1a8   :  { %v687_v56 = vpop.f32.mrf.mxu1 }
 0x1a9   :  { %v1008_v59 = vsel %vm880_vm13, %v812_v51, %v944_v54  ;;  %v688_v60 = vadd.f32 %v687_v56, %v10850_v31  ;;  %v914_v9 = vmul.f32 0.2, %v775_v62  ;;  %vm850_vm0 = vcmp.gt.f32.partialorder %v775_v62, 0.0 }
 0x1aa   :  { %v10934_v61 = vpack.c.bf16 %v1008_v59, %v1006_v57  ;;  %v8145_v57 = vor.u32 %v9263_v50, %v8142_v53  ;;  %v9261_v53 = vld [vmem:[#allocation11 + $0x94] sm:$0xf0] }
 0x1ab   :  { %vm851_vm15 = vcmp.gt.f32.partialorder %v688_v60, 0.0  ;;  %v915_v0 = vmul.f32 0.2, %v688_v60  ;;  %v978_v16 = vsel %vm850_vm0, %v775_v62, %v914_v9 }
 0x1ac   :  { %v814_v2 = vpop.f32.mrf.mxu3  ;;  %1983 = vmatpush.bf16.msra.mxu1 %v8145_v57 }
 0x1ad   :  { %v979_v6 = vsel %vm851_vm15, %v688_v60, %v915_v0  ;;  %v815_v28 = vadd.f32 %v814_v2, %v10853_v35 }
 0x1ae   :  { %v10937_v7 = vpack.c.bf16 %v979_v6, %v977_v3  ;;  %v776_v8 = vpop.f32.mrf.mxu2 }
 0x1af   :  { %v777_v10 = vadd.f32 %v776_v8, %v10853_v35  ;;  %v946_v14 = vmul.f32 0.2, %v815_v28  ;;  %vm882_vm2 = vcmp.gt.f32.partialorder %v815_v28, 0.0 }
 0x1b0   :  { %v690_v11 = vpop.f32.mrf.mxu1  ;;  %1480 = vmatmul.bf16.gmra.mxu3 %v10937_v7 }
 0x1b1   :  { %vm852_vm1 = vcmp.gt.f32.partialorder %v777_v10, 0.0  ;;  %v916_v12 = vmul.f32 0.2, %v777_v10  ;;  %v691_v43 = vadd.f32 %v690_v11, %v10850_v31  ;;  %v1010_v36 = vsel %vm882_vm2, %v815_v28, %v946_v14 }
 0x1b3   :  { %v980_v18 = vsel %vm852_vm1, %v777_v10, %v916_v12  ;;  %1643 = vmatmul.bf16.gmra.mxu1 %v10891_v17  ;;  %1732 = vmatmul.bf16.gmra.mxu2 %v10896_v55  ;;  %v917_v37 = vmul.f32 0.2, %v691_v43  ;;  %vm853_vm4 = vcmp.gt.f32.partialorder %v691_v43, 0.0 }
 0x1b4   :  { %v10942_v22 = vpack.c.bf16 %v980_v18, %v978_v16  ;;  %v816_v23 = vpop.f32.mrf.mxu3 }
 0x1b5   :  { %v817_v24 = vadd.f32 %v816_v23, %v10853_v35  ;;  %v981_v54 = vsel %vm853_vm4, %v691_v43, %v917_v37 }
 0x1b6   :  { %v779_v29 = vpop.f32.mrf.mxu2  ;;  %1569 = vmatmul.bf16.gmra.mxu0 %v10942_v22 }
 0x1b7   :  { %vm884_vm3 = vcmp.gt.f32.partialorder %v817_v24, 0.0  ;;  %v948_v32 = vmul.f32 0.2, %v817_v24  ;;  %v780_v44 = vadd.f32 %v779_v29, %v10853_v35 }
 0x1b8   :  { %v692_v33 = vpop.f32.mrf.mxu1 }
 0x1b9   :  { %v1012_v38 = vsel %vm884_vm3, %v817_v24, %v948_v32  ;;  %v693_v39 = vadd.f32 %v692_v33, %v10850_v31  ;;  %v918_v60 = vmul.f32 0.2, %v780_v44  ;;  %vm854_vm6 = vcmp.gt.f32.partialorder %v780_v44, 0.0 }
 0x1ba   :  { %v10950_v40 = vpack.c.bf16 %v1012_v38, %v1010_v36 }
 0x1bb   :  { %vm855_vm5 = vcmp.gt.f32.partialorder %v693_v39, 0.0  ;;  %v919_v46 = vmul.f32 0.2, %v693_v39  ;;  %v982_v6 = vsel %vm854_vm6, %v780_v44, %v918_v60 }
 0x1bc   :  { %v819_v51 = vpop.f32.mrf.mxu3 }
 0x1bd   :  { %v983_v56 = vsel %vm855_vm5, %v693_v39, %v919_v46  ;;  %v820_v2 = vadd.f32 %v819_v51, %v10853_v35  ;;  %v8124_v46 = vld [vmem:[#allocation11 + $0x88] sm:$0xf] }
 0x1be   :  { %v10953_v58 = vpack.c.bf16 %v983_v56, %v981_v54  ;;  %v781_v59 = vpop.f32.mrf.mxu2  ;;  %v8125_v57 = vor.u32 %v9261_v53, %v8124_v46 }
 0x1bf   :  { %v782_v62 = vadd.f32 %v781_v59, %v10853_v35  ;;  %v950_v11 = vmul.f32 0.2, %v820_v2  ;;  %vm886_vm8 = vcmp.gt.f32.partialorder %v820_v2, 0.0 }
 0x1c0   :  { %v695_v0 = vpop.f32.mrf.mxu1  ;;  %1485 = vmatmul.bf16.gmra.mxu3 %v10953_v58 }
 0x1c1   :  { %vm856_vm7 = vcmp.gt.f32.partialorder %v782_v62, 0.0  ;;  %v920_v3 = vmul.f32 0.2, %v782_v62  ;;  %v696_v28 = vadd.f32 %v695_v0, %v10850_v31  ;;  %v1014_v18 = vsel %vm886_vm8, %v820_v2, %v950_v11  ;;  %1806 = vmatpush.bf16.msra.mxu3 %v8125_v57  ;;  %v8254_v11 = vld [vmem:[#allocation11 + $0x198] sm:$0xf0] }
 0x1c3   :  { %v984_v8 = vsel %vm856_vm7, %v782_v62, %v920_v3  ;;  %1648 = vmatmul.bf16.gmra.mxu1 %v10905_v52  ;;  %1737 = vmatmul.bf16.gmra.mxu2 %v10910_v5  ;;  %v921_v20 = vmul.f32 0.2, %v696_v28  ;;  %vm857_vm10 = vcmp.gt.f32.partialorder %v696_v28, 0.0 }
 0x1c4   :  { %v10958_v9 = vpack.c.bf16 %v984_v8, %v982_v6  ;;  %v821_v10 = vpop.f32.mrf.mxu3 }
 0x1c5   :  { %v822_v12 = vadd.f32 %v821_v10, %v10853_v35  ;;  %v985_v29 = vsel %vm857_vm10, %v696_v28, %v921_v20  ;;  %v9291_v10 = vld [vmem:[#allocation11 + $0x18c] sm:$0xf]  ;;  %v8252_v28 = vld [vmem:[#allocation11 + $0x188] sm:$0xf] }
 0x1c6   :  { %v784_v13 = vpop.f32.mrf.mxu2  ;;  %1574 = vmatmul.bf16.gmra.mxu0 %v10958_v9  ;;  %v9259_v20 = vld [vmem:[#allocation11 + $0x8c] sm:$0xf] }
 0x1c7   :  { %vm888_vm9 = vcmp.gt.f32.partialorder %v822_v12, 0.0  ;;  %v952_v15 = vmul.f32 0.2, %v822_v12  ;;  %v785_v24 = vadd.f32 %v784_v13, %v10853_v35 }
 0x1c8   :  { %v697_v16 = vpop.f32.mrf.mxu1 }
 0x1c9   :  { %v1016_v23 = vsel %vm888_vm9, %v822_v12, %v952_v15  ;;  %v698_v14 = vadd.f32 %v697_v16, %v10850_v31  ;;  %v922_v36 = vmul.f32 0.2, %v785_v24  ;;  %vm858_vm12 = vcmp.gt.f32.partialorder %v785_v24, 0.0  ;;  %v9293_v16 = vld [vmem:[#allocation11 + $0x194] sm:$0xf0] }
 0x1ca   :  { %v10966_v43 = vpack.c.bf16 %v1016_v23, %v1014_v18  ;;  %v8257_v15 = vor.u32 %v9291_v10, %v8254_v11  ;;  %v8253_v18 = vor.u32 %v9293_v16, %v8252_v28  ;;  %v8126_v23 = vld [vmem:[#allocation11 + $0x98] sm:$0xf0] }
 0x1cb   :  { %vm859_vm11 = vcmp.gt.f32.partialorder %v698_v14, 0.0  ;;  %v923_v25 = vmul.f32 0.2, %v698_v14  ;;  %v986_v42 = vsel %vm858_vm12, %v785_v24, %v922_v36 }
 0x1cc   :  { %v824_v26 = vpop.f32.mrf.mxu3  ;;  %2073 = vmatpush.bf16.msra.mxu2 %v8257_v15  ;;  %1895 = vmatpush.bf16.msra.mxu0 %v8253_v18 }
 0x1cd   :  { %v987_v30 = vsel %vm859_vm11, %v698_v14, %v923_v25  ;;  %v825_v38 = vadd.f32 %v824_v26, %v10853_v35  ;;  %v10986_v25 = vld [vmem:[#allocation13] sm:$0xf]  ;;  %v8129_v26 = vor.u32 %v9259_v20, %v8126_v23 }
 0x1ce   :  { %v10969_v32 = vpack.c.bf16 %v987_v30, %v985_v29  ;;  %v786_v33 = vpop.f32.mrf.mxu2 }
 0x1cf   :  { %v787_v37 = vadd.f32 %v786_v33, %v10853_v35  ;;  %v954_v49 = vmul.f32 0.2, %v825_v38  ;;  %vm890_vm14 = vcmp.gt.f32.partialorder %v825_v38, 0.0  ;;  %1984 = vmatpush.bf16.msra.mxu1 %v8129_v26 }
 0x1d0   :  { %v700_v39 = vpop.f32.mrf.mxu1  ;;  %1490 = vmatmul.bf16.gmra.mxu3 %v10969_v32 }
 0x1d1   :  { %vm860_vm13 = vcmp.gt.f32.partialorder %v787_v37, 0.0  ;;  %v924_v41 = vmul.f32 0.2, %v787_v37  ;;  %v701_v54 = vadd.f32 %v700_v39, %v10850_v31  ;;  %v1018_v62 = vsel %vm890_vm14, %v825_v38, %v954_v49 }
 0x1d3   :  { %v988_v44 = vsel %vm860_vm13, %v787_v37, %v924_v41  ;;  %1653 = vmatmul.bf16.gmra.mxu1 %v10921_v34  ;;  %1742 = vmatmul.bf16.gmra.mxu2 %v10926_v63  ;;  %vm861_vm0 = vcmp.gt.f32.partialorder %v701_v54, 0.0  ;;  %v925_v2 = vmul.f32 0.2, %v701_v54  ;;  %v10993_v37 = vperm.slane %v10986_v25, 0 }
 0x1d4   :  { %v10974_v50 = vpack.c.bf16 %v988_v44, %v986_v42  ;;  %v826_v51 = vpop.f32.mrf.mxu3 }
 0x1d5   :  { %v827_v56 = vadd.f32 %v826_v51, %v10853_v35  ;;  %v989_v14 = vsel %vm861_vm0, %v701_v54, %v925_v2 }
 0x1d6   :  { %v789_v59 = vpop.f32.mrf.mxu2  ;;  %1579 = vmatmul.bf16.gmra.mxu0 %v10974_v50 }
 0x1d7   :  { %vm892_vm15 = vcmp.gt.f32.partialorder %v827_v56, 0.0  ;;  %v956_v60 = vmul.f32 0.2, %v827_v56  ;;  %v790_v12 = vadd.f32 %v789_v59, %v10853_v35 }
 0x1d8   :  { %v702_v0 = vpop.f32.mrf.mxu1 }
 0x1d9   :  { %v1020_v3 = vsel %vm892_vm15, %v827_v56, %v956_v60  ;;  %v703_v6 = vadd.f32 %v702_v0, %v10850_v31  ;;  %v926_v33 = vmul.f32 0.2, %v790_v12  ;;  %vm862_vm2 = vcmp.gt.f32.partialorder %v790_v12, 0.0 }
 0x1da   :  { %v10982_v8 = vpack.c.bf16 %v1020_v3, %v1018_v62 }
 0x1db   :  { %vm863_vm1 = vcmp.gt.f32.partialorder %v703_v6, 0.0  ;;  %v927_v13 = vmul.f32 0.2, %v703_v6  ;;  %v990_v41 = vsel %vm862_vm2, %v790_v12, %v926_v33 }
 0x1dd   :  { %v991_v24 = vsel %vm863_vm1, %v703_v6, %v927_v13 }
 0x1de   :  { %v10988_v29 = vpack.c.bf16 %v991_v24, %v989_v14  ;;  %v791_v30 = vpop.f32.mrf.mxu2 }
 0x1df   :  { %v792_v36 = vadd.f32 %v791_v30, %v10853_v35 }
 0x1e0   :  { %1495 = vmatmul.bf16.gmra.mxu3 %v10988_v29  ;;  %v705_v39 = vpop.f32.mrf.mxu1 }
 0x1e1   :  { %vm864_vm3 = vcmp.gt.f32.partialorder %v792_v36, 0.0  ;;  %v928_v38 = vmul.f32 0.2, %v792_v36  ;;  %v706_v53 = vadd.f32 %v705_v39, %v10850_v31  ;;  %v9257_v39 = vld [vmem:[#allocation11 + $0x74] sm:$0xf0] }
 0x1e3   :  { %v992_v42 = vsel %vm864_vm3, %v792_v36, %v928_v38  ;;  %v1456_v44 = vpop.f32.mrf.mxu3  ;;  %v1545_v46 = vpop.f32.mrf.mxu0  ;;  %1658 = vmatmul.bf16.gmra.mxu1 %v10937_v7  ;;  %1747 = vmatmul.bf16.gmra.mxu2 %v10942_v22  ;;  %v929_v59 = vmul.f32 0.2, %v706_v53  ;;  %vm865_vm4 = vcmp.gt.f32.partialorder %v706_v53, 0.0  ;;  %v8108_v38 = vld [vmem:[#allocation11 + $0x68] sm:$0xf] }
 0x1e4   :  { %v10995_v49 = vpack.c.bf16 %v992_v42, %v990_v41  ;;  %v1457_v51 = vadd.f32 %v1456_v44, %v10993_v37 }
 0x1e5   :  { %v993_v10 = vsel %vm865_vm4, %v706_v53, %v929_v59  ;;  %v8109_v53 = vor.u32 %v9257_v39, %v8108_v38 }
 0x1e6   :  { %v1546_v54 = vadd.f32 %v1545_v46, %v1457_v51  ;;  %1584 = vmatmul.bf16.gmra.mxu0 %v10995_v49  ;;  %v794_v56 = vpop.f32.mrf.mxu2 }
 0x1e7   :  { %v795_v2 = vadd.f32 %v794_v56, %v10853_v35  ;;  %1807 = vmatpush.bf16.msra.mxu3 %v8109_v53 }
 0x1e8   :  { %v707_v57 = vpop.f32.mrf.mxu1  ;;  %v2287_v11 = vmul.f32 0.2, %v1546_v54  ;;  %vm2159_vm6 = vcmp.gt.f32.partialorder %v1546_v54, 0.0 }
 0x1e9   :  { %v708_v60 = vadd.f32 %v707_v57, %v10850_v31  ;;  %v930_v16 = vmul.f32 0.2, %v795_v2  ;;  %vm866_vm8 = vcmp.gt.f32.partialorder %v795_v2, 0.0 }
 0x1ea   :  { %v2415_v14 = vsel %vm2159_vm6, %v1546_v54, %v2287_v11 }
 0x1eb   :  { %v1458_v62 = vpop.f32.mrf.mxu3  ;;  %v1547_v0 = vpop.f32.mrf.mxu0  ;;  %vm867_vm5 = vcmp.gt.f32.partialorder %v708_v60, 0.0  ;;  %v931_v3 = vmul.f32 0.2, %v708_v60  ;;  %v994_v41 = vsel %vm866_vm8, %v795_v2, %v930_v16 }
 0x1ec   :  { %v1459_v6 = vadd.f32 %v1458_v62, %v10993_v37  ;;  %v9287_v62 = vld [vmem:[#allocation11 + $0x16c] sm:$0xf] }
 0x1ed   :  { %v995_v28 = vsel %vm867_vm5, %v708_v60, %v931_v3  ;;  %v8238_v3 = vld [vmem:[#allocation11 + $0x178] sm:$0xf0] }
 0x1ee   :  { %v1548_v12 = vadd.f32 %v1547_v0, %v1459_v6  ;;  %v11005_v13 = vpack.c.bf16 %v995_v28, %v993_v10  ;;  %v796_v15 = vpop.f32.mrf.mxu2  ;;  %v8236_v6 = vld [vmem:[#allocation11 + $0x168] sm:$0xf]  ;;  %v9289_v10 = vld [vmem:[#allocation11 + $0x174] sm:$0xf0] }
 0x1ef   :  { %v797_v20 = vadd.f32 %v796_v15, %v10853_v35  ;;  %v9255_v15 = vld [vmem:[#allocation11 + $0x6c] sm:$0xf] }
 0x1f0   :  { %vm2163_vm7 = vcmp.gt.f32.partialorder %v1548_v12, 0.0  ;;  %v2291_v18 = vmul.f32 0.2, %v1548_v12  ;;  %v710_v23 = vpop.f32.mrf.mxu1  ;;  %1500 = vmatmul.bf16.gmra.mxu3 %v11005_v13 }
 0x1f1   :  { %vm868_vm9 = vcmp.gt.f32.partialorder %v797_v20, 0.0  ;;  %v932_v26 = vmul.f32 0.2, %v797_v20  ;;  %v711_v51 = vadd.f32 %v710_v23, %v10850_v31  ;;  %v8110_v23 = vld [vmem:[#allocation11 + $0x78] sm:$0xf0] }
 0x1f2   :  { %v2419_v24 = vsel %vm2163_vm7, %v1548_v12, %v2291_v18  ;;  %v8241_v18 = vor.u32 %v9287_v62, %v8238_v3 }
 0x1f3   :  { %v11009_v30 = vpack.c.bf16 %v2419_v24, %v2415_v14  ;;  %v1461_v33 = vpop.f32.mrf.mxu3  ;;  %v1550_v36 = vpop.f32.mrf.mxu0  ;;  %v996_v42 = vsel %vm868_vm9, %v797_v20, %v932_v26  ;;  %1663 = vmatmul.bf16.gmra.mxu1 %v10953_v58  ;;  %1752 = vmatmul.bf16.gmra.mxu2 %v10958_v9  ;;  %v933_v57 = vmul.f32 0.2, %v711_v51  ;;  %vm869_vm10 = vcmp.gt.f32.partialorder %v711_v51, 0.0 }
 0x1f4   :  { %v1462_v44 = vadd.f32 %v1461_v33, %v10993_v37  ;;  %v11014_v46 = vpack.c.bf16 %v996_v42, %v994_v41  ;;  %v8237_v20 = vor.u32 %v9289_v10, %v8236_v6  ;;  %v8113_v33 = vor.u32 %v9255_v15, %v8110_v23  ;;  %2074 = vmatpush.bf16.msra.mxu2 %v8241_v18 }
 0x1f5   :  { %v997_v16 = vsel %vm869_vm10, %v711_v51, %v933_v57 }
 0x1f6   :  { %v1551_v54 = vadd.f32 %v1550_v36, %v1462_v44  ;;  %v799_v56 = vpop.f32.mrf.mxu2  ;;  %1589 = vmatmul.bf16.gmra.mxu0 %v11014_v46  ;;  %1985 = vmatpush.bf16.msra.mxu1 %v8113_v33 }
 0x1f7   :  { %v800_v11 = vadd.f32 %v799_v56, %v10853_v35  ;;  %1896 = vmatpush.bf16.msra.mxu0 %v8237_v20 }
 0x1f8   :  { %v712_v59 = vpop.f32.mrf.mxu1  ;;  %v2295_v14 = vmul.f32 0.2, %v1551_v54  ;;  %vm2167_vm12 = vcmp.gt.f32.partialorder %v1551_v54, 0.0 }
 0x1f9   :  { %v713_v60 = vadd.f32 %v712_v59, %v10850_v31  ;;  %v934_v39 = vmul.f32 0.2, %v800_v11  ;;  %vm870_vm14 = vcmp.gt.f32.partialorder %v800_v11, 0.0 }
 0x1fa   :  { %v2423_v51 = vsel %vm2167_vm12, %v1551_v54, %v2295_v14 }
 0x1fb   :  { %v1463_v0 = vpop.f32.mrf.mxu3  ;;  %v1552_v2 = vpop.f32.mrf.mxu0  ;;  %vm871_vm11 = vcmp.gt.f32.partialorder %v713_v60, 0.0  ;;  %v935_v28 = vmul.f32 0.2, %v713_v60  ;;  %v998_v62 = vsel %vm870_vm14, %v800_v11, %v934_v39 }
 0x1fc   :  { %v1464_v12 = vadd.f32 %v1463_v0, %v10993_v37 }
 0x1fd   :  { %v999_v24 = vsel %vm871_vm11, %v713_v60, %v935_v28 }
 0x1fe   :  { %v1553_v26 = vadd.f32 %v1552_v2, %v1464_v12  ;;  %v11021_v36 = vpack.c.bf16 %v999_v24, %v997_v16  ;;  %v801_v38 = vpop.f32.mrf.mxu2 }
 0x1ff   :  { %v802_v42 = vadd.f32 %v801_v38, %v10853_v35 }
 0x200   :  { %vm2171_vm13 = vcmp.gt.f32.partialorder %v1553_v26, 0.0  ;;  %v2299_v41 = vmul.f32 0.2, %v1553_v26  ;;  %v715_v44 = vpop.f32.mrf.mxu1  ;;  %1505 = vmatmul.bf16.gmra.mxu3 %v11021_v36 }
 0x201   :  { %vm872_vm15 = vcmp.gt.f32.partialorder %v802_v42, 0.0  ;;  %v936_v56 = vmul.f32 0.2, %v802_v42  ;;  %v716_v6 = vadd.f32 %v715_v44, %v10850_v31  ;;  %v11042_v44 = vperm.slane %v10986_v25, 1 }
 0x202   :  { %v2427_v53 = vsel %vm2171_vm13, %v1553_v26, %v2299_v41 }
 0x203   :  { %v11025_v57 = vpack.c.bf16 %v2427_v53, %v2423_v51  ;;  %v1466_v59 = vpop.f32.mrf.mxu3  ;;  %v1555_v60 = vpop.f32.mrf.mxu0  ;;  %v1000_v0 = vsel %vm872_vm15, %v802_v42, %v936_v56  ;;  %1668 = vmatmul.bf16.gmra.mxu1 %v10969_v32  ;;  %1757 = vmatmul.bf16.gmra.mxu2 %v10974_v50  ;;  %v937_v12 = vmul.f32 0.2, %v716_v6  ;;  %vm873_vm0 = vcmp.gt.f32.partialorder %v716_v6, 0.0 }
 0x204   :  { %v1467_v2 = vadd.f32 %v1466_v59, %v10993_v37  ;;  %v11030_v3 = vpack.c.bf16 %v1000_v0, %v998_v62 }
 0x205   :  { %v1001_v14 = vsel %vm873_vm0, %v716_v6, %v937_v12  ;;  %v8092_v6 = vld [vmem:[#allocation11 + $0x48] sm:$0xf] }
 0x206   :  { %v1556_v54 = vadd.f32 %v1555_v60, %v1467_v2  ;;  %v804_v10 = vpop.f32.mrf.mxu2  ;;  %1594 = vmatmul.bf16.gmra.mxu0 %v11030_v3 }
 0x207   :  { %v805_v11 = vadd.f32 %v804_v10, %v10853_v35  ;;  %v9253_v10 = vld [vmem:[#allocation11 + $0x54] sm:$0xf0] }
 0x208   :  { %v717_v28 = vpop.f32.mrf.mxu1  ;;  %v2303_v24 = vmul.f32 0.2, %v1556_v54  ;;  %vm2175_vm2 = vcmp.gt.f32.partialorder %v1556_v54, 0.0  ;;  %v8093_v25 = vor.u32 %v9253_v10, %v8092_v6 }
 0x209   :  { %v718_v15 = vadd.f32 %v717_v28, %v10850_v31  ;;  %v938_v38 = vmul.f32 0.2, %v805_v11  ;;  %vm874_vm3 = vcmp.gt.f32.partialorder %v805_v11, 0.0 }
 0x20a   :  { %v2431_v53 = vsel %vm2175_vm2, %v1556_v54, %v2303_v24  ;;  %1808 = vmatpush.bf16.msra.mxu3 %v8093_v25  ;;  %v8222_v24 = vld [vmem:[#allocation11 + $0x158] sm:$0xf0] }
 0x20b   :  { %v1468_v16 = vpop.f32.mrf.mxu3  ;;  %v1557_v18 = vpop.f32.mrf.mxu0  ;;  %vm875_vm1 = vcmp.gt.f32.partialorder %v718_v15, 0.0  ;;  %v939_v20 = vmul.f32 0.2, %v718_v15  ;;  %v1002_v60 = vsel %vm874_vm3, %v805_v11, %v938_v38 }
 0x20c   :  { %v1469_v23 = vadd.f32 %v1468_v16, %v10993_v37 }
 0x20d   :  { %v1003_v26 = vsel %vm875_vm1, %v718_v15, %v939_v20  ;;  %v9283_v20 = vld [vmem:[#allocation11 + $0x14c] sm:$0xf] }
 0x20e   :  { %v1558_v33 = vadd.f32 %v1557_v18, %v1469_v23  ;;  %v11037_v39 = vpack.c.bf16 %v1003_v26, %v1001_v14  ;;  %v806_v41 = vpop.f32.mrf.mxu2  ;;  %v8220_v26 = vld [vmem:[#allocation11 + $0x148] sm:$0xf] }
 0x20f   :  { %v807_v42 = vadd.f32 %v806_v41, %v10853_v35  ;;  %v8225_v41 = vor.u32 %v9283_v20, %v8222_v24 }
 0x210   :  { %vm2179_vm4 = vcmp.gt.f32.partialorder %v1558_v33, 0.0  ;;  %v2307_v31 = vmul.f32 0.2, %v1558_v33  ;;  %1510 = vmatmul.bf16.gmra.mxu3 %v11037_v39  ;;  %v1634_v51 = vpop.f32.mrf.mxu1 }
 0x211   :  { %vm876_vm5 = vcmp.gt.f32.partialorder %v807_v42, 0.0  ;;  %v940_v59 = vmul.f32 0.2, %v807_v42  ;;  %v1635_v54 = vadd.f32 %v1634_v51, %v11042_v44  ;;  %2075 = vmatpush.bf16.msra.mxu2 %v8225_v41 }
 0x212   :  { %v2435_v56 = vsel %vm2179_vm4, %v1558_v33, %v2307_v31  ;;  %v9285_v33 = vld [vmem:[#allocation11 + $0x154] sm:$0xf0] }
 0x213   :  { %v11044_v62 = vpack.c.bf16 %v2435_v56, %v2431_v53  ;;  %v1471_v0 = vpop.f32.mrf.mxu3  ;;  %v1560_v2 = vpop.f32.mrf.mxu0  ;;  %v1004_v28 = vsel %vm876_vm5, %v807_v42, %v940_v59  ;;  %1673 = vmatmul.bf16.gmra.mxu1 %v10988_v29  ;;  %1762 = vmatmul.bf16.gmra.mxu2 %v10995_v49  ;;  %v8221_v31 = vor.u32 %v9285_v33, %v8220_v26  ;;  %v9251_v42 = vld [vmem:[#allocation11 + $0x4c] sm:$0xf]  ;;  %v8094_v53 = vld [vmem:[#allocation11 + $0x58] sm:$0xf0] }
 0x214   :  { %v1472_v35 = vadd.f32 %v1471_v0, %v10993_v37  ;;  %v11049_v12 = vpack.c.bf16 %v1004_v28, %v1002_v60  ;;  %v8097_v51 = vor.u32 %v9251_v42, %v8094_v53 }
 0x215   :  { %1897 = vmatpush.bf16.msra.mxu0 %v8221_v31 }
 0x216   :  { %v1561_v15 = vadd.f32 %v1560_v2, %v1472_v35  ;;  %1599 = vmatmul.bf16.gmra.mxu0 %v11049_v12  ;;  %v1723_v11 = vpop.f32.mrf.mxu2  ;;  %1986 = vmatpush.bf16.msra.mxu1 %v8097_v51 }
 0x217   :  { %v1724_v16 = vadd.f32 %v1723_v11, %v1635_v54 }
 0x218   :  { %v1636_v18 = vpop.f32.mrf.mxu1  ;;  %v2311_v56 = vmul.f32 0.2, %v1561_v15  ;;  %vm2183_vm6 = vcmp.gt.f32.partialorder %v1561_v15, 0.0 }
 0x219   :  { %v1637_v59 = vadd.f32 %v1636_v18, %v11042_v44  ;;  %v2288_v2 = vmul.f32 0.2, %v1724_v16  ;;  %vm2160_vm8 = vcmp.gt.f32.partialorder %v1724_v16, 0.0 }
 0x21a   :  { %v2439_v35 = vsel %vm2183_vm6, %v1561_v15, %v2311_v56 }
 0x21b   :  { %v1473_v23 = vpop.f32.mrf.mxu3  ;;  %v1562_v14 = vpop.f32.mrf.mxu0 }
 0x21c   :  { %v1474_v38 = vadd.f32 %v1473_v23, %v10993_v37  ;;  %v2416_v23 = vsel %vm2160_vm8, %v1724_v16, %v2288_v2 }
 0x21e   :  { %v1563_v60 = vadd.f32 %v1562_v14, %v1474_v38  ;;  %v1725_v0 = vpop.f32.mrf.mxu2 }
 0x21f   :  { %v1726_v10 = vadd.f32 %v1725_v0, %v1637_v59 }
 0x220   :  { %vm2187_vm7 = vcmp.gt.f32.partialorder %v1563_v60, 0.0  ;;  %v2315_v6 = vmul.f32 0.2, %v1563_v60  ;;  %1515 = vmatmul.bf16.gmra.mxu3 %v10871_v19  ;;  %v1639_v28 = vpop.f32.mrf.mxu1 }
 0x221   :  { %vm2164_vm9 = vcmp.gt.f32.partialorder %v1726_v10, 0.0  ;;  %v2292_v54 = vmul.f32 0.2, %v1726_v10  ;;  %v1640_v33 = vadd.f32 %v1639_v28, %v11042_v44 }
 0x222   :  { %v2443_v25 = vsel %vm2187_vm7, %v1563_v60, %v2315_v6 }
 0x223   :  { %v11056_v11 = vpack.c.bf16 %v2443_v25, %v2439_v35  ;;  %v1476_v18 = vpop.f32.mrf.mxu3  ;;  %v1565_v20 = vpop.f32.mrf.mxu0  ;;  %v2420_v14 = vsel %vm2164_vm9, %v1726_v10, %v2292_v54  ;;  %1678 = vmatmul.bf16.gmra.mxu1 %v11005_v13  ;;  %1767 = vmatmul.bf16.gmra.mxu2 %v11014_v46 }
 0x224   :  { %v1477_v24 = vadd.f32 %v1476_v18, %v10993_v37  ;;  %v11061_v26 = vpack.c.bf16 %v2420_v14, %v2416_v23  ;;  %v8076_v14 = vld [vmem:[#allocation11 + $0x28] sm:$0xf] }
 0x226   :  { %v1566_v15 = vadd.f32 %v1565_v20, %v1477_v24  ;;  %1604 = vmatmul.bf16.gmra.mxu0 %v10934_v61  ;;  %v1728_v38 = vpop.f32.mrf.mxu2  ;;  %v9249_v24 = vld [vmem:[#allocation11 + $0x34] sm:$0xf0] }
 0x227   :  { %v1729_v41 = vadd.f32 %v1728_v38, %v1640_v33 }
 0x228   :  { %v1641_v31 = vpop.f32.mrf.mxu1  ;;  %v2319_v51 = vmul.f32 0.2, %v1566_v15  ;;  %vm2191_vm10 = vcmp.gt.f32.partialorder %v1566_v15, 0.0 }
 0x229   :  { %v1642_v56 = vadd.f32 %v1641_v31, %v11042_v44  ;;  %v2296_v60 = vmul.f32 0.2, %v1729_v41  ;;  %vm2168_vm11 = vcmp.gt.f32.partialorder %v1729_v41, 0.0  ;;  %v8077_v31 = vor.u32 %v9249_v24, %v8076_v14  ;;  %v9245_v14 = vld [vmem:[#allocation11 + $0x14] sm:$0xf0] }
 0x22a   :  { %v2447_v28 = vsel %vm2191_vm10, %v1566_v15, %v2319_v51 }
 0x22b   :  { %v1478_v42 = vpop.f32.mrf.mxu3  ;;  %v1567_v53 = vpop.f32.mrf.mxu0  ;;  %v2424_v54 = vsel %vm2168_vm11, %v1729_v41, %v2296_v60  ;;  %1809 = vmatpush.bf16.msra.mxu3 %v8077_v31 }
 0x22c   :  { %v1479_v16 = vadd.f32 %v1478_v42, %v10993_v37 }
 0x22e   :  { %v1568_v59 = vadd.f32 %v1567_v53, %v1479_v16  ;;  %v1730_v0 = vpop.f32.mrf.mxu2 }
 0x22f   :  { %v1731_v6 = vadd.f32 %v1730_v0, %v1642_v56  ;;  %v9279_v56 = vld [vmem:[#allocation11 + $0x12c] sm:$0xf]  ;;  %v8206_v0 = vld [vmem:[#allocation11 + $0x138] sm:$0xf0] }
 0x230   :  { %vm2195_vm12 = vcmp.gt.f32.partialorder %v1568_v59, 0.0  ;;  %v2323_v2 = vmul.f32 0.2, %v1568_v59  ;;  %1520 = vmatmul.bf16.gmra.mxu3 %v10887_v1  ;;  %v1644_v10 = vpop.f32.mrf.mxu1 }
 0x231   :  { %vm2172_vm13 = vcmp.gt.f32.partialorder %v1731_v6, 0.0  ;;  %v2300_v25 = vmul.f32 0.2, %v1731_v6  ;;  %v1645_v15 = vadd.f32 %v1644_v10, %v11042_v44  ;;  %v8060_v10 = vld [vmem:[#allocation11 + $0x8] sm:$0xf] }
 0x232   :  { %v2451_v35 = vsel %vm2195_vm12, %v1568_v59, %v2323_v2  ;;  %v8204_v2 = vld [vmem:[#allocation11 + $0x128] sm:$0xf]  ;;  %v8061_v31 = vor.u32 %v9245_v14, %v8060_v10 }
 0x233   :  { %v11068_v18 = vpack.c.bf16 %v2451_v35, %v2447_v28  ;;  %v1481_v20 = vpop.f32.mrf.mxu3  ;;  %v1570_v23 = vpop.f32.mrf.mxu0  ;;  %v2428_v33 = vsel %vm2172_vm13, %v1731_v6, %v2300_v25  ;;  %1683 = vmatmul.bf16.gmra.mxu1 %v11021_v36  ;;  %1772 = vmatmul.bf16.gmra.mxu2 %v11030_v3  ;;  %v9281_v6 = vld [vmem:[#allocation11 + $0x134] sm:$0xf0]  ;;  %v8209_v35 = vor.u32 %v9279_v56, %v8206_v0 }
 0x234   :  { %v1482_v38 = vadd.f32 %v1481_v20, %v10993_v37  ;;  %v11073_v42 = vpack.c.bf16 %v2428_v33, %v2424_v54  ;;  %v8205_v25 = vor.u32 %v9281_v6, %v8204_v2  ;;  %v9247_v54 = vld [vmem:[#allocation11 + $0x2c] sm:$0xf]  ;;  %v8078_v20 = vld [vmem:[#allocation11 + $0x38] sm:$0xf0]  ;;  %1810 = vmatpush.bf16.msra.mxu3 %v8061_v31  ;;  %v8188_v2 = vld [vmem:[#allocation11 + $0x108] sm:$0xf] }
 0x235   :  { %13442 = vst [vmem:[#allocation23_spill] sm:$0xff] %v11068_v18  ;;  %2076 = vmatpush.bf16.msra.mxu2 %v8209_v35  ;;  %v9277_v6 = vld [vmem:[#allocation11 + $0x114] sm:$0xf0] }
 0x236   :  { %v1571_v53 = vadd.f32 %v1570_v23, %v1482_v38  ;;  %1609 = vmatmul.bf16.gmra.mxu0 %v10950_v40  ;;  %v1733_v41 = vpop.f32.mrf.mxu2  ;;  %v8081_v23 = vor.u32 %v9247_v54, %v8078_v20  ;;  %v8189_v20 = vor.u32 %v9277_v6, %v8188_v2 }
 0x237   :  { %v1734_v16 = vadd.f32 %v1733_v41, %v1645_v15  ;;  %1898 = vmatpush.bf16.msra.mxu0 %v8205_v25 }
 0x238   :  { %v1646_v51 = vpop.f32.mrf.mxu1  ;;  %v2327_v24 = vmul.f32 0.2, %v1571_v53  ;;  %vm2199_vm14 = vcmp.gt.f32.partialorder %v1571_v53, 0.0  ;;  %1987 = vmatpush.bf16.msra.mxu1 %v8081_v23 }
 0x239   :  { %v1647_v33 = vadd.f32 %v1646_v51, %v11042_v44  ;;  %v2304_v41 = vmul.f32 0.2, %v1734_v16  ;;  %vm2176_vm0 = vcmp.gt.f32.partialorder %v1734_v16, 0.0 }
 0x23a   :  { %v2455_v54 = vsel %vm2199_vm14, %v1571_v53, %v2327_v24 }
 0x23b   :  { %v1483_v59 = vpop.f32.mrf.mxu3  ;;  %v1572_v60 = vpop.f32.mrf.mxu0  ;;  %v2432_v10 = vsel %vm2176_vm0, %v1734_v16, %v2304_v41  ;;  %1899 = vmatpush.bf16.msra.mxu0 %v8189_v20 }
 0x23c   :  { %v1484_v28 = vadd.f32 %v1483_v59, %v10993_v37 }
 0x23e   :  { %v1573_v38 = vadd.f32 %v1572_v60, %v1484_v28  ;;  %v1735_v15 = vpop.f32.mrf.mxu2 }
 0x23f   :  { %v1736_v56 = vadd.f32 %v1735_v15, %v1647_v33 }
 0x240   :  { %vm2203_vm15 = vcmp.gt.f32.partialorder %v1573_v38, 0.0  ;;  %v2331_v59 = vmul.f32 0.2, %v1573_v38  ;;  %1525 = vmatmul.bf16.gmra.mxu3 %v10902_v45  ;;  %v1649_v0 = vpop.f32.mrf.mxu1 }
 0x241   :  { %vm2180_vm1 = vcmp.gt.f32.partialorder %v1736_v56, 0.0  ;;  %v2308_v60 = vmul.f32 0.2, %v1736_v56  ;;  %v1650_v53 = vadd.f32 %v1649_v0, %v11042_v44 }
 0x242   :  { %v2459_v51 = vsel %vm2203_vm15, %v1573_v38, %v2331_v59 }
 0x243   :  { %v11080_v28 = vpack.c.bf16 %v2459_v51, %v2455_v54  ;;  %v1486_v35 = vpop.f32.mrf.mxu3  ;;  %v1575_v25 = vpop.f32.mrf.mxu0  ;;  %v2436_v23 = vsel %vm2180_vm1, %v1736_v56, %v2308_v60  ;;  %1688 = vmatmul.bf16.gmra.mxu1 %v11037_v39  ;;  %1777 = vmatmul.bf16.gmra.mxu2 %v11049_v12 }
 0x244   :  { %v1487_v14 = vadd.f32 %v1486_v35, %v10993_v37  ;;  %v11085_v33 = vpack.c.bf16 %v2436_v23, %v2432_v10 }
 0x245   :  { %13443 = vst [vmem:[#allocation24_spill] sm:$0xff] %v11080_v28 }
 0x246   :  { %v1576_v24 = vadd.f32 %v1575_v25, %v1487_v14  ;;  %1614 = vmatmul.bf16.gmra.mxu0 %v10966_v43  ;;  %v1738_v38 = vpop.f32.mrf.mxu2 }
 0x247   :  { %v1739_v31 = vadd.f32 %v1738_v38, %v1650_v53 }
 0x248   :  { %v1651_v15 = vpop.f32.mrf.mxu1  ;;  %v2335_v56 = vmul.f32 0.2, %v1576_v24  ;;  %vm2207_vm2 = vcmp.gt.f32.partialorder %v1576_v24, 0.0 }
 0x249   :  { %v1652_v2 = vadd.f32 %v1651_v15, %v11042_v44  ;;  %v2312_v51 = vmul.f32 0.2, %v1739_v31  ;;  %vm2184_vm4 = vcmp.gt.f32.partialorder %v1739_v31, 0.0 }
 0x24a   :  { %v2463_v25 = vsel %vm2207_vm2, %v1576_v24, %v2335_v56 }
 0x24b   :  { %v1488_v59 = vpop.f32.mrf.mxu3  ;;  %v1577_v16 = vpop.f32.mrf.mxu0  ;;  %v2440_v38 = vsel %vm2184_vm4, %v1739_v31, %v2312_v51  ;;  %v9275_v31 = vld [vmem:[#allocation11 + $0x10c] sm:$0xf]  ;;  %v8190_v51 = vld [vmem:[#allocation11 + $0x118] sm:$0xf0] }
 0x24c   :  { %v1489_v41 = vadd.f32 %v1488_v59, %v10993_v37 }
 0x24e   :  { %v1578_v6 = vadd.f32 %v1577_v16, %v1489_v41  ;;  %v1740_v54 = vpop.f32.mrf.mxu2 }
 0x24f   :  { %v1741_v0 = vadd.f32 %v1740_v54, %v1652_v2 }
 0x250   :  { %vm2211_vm3 = vcmp.gt.f32.partialorder %v1578_v6, 0.0  ;;  %v2339_v60 = vmul.f32 0.2, %v1578_v6  ;;  %1530 = vmatmul.bf16.gmra.mxu3 %v10918_v21  ;;  %v1654_v35 = vpop.f32.mrf.mxu1 }
 0x251   :  { %vm2188_vm5 = vcmp.gt.f32.partialorder %v1741_v0, 0.0  ;;  %v2316_v10 = vmul.f32 0.2, %v1741_v0  ;;  %v1655_v41 = vadd.f32 %v1654_v35, %v11042_v44 }
 0x252   :  { %v2467_v20 = vsel %vm2211_vm3, %v1578_v6, %v2339_v60 }
 0x253   :  { %v11092_v23 = vpack.c.bf16 %v2467_v20, %v2463_v25  ;;  %v1491_v14 = vpop.f32.mrf.mxu3  ;;  %v1580_v53 = vpop.f32.mrf.mxu0  ;;  %v2444_v15 = vsel %vm2188_vm5, %v1741_v0, %v2316_v10  ;;  %1693 = vmatmul.bf16.gmra.mxu1 %v10871_v19  ;;  %1782 = vmatmul.bf16.gmra.mxu2 %v10934_v61  ;;  %v8193_v25 = vor.u32 %v9275_v31, %v8190_v51  ;;  %v9243_v20 = vld [vmem:[#allocation11 + $0xc] sm:$0xf]  ;;  %v8062_v10 = vld [vmem:[#allocation11 + $0x18] sm:$0xf0] }
 0x254   :  { %v1492_v59 = vadd.f32 %v1491_v14, %v10993_v37  ;;  %v11097_v16 = vpack.c.bf16 %v2444_v15, %v2440_v38  ;;  %v8065_v14 = vor.u32 %v9243_v20, %v8062_v10 }
 0x255   :  { %13444 = vst [vmem:[#allocation25_spill] sm:$0xff] %v11092_v23  ;;  %2077 = vmatpush.bf16.msra.mxu2 %v8193_v25 }
 0x256   :  { %v1581_v24 = vadd.f32 %v1580_v53, %v1492_v59  ;;  %1619 = vmatmul.bf16.gmra.mxu0 %v10982_v8  ;;  %v1743_v56 = vpop.f32.mrf.mxu2  ;;  %1988 = vmatpush.bf16.msra.mxu1 %v8065_v14 }
 0x257   :  { %v1744_v2 = vadd.f32 %v1743_v56, %v1655_v41 }
 0x258   :  { %v1656_v6 = vpop.f32.mrf.mxu1  ;;  %v2343_v38 = vmul.f32 0.2, %v1581_v24  ;;  %vm2215_vm6 = vcmp.gt.f32.partialorder %v1581_v24, 0.0 }
 0x259   :  { %v1657_v15 = vadd.f32 %v1656_v6, %v11042_v44  ;;  %v2320_v59 = vmul.f32 0.2, %v1744_v2  ;;  %vm2192_vm8 = vcmp.gt.f32.partialorder %v1744_v2, 0.0 }
 0x25b   :  { %v1493_v54 = vpop.f32.mrf.mxu3  ;;  %v1582_v60 = vpop.f32.mrf.mxu0 }
 0x25c   :  { %v1494_v0 = vadd.f32 %v1493_v54, %v10993_v37  ;;  %v2471_v54 = vsel %vm2215_vm6, %v1581_v24, %v2343_v38 }
 0x25e   :  { %v1583_v35 = vadd.f32 %v1582_v60, %v1494_v0  ;;  %v1745_v53 = vpop.f32.mrf.mxu2  ;;  %v2448_v0 = vsel %vm2192_vm8, %v1744_v2, %v2320_v59 }
 0x25f   :  { %v1746_v56 = vadd.f32 %v1745_v53, %v1657_v15 }
 0x260   :  { %vm2219_vm7 = vcmp.gt.f32.partialorder %v1583_v35, 0.0  ;;  %v2347_v41 = vmul.f32 0.2, %v1583_v35  ;;  %v1659_v23 = vpop.f32.mrf.mxu1  ;;  %1811 = vmatmul.bf16.vlgmr.msra.gmra.mxu3 %v10859_v48 }
 0x261   :  { %vm2196_vm9 = vcmp.gt.f32.partialorder %v1746_v56, 0.0  ;;  %v2324_v51 = vmul.f32 0.2, %v1746_v56  ;;  %v1660_v15 = vadd.f32 %v1659_v23, %v11042_v44 }
 0x262   :  { %v2475_v31 = vsel %vm2219_vm7, %v1583_v35, %v2347_v41 }
 0x263   :  { %v11104_v20 = vpack.c.bf16 %v2475_v31, %v2471_v54  ;;  %v1496_v6 = vpop.f32.mrf.mxu3  ;;  %v1585_v60 = vpop.f32.mrf.mxu0  ;;  %v2452_v25 = vsel %vm2196_vm9, %v1746_v56, %v2324_v51  ;;  %1698 = vmatmul.bf16.gmra.mxu1 %v10887_v1  ;;  %1787 = vmatmul.bf16.gmra.mxu2 %v10950_v40 }
 0x264   :  { %v1497_v10 = vadd.f32 %v1496_v6, %v10993_v37  ;;  %v11109_v14 = vpack.c.bf16 %v2452_v25, %v2448_v0 }
 0x265   :  { %13445 = vst [vmem:[#allocation26_spill] sm:$0xff] %v11104_v20 }
 0x266   :  { %13446 = vst [vmem:[#allocation27_spill] sm:$0xff] %v11109_v14  ;;  %v1586_v24 = vadd.f32 %v1585_v60, %v1497_v10  ;;  %v1748_v38 = vpop.f32.mrf.mxu2  ;;  %1900 = vmatmul.bf16.vlgmr.msra.gmra.mxu0 %v10864_v4 }
 0x267   :  { %v1749_v35 = vadd.f32 %v1748_v38, %v1660_v15 }
 0x268   :  { %v1661_v53 = vpop.f32.mrf.mxu1  ;;  %v2351_v59 = vmul.f32 0.2, %v1586_v24  ;;  %vm2223_vm10 = vcmp.gt.f32.partialorder %v1586_v24, 0.0 }
 0x269   :  { %v1662_v56 = vadd.f32 %v1661_v53, %v11042_v44  ;;  %v2328_v6 = vmul.f32 0.2, %v1749_v35  ;;  %vm2200_vm12 = vcmp.gt.f32.partialorder %v1749_v35, 0.0 }
 0x26a   :  { %v2479_v25 = vsel %vm2223_vm10, %v1586_v24, %v2351_v59 }
 0x26b   :  { %v1498_v41 = vpop.f32.mrf.mxu3  ;;  %v1587_v54 = vpop.f32.mrf.mxu0 }
 0x26c   :  { %v1499_v2 = vadd.f32 %v1498_v41, %v10993_v37  ;;  %v2456_v41 = vsel %vm2200_vm12, %v1749_v35, %v2328_v6 }
 0x26e   :  { %v1588_v31 = vadd.f32 %v1587_v54, %v1499_v2  ;;  %v1750_v51 = vpop.f32.mrf.mxu2  ;;  %v8504_v2 = vld [vmem:[#allocation14 + $0x188] sm:$0xf] }
 0x26f   :  { %v1751_v23 = vadd.f32 %v1750_v51, %v1662_v56  ;;  %v9358_v56 = vld [vmem:[#allocation14 + $0x1a0] sm:$0xf0] }
 0x270   :  { %vm2227_vm11 = vcmp.gt.f32.partialorder %v1588_v31, 0.0  ;;  %v2355_v0 = vmul.f32 0.2, %v1588_v31  ;;  %v1664_v60 = vpop.f32.mrf.mxu1  ;;  %1816 = vmatmul.bf16.gmra.mxu3 %v10875_v27  ;;  %v8505_v24 = vor.u32 %v9358_v56, %v8504_v2 }
 0x271   :  { %vm2204_vm13 = vcmp.gt.f32.partialorder %v1751_v23, 0.0  ;;  %v2332_v15 = vmul.f32 0.2, %v1751_v23  ;;  %v1665_v59 = vadd.f32 %v1664_v60, %v11042_v44 }
 0x272   :  { %v2483_v10 = vsel %vm2227_vm11, %v1588_v31, %v2355_v0  ;;  %4031 = vmatpush.bf16.msrb.mxu3 %v8505_v24 }
 0x273   :  { %v11116_v38 = vpack.c.bf16 %v2483_v10, %v2479_v25  ;;  %v2460_v20 = vsel %vm2204_vm13, %v1751_v23, %v2332_v15  ;;  %v1501_v53 = vpop.f32.mrf.mxu3  ;;  %v1590_v54 = vpop.f32.mrf.mxu0  ;;  %1703 = vmatmul.bf16.gmra.mxu1 %v10902_v45  ;;  %1792 = vmatmul.bf16.gmra.mxu2 %v10966_v43  ;;  %v9176_v23 = vld [vmem:[#allocation14 + $0x6c8] sm:$0xf]  ;;  %v9526_v25 = vld [vmem:[#allocation14 + $0x6e0] sm:$0xf0] }
 0x274   :  { %v11120_v51 = vpack.c.bf16 %v2460_v20, %v2456_v41  ;;  %v1502_v28 = vadd.f32 %v1501_v53, %v10993_v37  ;;  %v8728_v10 = vld [vmem:[#allocation14 + $0x348] sm:$0xf]  ;;  %v9177_v14 = vor.u32 %v9526_v25, %v9176_v23  ;;  %v9414_v20 = vld [vmem:[#allocation14 + $0x360] sm:$0xf0] }
 0x275   :  { %13447 = vst [vmem:[#allocation28_spill] sm:$0xff] %v11116_v38  ;;  %v8952_v41 = vld [vmem:[#allocation14 + $0x508] sm:$0xf]  ;;  %v8729_v2 = vor.u32 %v9414_v20, %v8728_v10 }
 0x276   :  { %13448 = vst [vmem:[#allocation29_spill] sm:$0xff] %v11120_v51  ;;  %v1591_v31 = vadd.f32 %v1590_v54, %v1502_v28  ;;  %v1753_v0 = vpop.f32.mrf.mxu2  ;;  %1905 = vmatmul.bf16.gmra.mxu0 %v10880_v47  ;;  %v9470_v51 = vld [vmem:[#allocation14 + $0x520] sm:$0xf0]  ;;  %4298 = vmatpush.bf16.msrb.mxu2 %v9177_v14 }
 0x277   :  { %v1754_v35 = vadd.f32 %v1753_v0, %v1665_v59  ;;  %v8953_v60 = vor.u32 %v9470_v51, %v8952_v41  ;;  %4120 = vmatpush.bf16.msrb.mxu0 %v8729_v2 }
 0x278   :  { %v1666_v6 = vpop.f32.mrf.mxu1  ;;  %v2359_v54 = vmul.f32 0.2, %v1591_v31  ;;  %vm2231_vm14 = vcmp.gt.f32.partialorder %v1591_v31, 0.0 }
 0x279   :  { %v1667_v28 = vadd.f32 %v1666_v6, %v11042_v44  ;;  %4209 = vmatpush.bf16.msrb.mxu1 %v8953_v60  ;;  %v2336_v59 = vmul.f32 0.2, %v1754_v35  ;;  %vm2208_vm15 = vcmp.gt.f32.partialorder %v1754_v35, 0.0 }
 0x27a   :  { %v2487_v51 = vsel %vm2231_vm14, %v1591_v31, %v2359_v54 }
 0x27b   :  { %v1503_v15 = vpop.f32.mrf.mxu3  ;;  %v1592_v38 = vpop.f32.mrf.mxu0  ;;  %v2464_v6 = vsel %vm2208_vm15, %v1754_v35, %v2336_v59 }
 0x27c   :  { %v1504_v53 = vadd.f32 %v1503_v15, %v10993_v37 }
 0x27e   :  { %v1593_v56 = vadd.f32 %v1592_v38, %v1504_v53  ;;  %v1755_v24 = vpop.f32.mrf.mxu2 }
 0x27f   :  { %v1756_v0 = vadd.f32 %v1755_v24, %v1667_v28 }
 0x280   :  { %vm2235_vm0 = vcmp.gt.f32.partialorder %v1593_v56, 0.0  ;;  %v2363_v23 = vmul.f32 0.2, %v1593_v56  ;;  %v1669_v25 = vpop.f32.mrf.mxu1  ;;  %1821 = vmatmul.bf16.gmra.mxu3 %v10891_v17 }
 0x281   :  { %vm2212_vm1 = vcmp.gt.f32.partialorder %v1756_v0, 0.0  ;;  %v2340_v10 = vmul.f32 0.2, %v1756_v0  ;;  %v1670_v60 = vadd.f32 %v1669_v25, %v11042_v44 }
 0x282   :  { %v2491_v15 = vsel %vm2235_vm0, %v1593_v56, %v2363_v23 }
 0x283   :  { %v11128_v14 = vpack.c.bf16 %v2491_v15, %v2487_v51  ;;  %v2468_v38 = vsel %vm2212_vm1, %v1756_v0, %v2340_v10  ;;  %v1506_v20 = vpop.f32.mrf.mxu3  ;;  %v1595_v41 = vpop.f32.mrf.mxu0  ;;  %1708 = vmatmul.bf16.gmra.mxu1 %v10918_v21  ;;  %1797 = vmatmul.bf16.gmra.mxu2 %v10982_v8 }
 0x284   :  { %v11132_v53 = vpack.c.bf16 %v2468_v38, %v2464_v6  ;;  %v1507_v2 = vadd.f32 %v1506_v20, %v10993_v37 }
 0x285   :  { %13449 = vst [vmem:[#allocation30_spill] sm:$0xff] %v11128_v14 }
 0x286   :  { %13450 = vst [vmem:[#allocation31_spill] sm:$0xff] %v11132_v53  ;;  %v1596_v28 = vadd.f32 %v1595_v41, %v1507_v2  ;;  %v1758_v24 = vpop.f32.mrf.mxu2  ;;  %1910 = vmatmul.bf16.gmra.mxu0 %v10896_v55 }
 0x287   :  { %v1759_v31 = vadd.f32 %v1758_v24, %v1670_v60 }
 0x288   :  { %v1671_v35 = vpop.f32.mrf.mxu1  ;;  %v2367_v23 = vmul.f32 0.2, %v1596_v28  ;;  %vm2239_vm2 = vcmp.gt.f32.partialorder %v1596_v28, 0.0 }
 0x289   :  { %v1672_v0 = vadd.f32 %v1671_v35, %v11042_v44  ;;  %v2344_v15 = vmul.f32 0.2, %v1759_v31  ;;  %vm2216_vm3 = vcmp.gt.f32.partialorder %v1759_v31, 0.0 }
 0x28a   :  { %v2495_v41 = vsel %vm2239_vm2, %v1596_v28, %v2367_v23 }
 0x28b   :  { %v1508_v54 = vpop.f32.mrf.mxu3  ;;  %v1597_v56 = vpop.f32.mrf.mxu0  ;;  %v2472_v60 = vsel %vm2216_vm3, %v1759_v31, %v2344_v15 }
 0x28c   :  { %v1509_v59 = vadd.f32 %v1508_v54, %v10993_v37 }
 0x28e   :  { %v1598_v10 = vadd.f32 %v1597_v56, %v1509_v59  ;;  %v1760_v51 = vpop.f32.mrf.mxu2  ;;  %v8476_v59 = vld [vmem:[#allocation14 + $0x150] sm:$0xf] }
 0x28f   :  { %v1761_v6 = vadd.f32 %v1760_v51, %v1672_v0  ;;  %v9351_v0 = vld [vmem:[#allocation14 + $0x168] sm:$0xf0] }
 0x290   :  { %vm2243_vm4 = vcmp.gt.f32.partialorder %v1598_v10, 0.0  ;;  %v2371_v25 = vmul.f32 0.2, %v1598_v10  ;;  %v1674_v38 = vpop.f32.mrf.mxu1  ;;  %1826 = vmatmul.bf16.gmra.mxu3 %v10905_v52  ;;  %v8477_v53 = vor.u32 %v9351_v0, %v8476_v59 }
 0x291   :  { %vm2220_vm5 = vcmp.gt.f32.partialorder %v1761_v6, 0.0  ;;  %v2348_v20 = vmul.f32 0.2, %v1761_v6  ;;  %v1675_v28 = vadd.f32 %v1674_v38, %v11042_v44 }
 0x292   :  { %v2499_v2 = vsel %vm2243_vm4, %v1598_v10, %v2371_v25  ;;  %4032 = vmatpush.bf16.msrb.mxu3 %v8477_v53  ;;  %v8700_v25 = vld [vmem:[#allocation14 + $0x310] sm:$0xf] }
 0x293   :  { %v11140_v24 = vpack.c.bf16 %v2499_v2, %v2495_v41  ;;  %v2476_v35 = vsel %vm2220_vm5, %v1761_v6, %v2348_v20  ;;  %v1511_v54 = vpop.f32.mrf.mxu3  ;;  %v1600_v56 = vpop.f32.mrf.mxu0  ;;  %1989 = vmatmul.bf16.vlgmr.msra.gmra.mxu1 %v10859_v48  ;;  %2078 = vmatmul.bf16.vlgmr.msra.gmra.mxu2 %v10864_v4  ;;  %v9148_v6 = vld [vmem:[#allocation14 + $0x690] sm:$0xf]  ;;  %v9519_v48 = vld [vmem:[#allocation14 + $0x6a8] sm:$0xf0] }
 0x294   :  { %v11144_v51 = vpack.c.bf16 %v2476_v35, %v2472_v60  ;;  %v1512_v14 = vadd.f32 %v1511_v54, %v10993_v37  ;;  %v9149_v41 = vor.u32 %v9519_v48, %v9148_v6  ;;  %v9407_v2 = vld [vmem:[#allocation14 + $0x328] sm:$0xf0]  ;;  %v8924_v60 = vld [vmem:[#allocation14 + $0x4d0] sm:$0xf] }
 0x295   :  { %13451 = vst [vmem:[#allocation32_spill] sm:$0xff] %v11140_v24  ;;  %v9463_v35 = vld [vmem:[#allocation14 + $0x4e8] sm:$0xf0]  ;;  %v8701_v59 = vor.u32 %v9407_v2, %v8700_v25 }
 0x296   :  { %13452 = vst [vmem:[#allocation33_spill] sm:$0xff] %v11144_v51  ;;  %v1601_v23 = vadd.f32 %v1600_v56, %v1512_v14  ;;  %v1763_v31 = vpop.f32.mrf.mxu2  ;;  %1915 = vmatmul.bf16.gmra.mxu0 %v10910_v5  ;;  %v8925_v38 = vor.u32 %v9463_v35, %v8924_v60  ;;  %4299 = vmatpush.bf16.msrb.mxu2 %v9149_v41 }
 0x297   :  { %v1764_v10 = vadd.f32 %v1763_v31, %v1675_v28  ;;  %4121 = vmatpush.bf16.msrb.mxu0 %v8701_v59 }
 0x298   :  { %v1676_v15 = vpop.f32.mrf.mxu1  ;;  %v2375_v56 = vmul.f32 0.2, %v1601_v23  ;;  %4210 = vmatpush.bf16.msrb.mxu1 %v8925_v38  ;;  %vm2247_vm6 = vcmp.gt.f32.partialorder %v1601_v23, 0.0 }
 0x299   :  { %v1677_v14 = vadd.f32 %v1676_v15, %v11042_v44  ;;  %v2352_v28 = vmul.f32 0.2, %v1764_v10  ;;  %vm2224_vm7 = vcmp.gt.f32.partialorder %v1764_v10, 0.0 }
 0x29b   :  { %v1513_v4 = vpop.f32.mrf.mxu3  ;;  %v1602_v20 = vpop.f32.mrf.mxu0  ;;  %v2480_v15 = vsel %vm2224_vm7, %v1764_v10, %v2352_v28 }
 0x29c   :  { %v1514_v54 = vadd.f32 %v1513_v4, %v10993_v37  ;;  %v2503_v4 = vsel %vm2247_vm6, %v1601_v23, %v2375_v56 }
 0x29e   :  { %v1603_v53 = vadd.f32 %v1602_v20, %v1514_v54  ;;  %v1765_v0 = vpop.f32.mrf.mxu2 }
 0x29f   :  { %v1766_v31 = vadd.f32 %v1765_v0, %v1677_v14 }
 0x2a0   :  { %vm2251_vm8 = vcmp.gt.f32.partialorder %v1603_v53, 0.0  ;;  %v2379_v6 = vmul.f32 0.2, %v1603_v53  ;;  %v1679_v48 = vpop.f32.mrf.mxu1  ;;  %1831 = vmatmul.bf16.gmra.mxu3 %v10921_v34 }
 0x2a1   :  { %vm2228_vm9 = vcmp.gt.f32.partialorder %v1766_v31, 0.0  ;;  %v2356_v25 = vmul.f32 0.2, %v1766_v31  ;;  %v1680_v38 = vadd.f32 %v1679_v48, %v11042_v44 }
 0x2a2   :  { %v2507_v2 = vsel %vm2251_vm8, %v1603_v53, %v2379_v6 }
 0x2a3   :  { %v11152_v41 = vpack.c.bf16 %v2507_v2, %v2503_v4  ;;  %v2484_v20 = vsel %vm2228_vm9, %v1766_v31, %v2356_v25  ;;  %v1516_v60 = vpop.f32.mrf.mxu3  ;;  %v1605_v35 = vpop.f32.mrf.mxu0  ;;  %1994 = vmatmul.bf16.gmra.mxu1 %v10875_v27  ;;  %2083 = vmatmul.bf16.gmra.mxu2 %v10880_v47 }
 0x2a4   :  { %v11156_v54 = vpack.c.bf16 %v2484_v20, %v2480_v15  ;;  %v1517_v59 = vadd.f32 %v1516_v60, %v10993_v37 }
 0x2a5   :  { %13453 = vst [vmem:[#allocation34_spill] sm:$0xff] %v11152_v41 }
 0x2a6   :  { %13454 = vst [vmem:[#allocation35_spill] sm:$0xff] %v11156_v54  ;;  %v1606_v14 = vadd.f32 %v1605_v35, %v1517_v59  ;;  %v1768_v0 = vpop.f32.mrf.mxu2  ;;  %1920 = vmatmul.bf16.gmra.mxu0 %v10926_v63 }
 0x2a7   :  { %v1769_v23 = vadd.f32 %v1768_v0, %v1680_v38 }
 0x2a8   :  { %v1681_v10 = vpop.f32.mrf.mxu1  ;;  %v2383_v31 = vmul.f32 0.2, %v1606_v14  ;;  %vm2255_vm10 = vcmp.gt.f32.partialorder %v1606_v14, 0.0 }
 0x2a9   :  { %v1682_v27 = vadd.f32 %v1681_v10, %v11042_v44  ;;  %v2360_v25 = vmul.f32 0.2, %v1769_v23  ;;  %vm2232_vm11 = vcmp.gt.f32.partialorder %v1769_v23, 0.0 }
 0x2aa   :  { %v2511_v20 = vsel %vm2255_vm10, %v1606_v14, %v2383_v31 }
 0x2ab   :  { %v1518_v56 = vpop.f32.mrf.mxu3  ;;  %v1607_v53 = vpop.f32.mrf.mxu0  ;;  %v2488_v35 = vsel %vm2232_vm11, %v1769_v23, %v2360_v25 }
 0x2ac   :  { %v1519_v28 = vadd.f32 %v1518_v56, %v10993_v37  ;;  %v8448_v56 = vld [vmem:[#allocation14 + $0x118] sm:$0xf] }
 0x2ae   :  { %v1608_v47 = vadd.f32 %v1607_v53, %v1519_v28  ;;  %v1770_v6 = vpop.f32.mrf.mxu2  ;;  %v9344_v53 = vld [vmem:[#allocation14 + $0x130] sm:$0xf0] }
 0x2af   :  { %v1771_v4 = vadd.f32 %v1770_v6, %v1682_v27  ;;  %v8449_v6 = vor.u32 %v9344_v53, %v8448_v56 }
 0x2b0   :  { %vm2259_vm12 = vcmp.gt.f32.partialorder %v1608_v47, 0.0  ;;  %v2387_v48 = vmul.f32 0.2, %v1608_v47  ;;  %v1684_v2 = vpop.f32.mrf.mxu1  ;;  %1836 = vmatmul.bf16.gmra.mxu3 %v10937_v7 }
 0x2b1   :  { %vm2236_vm13 = vcmp.gt.f32.partialorder %v1771_v4, 0.0  ;;  %v2364_v15 = vmul.f32 0.2, %v1771_v4  ;;  %v1685_v14 = vadd.f32 %v1684_v2, %v11042_v44  ;;  %4033 = vmatpush.bf16.msrb.mxu3 %v8449_v6 }
 0x2b2   :  { %v2515_v60 = vsel %vm2259_vm12, %v1608_v47, %v2387_v48  ;;  %v8672_v48 = vld [vmem:[#allocation14 + $0x2d8] sm:$0xf] }
 0x2b3   :  { %v11164_v59 = vpack.c.bf16 %v2515_v60, %v2511_v20  ;;  %v2492_v38 = vsel %vm2236_vm13, %v1771_v4, %v2364_v15  ;;  %v1521_v0 = vpop.f32.mrf.mxu3  ;;  %v1610_v10 = vpop.f32.mrf.mxu0  ;;  %1999 = vmatmul.bf16.gmra.mxu1 %v10891_v17  ;;  %2088 = vmatmul.bf16.gmra.mxu2 %v10896_v55  ;;  %v9120_v4 = vld [vmem:[#allocation14 + $0x658] sm:$0xf]  ;;  %v9512_v17 = vld [vmem:[#allocation14 + $0x670] sm:$0xf0] }
 0x2b4   :  { %v11168_v28 = vpack.c.bf16 %v2492_v38, %v2488_v35  ;;  %v1522_v27 = vadd.f32 %v1521_v0, %v10993_v37  ;;  %v9121_v20 = vor.u32 %v9512_v17, %v9120_v4  ;;  %v9400_v60 = vld [vmem:[#allocation14 + $0x2f0] sm:$0xf0]  ;;  %v8896_v35 = vld [vmem:[#allocation14 + $0x498] sm:$0xf] }
 0x2b5   :  { %13455 = vst [vmem:[#allocation36_spill] sm:$0xff] %v11164_v59  ;;  %v9456_v38 = vld [vmem:[#allocation14 + $0x4b0] sm:$0xf0]  ;;  %v8673_v56 = vor.u32 %v9400_v60, %v8672_v48 }
 0x2b6   :  { %13456 = vst [vmem:[#allocation37_spill] sm:$0xff] %v11168_v28  ;;  %v1611_v31 = vadd.f32 %v1610_v10, %v1522_v27  ;;  %v1773_v23 = vpop.f32.mrf.mxu2  ;;  %1925 = vmatmul.bf16.gmra.mxu0 %v10942_v22  ;;  %v8897_v2 = vor.u32 %v9456_v38, %v8896_v35  ;;  %4300 = vmatpush.bf16.msrb.mxu2 %v9121_v20 }
 0x2b7   :  { %v1774_v47 = vadd.f32 %v1773_v23, %v1685_v14  ;;  %4122 = vmatpush.bf16.msrb.mxu0 %v8673_v56 }
 0x2b8   :  { %v1686_v25 = vpop.f32.mrf.mxu1  ;;  %v2391_v53 = vmul.f32 0.2, %v1611_v31  ;;  %4211 = vmatpush.bf16.msrb.mxu1 %v8897_v2  ;;  %vm2263_vm14 = vcmp.gt.f32.partialorder %v1611_v31, 0.0 }
 0x2b9   :  { %v1687_v10 = vadd.f32 %v1686_v25, %v11042_v44  ;;  %v2368_v14 = vmul.f32 0.2, %v1774_v47  ;;  %vm2240_vm15 = vcmp.gt.f32.partialorder %v1774_v47, 0.0 }
 0x2bb   :  { %v1523_v55 = vpop.f32.mrf.mxu3  ;;  %v1612_v15 = vpop.f32.mrf.mxu0  ;;  %v2496_v25 = vsel %vm2240_vm15, %v1774_v47, %v2368_v14 }
 0x2bc   :  { %v1524_v0 = vadd.f32 %v1523_v55, %v10993_v37  ;;  %v2519_v55 = vsel %vm2263_vm14, %v1611_v31, %v2391_v53 }
 0x2be   :  { %v1613_v27 = vadd.f32 %v1612_v15, %v1524_v0  ;;  %v1775_v6 = vpop.f32.mrf.mxu2 }
 0x2bf   :  { %v1776_v23 = vadd.f32 %v1775_v6, %v1687_v10 }
 0x2c0   :  { %vm2267_vm0 = vcmp.gt.f32.partialorder %v1613_v27, 0.0  ;;  %v2395_v4 = vmul.f32 0.2, %v1613_v27  ;;  %v1689_v17 = vpop.f32.mrf.mxu1  ;;  %1841 = vmatmul.bf16.gmra.mxu3 %v10953_v58 }
 0x2c1   :  { %vm2244_vm1 = vcmp.gt.f32.partialorder %v1776_v23, 0.0  ;;  %v2372_v48 = vmul.f32 0.2, %v1776_v23  ;;  %v1690_v2 = vadd.f32 %v1689_v17, %v11042_v44 }
 0x2c2   :  { %v2523_v60 = vsel %vm2267_vm0, %v1613_v27, %v2395_v4 }
 0x2c3   :  { %v11176_v20 = vpack.c.bf16 %v2523_v60, %v2519_v55  ;;  %v2500_v15 = vsel %vm2244_vm1, %v1776_v23, %v2372_v48  ;;  %v1526_v35 = vpop.f32.mrf.mxu3  ;;  %v1615_v38 = vpop.f32.mrf.mxu0  ;;  %2004 = vmatmul.bf16.gmra.mxu1 %v10905_v52  ;;  %2093 = vmatmul.bf16.gmra.mxu2 %v10910_v5 }
 0x2c4   :  { %v11180_v0 = vpack.c.bf16 %v2500_v15, %v2496_v25  ;;  %v1527_v56 = vadd.f32 %v1526_v35, %v10993_v37 }
 0x2c5   :  { %13457 = vst [vmem:[#allocation38_spill] sm:$0xff] %v11176_v20 }
 0x2c6   :  { %13458 = vst [vmem:[#allocation39_spill] sm:$0xff] %v11180_v0  ;;  %v1616_v10 = vadd.f32 %v1615_v38, %v1527_v56  ;;  %v1778_v6 = vpop.f32.mrf.mxu2  ;;  %1930 = vmatmul.bf16.gmra.mxu0 %v10958_v9 }
 0x2c7   :  { %v1779_v31 = vadd.f32 %v1778_v6, %v1690_v2 }
 0x2c8   :  { %v1691_v47 = vpop.f32.mrf.mxu1  ;;  %v2399_v23 = vmul.f32 0.2, %v1616_v10  ;;  %vm2271_vm2 = vcmp.gt.f32.partialorder %v1616_v10, 0.0 }
 0x2c9   :  { %v1692_v52 = vadd.f32 %v1691_v47, %v11042_v44  ;;  %v2376_v48 = vmul.f32 0.2, %v1779_v31  ;;  %vm2248_vm3 = vcmp.gt.f32.partialorder %v1779_v31, 0.0 }
 0x2ca   :  { %v2527_v15 = vsel %vm2271_vm2, %v1616_v10, %v2399_v23 }
 0x2cb   :  { %v1528_v53 = vpop.f32.mrf.mxu3  ;;  %v1617_v27 = vpop.f32.mrf.mxu0  ;;  %v2504_v38 = vsel %vm2248_vm3, %v1779_v31, %v2376_v48 }
 0x2cc   :  { %v1529_v14 = vadd.f32 %v1528_v53, %v10993_v37  ;;  %v8420_v53 = vld [vmem:[#allocation14 + $0xe0] sm:$0xf] }
 0x2ce   :  { %v1618_v5 = vadd.f32 %v1617_v27, %v1529_v14  ;;  %v1780_v4 = vpop.f32.mrf.mxu2  ;;  %v9337_v27 = vld [vmem:[#allocation14 + $0xf8] sm:$0xf0] }
 0x2cf   :  { %v1781_v55 = vadd.f32 %v1780_v4, %v1692_v52  ;;  %v8421_v4 = vor.u32 %v9337_v27, %v8420_v53 }
 0x2d0   :  { %vm2275_vm4 = vcmp.gt.f32.partialorder %v1618_v5, 0.0  ;;  %v2403_v17 = vmul.f32 0.2, %v1618_v5  ;;  %v1694_v60 = vpop.f32.mrf.mxu1  ;;  %1846 = vmatmul.bf16.gmra.mxu3 %v10969_v32 }
 0x2d1   :  { %vm2252_vm5 = vcmp.gt.f32.partialorder %v1781_v55, 0.0  ;;  %v2380_v25 = vmul.f32 0.2, %v1781_v55  ;;  %v1695_v10 = vadd.f32 %v1694_v60, %v11042_v44  ;;  %4034 = vmatpush.bf16.msrb.mxu3 %v8421_v4 }
 0x2d2   :  { %v2531_v35 = vsel %vm2275_vm4, %v1618_v5, %v2403_v17  ;;  %v8644_v17 = vld [vmem:[#allocation14 + $0x2a0] sm:$0xf] }
 0x2d3   :  { %v11188_v56 = vpack.c.bf16 %v2531_v35, %v2527_v15  ;;  %v2508_v2 = vsel %vm2252_vm5, %v1781_v55, %v2380_v25  ;;  %v1531_v6 = vpop.f32.mrf.mxu3  ;;  %v1620_v47 = vpop.f32.mrf.mxu0  ;;  %2009 = vmatmul.bf16.gmra.mxu1 %v10921_v34  ;;  %2098 = vmatmul.bf16.gmra.mxu2 %v10926_v63  ;;  %v9092_v55 = vld [vmem:[#allocation14 + $0x620] sm:$0xf]  ;;  %v9505_v34 = vld [vmem:[#allocation14 + $0x638] sm:$0xf0] }
 0x2d4   :  { %v11192_v14 = vpack.c.bf16 %v2508_v2, %v2504_v38  ;;  %v1532_v52 = vadd.f32 %v1531_v6, %v10993_v37  ;;  %v9093_v15 = vor.u32 %v9505_v34, %v9092_v55  ;;  %v9393_v35 = vld [vmem:[#allocation14 + $0x2b8] sm:$0xf0]  ;;  %v8868_v38 = vld [vmem:[#allocation14 + $0x460] sm:$0xf] }
 0x2d5   :  { %13459 = vst [vmem:[#allocation40_spill] sm:$0xff] %v11188_v56  ;;  %v9449_v2 = vld [vmem:[#allocation14 + $0x478] sm:$0xf0]  ;;  %v8645_v53 = vor.u32 %v9393_v35, %v8644_v17 }
 0x2d6   :  { %13460 = vst [vmem:[#allocation41_spill] sm:$0xff] %v11192_v14  ;;  %v1621_v23 = vadd.f32 %v1620_v47, %v1532_v52  ;;  %v1783_v31 = vpop.f32.mrf.mxu2  ;;  %1935 = vmatmul.bf16.gmra.mxu0 %v10974_v50  ;;  %v8869_v60 = vor.u32 %v9449_v2, %v8868_v38  ;;  %4301 = vmatpush.bf16.msrb.mxu2 %v9093_v15 }
 0x2d7   :  { %v1784_v5 = vadd.f32 %v1783_v31, %v1695_v10  ;;  %4123 = vmatpush.bf16.msrb.mxu0 %v8645_v53 }
 0x2d8   :  { %v1696_v48 = vpop.f32.mrf.mxu1  ;;  %v2407_v27 = vmul.f32 0.2, %v1621_v23  ;;  %4212 = vmatpush.bf16.msrb.mxu1 %v8869_v60  ;;  %vm2279_vm6 = vcmp.gt.f32.partialorder %v1621_v23, 0.0 }
 0x2d9   :  { %v1697_v47 = vadd.f32 %v1696_v48, %v11042_v44  ;;  %v2384_v10 = vmul.f32 0.2, %v1784_v5  ;;  %vm2256_vm7 = vcmp.gt.f32.partialorder %v1784_v5, 0.0 }
 0x2db   :  { %v1533_v63 = vpop.f32.mrf.mxu3  ;;  %v1622_v25 = vpop.f32.mrf.mxu0  ;;  %v2512_v15 = vsel %vm2256_vm7, %v1784_v5, %v2384_v10 }
 0x2dc   :  { %v1534_v6 = vadd.f32 %v1533_v63, %v10993_v37  ;;  %v11200_v37 = vld [vmem:[#allocation13] sm:$0xf]  ;;  %v2535_v63 = vsel %vm2279_vm6, %v1621_v23, %v2407_v27 }
 0x2dd   :  { %v11203_v17 = vperm.slane %v11200_v37, 2 }
 0x2de   :  { %v1623_v52 = vadd.f32 %v1622_v25, %v1534_v6  ;;  %v1785_v4 = vpop.f32.mrf.mxu2 }
 0x2df   :  { %v1786_v31 = vadd.f32 %v1785_v4, %v1697_v47 }
 0x2e0   :  { %vm2283_vm8 = vcmp.gt.f32.partialorder %v1623_v52, 0.0  ;;  %v2411_v55 = vmul.f32 0.2, %v1623_v52  ;;  %v1699_v34 = vpop.f32.mrf.mxu1  ;;  %1851 = vmatmul.bf16.gmra.mxu3 %v10988_v29 }
 0x2e1   :  { %vm2260_vm9 = vcmp.gt.f32.partialorder %v1786_v31, 0.0  ;;  %v2388_v48 = vmul.f32 0.2, %v1786_v31  ;;  %v1700_v47 = vadd.f32 %v1699_v34, %v11042_v44 }
 0x2e2   :  { %v2539_v25 = vsel %vm2283_vm8, %v1623_v52, %v2411_v55 }
 0x2e3   :  { %v11205_v35 = vpack.c.bf16 %v2539_v25, %v2535_v63  ;;  %v2516_v38 = vsel %vm2260_vm9, %v1786_v31, %v2388_v48  ;;  %v1812_v2 = vpop.f32.mrf.mxu3  ;;  %v1901_v6 = vpop.f32.mrf.mxu0  ;;  %2014 = vmatmul.bf16.gmra.mxu1 %v10937_v7  ;;  %2103 = vmatmul.bf16.gmra.mxu2 %v10942_v22 }
 0x2e4   :  { %v11209_v53 = vpack.c.bf16 %v2516_v38, %v2512_v15  ;;  %v1813_v60 = vadd.f32 %v1812_v2, %v11203_v17 }
 0x2e6   :  { %13461 = vst [vmem:[#allocation42_spill] sm:$0xff] %v11209_v53  ;;  %v1902_v4 = vadd.f32 %v1901_v6, %v1813_v60  ;;  %v1788_v56 = vpop.f32.mrf.mxu2  ;;  %1940 = vmatmul.bf16.gmra.mxu0 %v10995_v49 }
 0x2e7   :  { %v1789_v23 = vadd.f32 %v1788_v56, %v1700_v47 }
 0x2e8   :  { %v1701_v5 = vpop.f32.mrf.mxu1  ;;  %v2289_v31 = vmul.f32 0.2, %v1902_v4  ;;  %vm2161_vm10 = vcmp.gt.f32.partialorder %v1902_v4, 0.0 }
 0x2e9   :  { %v1702_v7 = vadd.f32 %v1701_v5, %v11042_v44  ;;  %v2392_v48 = vmul.f32 0.2, %v1789_v23  ;;  %vm2264_vm11 = vcmp.gt.f32.partialorder %v1789_v23, 0.0 }
 0x2ea   :  { %v2417_v15 = vsel %vm2161_vm10, %v1902_v4, %v2289_v31 }
 0x2eb   :  { %v1814_v27 = vpop.f32.mrf.mxu3  ;;  %v1903_v52 = vpop.f32.mrf.mxu0  ;;  %v2520_v2 = vsel %vm2264_vm11, %v1789_v23, %v2392_v48 }
 0x2ec   :  { %v1815_v10 = vadd.f32 %v1814_v27, %v11203_v17  ;;  %v8392_v27 = vld [vmem:[#allocation14 + $0xa8] sm:$0xf] }
 0x2ee   :  { %v1904_v22 = vadd.f32 %v1903_v52, %v1815_v10  ;;  %v1790_v55 = vpop.f32.mrf.mxu2  ;;  %v9330_v52 = vld [vmem:[#allocation14 + $0xc0] sm:$0xf0] }
 0x2ef   :  { %v1791_v63 = vadd.f32 %v1790_v55, %v1702_v7  ;;  %v8393_v55 = vor.u32 %v9330_v52, %v8392_v27 }
 0x2f0   :  { %vm2165_vm12 = vcmp.gt.f32.partialorder %v1904_v22, 0.0  ;;  %v2293_v34 = vmul.f32 0.2, %v1904_v22  ;;  %v1704_v25 = vpop.f32.mrf.mxu1  ;;  %1856 = vmatmul.bf16.gmra.mxu3 %v11005_v13 }
 0x2f1   :  { %vm2268_vm13 = vcmp.gt.f32.partialorder %v1791_v63, 0.0  ;;  %v2396_v56 = vmul.f32 0.2, %v1791_v63  ;;  %v1705_v4 = vadd.f32 %v1704_v25, %v11042_v44  ;;  %4035 = vmatpush.bf16.msrb.mxu3 %v8393_v55 }
 0x2f2   :  { %v2421_v38 = vsel %vm2165_vm12, %v1904_v22, %v2293_v34  ;;  %v8616_v34 = vld [vmem:[#allocation14 + $0x268] sm:$0xf] }
 0x2f3   :  { %v11217_v6 = vpack.c.bf16 %v2421_v38, %v2417_v15  ;;  %v2524_v60 = vsel %vm2268_vm13, %v1791_v63, %v2396_v56  ;;  %v1817_v47 = vpop.f32.mrf.mxu3  ;;  %v1906_v5 = vpop.f32.mrf.mxu0  ;;  %2019 = vmatmul.bf16.gmra.mxu1 %v10953_v58  ;;  %2108 = vmatmul.bf16.gmra.mxu2 %v10958_v9  ;;  %v9064_v63 = vld [vmem:[#allocation14 + $0x5e8] sm:$0xf]  ;;  %v9498_v58 = vld [vmem:[#allocation14 + $0x600] sm:$0xf0] }
 0x2f4   :  { %v11221_v10 = vpack.c.bf16 %v2524_v60, %v2520_v2  ;;  %v1818_v7 = vadd.f32 %v1817_v47, %v11203_v17  ;;  %v9065_v15 = vor.u32 %v9498_v58, %v9064_v63  ;;  %v9386_v38 = vld [vmem:[#allocation14 + $0x280] sm:$0xf0]  ;;  %v8840_v2 = vld [vmem:[#allocation14 + $0x428] sm:$0xf] }
 0x2f5   :  { %v9442_v60 = vld [vmem:[#allocation14 + $0x440] sm:$0xf0]  ;;  %v8617_v27 = vor.u32 %v9386_v38, %v8616_v34 }
 0x2f6   :  { %13462 = vst [vmem:[#allocation43_spill] sm:$0xff] %v11221_v10  ;;  %v1907_v31 = vadd.f32 %v1906_v5, %v1818_v7  ;;  %v1793_v23 = vpop.f32.mrf.mxu2  ;;  %1945 = vmatmul.bf16.gmra.mxu0 %v11014_v46  ;;  %v8841_v25 = vor.u32 %v9442_v60, %v8840_v2  ;;  %4302 = vmatpush.bf16.msrb.mxu2 %v9065_v15 }
 0x2f7   :  { %v1794_v22 = vadd.f32 %v1793_v23, %v1705_v4  ;;  %4124 = vmatpush.bf16.msrb.mxu0 %v8617_v27 }
 0x2f8   :  { %v1706_v48 = vpop.f32.mrf.mxu1  ;;  %v2297_v52 = vmul.f32 0.2, %v1907_v31  ;;  %4213 = vmatpush.bf16.msrb.mxu1 %v8841_v25  ;;  %vm2169_vm14 = vcmp.gt.f32.partialorder %v1907_v31, 0.0 }
 0x2f9   :  { %v1707_v5 = vadd.f32 %v1706_v48, %v11042_v44  ;;  %v2400_v4 = vmul.f32 0.2, %v1794_v22  ;;  %vm2272_vm15 = vcmp.gt.f32.partialorder %v1794_v22, 0.0 }
 0x2fb   :  { %v1819_v9 = vpop.f32.mrf.mxu3  ;;  %v1908_v56 = vpop.f32.mrf.mxu0  ;;  %v2528_v48 = vsel %vm2272_vm15, %v1794_v22, %v2400_v4 }
 0x2fc   :  { %v1820_v47 = vadd.f32 %v1819_v9, %v11203_v17  ;;  %v2425_v9 = vsel %vm2169_vm14, %v1907_v31, %v2297_v52 }
 0x2fe   :  { %v1909_v7 = vadd.f32 %v1908_v56, %v1820_v47  ;;  %v1795_v55 = vpop.f32.mrf.mxu2 }
 0x2ff   :  { %v1796_v23 = vadd.f32 %v1795_v55, %v1707_v5 }
 0x300   :  { %vm2173_vm0 = vcmp.gt.f32.partialorder %v1909_v7, 0.0  ;;  %v2301_v63 = vmul.f32 0.2, %v1909_v7  ;;  %v1709_v58 = vpop.f32.mrf.mxu1  ;;  %1861 = vmatmul.bf16.gmra.mxu3 %v11021_v36 }
 0x301   :  { %vm2276_vm1 = vcmp.gt.f32.partialorder %v1796_v23, 0.0  ;;  %v2404_v34 = vmul.f32 0.2, %v1796_v23  ;;  %v1710_v25 = vadd.f32 %v1709_v58, %v11042_v44 }
 0x302   :  { %v2429_v38 = vsel %vm2173_vm0, %v1909_v7, %v2301_v63 }
 0x303   :  { %v11229_v15 = vpack.c.bf16 %v2429_v38, %v2425_v9  ;;  %v2532_v56 = vsel %vm2276_vm1, %v1796_v23, %v2404_v34  ;;  %v1822_v2 = vpop.f32.mrf.mxu3  ;;  %v1911_v60 = vpop.f32.mrf.mxu0  ;;  %2024 = vmatmul.bf16.gmra.mxu1 %v10969_v32  ;;  %2113 = vmatmul.bf16.gmra.mxu2 %v10974_v50 }
 0x304   :  { %v11233_v47 = vpack.c.bf16 %v2532_v56, %v2528_v48  ;;  %v1823_v27 = vadd.f32 %v1822_v2, %v11203_v17  ;;  %v11242_v56 = vperm.slane %v11200_v37, 3 }
 0x305   :  { %13463 = vst [vmem:[#allocation44_spill] sm:$0xff] %v11229_v15 }
 0x306   :  { %v1912_v5 = vadd.f32 %v1911_v60, %v1823_v27  ;;  %v1798_v55 = vpop.f32.mrf.mxu2  ;;  %1950 = vmatmul.bf16.gmra.mxu0 %v11030_v3 }
 0x307   :  { %v1799_v31 = vadd.f32 %v1798_v55, %v1710_v25 }
 0x308   :  { %v1711_v22 = vpop.f32.mrf.mxu1  ;;  %v2305_v23 = vmul.f32 0.2, %v1912_v5  ;;  %vm2177_vm2 = vcmp.gt.f32.partialorder %v1912_v5, 0.0 }
 0x309   :  { %v1712_v32 = vadd.f32 %v1711_v22, %v11042_v44  ;;  %v2408_v34 = vmul.f32 0.2, %v1799_v31  ;;  %vm2280_vm3 = vcmp.gt.f32.partialorder %v1799_v31, 0.0 }
 0x30a   :  { %v2433_v2 = vsel %vm2177_vm2, %v1912_v5, %v2305_v23 }
 0x30b   :  { %v1824_v52 = vpop.f32.mrf.mxu3  ;;  %v1913_v7 = vpop.f32.mrf.mxu0  ;;  %v2536_v44 = vsel %vm2280_vm3, %v1799_v31, %v2408_v34  ;;  %v9036_v34 = vld [vmem:[#allocation14 + $0x5b0] sm:$0xf] }
 0x30c   :  { %v1825_v4 = vadd.f32 %v1824_v52, %v11203_v17  ;;  %v8364_v52 = vld [vmem:[#allocation14 + $0x70] sm:$0xf] }
 0x30e   :  { %v1914_v50 = vadd.f32 %v1913_v7, %v1825_v4  ;;  %v1800_v63 = vpop.f32.mrf.mxu2  ;;  %v9323_v7 = vld [vmem:[#allocation14 + $0x88] sm:$0xf0] }
 0x30f   :  { %v1801_v9 = vadd.f32 %v1800_v63, %v1712_v32  ;;  %v8365_v37 = vor.u32 %v9323_v7, %v8364_v52 }
 0x310   :  { %vm2181_vm4 = vcmp.gt.f32.partialorder %v1914_v50, 0.0  ;;  %v2309_v58 = vmul.f32 0.2, %v1914_v50  ;;  %1866 = vmatmul.bf16.gmra.mxu3 %v11037_v39  ;;  %v1990_v38 = vpop.f32.mrf.mxu1 }
 0x311   :  { %vm2284_vm5 = vcmp.gt.f32.partialorder %v1801_v9, 0.0  ;;  %v2412_v48 = vmul.f32 0.2, %v1801_v9  ;;  %v1991_v5 = vadd.f32 %v1990_v38, %v11242_v56  ;;  %4036 = vmatpush.bf16.msrb.mxu3 %v8365_v37 }
 0x312   :  { %v2437_v60 = vsel %vm2181_vm4, %v1914_v50, %v2309_v58 }
 0x313   :  { %v11244_v27 = vpack.c.bf16 %v2437_v60, %v2433_v2  ;;  %v2540_v25 = vsel %vm2284_vm5, %v1801_v9, %v2412_v48  ;;  %v1827_v55 = vpop.f32.mrf.mxu3  ;;  %v1916_v22 = vpop.f32.mrf.mxu0  ;;  %2029 = vmatmul.bf16.gmra.mxu1 %v10988_v29  ;;  %2118 = vmatmul.bf16.gmra.mxu2 %v10995_v49  ;;  %v9491_v29 = vld [vmem:[#allocation14 + $0x5c8] sm:$0xf0]  ;;  %v8588_v9 = vld [vmem:[#allocation14 + $0x230] sm:$0xf] }
 0x314   :  { %v11248_v4 = vpack.c.bf16 %v2540_v25, %v2536_v44  ;;  %v1828_v32 = vadd.f32 %v1827_v55, %v11203_v17  ;;  %v9037_v48 = vor.u32 %v9491_v29, %v9036_v34  ;;  %v9379_v2 = vld [vmem:[#allocation14 + $0x248] sm:$0xf0]  ;;  %v8812_v60 = vld [vmem:[#allocation14 + $0x3f0] sm:$0xf] }
 0x315   :  { %13464 = vst [vmem:[#allocation45_spill] sm:$0xff] %v11244_v27  ;;  %v9435_v44 = vld [vmem:[#allocation14 + $0x408] sm:$0xf0]  ;;  %v8589_v55 = vor.u32 %v9379_v2, %v8588_v9 }
 0x316   :  { %v1917_v23 = vadd.f32 %v1916_v22, %v1828_v32  ;;  %1955 = vmatmul.bf16.gmra.mxu0 %v11049_v12  ;;  %v2079_v31 = vpop.f32.mrf.mxu2  ;;  %v8813_v38 = vor.u32 %v9435_v44, %v8812_v60  ;;  %4303 = vmatpush.bf16.msrb.mxu2 %v9037_v48 }
 0x317   :  { %v2080_v50 = vadd.f32 %v2079_v31, %v1991_v5  ;;  %4125 = vmatpush.bf16.msrb.mxu0 %v8589_v55 }
 0x318   :  { %v1992_v63 = vpop.f32.mrf.mxu1  ;;  %v2313_v52 = vmul.f32 0.2, %v1917_v23  ;;  %4214 = vmatpush.bf16.msrb.mxu1 %v8813_v38  ;;  %vm2185_vm6 = vcmp.gt.f32.partialorder %v1917_v23, 0.0 }
 0x319   :  { %v1993_v22 = vadd.f32 %v1992_v63, %v11242_v56  ;;  %v2290_v37 = vmul.f32 0.2, %v2080_v50  ;;  %vm2162_vm7 = vcmp.gt.f32.partialorder %v2080_v50, 0.0 }
 0x31a   :  { %v2441_v9 = vsel %vm2185_vm6, %v1917_v23, %v2313_v52 }
 0x31b   :  { %v1829_v49 = vpop.f32.mrf.mxu3  ;;  %v1918_v58 = vpop.f32.mrf.mxu0  ;;  %v2418_v63 = vsel %vm2162_vm7, %v2080_v50, %v2290_v37 }
 0x31c   :  { %v1830_v25 = vadd.f32 %v1829_v49, %v11203_v17 }
 0x31e   :  { %v1919_v7 = vadd.f32 %v1918_v58, %v1830_v25  ;;  %v2081_v32 = vpop.f32.mrf.mxu2 }
 0x31f   :  { %v2082_v5 = vadd.f32 %v2081_v32, %v1993_v22 }
 0x320   :  { %vm2189_vm8 = vcmp.gt.f32.partialorder %v1919_v7, 0.0  ;;  %v2317_v31 = vmul.f32 0.2, %v1919_v7  ;;  %1871 = vmatmul.bf16.gmra.mxu3 %v10871_v19  ;;  %v1995_v34 = vpop.f32.mrf.mxu1 }
 0x321   :  { %vm2166_vm9 = vcmp.gt.f32.partialorder %v2082_v5, 0.0  ;;  %v2294_v29 = vmul.f32 0.2, %v2082_v5  ;;  %v1996_v55 = vadd.f32 %v1995_v34, %v11242_v56 }
 0x322   :  { %v2445_v49 = vsel %vm2189_vm8, %v1919_v7, %v2317_v31 }
 0x323   :  { %v11256_v48 = vpack.c.bf16 %v2445_v49, %v2441_v9  ;;  %v2422_v58 = vsel %vm2166_vm9, %v2082_v5, %v2294_v29  ;;  %v1832_v2 = vpop.f32.mrf.mxu3  ;;  %v1921_v60 = vpop.f32.mrf.mxu0  ;;  %2034 = vmatmul.bf16.gmra.mxu1 %v11005_v13  ;;  %2123 = vmatmul.bf16.gmra.mxu2 %v11014_v46 }
 0x324   :  { %v11260_v44 = vpack.c.bf16 %v2422_v58, %v2418_v63  ;;  %v1833_v25 = vadd.f32 %v1832_v2, %v11203_v17 }
 0x325   :  { %13465 = vst [vmem:[#allocation46_spill] sm:$0xff] %v11256_v48 }
 0x326   :  { %13466 = vst [vmem:[#allocation47_spill] sm:$0xff] %v11260_v44  ;;  %v1922_v38 = vadd.f32 %v1921_v60, %v1833_v25  ;;  %1960 = vmatmul.bf16.gmra.mxu0 %v10934_v61  ;;  %v2084_v23 = vpop.f32.mrf.mxu2 }
 0x327   :  { %v2085_v50 = vadd.f32 %v2084_v23, %v1996_v55 }
 0x328   :  { %v1997_v22 = vpop.f32.mrf.mxu1  ;;  %v2321_v37 = vmul.f32 0.2, %v1922_v38  ;;  %vm2193_vm10 = vcmp.gt.f32.partialorder %v1922_v38, 0.0 }
 0x329   :  { %v1998_v13 = vadd.f32 %v1997_v22, %v11242_v56  ;;  %v2298_v31 = vmul.f32 0.2, %v2085_v50  ;;  %vm2170_vm11 = vcmp.gt.f32.partialorder %v2085_v50, 0.0  ;;  %v8336_v22 = vld [vmem:[#allocation14 + $0x38] sm:$0xf] }
 0x32a   :  { %v2449_v63 = vsel %vm2193_vm10, %v1922_v38, %v2321_v37 }
 0x32b   :  { %v1834_v52 = vpop.f32.mrf.mxu3  ;;  %v1923_v7 = vpop.f32.mrf.mxu0  ;;  %v2426_v2 = vsel %vm2170_vm11, %v2085_v50, %v2298_v31  ;;  %v9008_v31 = vld [vmem:[#allocation14 + $0x578] sm:$0xf] }
 0x32c   :  { %v1835_v32 = vadd.f32 %v1834_v52, %v11203_v17  ;;  %v9316_v52 = vld [vmem:[#allocation14 + $0x50] sm:$0xf0] }
 0x32e   :  { %v1924_v46 = vadd.f32 %v1923_v7, %v1835_v32  ;;  %v2086_v5 = vpop.f32.mrf.mxu2 }
 0x32f   :  { %v2087_v29 = vadd.f32 %v2086_v5, %v1998_v13  ;;  %v8337_v13 = vor.u32 %v9316_v52, %v8336_v22  ;;  %v9309_v22 = vld [vmem:[#allocation14 + $0x18] sm:$0xf0] }
 0x330   :  { %vm2197_vm12 = vcmp.gt.f32.partialorder %v1924_v46, 0.0  ;;  %v2325_v34 = vmul.f32 0.2, %v1924_v46  ;;  %1876 = vmatmul.bf16.gmra.mxu3 %v10887_v1  ;;  %v2000_v9 = vpop.f32.mrf.mxu1 }
 0x331   :  { %vm2174_vm13 = vcmp.gt.f32.partialorder %v2087_v29, 0.0  ;;  %v2302_v49 = vmul.f32 0.2, %v2087_v29  ;;  %v2001_v38 = vadd.f32 %v2000_v9, %v11242_v56  ;;  %4037 = vmatpush.bf16.msrb.mxu3 %v8337_v13 }
 0x332   :  { %v2453_v58 = vsel %vm2197_vm12, %v1924_v46, %v2325_v34 }
 0x333   :  { %v11268_v60 = vpack.c.bf16 %v2453_v58, %v2449_v63  ;;  %v2430_v25 = vsel %vm2174_vm13, %v2087_v29, %v2302_v49  ;;  %v1837_v55 = vpop.f32.mrf.mxu3  ;;  %v1926_v23 = vpop.f32.mrf.mxu0  ;;  %2039 = vmatmul.bf16.gmra.mxu1 %v11021_v36  ;;  %2128 = vmatmul.bf16.gmra.mxu2 %v11030_v3  ;;  %v9484_v36 = vld [vmem:[#allocation14 + $0x590] sm:$0xf0]  ;;  %v8560_v29 = vld [vmem:[#allocation14 + $0x1f8] sm:$0xf] }
 0x334   :  { %v11272_v7 = vpack.c.bf16 %v2430_v25, %v2426_v2  ;;  %v1838_v32 = vadd.f32 %v1837_v55, %v11203_v17  ;;  %v9009_v49 = vor.u32 %v9484_v36, %v9008_v31  ;;  %v9372_v63 = vld [vmem:[#allocation14 + $0x210] sm:$0xf0]  ;;  %v8784_v58 = vld [vmem:[#allocation14 + $0x3b8] sm:$0xf] }
 0x335   :  { %13467 = vst [vmem:[#allocation48_spill] sm:$0xff] %v11268_v60  ;;  %v9428_v2 = vld [vmem:[#allocation14 + $0x3d0] sm:$0xf0]  ;;  %v8561_v55 = vor.u32 %v9372_v63, %v8560_v29  ;;  %v8532_v63 = vld [vmem:[#allocation14 + $0x1c0] sm:$0xf] }
 0x336   :  { %13468 = vst [vmem:[#allocation49_spill] sm:$0xff] %v11272_v7  ;;  %v1927_v37 = vadd.f32 %v1926_v23, %v1838_v32  ;;  %1965 = vmatmul.bf16.gmra.mxu0 %v10950_v40  ;;  %v2089_v50 = vpop.f32.mrf.mxu2  ;;  %v8785_v9 = vor.u32 %v9428_v2, %v8784_v58  ;;  %v8308_v23 = vld [vmem:[#allocation14] sm:$0xf]  ;;  %4304 = vmatpush.bf16.msrb.mxu2 %v9009_v49  ;;  %v9365_v49 = vld [vmem:[#allocation14 + $0x1d8] sm:$0xf0] }
 0x337   :  { %v2090_v46 = vadd.f32 %v2089_v50, %v2001_v38  ;;  %v8309_v32 = vor.u32 %v9309_v22, %v8308_v23  ;;  %4126 = vmatpush.bf16.msrb.mxu0 %v8561_v55 }
 0x338   :  { %v2002_v5 = vpop.f32.mrf.mxu1  ;;  %v2329_v13 = vmul.f32 0.2, %v1927_v37  ;;  %4215 = vmatpush.bf16.msrb.mxu1 %v8785_v9  ;;  %vm2201_vm14 = vcmp.gt.f32.partialorder %v1927_v37, 0.0 }
 0x339   :  { %v2003_v52 = vadd.f32 %v2002_v5, %v11242_v56  ;;  %v2306_v31 = vmul.f32 0.2, %v2090_v46  ;;  %4038 = vmatpush.bf16.msrb.mxu3 %v8309_v32  ;;  %vm2178_vm15 = vcmp.gt.f32.partialorder %v2090_v46, 0.0 }
 0x33a   :  { %v2457_v58 = vsel %vm2201_vm14, %v1927_v37, %v2329_v13 }
 0x33b   :  { %v1839_v3 = vpop.f32.mrf.mxu3  ;;  %v1928_v34 = vpop.f32.mrf.mxu0 }
 0x33c   :  { %v1840_v25 = vadd.f32 %v1839_v3, %v11203_v17 }
 0x33e   :  { %v1929_v38 = vadd.f32 %v1928_v34, %v1840_v25  ;;  %v2091_v50 = vpop.f32.mrf.mxu2  ;;  %v8533_v34 = vor.u32 %v9365_v49, %v8532_v63  ;;  %v2434_v25 = vsel %vm2178_vm15, %v2090_v46, %v2306_v31 }
 0x33f   :  { %v2092_v36 = vadd.f32 %v2091_v50, %v2003_v52 }
 0x340   :  { %vm2205_vm0 = vcmp.gt.f32.partialorder %v1929_v38, 0.0  ;;  %v2333_v3 = vmul.f32 0.2, %v1929_v38  ;;  %1881 = vmatmul.bf16.gmra.mxu3 %v10902_v45  ;;  %v2005_v29 = vpop.f32.mrf.mxu1  ;;  %4127 = vmatpush.bf16.msrb.mxu0 %v8533_v34 }
 0x341   :  { %vm2182_vm1 = vcmp.gt.f32.partialorder %v2092_v36, 0.0  ;;  %v2310_v5 = vmul.f32 0.2, %v2092_v36  ;;  %v2006_v50 = vadd.f32 %v2005_v29, %v11242_v56 }
 0x342   :  { %v2461_v2 = vsel %vm2205_vm0, %v1929_v38, %v2333_v3 }
 0x343   :  { %v11280_v55 = vpack.c.bf16 %v2461_v2, %v2457_v58  ;;  %v2438_v9 = vsel %vm2182_vm1, %v2092_v36, %v2310_v5  ;;  %v1842_v23 = vpop.f32.mrf.mxu3  ;;  %v1931_v22 = vpop.f32.mrf.mxu0  ;;  %2044 = vmatmul.bf16.gmra.mxu1 %v11037_v39  ;;  %2133 = vmatmul.bf16.gmra.mxu2 %v11049_v12 }
 0x344   :  { %v11284_v52 = vpack.c.bf16 %v2438_v9, %v2434_v25  ;;  %v1843_v32 = vadd.f32 %v1842_v23, %v11203_v17 }
 0x345   :  { %13469 = vst [vmem:[#allocation50_spill] sm:$0xff] %v11280_v55 }
 0x346   :  { %13470 = vst [vmem:[#allocation51_spill] sm:$0xff] %v11284_v52  ;;  %v1932_v37 = vadd.f32 %v1931_v22, %v1843_v32  ;;  %1970 = vmatmul.bf16.gmra.mxu0 %v10966_v43  ;;  %v2094_v46 = vpop.f32.mrf.mxu2 }
 0x347   :  { %v2095_v13 = vadd.f32 %v2094_v46, %v2006_v50 }
 0x348   :  { %v2007_v38 = vpop.f32.mrf.mxu1  ;;  %v2337_v12 = vmul.f32 0.2, %v1932_v37  ;;  %vm2209_vm2 = vcmp.gt.f32.partialorder %v1932_v37, 0.0 }
 0x349   :  { %v2008_v39 = vadd.f32 %v2007_v38, %v11242_v56  ;;  %v2314_v49 = vmul.f32 0.2, %v2095_v13  ;;  %vm2186_vm3 = vcmp.gt.f32.partialorder %v2095_v13, 0.0 }
 0x34a   :  { %v2465_v25 = vsel %vm2209_vm2, %v1932_v37, %v2337_v12  ;;  %v8980_v12 = vld [vmem:[#allocation14 + $0x540] sm:$0xf] }
 0x34b   :  { %v1844_v31 = vpop.f32.mrf.mxu3  ;;  %v1933_v36 = vpop.f32.mrf.mxu0  ;;  %v2442_v23 = vsel %vm2186_vm3, %v2095_v13, %v2314_v49 }
 0x34c   :  { %v1845_v3 = vadd.f32 %v1844_v31, %v11203_v17 }
 0x34e   :  { %v1934_v63 = vadd.f32 %v1933_v36, %v1845_v3  ;;  %v2096_v5 = vpop.f32.mrf.mxu2 }
 0x34f   :  { %v2097_v58 = vadd.f32 %v2096_v5, %v2008_v39 }
 0x350   :  { %vm2213_vm4 = vcmp.gt.f32.partialorder %v1934_v63, 0.0  ;;  %v2341_v29 = vmul.f32 0.2, %v1934_v63  ;;  %1886 = vmatmul.bf16.gmra.mxu3 %v10918_v21  ;;  %v2010_v2 = vpop.f32.mrf.mxu1 }
 0x351   :  { %vm2190_vm5 = vcmp.gt.f32.partialorder %v2097_v58, 0.0  ;;  %v2318_v34 = vmul.f32 0.2, %v2097_v58  ;;  %v2011_v36 = vadd.f32 %v2010_v2, %v11242_v56 }
 0x352   :  { %v2469_v9 = vsel %vm2213_vm4, %v1934_v63, %v2341_v29  ;;  %v9477_v63 = vld [vmem:[#allocation14 + $0x558] sm:$0xf0] }
 0x353   :  { %v11292_v22 = vpack.c.bf16 %v2469_v9, %v2465_v25  ;;  %v2446_v32 = vsel %vm2190_vm5, %v2097_v58, %v2318_v34  ;;  %v1847_v50 = vpop.f32.mrf.mxu3  ;;  %v1936_v46 = vpop.f32.mrf.mxu0  ;;  %2049 = vmatmul.bf16.gmra.mxu1 %v10871_v19  ;;  %2138 = vmatmul.bf16.gmra.mxu2 %v10934_v61  ;;  %v8981_v58 = vor.u32 %v9477_v63, %v8980_v12  ;;  %v8756_v19 = vld [vmem:[#allocation14 + $0x380] sm:$0xf]  ;;  %v9421_v29 = vld [vmem:[#allocation14 + $0x398] sm:$0xf0] }
 0x354   :  { %v11296_v38 = vpack.c.bf16 %v2446_v32, %v2442_v23  ;;  %v1848_v31 = vadd.f32 %v1847_v50, %v11203_v17  ;;  %v8757_v34 = vor.u32 %v9421_v29, %v8756_v19 }
 0x355   :  { %13471 = vst [vmem:[#allocation52_spill] sm:$0xff] %v11292_v22  ;;  %4305 = vmatpush.bf16.msrb.mxu2 %v8981_v58 }
 0x356   :  { %13472 = vst [vmem:[#allocation53_spill] sm:$0xff] %v11296_v38  ;;  %v1937_v3 = vadd.f32 %v1936_v46, %v1848_v31  ;;  %1975 = vmatmul.bf16.gmra.mxu0 %v10982_v8  ;;  %v2099_v37 = vpop.f32.mrf.mxu2  ;;  %4216 = vmatpush.bf16.msrb.mxu1 %v8757_v34 }
 0x357   :  { %v2100_v13 = vadd.f32 %v2099_v37, %v2011_v36 }
 0x358   :  { %v2012_v39 = vpop.f32.mrf.mxu1  ;;  %v2345_v2 = vmul.f32 0.2, %v1937_v3  ;;  %vm2217_vm6 = vcmp.gt.f32.partialorder %v1937_v3, 0.0 }
 0x359   :  { %v2013_v25 = vadd.f32 %v2012_v39, %v11242_v56  ;;  %v2322_v32 = vmul.f32 0.2, %v2100_v13  ;;  %vm2194_vm7 = vcmp.gt.f32.partialorder %v2100_v13, 0.0 }
 0x35a   :  { %v2473_v37 = vsel %vm2217_vm6, %v1937_v3, %v2345_v2 }
 0x35b   :  { %v1849_v5 = vpop.f32.mrf.mxu3  ;;  %v1938_v49 = vpop.f32.mrf.mxu0  ;;  %v2450_v63 = vsel %vm2194_vm7, %v2100_v13, %v2322_v32 }
 0x35c   :  { %v1850_v61 = vadd.f32 %v1849_v5, %v11203_v17 }
 0x35e   :  { %v1939_v9 = vadd.f32 %v1938_v49, %v1850_v61  ;;  %v2101_v23 = vpop.f32.mrf.mxu2 }
 0x35f   :  { %v2102_v50 = vadd.f32 %v2101_v23, %v2013_v25 }
 0x360   :  { %vm2221_vm8 = vcmp.gt.f32.partialorder %v1939_v9, 0.0  ;;  %v2349_v46 = vmul.f32 0.2, %v1939_v9  ;;  %v2015_v31 = vpop.f32.mrf.mxu1  ;;  %4039 = vmatmul.bf16.vlgmr.msrb.gmra.mxu3 %v11009_v30 }
 0x361   :  { %vm2198_vm9 = vcmp.gt.f32.partialorder %v2102_v50, 0.0  ;;  %v2326_v36 = vmul.f32 0.2, %v2102_v50  ;;  %v2016_v61 = vadd.f32 %v2015_v31, %v11242_v56 }
 0x362   :  { %v2477_v12 = vsel %vm2221_vm8, %v1939_v9, %v2349_v46 }
 0x363   :  { %v11304_v39 = vpack.c.bf16 %v2477_v12, %v2473_v37  ;;  %v2454_v5 = vsel %vm2198_vm9, %v2102_v50, %v2326_v36  ;;  %v1852_v49 = vpop.f32.mrf.mxu3  ;;  %v1941_v58 = vpop.f32.mrf.mxu0  ;;  %2054 = vmatmul.bf16.gmra.mxu1 %v10887_v1  ;;  %2143 = vmatmul.bf16.gmra.mxu2 %v10950_v40 }
 0x364   :  { %v11308_v19 = vpack.c.bf16 %v2454_v5, %v2450_v63  ;;  %v1853_v29 = vadd.f32 %v1852_v49, %v11203_v17 }
 0x365   :  { %13473 = vst [vmem:[#allocation54_spill] sm:$0xff] %v11304_v39 }
 0x366   :  { %13474 = vst [vmem:[#allocation55_spill] sm:$0xff] %v11308_v19  ;;  %v1942_v34 = vadd.f32 %v1941_v58, %v1853_v29  ;;  %v2104_v25 = vpop.f32.mrf.mxu2  ;;  %4128 = vmatmul.bf16.vlgmr.msrb.gmra.mxu0 %v11061_v26 }
 0x367   :  { %v2105_v3 = vadd.f32 %v2104_v25, %v2016_v61 }
 0x368   :  { %v2017_v13 = vpop.f32.mrf.mxu1  ;;  %v2353_v32 = vmul.f32 0.2, %v1942_v34  ;;  %vm2225_vm10 = vcmp.gt.f32.partialorder %v1942_v34, 0.0 }
 0x369   :  { %v2018_v1 = vadd.f32 %v2017_v13, %v11242_v56  ;;  %v2330_v46 = vmul.f32 0.2, %v2105_v3  ;;  %vm2202_vm11 = vcmp.gt.f32.partialorder %v2105_v3, 0.0  ;;  %v9355_v13 = vld [vmem:[#allocation14 + $0x18c] sm:$0xf] }
 0x36a   :  { %v2481_v63 = vsel %vm2225_vm10, %v1942_v34, %v2353_v32 }
 0x36b   :  { %v1854_v2 = vpop.f32.mrf.mxu3  ;;  %v1943_v9 = vpop.f32.mrf.mxu0  ;;  %v2458_v49 = vsel %vm2202_vm11, %v2105_v3, %v2330_v46  ;;  %v9523_v46 = vld [vmem:[#allocation14 + $0x6cc] sm:$0xf] }
 0x36c   :  { %v1855_v23 = vadd.f32 %v1854_v2, %v11203_v17  ;;  %v8506_v2 = vld [vmem:[#allocation14 + $0x1a4] sm:$0xf0] }
 0x36e   :  { %v1944_v40 = vadd.f32 %v1943_v9, %v1855_v23  ;;  %v2106_v50 = vpop.f32.mrf.mxu2 }
 0x36f   :  { %v2107_v36 = vadd.f32 %v2106_v50, %v2018_v1  ;;  %v8509_v1 = vor.u32 %v9355_v13, %v8506_v2 }
 0x370   :  { %vm2229_vm12 = vcmp.gt.f32.partialorder %v1944_v40, 0.0  ;;  %v2357_v31 = vmul.f32 0.2, %v1944_v40  ;;  %v2020_v37 = vpop.f32.mrf.mxu1  ;;  %4044 = vmatmul.bf16.gmra.mxu3 %v11025_v57 }
 0x371   :  { %vm2206_vm13 = vcmp.gt.f32.partialorder %v2107_v36, 0.0  ;;  %v2334_v12 = vmul.f32 0.2, %v2107_v36  ;;  %v2021_v34 = vadd.f32 %v2020_v37, %v11242_v56  ;;  %4387 = vmatpush.bf16.msra.mxu3 %v8509_v1 }
 0x372   :  { %v2485_v5 = vsel %vm2229_vm12, %v1944_v40, %v2357_v31 }
 0x373   :  { %v11316_v58 = vpack.c.bf16 %v2485_v5, %v2481_v63  ;;  %v2462_v29 = vsel %vm2206_vm13, %v2107_v36, %v2334_v12  ;;  %v1857_v61 = vpop.f32.mrf.mxu3  ;;  %v1946_v25 = vpop.f32.mrf.mxu0  ;;  %2059 = vmatmul.bf16.gmra.mxu1 %v10902_v45  ;;  %2148 = vmatmul.bf16.gmra.mxu2 %v10966_v43  ;;  %v9178_v45 = vld [vmem:[#allocation14 + $0x6e4] sm:$0xf0]  ;;  %v9411_v36 = vld [vmem:[#allocation14 + $0x34c] sm:$0xf] }
 0x374   :  { %v11320_v9 = vpack.c.bf16 %v2462_v29, %v2458_v49  ;;  %v1858_v23 = vadd.f32 %v1857_v61, %v11203_v17  ;;  %v9181_v12 = vor.u32 %v9523_v46, %v9178_v45  ;;  %v8730_v63 = vld [vmem:[#allocation14 + $0x364] sm:$0xf0]  ;;  %v9467_v5 = vld [vmem:[#allocation14 + $0x50c] sm:$0xf] }
 0x375   :  { %13475 = vst [vmem:[#allocation56_spill] sm:$0xff] %v11316_v58  ;;  %v8954_v49 = vld [vmem:[#allocation14 + $0x524] sm:$0xf0]  ;;  %v8733_v61 = vor.u32 %v9411_v36, %v8730_v63 }
 0x376   :  { %13476 = vst [vmem:[#allocation57_spill] sm:$0xff] %v11320_v9  ;;  %v1947_v32 = vadd.f32 %v1946_v25, %v1858_v23  ;;  %v2109_v3 = vpop.f32.mrf.mxu2  ;;  %4133 = vmatmul.bf16.gmra.mxu0 %v11073_v42  ;;  %v8957_v37 = vor.u32 %v9467_v5, %v8954_v49  ;;  %4654 = vmatpush.bf16.msra.mxu2 %v9181_v12 }
 0x377   :  { %v2110_v40 = vadd.f32 %v2109_v3, %v2021_v34  ;;  %4476 = vmatpush.bf16.msra.mxu0 %v8733_v61 }
 0x378   :  { %v2022_v50 = vpop.f32.mrf.mxu1  ;;  %v2361_v13 = vmul.f32 0.2, %v1947_v32  ;;  %4565 = vmatpush.bf16.msra.mxu1 %v8957_v37  ;;  %vm2233_vm14 = vcmp.gt.f32.partialorder %v1947_v32, 0.0 }
 0x379   :  { %v2023_v25 = vadd.f32 %v2022_v50, %v11242_v56  ;;  %v2338_v1 = vmul.f32 0.2, %v2110_v40  ;;  %vm2210_vm15 = vcmp.gt.f32.partialorder %v2110_v40, 0.0 }
 0x37a   :  { %v2489_v36 = vsel %vm2233_vm14, %v1947_v32, %v2361_v13 }
 0x37b   :  { %v1859_v43 = vpop.f32.mrf.mxu3  ;;  %v1948_v31 = vpop.f32.mrf.mxu0  ;;  %v2466_v50 = vsel %vm2210_vm15, %v2110_v40, %v2338_v1 }
 0x37c   :  { %v1860_v29 = vadd.f32 %v1859_v43, %v11203_v17 }
 0x37e   :  { %v1949_v2 = vadd.f32 %v1948_v31, %v1860_v29  ;;  %v2111_v23 = vpop.f32.mrf.mxu2 }
 0x37f   :  { %v2112_v34 = vadd.f32 %v2111_v23, %v2023_v25 }
 0x380   :  { %vm2237_vm0 = vcmp.gt.f32.partialorder %v1949_v2, 0.0  ;;  %v2365_v3 = vmul.f32 0.2, %v1949_v2  ;;  %v2025_v46 = vpop.f32.mrf.mxu1  ;;  %4049 = vmatmul.bf16.gmra.mxu3 %v11044_v62 }
 0x381   :  { %vm2214_vm1 = vcmp.gt.f32.partialorder %v2112_v34, 0.0  ;;  %v2342_v45 = vmul.f32 0.2, %v2112_v34  ;;  %v2026_v61 = vadd.f32 %v2025_v46, %v11242_v56 }
 0x382   :  { %v2493_v43 = vsel %vm2237_vm0, %v1949_v2, %v2365_v3 }
 0x383   :  { %v11328_v12 = vpack.c.bf16 %v2493_v43, %v2489_v36  ;;  %v2470_v31 = vsel %vm2214_vm1, %v2112_v34, %v2342_v45  ;;  %v1862_v63 = vpop.f32.mrf.mxu3  ;;  %v1951_v5 = vpop.f32.mrf.mxu0  ;;  %2064 = vmatmul.bf16.gmra.mxu1 %v10918_v21  ;;  %2153 = vmatmul.bf16.gmra.mxu2 %v10982_v8 }
 0x384   :  { %v11332_v49 = vpack.c.bf16 %v2470_v31, %v2466_v50  ;;  %v1863_v29 = vadd.f32 %v1862_v63, %v11203_v17 }
 0x385   :  { %13477 = vst [vmem:[#allocation58_spill] sm:$0xff] %v11328_v12 }
 0x386   :  { %13478 = vst [vmem:[#allocation59_spill] sm:$0xff] %v11332_v49  ;;  %v1952_v37 = vadd.f32 %v1951_v5, %v1863_v29  ;;  %v2114_v25 = vpop.f32.mrf.mxu2  ;;  %4138 = vmatmul.bf16.gmra.mxu0 %v11085_v33 }
 0x387   :  { %v2115_v32 = vadd.f32 %v2114_v25, %v2026_v61 }
 0x388   :  { %v2027_v40 = vpop.f32.mrf.mxu1  ;;  %v2369_v1 = vmul.f32 0.2, %v1952_v37  ;;  %vm2241_vm2 = vcmp.gt.f32.partialorder %v1952_v37, 0.0 }
 0x389   :  { %v2028_v21 = vadd.f32 %v2027_v40, %v11242_v56  ;;  %v2346_v3 = vmul.f32 0.2, %v2115_v32  ;;  %vm2218_vm3 = vcmp.gt.f32.partialorder %v2115_v32, 0.0  ;;  %v9348_v40 = vld [vmem:[#allocation14 + $0x154] sm:$0xf] }
 0x38a   :  { %v2497_v50 = vsel %vm2241_vm2, %v1952_v37, %v2369_v1 }
 0x38b   :  { %v1864_v13 = vpop.f32.mrf.mxu3  ;;  %v1953_v2 = vpop.f32.mrf.mxu0  ;;  %v2474_v63 = vsel %vm2218_vm3, %v2115_v32, %v2346_v3  ;;  %v9516_v3 = vld [vmem:[#allocation14 + $0x694] sm:$0xf] }
 0x38c   :  { %v1865_v23 = vadd.f32 %v1864_v13, %v11203_v17  ;;  %v8478_v13 = vld [vmem:[#allocation14 + $0x16c] sm:$0xf0] }
 0x38e   :  { %v1954_v8 = vadd.f32 %v1953_v2, %v1865_v23  ;;  %v2116_v34 = vpop.f32.mrf.mxu2 }
 0x38f   :  { %v2117_v45 = vadd.f32 %v2116_v34, %v2028_v21  ;;  %v8481_v21 = vor.u32 %v9348_v40, %v8478_v13 }
 0x390   :  { %vm2245_vm4 = vcmp.gt.f32.partialorder %v1954_v8, 0.0  ;;  %v2373_v46 = vmul.f32 0.2, %v1954_v8  ;;  %v2030_v36 = vpop.f32.mrf.mxu1  ;;  %4054 = vmatmul.bf16.gmra.mxu3 %v11056_v11 }
 0x391   :  { %vm2222_vm5 = vcmp.gt.f32.partialorder %v2117_v45, 0.0  ;;  %v2350_v43 = vmul.f32 0.2, %v2117_v45  ;;  %v2031_v37 = vadd.f32 %v2030_v36, %v11242_v56  ;;  %4388 = vmatpush.bf16.msra.mxu3 %v8481_v21 }
 0x392   :  { %v2501_v31 = vsel %vm2245_vm4, %v1954_v8, %v2373_v46  ;;  %v9404_v46 = vld [vmem:[#allocation14 + $0x314] sm:$0xf] }
 0x393   :  { %v11340_v5 = vpack.c.bf16 %v2501_v31, %v2497_v50  ;;  %v2478_v29 = vsel %vm2222_vm5, %v2117_v45, %v2350_v43  ;;  %v1867_v61 = vpop.f32.mrf.mxu3  ;;  %v1956_v25 = vpop.f32.mrf.mxu0  ;;  %4217 = vmatmul.bf16.vlgmr.msrb.gmra.mxu1 %v11217_v6  ;;  %4306 = vmatmul.bf16.vlgmr.msrb.gmra.mxu2 %v11260_v44  ;;  %v9150_v45 = vld [vmem:[#allocation14 + $0x6ac] sm:$0xf0] }
 0x394   :  { %v11344_v2 = vpack.c.bf16 %v2478_v29, %v2474_v63  ;;  %v1868_v23 = vadd.f32 %v1867_v61, %v11203_v17  ;;  %v9153_v31 = vor.u32 %v9516_v3, %v9150_v45  ;;  %v8702_v63 = vld [vmem:[#allocation14 + $0x32c] sm:$0xf0]  ;;  %v9460_v29 = vld [vmem:[#allocation14 + $0x4d4] sm:$0xf] }
 0x395   :  { %13479 = vst [vmem:[#allocation60_spill] sm:$0xff] %v11340_v5  ;;  %v8926_v44 = vld [vmem:[#allocation14 + $0x4ec] sm:$0xf0]  ;;  %v8705_v40 = vor.u32 %v9404_v46, %v8702_v63 }
 0x396   :  { %13480 = vst [vmem:[#allocation61_spill] sm:$0xff] %v11344_v2  ;;  %v1957_v1 = vadd.f32 %v1956_v25, %v1868_v23  ;;  %v2119_v32 = vpop.f32.mrf.mxu2  ;;  %4143 = vmatmul.bf16.gmra.mxu0 %v11097_v16  ;;  %v8929_v36 = vor.u32 %v9460_v29, %v8926_v44  ;;  %4655 = vmatpush.bf16.msra.mxu2 %v9153_v31 }
 0x397   :  { %v2120_v8 = vadd.f32 %v2119_v32, %v2031_v37  ;;  %4477 = vmatpush.bf16.msra.mxu0 %v8705_v40 }
 0x398   :  { %v2032_v34 = vpop.f32.mrf.mxu1  ;;  %v2377_v13 = vmul.f32 0.2, %v1957_v1  ;;  %4566 = vmatpush.bf16.msra.mxu1 %v8929_v36  ;;  %vm2249_vm6 = vcmp.gt.f32.partialorder %v1957_v1, 0.0 }
 0x399   :  { %v2033_v25 = vadd.f32 %v2032_v34, %v11242_v56  ;;  %v2354_v37 = vmul.f32 0.2, %v2120_v8  ;;  %vm2226_vm7 = vcmp.gt.f32.partialorder %v2120_v8, 0.0 }
 0x39a   :  { %v2505_v44 = vsel %vm2249_vm6, %v1957_v1, %v2377_v13  ;;  %v13482_v1 = vld [vmem:[#allocation27_spill] sm:$0xff] }
 0x39b   :  { %v1869_v43 = vpop.f32.mrf.mxu3  ;;  %v1958_v50 = vpop.f32.mrf.mxu0  ;;  %v2482_v34 = vsel %vm2226_vm7, %v2120_v8, %v2354_v37 }
 0x39c   :  { %v1870_v61 = vadd.f32 %v1869_v43, %v11203_v17 }
 0x39e   :  { %v1959_v23 = vadd.f32 %v1958_v50, %v1870_v61  ;;  %v2121_v21 = vpop.f32.mrf.mxu2 }
 0x39f   :  { %v2122_v32 = vadd.f32 %v2121_v21, %v2033_v25 }
 0x3a0   :  { %vm2253_vm8 = vcmp.gt.f32.partialorder %v1959_v23, 0.0  ;;  %v2381_v3 = vmul.f32 0.2, %v1959_v23  ;;  %v2035_v45 = vpop.f32.mrf.mxu1  ;;  %4059 = vmatmul.bf16.gmra.mxu3 %v11068_v18  ;;  %v8898_v18 = vld [vmem:[#allocation14 + $0x4b4] sm:$0xf0] }
 0x3a1   :  { %vm2230_vm9 = vcmp.gt.f32.partialorder %v2122_v32, 0.0  ;;  %v2358_v46 = vmul.f32 0.2, %v2122_v32  ;;  %v2036_v36 = vadd.f32 %v2035_v45, %v11242_v56 }
 0x3a2   :  { %v2509_v43 = vsel %vm2253_vm8, %v1959_v23, %v2381_v3 }
 0x3a3   :  { %v11352_v31 = vpack.c.bf16 %v2509_v43, %v2505_v44  ;;  %v2486_v50 = vsel %vm2230_vm9, %v2122_v32, %v2358_v46  ;;  %v1872_v63 = vpop.f32.mrf.mxu3  ;;  %v1961_v29 = vpop.f32.mrf.mxu0  ;;  %4222 = vmatmul.bf16.gmra.mxu1 %v11229_v15  ;;  %4311 = vmatmul.bf16.gmra.mxu2 %v11272_v7 }
 0x3a4   :  { %v11356_v61 = vpack.c.bf16 %v2486_v50, %v2482_v34  ;;  %v1873_v40 = vadd.f32 %v1872_v63, %v11203_v17 }
 0x3a6   :  { %13481 = vst [vmem:[#allocation62_spill] sm:$0xff] %v11356_v61  ;;  %v1962_v25 = vadd.f32 %v1961_v29, %v1873_v40  ;;  %v2124_v21 = vpop.f32.mrf.mxu2  ;;  %4148 = vmatmul.bf16.gmra.mxu0 %v13482_v1  ;;  %v13483_v29 = vld [vmem:[#allocation24_spill] sm:$0xff] }
 0x3a7   :  { %v2125_v8 = vadd.f32 %v2124_v21, %v2036_v36 }
 0x3a8   :  { %v2037_v13 = vpop.f32.mrf.mxu1  ;;  %v2385_v46 = vmul.f32 0.2, %v1962_v25  ;;  %vm2257_vm10 = vcmp.gt.f32.partialorder %v1962_v25, 0.0 }
 0x3a9   :  { %v2038_v3 = vadd.f32 %v2037_v13, %v11242_v56  ;;  %v2362_v34 = vmul.f32 0.2, %v2125_v8  ;;  %vm2234_vm11 = vcmp.gt.f32.partialorder %v2125_v8, 0.0 }
 0x3aa   :  { %v2513_v36 = vsel %vm2257_vm10, %v1962_v25, %v2385_v46 }
 0x3ab   :  { %v1874_v23 = vpop.f32.mrf.mxu3  ;;  %v1963_v37 = vpop.f32.mrf.mxu0  ;;  %v2490_v1 = vsel %vm2234_vm11, %v2125_v8, %v2362_v34 }
 0x3ac   :  { %v1875_v32 = vadd.f32 %v1874_v23, %v11203_v17 }
 0x3ae   :  { %v1964_v44 = vadd.f32 %v1963_v37, %v1875_v32  ;;  %v2126_v43 = vpop.f32.mrf.mxu2  ;;  %v9341_v32 = vld [vmem:[#allocation14 + $0x11c] sm:$0xf] }
 0x3af   :  { %v2127_v50 = vadd.f32 %v2126_v43, %v2038_v3  ;;  %v8450_v3 = vld [vmem:[#allocation14 + $0x134] sm:$0xf0] }
 0x3b0   :  { %vm2261_vm12 = vcmp.gt.f32.partialorder %v1964_v44, 0.0  ;;  %v2389_v45 = vmul.f32 0.2, %v1964_v44  ;;  %v2040_v63 = vpop.f32.mrf.mxu1  ;;  %4064 = vmatmul.bf16.gmra.mxu3 %v13483_v29  ;;  %v8453_v15 = vor.u32 %v9341_v32, %v8450_v3 }
 0x3b1   :  { %vm2238_vm13 = vcmp.gt.f32.partialorder %v2127_v50, 0.0  ;;  %v2366_v40 = vmul.f32 0.2, %v2127_v50  ;;  %v2041_v25 = vadd.f32 %v2040_v63, %v11242_v56 }
 0x3b2   :  { %v2517_v21 = vsel %vm2261_vm12, %v1964_v44, %v2389_v45  ;;  %v13485_v44 = vld [vmem:[#allocation29_spill] sm:$0xff]  ;;  %4389 = vmatpush.bf16.msra.mxu3 %v8453_v15  ;;  %v9509_v45 = vld [vmem:[#allocation14 + $0x65c] sm:$0xf] }
 0x3b3   :  { %v11364_v23 = vpack.c.bf16 %v2517_v21, %v2513_v36  ;;  %v2494_v13 = vsel %vm2238_vm13, %v2127_v50, %v2366_v40  ;;  %v1877_v7 = vpop.f32.mrf.mxu3  ;;  %v1966_v37 = vpop.f32.mrf.mxu0  ;;  %4227 = vmatmul.bf16.gmra.mxu1 %v11244_v27  ;;  %4316 = vmatmul.bf16.gmra.mxu2 %v11284_v52  ;;  %v9122_v40 = vld [vmem:[#allocation14 + $0x674] sm:$0xf0]  ;;  %v9397_v36 = vld [vmem:[#allocation14 + $0x2dc] sm:$0xf] }
 0x3b4   :  { %v11368_v43 = vpack.c.bf16 %v2494_v13, %v2490_v1  ;;  %v1878_v29 = vadd.f32 %v1877_v7, %v11203_v17  ;;  %v9125_v27 = vor.u32 %v9509_v45, %v9122_v40  ;;  %v8674_v1 = vld [vmem:[#allocation14 + $0x2f4] sm:$0xf0]  ;;  %v9453_v13 = vld [vmem:[#allocation14 + $0x49c] sm:$0xf] }
 0x3b5   :  { %v8677_v32 = vor.u32 %v9397_v36, %v8674_v1  ;;  %v8901_v63 = vor.u32 %v9453_v13, %v8898_v18 }
 0x3b6   :  { %13484 = vst [vmem:[#allocation63_spill] sm:$0xff] %v11368_v43  ;;  %v1967_v46 = vadd.f32 %v1966_v37, %v1878_v29  ;;  %v2129_v8 = vpop.f32.mrf.mxu2  ;;  %4153 = vmatmul.bf16.gmra.mxu0 %v13485_v44  ;;  %4656 = vmatpush.bf16.msra.mxu2 %v9125_v27  ;;  %v13486_v44 = vld [vmem:[#allocation25_spill] sm:$0xff] }
 0x3b7   :  { %v2130_v34 = vadd.f32 %v2129_v8, %v2041_v25  ;;  %4478 = vmatpush.bf16.msra.mxu0 %v8677_v32  ;;  %4567 = vmatpush.bf16.msra.mxu1 %v8901_v63 }
 0x3b8   :  { %v2042_v50 = vpop.f32.mrf.mxu1  ;;  %v2393_v37 = vmul.f32 0.2, %v1967_v46  ;;  %vm2265_vm14 = vcmp.gt.f32.partialorder %v1967_v46, 0.0 }
 0x3b9   :  { %v2043_v29 = vadd.f32 %v2042_v50, %v11242_v56  ;;  %v2370_v25 = vmul.f32 0.2, %v2130_v34  ;;  %vm2242_vm15 = vcmp.gt.f32.partialorder %v2130_v34, 0.0 }
 0x3ba   :  { %v2521_v18 = vsel %vm2265_vm14, %v1967_v46, %v2393_v37  ;;  %v13488_v46 = vld [vmem:[#allocation31_spill] sm:$0xff] }
 0x3bb   :  { %v1879_v21 = vpop.f32.mrf.mxu3  ;;  %v1968_v52 = vpop.f32.mrf.mxu0  ;;  %v2498_v50 = vsel %vm2242_vm15, %v2130_v34, %v2370_v25 }
 0x3bc   :  { %v1880_v7 = vadd.f32 %v1879_v21, %v11203_v17 }
 0x3be   :  { %v1969_v15 = vadd.f32 %v1968_v52, %v1880_v7  ;;  %v2131_v3 = vpop.f32.mrf.mxu2 }
 0x3bf   :  { %v2132_v8 = vadd.f32 %v2131_v3, %v2043_v29 }
 0x3c0   :  { %vm2269_vm0 = vcmp.gt.f32.partialorder %v1969_v15, 0.0  ;;  %v2397_v45 = vmul.f32 0.2, %v1969_v15  ;;  %v2045_v40 = vpop.f32.mrf.mxu1  ;;  %4069 = vmatmul.bf16.gmra.mxu3 %v13486_v44 }
 0x3c1   :  { %vm2246_vm1 = vcmp.gt.f32.partialorder %v2132_v8, 0.0  ;;  %v2374_v36 = vmul.f32 0.2, %v2132_v8  ;;  %v2046_v63 = vadd.f32 %v2045_v40, %v11242_v56 }
 0x3c2   :  { %v2525_v21 = vsel %vm2269_vm0, %v1969_v15, %v2397_v45 }
 0x3c3   :  { %v11376_v27 = vpack.c.bf16 %v2525_v21, %v2521_v18  ;;  %v2502_v52 = vsel %vm2246_vm1, %v2132_v8, %v2374_v36  ;;  %v1882_v1 = vpop.f32.mrf.mxu3  ;;  %v1971_v13 = vpop.f32.mrf.mxu0  ;;  %4232 = vmatmul.bf16.gmra.mxu1 %v11256_v48  ;;  %4321 = vmatmul.bf16.gmra.mxu2 %v11296_v38 }
 0x3c4   :  { %v11380_v7 = vpack.c.bf16 %v2502_v52, %v2498_v50  ;;  %v1883_v32 = vadd.f32 %v1882_v1, %v11203_v17  ;;  %v9334_v50 = vld [vmem:[#allocation14 + $0xe4] sm:$0xf]  ;;  %v8422_v52 = vld [vmem:[#allocation14 + $0xfc] sm:$0xf0] }
 0x3c6   :  { %13487 = vst [vmem:[#allocation64_spill] sm:$0xff] %v11380_v7  ;;  %v1972_v29 = vadd.f32 %v1971_v13, %v1883_v32  ;;  %v2134_v3 = vpop.f32.mrf.mxu2  ;;  %4158 = vmatmul.bf16.gmra.mxu0 %v13488_v46  ;;  %v8425_v13 = vor.u32 %v9334_v50, %v8422_v52 }
 0x3c7   :  { %v2135_v34 = vadd.f32 %v2134_v3, %v2046_v63  ;;  %v13489_v3 = vld [vmem:[#allocation26_spill] sm:$0xff] }
 0x3c8   :  { %v2047_v37 = vpop.f32.mrf.mxu1  ;;  %v2401_v36 = vmul.f32 0.2, %v1972_v29  ;;  %vm2273_vm2 = vcmp.gt.f32.partialorder %v1972_v29, 0.0  ;;  %4390 = vmatpush.bf16.msra.mxu3 %v8425_v13 }
 0x3c9   :  { %v2048_v45 = vadd.f32 %v2047_v37, %v11242_v56  ;;  %v2378_v1 = vmul.f32 0.2, %v2135_v34  ;;  %vm2250_vm3 = vcmp.gt.f32.partialorder %v2135_v34, 0.0 }
 0x3cb   :  { %v1884_v15 = vpop.f32.mrf.mxu3  ;;  %v1973_v25 = vpop.f32.mrf.mxu0  ;;  %v2506_v38 = vsel %vm2250_vm3, %v2135_v34, %v2378_v1  ;;  %v9094_v34 = vld [vmem:[#allocation14 + $0x63c] sm:$0xf0] }
 0x3cc   :  { %v1885_v8 = vadd.f32 %v1884_v15, %v11203_v17  ;;  %v2529_v15 = vsel %vm2273_vm2, %v1972_v29, %v2401_v36  ;;  %v9502_v29 = vld [vmem:[#allocation14 + $0x624] sm:$0xf]  ;;  %v8646_v1 = vld [vmem:[#allocation14 + $0x2bc] sm:$0xf0] }
 0x3cd   :  { %v9390_v36 = vld [vmem:[#allocation14 + $0x2a4] sm:$0xf] }
 0x3ce   :  { %v1974_v18 = vadd.f32 %v1973_v25, %v1885_v8  ;;  %v2136_v21 = vpop.f32.mrf.mxu2 }
 0x3cf   :  { %v2137_v40 = vadd.f32 %v2136_v21, %v2048_v45 }
 0x3d0   :  { %vm2277_vm4 = vcmp.gt.f32.partialorder %v1974_v18, 0.0  ;;  %v2405_v32 = vmul.f32 0.2, %v1974_v18  ;;  %v2050_v63 = vpop.f32.mrf.mxu1  ;;  %4074 = vmatmul.bf16.gmra.mxu3 %v13489_v3 }
 0x3d1   :  { %vm2254_vm5 = vcmp.gt.f32.partialorder %v2137_v40, 0.0  ;;  %v2382_v46 = vmul.f32 0.2, %v2137_v40  ;;  %v2051_v50 = vadd.f32 %v2050_v63, %v11242_v56 }
 0x3d2   :  { %v2533_v37 = vsel %vm2277_vm4, %v1974_v18, %v2405_v32  ;;  %v9097_v18 = vor.u32 %v9502_v29, %v9094_v34  ;;  %v8649_v32 = vor.u32 %v9390_v36, %v8646_v1  ;;  %v13490_v36 = vld [vmem:[#allocation28_spill] sm:$0xff] }
 0x3d3   :  { %v11388_v25 = vpack.c.bf16 %v2533_v37, %v2529_v15  ;;  %v2510_v8 = vsel %vm2254_vm5, %v2137_v40, %v2382_v46  ;;  %v1887_v48 = vpop.f32.mrf.mxu3  ;;  %v1976_v44 = vpop.f32.mrf.mxu0  ;;  %4237 = vmatmul.bf16.gmra.mxu1 %v11268_v60  ;;  %4326 = vmatmul.bf16.gmra.mxu2 %v11308_v19  ;;  %v9446_v37 = vld [vmem:[#allocation14 + $0x464] sm:$0xf] }
 0x3d4   :  { %v11392_v45 = vpack.c.bf16 %v2510_v8, %v2506_v38  ;;  %v1888_v21 = vadd.f32 %v1887_v48, %v11203_v17  ;;  %4657 = vmatpush.bf16.msra.mxu2 %v9097_v18  ;;  %4479 = vmatpush.bf16.msra.mxu0 %v8649_v32  ;;  %v8870_v48 = vld [vmem:[#allocation14 + $0x47c] sm:$0xf0] }
 0x3d6   :  { %v1977_v52 = vadd.f32 %v1976_v44, %v1888_v21  ;;  %v2139_v13 = vpop.f32.mrf.mxu2  ;;  %4163 = vmatmul.bf16.gmra.mxu0 %v11144_v51  ;;  %v8873_v44 = vor.u32 %v9446_v37, %v8870_v48 }
 0x3d7   :  { %v2140_v46 = vadd.f32 %v2139_v13, %v2051_v50 }
 0x3d8   :  { %v2052_v40 = vpop.f32.mrf.mxu1  ;;  %v2409_v21 = vmul.f32 0.2, %v1977_v52  ;;  %4568 = vmatpush.bf16.msra.mxu1 %v8873_v44  ;;  %vm2281_vm6 = vcmp.gt.f32.partialorder %v1977_v52, 0.0 }
 0x3d9   :  { %v2053_v8 = vadd.f32 %v2052_v40, %v11242_v56  ;;  %v2386_v50 = vmul.f32 0.2, %v2140_v46  ;;  %vm2258_vm7 = vcmp.gt.f32.partialorder %v2140_v46, 0.0 }
 0x3da   :  { %v2537_v1 = vsel %vm2281_vm6, %v1977_v52, %v2409_v21 }
 0x3db   :  { %v1889_v38 = vpop.f32.mrf.mxu3  ;;  %v1978_v15 = vpop.f32.mrf.mxu0  ;;  %v2514_v32 = vsel %vm2258_vm7, %v2140_v46, %v2386_v50  ;;  %v9327_v50 = vld [vmem:[#allocation14 + $0xac] sm:$0xf] }
 0x3dc   :  { %v1890_v63 = vadd.f32 %v1889_v38, %v11203_v17 }
 0x3de   :  { %v1979_v51 = vadd.f32 %v1978_v15, %v1890_v63  ;;  %v2141_v19 = vpop.f32.mrf.mxu2 }
 0x3df   :  { %v2142_v13 = vadd.f32 %v2141_v19, %v2053_v8 }
 0x3e0   :  { %vm2285_vm8 = vcmp.gt.f32.partialorder %v1979_v51, 0.0  ;;  %v2413_v29 = vmul.f32 0.2, %v1979_v51  ;;  %v2055_v34 = vpop.f32.mrf.mxu1  ;;  %4079 = vmatmul.bf16.gmra.mxu3 %v13490_v36 }
 0x3e1   :  { %vm2262_vm9 = vcmp.gt.f32.partialorder %v2142_v13, 0.0  ;;  %v2390_v18 = vmul.f32 0.2, %v2142_v13  ;;  %v2056_v48 = vadd.f32 %v2055_v34, %v11242_v56  ;;  %v13491_v34 = vld [vmem:[#allocation30_spill] sm:$0xff] }
 0x3e2   :  { %v2541_v17 = vsel %vm2285_vm8, %v1979_v51, %v2413_v29 }
 0x3e3   :  { %v11400_v38 = vpack.c.bf16 %v2541_v17, %v2537_v1  ;;  %v2518_v40 = vsel %vm2262_vm9, %v2142_v13, %v2390_v18  ;;  %v11402_v15 = vpop.f32.mrf.mxu3  ;;  %v11404_v37 = vpop.f32.mrf.mxu0  ;;  %4242 = vmatmul.bf16.gmra.mxu1 %v11280_v55  ;;  %4331 = vmatmul.bf16.gmra.mxu2 %v11320_v9  ;;  %v8394_v13 = vld [vmem:[#allocation14 + $0xc4] sm:$0xf0] }
 0x3e4   :  { %v11408_v19 = vpack.c.bf16 %v2518_v40, %v2514_v32  ;;  %v8397_v1 = vor.u32 %v9327_v50, %v8394_v13  ;;  %v9495_v50 = vld [vmem:[#allocation14 + $0x5ec] sm:$0xf]  ;;  %v9066_v13 = vld [vmem:[#allocation14 + $0x604] sm:$0xf0] }
 0x3e6   :  { %v2144_v63 = vpop.f32.mrf.mxu2  ;;  %4168 = vmatmul.bf16.gmra.mxu0 %v11156_v54  ;;  %4391 = vmatpush.bf16.msra.mxu3 %v8397_v1  ;;  %v9383_v1 = vld [vmem:[#allocation14 + $0x26c] sm:$0xf] }
 0x3e7   :  { %v2145_v51 = vadd.f32 %v2144_v63, %v2056_v48 }
 0x3e8   :  { %v2057_v52 = vpop.f32.mrf.mxu1 }
 0x3e9   :  { %v2058_v8 = vadd.f32 %v2057_v52, %v11242_v56  ;;  %v2394_v29 = vmul.f32 0.2, %v2145_v51  ;;  %vm2266_vm10 = vcmp.gt.f32.partialorder %v2145_v51, 0.0 }
 0x3eb   :  { %v11412_v46 = vpop.f32.mrf.mxu3  ;;  %v11414_v44 = vpop.f32.mrf.mxu0  ;;  %v2522_v40 = vsel %vm2266_vm10, %v2145_v51, %v2394_v29  ;;  %v9069_v29 = vor.u32 %v9495_v50, %v9066_v13 }
 0x3ed   :  { %4658 = vmatpush.bf16.msra.mxu2 %v9069_v29 }
 0x3ee   :  { %v2146_v21 = vpop.f32.mrf.mxu2 }
 0x3ef   :  { %v2147_v18 = vadd.f32 %v2146_v21, %v2058_v8 }
 0x3f0   :  { %v2060_v17 = vpop.f32.mrf.mxu1  ;;  %4084 = vmatmul.bf16.gmra.mxu3 %v13491_v34 }
 0x3f1   :  { %vm2270_vm11 = vcmp.gt.f32.partialorder %v2147_v18, 0.0  ;;  %v2398_v32 = vmul.f32 0.2, %v2147_v18  ;;  %v2061_v8 = vadd.f32 %v2060_v17, %v11242_v56 }
 0x3f3   :  { %v2526_v48 = vsel %vm2270_vm11, %v2147_v18, %v2398_v32  ;;  %v11418_v63 = vpop.f32.mrf.mxu3  ;;  %v11420_v54 = vpop.f32.mrf.mxu0  ;;  %4247 = vmatmul.bf16.gmra.mxu1 %v11292_v22  ;;  %4336 = vmatmul.bf16.gmra.mxu2 %v11332_v49  ;;  %v8618_v18 = vld [vmem:[#allocation14 + $0x284] sm:$0xf0] }
 0x3f4   :  { %v11424_v52 = vpack.c.bf16 %v2526_v48, %v2522_v40  ;;  %v8621_v34 = vor.u32 %v9383_v1, %v8618_v18 }
 0x3f6   :  { %v2149_v21 = vpop.f32.mrf.mxu2  ;;  %4173 = vmatmul.bf16.gmra.mxu0 %v11168_v28 }
 0x3f7   :  { %v2150_v51 = vadd.f32 %v2149_v21, %v2061_v8  ;;  %4480 = vmatpush.bf16.msra.mxu0 %v8621_v34 }
 0x3f8   :  { %v2062_v32 = vpop.f32.mrf.mxu1 }
 0x3f9   :  { %v2063_v40 = vadd.f32 %v2062_v32, %v11242_v56  ;;  %v2402_v48 = vmul.f32 0.2, %v2150_v51  ;;  %vm2274_vm12 = vcmp.gt.f32.partialorder %v2150_v51, 0.0 }
 0x3fb   :  { %v11428_v22 = vpop.f32.mrf.mxu3  ;;  %v11430_v49 = vpop.f32.mrf.mxu0  ;;  %v2530_v21 = vsel %vm2274_vm12, %v2150_v51, %v2402_v48 }
 0x3fe   :  { %v2151_v17 = vpop.f32.mrf.mxu2 }
 0x3ff   :  { %v2152_v9 = vadd.f32 %v2151_v17, %v2063_v40 }
 0x400   :  { %v2065_v28 = vpop.f32.mrf.mxu1  ;;  %4089 = vmatmul.bf16.gmra.mxu3 %v11140_v24 }
 0x401   :  { %vm2278_vm13 = vcmp.gt.f32.partialorder %v2152_v9, 0.0  ;;  %v2406_v8 = vmul.f32 0.2, %v2152_v9  ;;  %v2066_v29 = vadd.f32 %v2065_v28, %v11242_v56 }
 0x403   :  { %v2534_v50 = vsel %vm2278_vm13, %v2152_v9, %v2406_v8  ;;  %v11434_v13 = vpop.f32.mrf.mxu3  ;;  %v11436_v34 = vpop.f32.mrf.mxu0  ;;  %4252 = vmatmul.bf16.gmra.mxu1 %v11304_v39  ;;  %4341 = vmatmul.bf16.gmra.mxu2 %v11344_v2  ;;  %v2863_v9 = vld [vmem:[%s13361_s8] sm:$0xff] }
 0x404   :  { %v11440_v1 = vpack.c.bf16 %v2534_v50, %v2530_v21  ;;  %v11447_v40 = vperm.slane %v2863_v9, 0  ;;  %v9439_v21 = vld [vmem:[#allocation14 + $0x42c] sm:$0xf]  ;;  %v8842_v50 = vld [vmem:[#allocation14 + $0x444] sm:$0xf0] }
 0x405   :  { %v8845_v2 = vor.u32 %v9439_v21, %v8842_v50 }
 0x406   :  { %v2154_v18 = vpop.f32.mrf.mxu2  ;;  %4178 = vmatmul.bf16.gmra.mxu0 %v11180_v0  ;;  %v4043_v21 = vadd.f32 %v11412_v46, %v11447_v40 }
 0x407   :  { %v2155_v32 = vadd.f32 %v2154_v18, %v2066_v29  ;;  %v4041_v29 = vadd.f32 %v11402_v15, %v11447_v40  ;;  %4569 = vmatpush.bf16.msra.mxu1 %v8845_v2 }
 0x408   :  { %v2067_v51 = vpop.f32.mrf.mxu1 }
 0x409   :  { %v2068_v8 = vadd.f32 %v2067_v51, %v11242_v56  ;;  %v2410_v18 = vmul.f32 0.2, %v2155_v32  ;;  %vm2282_vm14 = vcmp.gt.f32.partialorder %v2155_v32, 0.0  ;;  %v4130_v24 = vadd.f32 %v11404_v37, %v4041_v29 }
 0x40b   :  { %v11449_v17 = vpop.f32.mrf.mxu3  ;;  %v11451_v48 = vpop.f32.mrf.mxu0  ;;  %v2538_v55 = vsel %vm2282_vm14, %v2155_v32, %v2410_v18  ;;  %v9320_v18 = vld [vmem:[#allocation14 + $0x74] sm:$0xf] }
 0x40e   :  { %v2156_v28 = vpop.f32.mrf.mxu2 }
 0x40f   :  { %v2157_v0 = vadd.f32 %v2156_v28, %v2068_v8 }
 0x410   :  { %4094 = vmatmul.bf16.gmra.mxu3 %v11152_v41  ;;  %v4218_v9 = vpop.f32.mrf.mxu1 }
 0x411   :  { %vm2286_vm15 = vcmp.gt.f32.partialorder %v2157_v0, 0.0  ;;  %v2414_v39 = vmul.f32 0.2, %v2157_v0  ;;  %v4219_v8 = vadd.f32 %v4218_v9, %v4130_v24  ;;  %v8366_v24 = vld [vmem:[#allocation14 + $0x8c] sm:$0xf0] }
 0x413   :  { %v2542_v56 = vsel %vm2286_vm15, %v2157_v0, %v2414_v39  ;;  %v11458_v51 = vpop.f32.mrf.mxu3  ;;  %v11460_v36 = vpop.f32.mrf.mxu0  ;;  %4257 = vmatmul.bf16.gmra.mxu1 %v11316_v58  ;;  %4346 = vmatmul.bf16.gmra.mxu2 %v11356_v61  ;;  %v4132_v39 = vadd.f32 %v11414_v44, %v4043_v21 }
 0x414   :  { %v11464_v15 = vpack.c.bf16 %v2542_v56, %v2538_v55  ;;  %v8369_v56 = vor.u32 %v9320_v18, %v8366_v24  ;;  %v9376_v18 = vld [vmem:[#allocation14 + $0x234] sm:$0xf] }
 0x416   :  { %4183 = vmatmul.bf16.gmra.mxu0 %v11192_v14  ;;  %v4307_v2 = vpop.f32.mrf.mxu2  ;;  %v4046_v14 = vadd.f32 %v11418_v63, %v11447_v40  ;;  %4392 = vmatpush.bf16.msra.mxu3 %v8369_v56 }
 0x417   :  { %v4308_v37 = vadd.f32 %v4307_v2, %v4219_v8 }
 0x418   :  { %v4220_v32 = vpop.f32.mrf.mxu1  ;;  %v4135_v21 = vadd.f32 %v11420_v54, %v4046_v14  ;;  %v8590_v14 = vld [vmem:[#allocation14 + $0x24c] sm:$0xf0] }
 0x419   :  { %v6523_v0 = vsub.f32 0.0, %v4308_v37  ;;  %v4221_v55 = vadd.f32 %v4220_v32, %v4132_v39 }
 0x41b   :  { %v6747_v50 = vmul.f32 1.442695, %v6523_v0  ;;  %v11470_v28 = vpop.f32.mrf.mxu3  ;;  %v11472_v29 = vpop.f32.mrf.mxu0 }
 0x41d   :  { %9574 = vpow2.f32 %v6747_v50  ;;  %v9488_v50 = vld [vmem:[#allocation14 + $0x5b4] sm:$0xf] }
 0x41e   :  { %v4309_v9 = vpop.f32.mrf.mxu2 }
 0x41f   :  { %v4310_v46 = vadd.f32 %v4309_v9, %v4221_v55  ;;  %v9038_v55 = vld [vmem:[#allocation14 + $0x5cc] sm:$0xf0]  ;;  %v4048_v9 = vadd.f32 %v11428_v22, %v11447_v40  ;;  %v9432_v22 = vld [vmem:[#allocation14 + $0x3f4] sm:$0xf] }
 0x420   :  { %4099 = vmatmul.bf16.gmra.mxu3 %v11164_v59  ;;  %v4223_v8 = vpop.f32.mrf.mxu1  ;;  %v9041_v54 = vor.u32 %v9488_v50, %v9038_v55 }
 0x421   :  { %v6530_v2 = vsub.f32 0.0, %v4310_v46  ;;  %v4224_v63 = vadd.f32 %v4223_v8, %v4135_v21  ;;  %v8593_v46 = vor.u32 %v9376_v18, %v8590_v14  ;;  %v4137_v8 = vadd.f32 %v11430_v49, %v4048_v9 }
 0x422   :  { %4659 = vmatpush.bf16.msra.mxu2 %v9041_v54  ;;  %v4051_v54 = vadd.f32 %v11434_v13, %v11447_v40 }
 0x423   :  { %v9575_v44 = vpop.eup %9574  ;;  %v6761_v37 = vmul.f32 1.442695, %v6530_v2  ;;  %v11478_v0 = vpop.f32.mrf.mxu3  ;;  %4262 = vmatmul.bf16.gmra.mxu1 %v11328_v12  ;;  %4351 = vmatmul.bf16.gmra.mxu2 %v11368_v43 }
 0x424   :  { %v11480_v32 = vpop.f32.mrf.mxu0  ;;  %v7195_v39 = vadd.f32 1.0, %v9575_v44  ;;  %4481 = vmatpush.bf16.msra.mxu0 %v8593_v46 }
 0x425   :  { %9576 = vpow2.f32 %v6761_v37 }
 0x426   :  { %9578 = vrcp.f32 %v7195_v39  ;;  %4188 = vmatmul.bf16.gmra.mxu0 %v11209_v53  ;;  %v4312_v24 = vpop.f32.mrf.mxu2 }
 0x427   :  { %v4313_v56 = vadd.f32 %v4312_v24, %v4224_v63  ;;  %v8814_v63 = vld [vmem:[#allocation14 + $0x40c] sm:$0xf0] }
 0x428   :  { %v4225_v2 = vpop.f32.mrf.mxu1  ;;  %v8817_v24 = vor.u32 %v9432_v22, %v8814_v63 }
 0x429   :  { %v6537_v43 = vsub.f32 0.0, %v4313_v56  ;;  %v4226_v55 = vadd.f32 %v4225_v2, %v4137_v8  ;;  %v4140_v56 = vadd.f32 %v11436_v34, %v4051_v54  ;;  %v8338_v34 = vld [vmem:[#allocation14 + $0x54] sm:$0xf0]  ;;  %v9306_v54 = vld [vmem:[#allocation14 + $0x4] sm:$0xf] }
 0x42a   :  { %4570 = vmatpush.bf16.msra.mxu1 %v8817_v24 }
 0x42b   :  { %v9577_v44 = vpop.eup %9576  ;;  %v6775_v21 = vmul.f32 1.442695, %v6537_v43  ;;  %v11488_v37 = vpop.f32.mrf.mxu3 }
 0x42c   :  { %v11490_v39 = vpop.f32.mrf.mxu0  ;;  %v9579_v53 = vpop.eup %9578  ;;  %v7202_v50 = vadd.f32 1.0, %v9577_v44 }
 0x42d   :  { %7643 = vst [vmem:[#allocation16] sm:$0xff] %v9579_v53  ;;  %9580 = vpow2.f32 %v6775_v21 }
 0x42e   :  { %9582 = vrcp.f32 %v7202_v50  ;;  %v4314_v18 = vpop.f32.mrf.mxu2  ;;  %v9313_v50 = vld [vmem:[#allocation14 + $0x3c] sm:$0xf] }
 0x42f   :  { %v4315_v14 = vadd.f32 %v4314_v18, %v4226_v55  ;;  %v4053_v55 = vadd.f32 %v11449_v17, %v11447_v40  ;;  %v8341_v63 = vor.u32 %v9313_v50, %v8338_v34  ;;  %v8562_v17 = vld [vmem:[#allocation14 + $0x214] sm:$0xf0] }
 0x430   :  { %4104 = vmatmul.bf16.gmra.mxu3 %v11176_v20  ;;  %v4228_v49 = vpop.f32.mrf.mxu1 }
 0x431   :  { %v6544_v43 = vsub.f32 0.0, %v4315_v14  ;;  %v4229_v8 = vadd.f32 %v4228_v49, %v4140_v56  ;;  %4393 = vmatpush.bf16.msra.mxu3 %v8341_v63  ;;  %v8310_v14 = vld [vmem:[#allocation14 + $0x1c] sm:$0xf0]  ;;  %v9362_v63 = vld [vmem:[#allocation14 + $0x1c4] sm:$0xf] }
 0x433   :  { %v9581_v9 = vpop.eup %9580  ;;  %v6789_v53 = vmul.f32 1.442695, %v6544_v43  ;;  %v11496_v46 = vpop.f32.mrf.mxu3  ;;  %4267 = vmatmul.bf16.gmra.mxu1 %v11340_v5  ;;  %4356 = vmatmul.bf16.gmra.mxu2 %v11380_v7  ;;  %v9369_v7 = vld [vmem:[#allocation14 + $0x1fc] sm:$0xf] }
 0x434   :  { %v11498_v2 = vpop.f32.mrf.mxu0  ;;  %v9583_v44 = vpop.eup %9582  ;;  %v7209_v13 = vadd.f32 1.0, %v9581_v9  ;;  %v4142_v9 = vadd.f32 %v11451_v48, %v4053_v55  ;;  %v4056_v48 = vadd.f32 %v11458_v51, %v11447_v40  ;;  %v13492_v55 = vld [vmem:[#allocation40_spill] sm:$0xff] }
 0x435   :  { %7650 = vst [vmem:[#allocation16 + $0x38] sm:$0xff] %v9583_v44  ;;  %9584 = vpow2.f32 %v6789_v53  ;;  %v8313_v44 = vor.u32 %v9306_v54, %v8310_v14 }
 0x436   :  { %9586 = vrcp.f32 %v7209_v13  ;;  %4193 = vmatmul.bf16.gmra.mxu0 %v11221_v10  ;;  %v4317_v21 = vpop.f32.mrf.mxu2 }
 0x437   :  { %v4318_v22 = vadd.f32 %v4317_v21, %v4229_v8  ;;  %v8565_v21 = vor.u32 %v9369_v7, %v8562_v17  ;;  %4394 = vmatpush.bf16.msra.mxu3 %v8313_v44  ;;  %v9010_v17 = vld [vmem:[#allocation14 + $0x594] sm:$0xf0] }
 0x438   :  { %v4230_v18 = vpop.f32.mrf.mxu1 }
 0x439   :  { %v6551_v24 = vsub.f32 0.0, %v4318_v22  ;;  %v4231_v8 = vadd.f32 %v4230_v18, %v4142_v9  ;;  %4482 = vmatpush.bf16.msra.mxu0 %v8565_v21  ;;  %v4058_v21 = vadd.f32 %v11470_v28, %v11447_v40 }
 0x43b   :  { %v9585_v43 = vpop.eup %9584  ;;  %v6803_v49 = vmul.f32 1.442695, %v6551_v24  ;;  %v11506_v56 = vpop.f32.mrf.mxu3  ;;  %v8534_v24 = vld [vmem:[#allocation14 + $0x1dc] sm:$0xf0] }
 0x43c   :  { %v11508_v53 = vpop.f32.mrf.mxu0  ;;  %v9587_v13 = vpop.eup %9586  ;;  %v7216_v10 = vadd.f32 1.0, %v9585_v43  ;;  %v8537_v14 = vor.u32 %v9362_v63, %v8534_v24  ;;  %v4147_v24 = vadd.f32 %v11472_v29, %v4058_v21 }
 0x43d   :  { %7657 = vst [vmem:[#allocation16 + $0x70] sm:$0xff] %v9587_v13  ;;  %9588 = vpow2.f32 %v6803_v49  ;;  %v4145_v49 = vadd.f32 %v11460_v36, %v4056_v48  ;;  %v9481_v13 = vld [vmem:[#allocation14 + $0x57c] sm:$0xf] }
 0x43e   :  { %9590 = vrcp.f32 %v7216_v10  ;;  %v4319_v50 = vpop.f32.mrf.mxu2  ;;  %4483 = vmatpush.bf16.msra.mxu0 %v8537_v14 }
 0x43f   :  { %v4320_v34 = vadd.f32 %v4319_v50, %v4231_v8  ;;  %v9013_v8 = vor.u32 %v9481_v13, %v9010_v17  ;;  %v4061_v13 = vadd.f32 %v11478_v0, %v11447_v40 }
 0x440   :  { %4109 = vmatmul.bf16.gmra.mxu3 %v13492_v55  ;;  %v4233_v22 = vpop.f32.mrf.mxu1 }
 0x441   :  { %v6558_v54 = vsub.f32 0.0, %v4320_v34  ;;  %v4234_v44 = vadd.f32 %v4233_v22, %v4145_v49  ;;  %4660 = vmatpush.bf16.msra.mxu2 %v9013_v8  ;;  %v4150_v21 = vadd.f32 %v11480_v32, %v4061_v13  ;;  %v4063_v32 = vadd.f32 %v11488_v37, %v11447_v40 }
 0x442   :  { %v4066_v37 = vadd.f32 %v11496_v46, %v11447_v40 }
 0x443   :  { %v9589_v43 = vpop.eup %9588  ;;  %v6817_v18 = vmul.f32 1.442695, %v6558_v54  ;;  %v11514_v7 = vpop.f32.mrf.mxu3  ;;  %4272 = vmatmul.bf16.gmra.mxu1 %v11352_v31  ;;  %4361 = vmatmul.bf16.gmra.mxu2 %v11392_v45 }
 0x444   :  { %v11516_v10 = vpop.f32.mrf.mxu0  ;;  %v9591_v51 = vpop.eup %9590  ;;  %v7223_v9 = vadd.f32 1.0, %v9589_v43 }
 0x445   :  { %7664 = vst [vmem:[#allocation16 + $0xa8] sm:$0xff] %v9591_v51  ;;  %9592 = vpow2.f32 %v6817_v18  ;;  %v9425_v51 = vld [vmem:[#allocation14 + $0x3bc] sm:$0xf] }
 0x446   :  { %9594 = vrcp.f32 %v7223_v9  ;;  %4198 = vmatmul.bf16.gmra.mxu0 %v11233_v47  ;;  %v4322_v36 = vpop.f32.mrf.mxu2  ;;  %v8786_v9 = vld [vmem:[#allocation14 + $0x3d4] sm:$0xf0] }
 0x447   :  { %v4323_v50 = vadd.f32 %v4322_v36, %v4234_v44  ;;  %v8789_v44 = vor.u32 %v9425_v51, %v8786_v9  ;;  %v4152_v9 = vadd.f32 %v11490_v39, %v4063_v32 }
 0x448   :  { %v4235_v48 = vpop.f32.mrf.mxu1 }
 0x449   :  { %v6565_v34 = vsub.f32 0.0, %v4323_v50  ;;  %v4236_v18 = vadd.f32 %v4235_v48, %v4147_v24  ;;  %4571 = vmatpush.bf16.msra.mxu1 %v8789_v44 }
 0x44b   :  { %v9593_v63 = vpop.eup %9592  ;;  %v6831_v54 = vmul.f32 1.442695, %v6565_v34  ;;  %v11524_v14 = vpop.f32.mrf.mxu3 }
 0x44c   :  { %v11526_v22 = vpop.f32.mrf.mxu0  ;;  %v9595_v43 = vpop.eup %9594  ;;  %v7230_v49 = vadd.f32 1.0, %v9593_v63 }
 0x44d   :  { %7671 = vst [vmem:[#allocation16 + $0xe0] sm:$0xff] %v9595_v43  ;;  %9596 = vpow2.f32 %v6831_v54 }
 0x44e   :  { %9598 = vrcp.f32 %v7230_v49  ;;  %v4324_v28 = vpop.f32.mrf.mxu2 }
 0x44f   :  { %v4325_v17 = vadd.f32 %v4324_v28, %v4236_v18 }
 0x450   :  { %4114 = vmatmul.bf16.gmra.mxu3 %v11205_v35  ;;  %v4238_v29 = vpop.f32.mrf.mxu1 }
 0x451   :  { %v6572_v36 = vsub.f32 0.0, %v4325_v17  ;;  %v4239_v24 = vadd.f32 %v4238_v29, %v4150_v21 }
 0x453   :  { %v9597_v8 = vpop.eup %9596  ;;  %v6845_v50 = vmul.f32 1.442695, %v6572_v36  ;;  %v11532_v34 = vpop.f32.mrf.mxu3  ;;  %4277 = vmatmul.bf16.gmra.mxu1 %v11364_v23  ;;  %4366 = vmatmul.bf16.gmra.mxu2 %v11408_v19 }
 0x454   :  { %v11534_v48 = vpop.f32.mrf.mxu0  ;;  %v9599_v63 = vpop.eup %9598  ;;  %v7237_v0 = vadd.f32 1.0, %v9597_v8 }
 0x455   :  { %7678 = vst [vmem:[#allocation16 + $0x118] sm:$0xff] %v9599_v63  ;;  %9600 = vpow2.f32 %v6845_v50 }
 0x456   :  { %9602 = vrcp.f32 %v7237_v0  ;;  %4203 = vmatmul.bf16.gmra.mxu0 %v11248_v4  ;;  %v4327_v54 = vpop.f32.mrf.mxu2  ;;  %v4155_v0 = vadd.f32 %v11498_v2, %v4066_v37 }
 0x457   :  { %v4328_v43 = vadd.f32 %v4327_v54, %v4239_v24 }
 0x458   :  { %v4240_v49 = vpop.f32.mrf.mxu1 }
 0x459   :  { %v6579_v18 = vsub.f32 0.0, %v4328_v43  ;;  %v4241_v36 = vadd.f32 %v4240_v49, %v4152_v9 }
 0x45b   :  { %v9601_v51 = vpop.eup %9600  ;;  %v6859_v28 = vmul.f32 1.442695, %v6579_v18  ;;  %v11542_v44 = vpop.f32.mrf.mxu3  ;;  %v9474_v18 = vld [vmem:[#allocation14 + $0x544] sm:$0xf] }
 0x45c   :  { %v11544_v13 = vpop.f32.mrf.mxu0  ;;  %v9603_v17 = vpop.eup %9602  ;;  %v7244_v29 = vadd.f32 1.0, %v9601_v51  ;;  %v8982_v51 = vld [vmem:[#allocation14 + $0x55c] sm:$0xf0] }
 0x45d   :  { %7685 = vst [vmem:[#allocation16 + $0x150] sm:$0xff] %v9603_v17  ;;  %9604 = vpow2.f32 %v6859_v28  ;;  %v8985_v2 = vor.u32 %v9474_v18, %v8982_v51  ;;  %v4068_v28 = vadd.f32 %v11506_v56, %v11447_v40  ;;  %v4071_v18 = vadd.f32 %v11514_v7, %v11447_v40 }
 0x45e   :  { %9606 = vrcp.f32 %v7244_v29  ;;  %v4329_v8 = vpop.f32.mrf.mxu2 }
 0x45f   :  { %v4330_v21 = vadd.f32 %v4329_v8, %v4241_v36  ;;  %4661 = vmatpush.bf16.msra.mxu2 %v8985_v2  ;;  %v4157_v37 = vadd.f32 %v11508_v53, %v4068_v28  ;;  %v4160_v28 = vadd.f32 %v11516_v10, %v4071_v18  ;;  %v4073_v10 = vadd.f32 %v11524_v14, %v11447_v40 }
 0x460   :  { %v4243_v50 = vpop.f32.mrf.mxu1  ;;  %4395 = vmatmul.bf16.vlgmr.msra.gmra.mxu3 %v11009_v30 }
 0x461   :  { %v6586_v39 = vsub.f32 0.0, %v4330_v21  ;;  %v4244_v46 = vadd.f32 %v4243_v50, %v4155_v0 }
 0x463   :  { %v9605_v63 = vpop.eup %9604  ;;  %v6873_v24 = vmul.f32 1.442695, %v6586_v39  ;;  %v11550_v54 = vpop.f32.mrf.mxu3  ;;  %4282 = vmatmul.bf16.gmra.mxu1 %v11376_v27  ;;  %4371 = vmatmul.bf16.gmra.mxu2 %v11424_v52 }
 0x464   :  { %v11552_v32 = vpop.f32.mrf.mxu0  ;;  %v9607_v43 = vpop.eup %9606  ;;  %v7251_v49 = vadd.f32 1.0, %v9605_v63 }
 0x465   :  { %7692 = vst [vmem:[#allocation16 + $0x188] sm:$0xff] %v9607_v43  ;;  %9608 = vpow2.f32 %v6873_v24  ;;  %v9418_v43 = vld [vmem:[#allocation14 + $0x384] sm:$0xf] }
 0x466   :  { %9610 = vrcp.f32 %v7251_v49  ;;  %v4332_v9 = vpop.f32.mrf.mxu2  ;;  %4484 = vmatmul.bf16.vlgmr.msra.gmra.mxu0 %v11061_v26  ;;  %v8758_v49 = vld [vmem:[#allocation14 + $0x39c] sm:$0xf0] }
 0x467   :  { %v4333_v17 = vadd.f32 %v4332_v9, %v4244_v46  ;;  %v8761_v46 = vor.u32 %v9418_v43, %v8758_v49  ;;  %v4162_v49 = vadd.f32 %v11526_v22, %v4073_v10 }
 0x468   :  { %v4245_v29 = vpop.f32.mrf.mxu1 }
 0x469   :  { %v6593_v36 = vsub.f32 0.0, %v4333_v17  ;;  %v4246_v24 = vadd.f32 %v4245_v29, %v4157_v37  ;;  %4572 = vmatpush.bf16.msra.mxu1 %v8761_v46 }
 0x46b   :  { %v9609_v8 = vpop.eup %9608  ;;  %v6887_v21 = vmul.f32 1.442695, %v6593_v36  ;;  %v11560_v39 = vpop.f32.mrf.mxu3 }
 0x46c   :  { %v11562_v50 = vpop.f32.mrf.mxu0  ;;  %v9611_v63 = vpop.eup %9610  ;;  %v7258_v0 = vadd.f32 1.0, %v9609_v8 }
 0x46d   :  { %7699 = vst [vmem:[#allocation16 + $0x1c0] sm:$0xff] %v9611_v63  ;;  %9612 = vpow2.f32 %v6887_v21 }
 0x46e   :  { %9614 = vrcp.f32 %v7258_v0  ;;  %v4334_v56 = vpop.f32.mrf.mxu2 }
 0x46f   :  { %v4335_v51 = vadd.f32 %v4334_v56, %v4246_v24 }
 0x470   :  { %v4248_v53 = vpop.f32.mrf.mxu1  ;;  %4400 = vmatmul.bf16.gmra.mxu3 %v11025_v57 }
 0x471   :  { %v6600_v9 = vsub.f32 0.0, %v4335_v51  ;;  %v4249_v37 = vadd.f32 %v4248_v53, %v4160_v28  ;;  %v9359_v28 = vld [vmem:[#allocation14 + $0x1a8] sm:$0xf0] }
 0x473   :  { %v9613_v2 = vpop.eup %9612  ;;  %v6901_v17 = vmul.f32 1.442695, %v6600_v9  ;;  %v11568_v36 = vpop.f32.mrf.mxu3  ;;  %4287 = vmatmul.bf16.gmra.mxu1 %v11388_v25  ;;  %4376 = vmatmul.bf16.gmra.mxu2 %v11440_v1 }
 0x474   :  { %v11570_v29 = vpop.f32.mrf.mxu0  ;;  %v9615_v8 = vpop.eup %9614  ;;  %v7265_v7 = vadd.f32 1.0, %v9613_v2  ;;  %v8512_v2 = vld [vmem:[#allocation14 + $0x190] sm:$0xf] }
 0x475   :  { %7706 = vst [vmem:[#allocation16 + $0x1f8] sm:$0xff] %v9615_v8  ;;  %9616 = vpow2.f32 %v6901_v17  ;;  %v8513_v17 = vor.u32 %v9359_v28, %v8512_v2  ;;  %v4076_v8 = vadd.f32 %v11532_v34, %v11447_v40  ;;  %v9415_v2 = vld [vmem:[#allocation14 + $0x368] sm:$0xf0]  ;;  %v4078_v28 = vadd.f32 %v11542_v44, %v11447_v40  ;;  %v8960_v44 = vld [vmem:[#allocation14 + $0x510] sm:$0xf] }
 0x476   :  { %9618 = vrcp.f32 %v7265_v7  ;;  %v4337_v21 = vpop.f32.mrf.mxu2  ;;  %4489 = vmatmul.bf16.gmra.mxu0 %v11073_v42 }
 0x477   :  { %v4338_v63 = vadd.f32 %v4337_v21, %v4249_v37  ;;  %4743 = vmatpush.bf16.msrb.mxu3 %v8513_v17  ;;  %v4165_v10 = vadd.f32 %v11534_v48, %v4076_v8 }
 0x478   :  { %v4250_v0 = vpop.f32.mrf.mxu1 }
 0x479   :  { %v6607_v24 = vsub.f32 0.0, %v4338_v63  ;;  %v4251_v9 = vadd.f32 %v4250_v0, %v4162_v49 }
 0x47b   :  { %v9617_v43 = vpop.eup %9616  ;;  %v6915_v56 = vmul.f32 1.442695, %v6607_v24  ;;  %v11578_v46 = vpop.f32.mrf.mxu3 }
 0x47c   :  { %v11580_v18 = vpop.f32.mrf.mxu0  ;;  %v9619_v51 = vpop.eup %9618  ;;  %v7272_v53 = vadd.f32 1.0, %v9617_v43 }
 0x47d   :  { %7713 = vst [vmem:[#allocation16 + $0x230] sm:$0xff] %v9619_v51  ;;  %9620 = vpow2.f32 %v6915_v56  ;;  %v9184_v56 = vld [vmem:[#allocation14 + $0x6d0] sm:$0xf]  ;;  %v9527_v51 = vld [vmem:[#allocation14 + $0x6e8] sm:$0xf0] }
 0x47e   :  { %9622 = vrcp.f32 %v7272_v53  ;;  %v4339_v14 = vpop.f32.mrf.mxu2  ;;  %v9185_v48 = vor.u32 %v9527_v51, %v9184_v56 }
 0x47f   :  { %v4340_v7 = vadd.f32 %v4339_v14, %v4251_v9  ;;  %v8736_v9 = vld [vmem:[#allocation14 + $0x350] sm:$0xf] }
 0x480   :  { %v4253_v22 = vpop.f32.mrf.mxu1  ;;  %4405 = vmatmul.bf16.gmra.mxu3 %v11044_v62  ;;  %v8737_v17 = vor.u32 %v9415_v2, %v8736_v9  ;;  %5010 = vmatpush.bf16.msrb.mxu2 %v9185_v48  ;;  %v4081_v48 = vadd.f32 %v11550_v54, %v11447_v40 }
 0x481   :  { %v6614_v37 = vsub.f32 0.0, %v4340_v7  ;;  %v4254_v49 = vadd.f32 %v4253_v22, %v4165_v10  ;;  %v4167_v22 = vadd.f32 %v11544_v13, %v4078_v28 }
 0x482   :  { %4832 = vmatpush.bf16.msrb.mxu0 %v8737_v17 }
 0x483   :  { %v9621_v21 = vpop.eup %9620  ;;  %v6929_v63 = vmul.f32 1.442695, %v6614_v37  ;;  %v11586_v24 = vpop.f32.mrf.mxu3  ;;  %4292 = vmatmul.bf16.gmra.mxu1 %v11400_v38  ;;  %4381 = vmatmul.bf16.gmra.mxu2 %v11464_v15 }
 0x484   :  { %v11588_v0 = vpop.f32.mrf.mxu0  ;;  %v9623_v43 = vpop.eup %9622  ;;  %v7279_v34 = vadd.f32 1.0, %v9621_v21 }
 0x485   :  { %7720 = vst [vmem:[#allocation16 + $0x268] sm:$0xff] %v9623_v43  ;;  %9624 = vpow2.f32 %v6929_v63 }
 0x486   :  { %9626 = vrcp.f32 %v7279_v34  ;;  %v4342_v53 = vpop.f32.mrf.mxu2  ;;  %4494 = vmatmul.bf16.gmra.mxu0 %v11085_v33 }
 0x487   :  { %v4343_v14 = vadd.f32 %v4342_v53, %v4254_v49  ;;  %v9471_v49 = vld [vmem:[#allocation14 + $0x528] sm:$0xf0] }
 0x488   :  { %v4255_v8 = vpop.f32.mrf.mxu1  ;;  %v8961_v53 = vor.u32 %v9471_v49, %v8960_v44 }
 0x489   :  { %v6621_v7 = vsub.f32 0.0, %v4343_v14  ;;  %v4256_v56 = vadd.f32 %v4255_v8, %v4167_v22  ;;  %v4170_v14 = vadd.f32 %v11552_v32, %v4081_v48  ;;  %v4083_v32 = vadd.f32 %v11560_v39, %v11447_v40 }
 0x48a   :  { %4921 = vmatpush.bf16.msrb.mxu1 %v8961_v53 }
 0x48b   :  { %v9625_v37 = vpop.eup %9624  ;;  %v6943_v21 = vmul.f32 1.442695, %v6621_v7  ;;  %v11596_v10 = vpop.f32.mrf.mxu3 }
 0x48c   :  { %v11598_v63 = vpop.f32.mrf.mxu0  ;;  %v9627_v43 = vpop.eup %9626  ;;  %v7286_v34 = vadd.f32 1.0, %v9625_v37  ;;  %v13493_v37 = vld [vmem:[#allocation47_spill] sm:$0xff] }
 0x48d   :  { %7727 = vst [vmem:[#allocation16 + $0x2a0] sm:$0xff] %v9627_v43  ;;  %9628 = vpow2.f32 %v6943_v21 }
 0x48e   :  { %9630 = vrcp.f32 %v7286_v34  ;;  %v4344_v51 = vpop.f32.mrf.mxu2 }
 0x48f   :  { %v4345_v9 = vadd.f32 %v4344_v51, %v4256_v56  ;;  %v4172_v51 = vadd.f32 %v11562_v50, %v4083_v32 }
 0x490   :  { %v4258_v13 = vpop.f32.mrf.mxu1  ;;  %4410 = vmatmul.bf16.gmra.mxu3 %v11056_v11 }
 0x491   :  { %v6628_v2 = vsub.f32 0.0, %v4345_v9  ;;  %v4259_v21 = vadd.f32 %v4258_v13, %v4170_v14  ;;  %v8484_v14 = vld [vmem:[#allocation14 + $0x158] sm:$0xf] }
 0x493   :  { %v9629_v28 = vpop.eup %9628  ;;  %v6957_v17 = vmul.f32 1.442695, %v6628_v2  ;;  %v11604_v7 = vpop.f32.mrf.mxu3  ;;  %4573 = vmatmul.bf16.vlgmr.msra.gmra.mxu1 %v11217_v6  ;;  %4662 = vmatmul.bf16.vlgmr.msra.gmra.mxu2 %v13493_v37 }
 0x494   :  { %v11606_v8 = vpop.f32.mrf.mxu0  ;;  %v9631_v22 = vpop.eup %9630  ;;  %v7293_v54 = vadd.f32 1.0, %v9629_v28 }
 0x495   :  { %7734 = vst [vmem:[#allocation16 + $0x2d8] sm:$0xff] %v9631_v22  ;;  %9632 = vpow2.f32 %v6957_v17  ;;  %v9352_v17 = vld [vmem:[#allocation14 + $0x170] sm:$0xf0] }
 0x496   :  { %9634 = vrcp.f32 %v7293_v54  ;;  %v4347_v43 = vpop.f32.mrf.mxu2  ;;  %4499 = vmatmul.bf16.gmra.mxu0 %v11097_v16  ;;  %v8485_v22 = vor.u32 %v9352_v17, %v8484_v14  ;;  %v4086_v54 = vadd.f32 %v11568_v36, %v11447_v40  ;;  %v9156_v14 = vld [vmem:[#allocation14 + $0x698] sm:$0xf]  ;;  %v9520_v17 = vld [vmem:[#allocation14 + $0x6b0] sm:$0xf0] }
 0x497   :  { %v4348_v34 = vadd.f32 %v4347_v43, %v4259_v21  ;;  %v13494_v43 = vld [vmem:[#allocation23_spill] sm:$0xff] }
 0x498   :  { %v4260_v56 = vpop.f32.mrf.mxu1  ;;  %4744 = vmatpush.bf16.msrb.mxu3 %v8485_v22  ;;  %v13497_v22 = vld [vmem:[#allocation27_spill] sm:$0xff] }
 0x499   :  { %v6635_v44 = vsub.f32 0.0, %v4348_v34  ;;  %v4261_v28 = vadd.f32 %v4260_v56, %v4172_v51  ;;  %v13495_v51 = vld [vmem:[#allocation44_spill] sm:$0xff] }
 0x49b   :  { %v9633_v49 = vpop.eup %9632  ;;  %v6971_v53 = vmul.f32 1.442695, %v6635_v44  ;;  %v11614_v48 = vpop.f32.mrf.mxu3  ;;  %v4175_v44 = vadd.f32 %v11570_v29, %v4086_v54  ;;  %v9157_v29 = vor.u32 %v9520_v17, %v9156_v14  ;;  %v8708_v54 = vld [vmem:[#allocation14 + $0x318] sm:$0xf] }
 0x49c   :  { %v11616_v9 = vpop.f32.mrf.mxu0  ;;  %v9635_v2 = vpop.eup %9634  ;;  %v7300_v13 = vadd.f32 1.0, %v9633_v49 }
 0x49d   :  { %7741 = vst [vmem:[#allocation16 + $0x310] sm:$0xff] %v9635_v2  ;;  %9636 = vpow2.f32 %v6971_v53  ;;  %v13496_v2 = vld [vmem:[#allocation49_spill] sm:$0xff]  ;;  %5011 = vmatpush.bf16.msrb.mxu2 %v9157_v29 }
 0x49e   :  { %9638 = vrcp.f32 %v7300_v13  ;;  %v4349_v39 = vpop.f32.mrf.mxu2 }
 0x49f   :  { %v4350_v21 = vadd.f32 %v4349_v39, %v4261_v28 }
 0x4a0   :  { %v4263_v50 = vpop.f32.mrf.mxu1  ;;  %4415 = vmatmul.bf16.gmra.mxu3 %v13494_v43 }
 0x4a1   :  { %v6642_v32 = vsub.f32 0.0, %v4350_v21  ;;  %v4264_v28 = vadd.f32 %v4263_v50, %v4175_v44  ;;  %v9408_v21 = vld [vmem:[#allocation14 + $0x330] sm:$0xf0] }
 0x4a2   :  { %v8709_v43 = vor.u32 %v9408_v21, %v8708_v54  ;;  %v13498_v54 = vld [vmem:[#allocation24_spill] sm:$0xff] }
 0x4a3   :  { %v9637_v34 = vpop.eup %9636  ;;  %v6985_v49 = vmul.f32 1.442695, %v6642_v32  ;;  %v11622_v53 = vpop.f32.mrf.mxu3  ;;  %4578 = vmatmul.bf16.gmra.mxu1 %v13495_v51  ;;  %4667 = vmatmul.bf16.gmra.mxu2 %v13496_v2  ;;  %v4088_v32 = vadd.f32 %v11578_v46, %v11447_v40  ;;  %v8932_v46 = vld [vmem:[#allocation14 + $0x4d8] sm:$0xf] }
 0x4a4   :  { %v11624_v56 = vpop.f32.mrf.mxu0  ;;  %v9639_v13 = vpop.eup %9638  ;;  %v7307_v36 = vadd.f32 1.0, %v9637_v34  ;;  %4833 = vmatpush.bf16.msrb.mxu0 %v8709_v43  ;;  %v4091_v43 = vadd.f32 %v11586_v24, %v11447_v40 }
 0x4a5   :  { %7748 = vst [vmem:[#allocation16 + $0x348] sm:$0xff] %v9639_v13  ;;  %9640 = vpow2.f32 %v6985_v49  ;;  %v4177_v50 = vadd.f32 %v11580_v18, %v4088_v32 }
 0x4a6   :  { %9642 = vrcp.f32 %v7307_v36  ;;  %v4352_v39 = vpop.f32.mrf.mxu2  ;;  %4504 = vmatmul.bf16.gmra.mxu0 %v13497_v22 }
 0x4a7   :  { %v4353_v51 = vadd.f32 %v4352_v39, %v4264_v28  ;;  %v9464_v28 = vld [vmem:[#allocation14 + $0x4f0] sm:$0xf0] }
 0x4a8   :  { %v4265_v2 = vpop.f32.mrf.mxu1  ;;  %v8933_v29 = vor.u32 %v9464_v28, %v8932_v46  ;;  %v13501_v28 = vld [vmem:[#allocation29_spill] sm:$0xff] }
 0x4a9   :  { %v6649_v34 = vsub.f32 0.0, %v4353_v51  ;;  %v4266_v22 = vadd.f32 %v4265_v2, %v4177_v50  ;;  %v13499_v50 = vld [vmem:[#allocation45_spill] sm:$0xff] }
 0x4aa   :  { %4922 = vmatpush.bf16.msrb.mxu1 %v8933_v29 }
 0x4ab   :  { %v9641_v49 = vpop.eup %9640  ;;  %v6999_v44 = vmul.f32 1.442695, %v6649_v34  ;;  %v11632_v13 = vpop.f32.mrf.mxu3  ;;  %v4180_v34 = vadd.f32 %v11588_v0, %v4091_v43  ;;  %v4093_v0 = vadd.f32 %v11596_v10, %v11447_v40 }
 0x4ac   :  { %v11634_v36 = vpop.f32.mrf.mxu0  ;;  %v9643_v14 = vpop.eup %9642  ;;  %v7314_v17 = vadd.f32 1.0, %v9641_v49 }
 0x4ad   :  { %7755 = vst [vmem:[#allocation16 + $0x380] sm:$0xff] %v9643_v14  ;;  %9644 = vpow2.f32 %v6999_v44  ;;  %v13500_v14 = vld [vmem:[#allocation51_spill] sm:$0xff] }
 0x4ae   :  { %9646 = vrcp.f32 %v7314_v17  ;;  %v4354_v39 = vpop.f32.mrf.mxu2 }
 0x4af   :  { %v4355_v51 = vadd.f32 %v4354_v39, %v4266_v22 }
 0x4b0   :  { %v4268_v18 = vpop.f32.mrf.mxu1  ;;  %4420 = vmatmul.bf16.gmra.mxu3 %v13498_v54 }
 0x4b1   :  { %v6656_v21 = vsub.f32 0.0, %v4355_v51  ;;  %v4269_v22 = vadd.f32 %v4268_v18, %v4180_v34 }
 0x4b3   :  { %v9645_v32 = vpop.eup %9644  ;;  %v7013_v49 = vmul.f32 1.442695, %v6656_v21  ;;  %v11640_v44 = vpop.f32.mrf.mxu3  ;;  %4583 = vmatmul.bf16.gmra.mxu1 %v13499_v50  ;;  %4672 = vmatmul.bf16.gmra.mxu2 %v13500_v14  ;;  %v4182_v21 = vadd.f32 %v11598_v63, %v4093_v0  ;;  %v13502_v0 = vld [vmem:[#allocation25_spill] sm:$0xff] }
 0x4b4   :  { %v11642_v2 = vpop.f32.mrf.mxu0  ;;  %v9647_v17 = vpop.eup %9646  ;;  %v7321_v24 = vadd.f32 1.0, %v9645_v32 }
 0x4b5   :  { %7762 = vst [vmem:[#allocation16 + $0x3b8] sm:$0xff] %v9647_v17  ;;  %9648 = vpow2.f32 %v7013_v49  ;;  %v8456_v17 = vld [vmem:[#allocation14 + $0x120] sm:$0xf] }
 0x4b6   :  { %9650 = vrcp.f32 %v7321_v24  ;;  %v4357_v46 = vpop.f32.mrf.mxu2  ;;  %4509 = vmatmul.bf16.gmra.mxu0 %v13501_v28  ;;  %v9345_v24 = vld [vmem:[#allocation14 + $0x138] sm:$0xf0] }
 0x4b7   :  { %v4358_v39 = vadd.f32 %v4357_v46, %v4269_v22  ;;  %v8457_v22 = vor.u32 %v9345_v24, %v8456_v17  ;;  %v4096_v46 = vadd.f32 %v11604_v7, %v11447_v40  ;;  %v9128_v24 = vld [vmem:[#allocation14 + $0x660] sm:$0xf] }
 0x4b8   :  { %v4270_v29 = vpop.f32.mrf.mxu1 }
 0x4b9   :  { %v6663_v43 = vsub.f32 0.0, %v4358_v39  ;;  %v4271_v34 = vadd.f32 %v4270_v29, %v4182_v21  ;;  %4745 = vmatpush.bf16.msrb.mxu3 %v8457_v22  ;;  %v13503_v21 = vld [vmem:[#allocation46_spill] sm:$0xff] }
 0x4bb   :  { %v9649_v51 = vpop.eup %9648  ;;  %v7027_v50 = vmul.f32 1.442695, %v6663_v43  ;;  %v11650_v14 = vpop.f32.mrf.mxu3 }
 0x4bc   :  { %v11652_v32 = vpop.f32.mrf.mxu0  ;;  %v9651_v49 = vpop.eup %9650  ;;  %v7328_v18 = vadd.f32 1.0, %v9649_v51  ;;  %v4185_v51 = vadd.f32 %v11606_v8, %v4096_v46  ;;  %v8680_v46 = vld [vmem:[#allocation14 + $0x2e0] sm:$0xf] }
 0x4bd   :  { %7769 = vst [vmem:[#allocation16 + $0x3f0] sm:$0xff] %v9651_v49  ;;  %9652 = vpow2.f32 %v7027_v50 }
 0x4be   :  { %9654 = vrcp.f32 %v7328_v18  ;;  %v4359_v10 = vpop.f32.mrf.mxu2  ;;  %v13504_v18 = vld [vmem:[#allocation53_spill] sm:$0xff] }
 0x4bf   :  { %v4360_v39 = vadd.f32 %v4359_v10, %v4271_v34  ;;  %v9513_v10 = vld [vmem:[#allocation14 + $0x678] sm:$0xf0] }
 0x4c0   :  { %v4273_v63 = vpop.f32.mrf.mxu1  ;;  %4425 = vmatmul.bf16.gmra.mxu3 %v13502_v0  ;;  %v9129_v8 = vor.u32 %v9513_v10, %v9128_v24  ;;  %v4098_v0 = vadd.f32 %v11614_v48, %v11447_v40  ;;  %v8904_v48 = vld [vmem:[#allocation14 + $0x4a0] sm:$0xf] }
 0x4c1   :  { %v6670_v43 = vsub.f32 0.0, %v4360_v39  ;;  %v4274_v34 = vadd.f32 %v4273_v63, %v4185_v51  ;;  %v13505_v39 = vld [vmem:[#allocation31_spill] sm:$0xff] }
 0x4c2   :  { %5012 = vmatpush.bf16.msrb.mxu2 %v9129_v8  ;;  %v4187_v63 = vadd.f32 %v11616_v9, %v4098_v0 }
 0x4c3   :  { %v9653_v28 = vpop.eup %9652  ;;  %v7041_v49 = vmul.f32 1.442695, %v6670_v43  ;;  %v11658_v50 = vpop.f32.mrf.mxu3  ;;  %4588 = vmatmul.bf16.gmra.mxu1 %v13503_v21  ;;  %4677 = vmatmul.bf16.gmra.mxu2 %v13504_v18  ;;  %v9401_v43 = vld [vmem:[#allocation14 + $0x2f8] sm:$0xf0] }
 0x4c4   :  { %v11660_v29 = vpop.f32.mrf.mxu0  ;;  %v9655_v17 = vpop.eup %9654  ;;  %v7335_v7 = vadd.f32 1.0, %v9653_v28  ;;  %v8681_v54 = vor.u32 %v9401_v43, %v8680_v46 }
 0x4c5   :  { %7776 = vst [vmem:[#allocation16 + $0x428] sm:$0xff] %v9655_v17  ;;  %9656 = vpow2.f32 %v7041_v49 }
 0x4c6   :  { %9658 = vrcp.f32 %v7335_v7  ;;  %v4362_v22 = vpop.f32.mrf.mxu2  ;;  %4514 = vmatmul.bf16.gmra.mxu0 %v13505_v39 }
 0x4c7   :  { %v4363_v21 = vadd.f32 %v4362_v22, %v4274_v34  ;;  %4834 = vmatpush.bf16.msrb.mxu0 %v8681_v54  ;;  %v9457_v34 = vld [vmem:[#allocation14 + $0x4b8] sm:$0xf0]  ;;  %v4101_v54 = vadd.f32 %v11622_v53, %v11447_v40 }
 0x4c8   :  { %v4275_v18 = vpop.f32.mrf.mxu1  ;;  %v8905_v8 = vor.u32 %v9457_v34, %v8904_v48 }
 0x4c9   :  { %v6677_v28 = vsub.f32 0.0, %v4363_v21  ;;  %v4276_v39 = vadd.f32 %v4275_v18, %v4187_v63  ;;  %v4190_v43 = vadd.f32 %v11624_v56, %v4101_v54  ;;  %v13506_v63 = vld [vmem:[#allocation55_spill] sm:$0xff]  ;;  %v4103_v56 = vadd.f32 %v11632_v13, %v11447_v40 }
 0x4ca   :  { %4923 = vmatpush.bf16.msrb.mxu1 %v8905_v8 }
 0x4cb   :  { %v9657_v49 = vpop.eup %9656  ;;  %v7055_v51 = vmul.f32 1.442695, %v6677_v28  ;;  %v11668_v17 = vpop.f32.mrf.mxu3  ;;  %v4192_v54 = vadd.f32 %v11634_v36, %v4103_v56  ;;  %v13508_v56 = vld [vmem:[#allocation28_spill] sm:$0xff] }
 0x4cc   :  { %v11670_v7 = vpop.f32.mrf.mxu0  ;;  %v9659_v24 = vpop.eup %9658  ;;  %v7342_v10 = vadd.f32 1.0, %v9657_v49 }
 0x4cd   :  { %7783 = vst [vmem:[#allocation16 + $0x460] sm:$0xff] %v9659_v24  ;;  %9660 = vpow2.f32 %v7055_v51 }
 0x4ce   :  { %9662 = vrcp.f32 %v7342_v10  ;;  %v4364_v22 = vpop.f32.mrf.mxu2  ;;  %v13507_v10 = vld [vmem:[#allocation33_spill] sm:$0xff] }
 0x4cf   :  { %v4365_v21 = vadd.f32 %v4364_v22, %v4276_v39 }
 0x4d0   :  { %v4278_v9 = vpop.f32.mrf.mxu1  ;;  %4430 = vmatmul.bf16.gmra.mxu3 %v13489_v3 }
 0x4d1   :  { %v6684_v0 = vsub.f32 0.0, %v4365_v21  ;;  %v4279_v39 = vadd.f32 %v4278_v9, %v4190_v43 }
 0x4d3   :  { %v9661_v46 = vpop.eup %9660  ;;  %v7069_v28 = vmul.f32 1.442695, %v6684_v0  ;;  %v11676_v49 = vpop.f32.mrf.mxu3  ;;  %4593 = vmatmul.bf16.gmra.mxu1 %v11268_v60  ;;  %4682 = vmatmul.bf16.gmra.mxu2 %v13506_v63 }
 0x4d4   :  { %v11678_v18 = vpop.f32.mrf.mxu0  ;;  %v9663_v51 = vpop.eup %9662  ;;  %v7349_v53 = vadd.f32 1.0, %v9661_v46 }
 0x4d5   :  { %7790 = vst [vmem:[#allocation16 + $0x498] sm:$0xff] %v9663_v51  ;;  %9664 = vpow2.f32 %v7069_v28  ;;  %v8428_v51 = vld [vmem:[#allocation14 + $0xe8] sm:$0xf] }
 0x4d6   :  { %9666 = vrcp.f32 %v7349_v53  ;;  %v4367_v24 = vpop.f32.mrf.mxu2  ;;  %4519 = vmatmul.bf16.gmra.mxu0 %v13507_v10  ;;  %v9338_v53 = vld [vmem:[#allocation14 + $0x100] sm:$0xf0] }
 0x4d7   :  { %v4368_v48 = vadd.f32 %v4367_v24, %v4279_v39  ;;  %v8429_v39 = vor.u32 %v9338_v53, %v8428_v51  ;;  %v4106_v24 = vadd.f32 %v11640_v44, %v11447_v40  ;;  %v9100_v53 = vld [vmem:[#allocation14 + $0x628] sm:$0xf] }
 0x4d8   :  { %v4280_v34 = vpop.f32.mrf.mxu1 }
 0x4d9   :  { %v6691_v22 = vsub.f32 0.0, %v4368_v48  ;;  %v4281_v43 = vadd.f32 %v4280_v34, %v4192_v54  ;;  %4746 = vmatpush.bf16.msrb.mxu3 %v8429_v39  ;;  %v13509_v54 = vld [vmem:[#allocation50_spill] sm:$0xff] }
 0x4db   :  { %v9665_v8 = vpop.eup %9664  ;;  %v7083_v21 = vmul.f32 1.442695, %v6691_v22  ;;  %v11686_v0 = vpop.f32.mrf.mxu3 }
 0x4dc   :  { %v11688_v46 = vpop.f32.mrf.mxu0  ;;  %v9667_v28 = vpop.eup %9666  ;;  %v7356_v9 = vadd.f32 1.0, %v9665_v8  ;;  %v4195_v8 = vadd.f32 %v11642_v2, %v4106_v24  ;;  %v8652_v24 = vld [vmem:[#allocation14 + $0x2a8] sm:$0xf] }
 0x4dd   :  { %7797 = vst [vmem:[#allocation16 + $0x4d0] sm:$0xff] %v9667_v28  ;;  %9668 = vpow2.f32 %v7083_v21 }
 0x4de   :  { %9670 = vrcp.f32 %v7356_v9  ;;  %v4369_v13 = vpop.f32.mrf.mxu2  ;;  %v13510_v9 = vld [vmem:[#allocation57_spill] sm:$0xff] }
 0x4df   :  { %v4370_v48 = vadd.f32 %v4369_v13, %v4281_v43  ;;  %v9506_v13 = vld [vmem:[#allocation14 + $0x640] sm:$0xf0] }
 0x4e0   :  { %v4283_v36 = vpop.f32.mrf.mxu1  ;;  %4435 = vmatmul.bf16.gmra.mxu3 %v13508_v56  ;;  %v9101_v2 = vor.u32 %v9506_v13, %v9100_v53  ;;  %v4108_v56 = vadd.f32 %v11650_v14, %v11447_v40  ;;  %v8876_v14 = vld [vmem:[#allocation14 + $0x468] sm:$0xf] }
 0x4e1   :  { %v6698_v22 = vsub.f32 0.0, %v4370_v48  ;;  %v4284_v43 = vadd.f32 %v4283_v36, %v4195_v8  ;;  %v13511_v48 = vld [vmem:[#allocation35_spill] sm:$0xff] }
 0x4e2   :  { %5013 = vmatpush.bf16.msrb.mxu2 %v9101_v2  ;;  %v4197_v36 = vadd.f32 %v11652_v32, %v4108_v56  ;;  %v13512_v56 = vld [vmem:[#allocation30_spill] sm:$0xff] }
 0x4e3   :  { %v9669_v10 = vpop.eup %9668  ;;  %v7097_v28 = vmul.f32 1.442695, %v6698_v22  ;;  %v11694_v21 = vpop.f32.mrf.mxu3  ;;  %4598 = vmatmul.bf16.gmra.mxu1 %v13509_v54  ;;  %4687 = vmatmul.bf16.gmra.mxu2 %v13510_v9  ;;  %v9394_v22 = vld [vmem:[#allocation14 + $0x2c0] sm:$0xf0] }
 0x4e4   :  { %v11696_v34 = vpop.f32.mrf.mxu0  ;;  %v9671_v51 = vpop.eup %9670  ;;  %v7363_v44 = vadd.f32 1.0, %v9669_v10  ;;  %v8653_v63 = vor.u32 %v9394_v22, %v8652_v24 }
 0x4e5   :  { %7804 = vst [vmem:[#allocation16 + $0x508] sm:$0xff] %v9671_v51  ;;  %9672 = vpow2.f32 %v7097_v28 }
 0x4e6   :  { %9674 = vrcp.f32 %v7363_v44  ;;  %v4372_v39 = vpop.f32.mrf.mxu2  ;;  %4524 = vmatmul.bf16.gmra.mxu0 %v13511_v48 }
 0x4e7   :  { %v4373_v54 = vadd.f32 %v4372_v39, %v4284_v43  ;;  %4835 = vmatpush.bf16.msrb.mxu0 %v8653_v63  ;;  %v9450_v43 = vld [vmem:[#allocation14 + $0x480] sm:$0xf0]  ;;  %v4111_v63 = vadd.f32 %v11658_v50, %v11447_v40 }
 0x4e8   :  { %v4285_v9 = vpop.f32.mrf.mxu1  ;;  %v8877_v2 = vor.u32 %v9450_v43, %v8876_v14  ;;  %v13515_v43 = vld [vmem:[#allocation37_spill] sm:$0xff] }
 0x4e9   :  { %v6705_v10 = vsub.f32 0.0, %v4373_v54  ;;  %v4286_v48 = vadd.f32 %v4285_v9, %v4197_v36  ;;  %v13513_v36 = vld [vmem:[#allocation52_spill] sm:$0xff] }
 0x4ea   :  { %4924 = vmatpush.bf16.msrb.mxu1 %v8877_v2 }
 0x4eb   :  { %v9673_v28 = vpop.eup %9672  ;;  %v7111_v8 = vmul.f32 1.442695, %v6705_v10  ;;  %v11704_v51 = vpop.f32.mrf.mxu3  ;;  %v4200_v10 = vadd.f32 %v11660_v29, %v4111_v63  ;;  %v4113_v29 = vadd.f32 %v11668_v17, %v11447_v40 }
 0x4ec   :  { %v11706_v44 = vpop.f32.mrf.mxu0  ;;  %v9675_v53 = vpop.eup %9674  ;;  %v7370_v13 = vadd.f32 1.0, %v9673_v28 }
 0x4ed   :  { %7811 = vst [vmem:[#allocation16 + $0x540] sm:$0xff] %v9675_v53  ;;  %9676 = vpow2.f32 %v7111_v8  ;;  %v13514_v53 = vld [vmem:[#allocation59_spill] sm:$0xff] }
 0x4ee   :  { %9678 = vrcp.f32 %v7370_v13  ;;  %v4374_v39 = vpop.f32.mrf.mxu2 }
 0x4ef   :  { %v4375_v54 = vadd.f32 %v4374_v39, %v4286_v48 }
 0x4f0   :  { %v4288_v32 = vpop.f32.mrf.mxu1  ;;  %4440 = vmatmul.bf16.gmra.mxu3 %v13512_v56 }
 0x4f1   :  { %v6712_v24 = vsub.f32 0.0, %v4375_v54  ;;  %v4289_v48 = vadd.f32 %v4288_v32, %v4200_v10 }
 0x4f3   :  { %v9677_v22 = vpop.eup %9676  ;;  %v7125_v28 = vmul.f32 1.442695, %v6712_v24  ;;  %v11712_v8 = vpop.f32.mrf.mxu3  ;;  %4603 = vmatmul.bf16.gmra.mxu1 %v13513_v36  ;;  %4692 = vmatmul.bf16.gmra.mxu2 %v13514_v53  ;;  %v4202_v24 = vadd.f32 %v11670_v7, %v4113_v29  ;;  %v13516_v29 = vld [vmem:[#allocation32_spill] sm:$0xff] }
 0x4f4   :  { %v11714_v9 = vpop.f32.mrf.mxu0  ;;  %v9679_v13 = vpop.eup %9678  ;;  %v7377_v50 = vadd.f32 1.0, %v9677_v22 }
 0x4f5   :  { %7818 = vst [vmem:[#allocation16 + $0x578] sm:$0xff] %v9679_v13  ;;  %9680 = vpow2.f32 %v7125_v28  ;;  %v8400_v13 = vld [vmem:[#allocation14 + $0xb0] sm:$0xf] }
 0x4f6   :  { %9682 = vrcp.f32 %v7377_v50  ;;  %v4377_v14 = vpop.f32.mrf.mxu2  ;;  %4529 = vmatmul.bf16.gmra.mxu0 %v13515_v43  ;;  %v9331_v50 = vld [vmem:[#allocation14 + $0xc8] sm:$0xf0] }
 0x4f7   :  { %v4378_v39 = vadd.f32 %v4377_v14, %v4289_v48  ;;  %v8401_v48 = vor.u32 %v9331_v50, %v8400_v13  ;;  %v4116_v14 = vadd.f32 %v11676_v49, %v11447_v40  ;;  %v9072_v50 = vld [vmem:[#allocation14 + $0x5f0] sm:$0xf] }
 0x4f8   :  { %v4290_v2 = vpop.f32.mrf.mxu1 }
 0x4f9   :  { %v6719_v63 = vsub.f32 0.0, %v4378_v39  ;;  %v4291_v10 = vadd.f32 %v4290_v2, %v4202_v24  ;;  %4747 = vmatpush.bf16.msrb.mxu3 %v8401_v48  ;;  %v13517_v24 = vld [vmem:[#allocation54_spill] sm:$0xff] }
 0x4fb   :  { %v9681_v54 = vpop.eup %9680  ;;  %v7139_v36 = vmul.f32 1.442695, %v6719_v63  ;;  %v11722_v53 = vpop.f32.mrf.mxu3 }
 0x4fc   :  { %v11724_v22 = vpop.f32.mrf.mxu0  ;;  %v9683_v28 = vpop.eup %9682  ;;  %v7384_v32 = vadd.f32 1.0, %v9681_v54  ;;  %v4205_v54 = vadd.f32 %v11678_v18, %v4116_v14  ;;  %v8624_v14 = vld [vmem:[#allocation14 + $0x270] sm:$0xf] }
 0x4fd   :  { %7825 = vst [vmem:[#allocation16 + $0x5b0] sm:$0xff] %v9683_v28  ;;  %9684 = vpow2.f32 %v7139_v36 }
 0x4fe   :  { %9686 = vrcp.f32 %v7384_v32  ;;  %v4379_v17 = vpop.f32.mrf.mxu2  ;;  %v13518_v32 = vld [vmem:[#allocation61_spill] sm:$0xff] }
 0x4ff   :  { %v4380_v39 = vadd.f32 %v4379_v17, %v4291_v10  ;;  %v9499_v17 = vld [vmem:[#allocation14 + $0x608] sm:$0xf0] }
 0x500   :  { %v4293_v7 = vpop.f32.mrf.mxu1  ;;  %4445 = vmatmul.bf16.gmra.mxu3 %v13516_v29  ;;  %v9073_v18 = vor.u32 %v9499_v17, %v9072_v50  ;;  %v4118_v29 = vadd.f32 %v11686_v0, %v11447_v40 }
 0x501   :  { %v6726_v63 = vsub.f32 0.0, %v4380_v39  ;;  %v4294_v10 = vadd.f32 %v4293_v7, %v4205_v54  ;;  %v13519_v39 = vld [vmem:[#allocation39_spill] sm:$0xff]  ;;  %v10471_v54 = vld [vmem:[%s13361_s8] sm:$0xff] }
 0x502   :  { %5014 = vmatpush.bf16.msrb.mxu2 %v9073_v18  ;;  %v4207_v7 = vadd.f32 %v11688_v46, %v4118_v29 }
 0x503   :  { %v9685_v43 = vpop.eup %9684  ;;  %v7153_v28 = vmul.f32 1.442695, %v6726_v63  ;;  %v11730_v36 = vpop.f32.mrf.mxu3  ;;  %4608 = vmatmul.bf16.gmra.mxu1 %v13517_v24  ;;  %4697 = vmatmul.bf16.gmra.mxu2 %v13518_v32  ;;  %v9387_v63 = vld [vmem:[#allocation14 + $0x288] sm:$0xf0] }
 0x504   :  { %v11732_v2 = vpop.f32.mrf.mxu0  ;;  %v9687_v13 = vpop.eup %9686  ;;  %v7391_v49 = vadd.f32 1.0, %v9685_v43  ;;  %v8625_v56 = vor.u32 %v9387_v63, %v8624_v14 }
 0x505   :  { %7832 = vst [vmem:[#allocation16 + $0x5e8] sm:$0xff] %v9687_v13  ;;  %9688 = vpow2.f32 %v7153_v28  ;;  %v11743_v13 = vperm.slane %v10471_v54, 1 }
 0x506   :  { %9690 = vrcp.f32 %v7391_v49  ;;  %v4382_v48 = vpop.f32.mrf.mxu2  ;;  %4534 = vmatmul.bf16.gmra.mxu0 %v13519_v39 }
 0x507   :  { %v4383_v24 = vadd.f32 %v4382_v48, %v4294_v10  ;;  %4836 = vmatpush.bf16.msrb.mxu0 %v8625_v56  ;;  %v8848_v56 = vld [vmem:[#allocation14 + $0x430] sm:$0xf]  ;;  %v9443_v10 = vld [vmem:[#allocation14 + $0x448] sm:$0xf0]  ;;  %v4397_v48 = vadd.f32 %v11694_v21, %v11743_v13 }
 0x508   :  { %v4295_v32 = vpop.f32.mrf.mxu1  ;;  %v8849_v29 = vor.u32 %v9443_v10, %v8848_v56 }
 0x509   :  { %v6733_v43 = vsub.f32 0.0, %v4383_v24  ;;  %v4296_v24 = vadd.f32 %v4295_v32, %v4207_v7 }
 0x50a   :  { %4925 = vmatpush.bf16.msrb.mxu1 %v8849_v29 }
 0x50b   :  { %v9689_v28 = vpop.eup %9688  ;;  %v7167_v49 = vmul.f32 1.442695, %v6733_v43  ;;  %v11745_v50 = vpop.f32.mrf.mxu3 }
 0x50c   :  { %v11747_v17 = vpop.f32.mrf.mxu0  ;;  %v9691_v40 = vpop.eup %9690  ;;  %v7398_v0 = vadd.f32 1.0, %v9689_v28  ;;  %v4486_v28 = vadd.f32 %v11696_v34, %v4397_v48  ;;  %v4399_v34 = vadd.f32 %v11704_v51, %v11743_v13 }
 0x50d   :  { %7839 = vst [vmem:[#allocation16 + $0x620] sm:$0xff] %v9691_v40  ;;  %9692 = vpow2.f32 %v7167_v49 }
 0x50e   :  { %9694 = vrcp.f32 %v7398_v0  ;;  %v4384_v46 = vpop.f32.mrf.mxu2  ;;  %v13520_v0 = vld [vmem:[#allocation41_spill] sm:$0xff]  ;;  %v4488_v48 = vadd.f32 %v11706_v44, %v4399_v34 }
 0x50f   :  { %v4385_v18 = vadd.f32 %v4384_v46, %v4296_v24 }
 0x510   :  { %4450 = vmatmul.bf16.gmra.mxu3 %v11152_v41  ;;  %v4574_v14 = vpop.f32.mrf.mxu1 }
 0x511   :  { %v6740_v63 = vsub.f32 0.0, %v4385_v18  ;;  %v4575_v40 = vadd.f32 %v4574_v14, %v4486_v28 }
 0x513   :  { %v9693_v43 = vpop.eup %9692  ;;  %v7181_v54 = vmul.f32 1.442695, %v6740_v63  ;;  %v11753_v49 = vpop.f32.mrf.mxu3  ;;  %4613 = vmatmul.bf16.gmra.mxu1 %v11316_v58  ;;  %4702 = vmatmul.bf16.gmra.mxu2 %v11356_v61 }
 0x514   :  { %v11755_v32 = vpop.f32.mrf.mxu0  ;;  %v9695_v7 = vpop.eup %9694  ;;  %v7405_v21 = vadd.f32 1.0, %v9693_v43 }
 0x515   :  { %7846 = vst [vmem:[#allocation16 + $0x658] sm:$0xff] %v9695_v7  ;;  %9696 = vpow2.f32 %v7181_v54  ;;  %v8372_v7 = vld [vmem:[#allocation14 + $0x78] sm:$0xf] }
 0x516   :  { %9698 = vrcp.f32 %v7405_v21  ;;  %4539 = vmatmul.bf16.gmra.mxu0 %v13520_v0  ;;  %v4663_v24 = vpop.f32.mrf.mxu2  ;;  %v9324_v21 = vld [vmem:[#allocation14 + $0x90] sm:$0xf0] }
 0x517   :  { %v4664_v56 = vadd.f32 %v4663_v24, %v4575_v40  ;;  %v8373_v40 = vor.u32 %v9324_v21, %v8372_v7  ;;  %v4402_v24 = vadd.f32 %v11712_v8, %v11743_v13  ;;  %v9044_v7 = vld [vmem:[#allocation14 + $0x5b8] sm:$0xf]  ;;  %v9492_v21 = vld [vmem:[#allocation14 + $0x5d0] sm:$0xf0] }
 0x518   :  { %v4576_v10 = vpop.f32.mrf.mxu1 }
 0x519   :  { %v6524_v46 = vsub.f32 0.0, %v4664_v56  ;;  %v4577_v28 = vadd.f32 %v4576_v10, %v4488_v48  ;;  %4748 = vmatpush.bf16.msrb.mxu3 %v8373_v40  ;;  %v13521_v48 = vld [vmem:[#allocation63_spill] sm:$0xff]  ;;  %v9045_v40 = vor.u32 %v9492_v21, %v9044_v7 }
 0x51b   :  { %v9697_v29 = vpop.eup %9696  ;;  %v6749_v18 = vmul.f32 1.442695, %v6524_v46  ;;  %v11763_v63 = vpop.f32.mrf.mxu3  ;;  %5015 = vmatpush.bf16.msrb.mxu2 %v9045_v40 }
 0x51c   :  { %v11765_v43 = vpop.f32.mrf.mxu0  ;;  %v9699_v54 = vpop.eup %9698  ;;  %v7412_v14 = vadd.f32 1.0, %v9697_v29  ;;  %v4491_v29 = vadd.f32 %v11714_v9, %v4402_v24  ;;  %v8596_v24 = vld [vmem:[#allocation14 + $0x238] sm:$0xf] }
 0x51d   :  { %7853 = vst [vmem:[#allocation16 + $0x690] sm:$0xff] %v9699_v54  ;;  %9700 = vpow2.f32 %v6749_v18 }
 0x51e   :  { %9702 = vrcp.f32 %v7412_v14  ;;  %v4665_v51 = vpop.f32.mrf.mxu2 }
 0x51f   :  { %v4666_v56 = vadd.f32 %v4665_v51, %v4577_v28  ;;  %v13522_v51 = vld [vmem:[#allocation42_spill] sm:$0xff] }
 0x520   :  { %4455 = vmatmul.bf16.gmra.mxu3 %v11164_v59  ;;  %v4579_v44 = vpop.f32.mrf.mxu1 }
 0x521   :  { %v6531_v34 = vsub.f32 0.0, %v4666_v56  ;;  %v4580_v28 = vadd.f32 %v4579_v44, %v4491_v29  ;;  %v9380_v56 = vld [vmem:[#allocation14 + $0x250] sm:$0xf0] }
 0x522   :  { %v8597_v59 = vor.u32 %v9380_v56, %v8596_v24 }
 0x523   :  { %v9701_v46 = vpop.eup %9700  ;;  %v6763_v54 = vmul.f32 1.442695, %v6531_v34  ;;  %v11771_v18 = vpop.f32.mrf.mxu3  ;;  %4618 = vmatmul.bf16.gmra.mxu1 %v11328_v12  ;;  %4707 = vmatmul.bf16.gmra.mxu2 %v13521_v48  ;;  %v4404_v34 = vadd.f32 %v11722_v53, %v11743_v13  ;;  %v8820_v53 = vld [vmem:[#allocation14 + $0x3f8] sm:$0xf] }
 0x524   :  { %v11773_v10 = vpop.f32.mrf.mxu0  ;;  %v9703_v14 = vpop.eup %9702  ;;  %v7196_v8 = vadd.f32 1.0, %v9701_v46  ;;  %4837 = vmatpush.bf16.msrb.mxu0 %v8597_v59  ;;  %v4407_v59 = vadd.f32 %v11730_v36, %v11743_v13 }
 0x525   :  { %7860 = vst [vmem:[#allocation16 + $0x6c8] sm:$0xff] %v9703_v14  ;;  %9704 = vpow2.f32 %v6763_v54  ;;  %v4493_v44 = vadd.f32 %v11724_v22, %v4404_v34 }
 0x526   :  { %9706 = vrcp.f32 %v7196_v8  ;;  %4544 = vmatmul.bf16.gmra.mxu0 %v13522_v51  ;;  %v4668_v9 = vpop.f32.mrf.mxu2  ;;  %v4496_v34 = vadd.f32 %v11732_v2, %v4407_v59  ;;  %v9317_v2 = vld [vmem:[#allocation14 + $0x58] sm:$0xf0] }
 0x527   :  { %v4669_v12 = vadd.f32 %v4668_v9, %v4580_v28  ;;  %v9436_v28 = vld [vmem:[#allocation14 + $0x410] sm:$0xf0] }
 0x528   :  { %v4581_v48 = vpop.f32.mrf.mxu1  ;;  %v8821_v40 = vor.u32 %v9436_v28, %v8820_v53  ;;  %v8344_v53 = vld [vmem:[#allocation14 + $0x40] sm:$0xf]  ;;  %v4409_v28 = vadd.f32 %v11745_v50, %v11743_v13  ;;  %v9373_v50 = vld [vmem:[#allocation14 + $0x218] sm:$0xf0] }
 0x529   :  { %v6538_v46 = vsub.f32 0.0, %v4669_v12  ;;  %v4582_v51 = vadd.f32 %v4581_v48, %v4493_v44  ;;  %v13523_v44 = vld [vmem:[#allocation64_spill] sm:$0xff] }
 0x52a   :  { %4926 = vmatpush.bf16.msrb.mxu1 %v8821_v40  ;;  %v8345_v40 = vor.u32 %v9317_v2, %v8344_v53 }
 0x52b   :  { %v9705_v54 = vpop.eup %9704  ;;  %v6777_v29 = vmul.f32 1.442695, %v6538_v46  ;;  %v11781_v14 = vpop.f32.mrf.mxu3 }
 0x52c   :  { %v11783_v8 = vpop.f32.mrf.mxu0  ;;  %v9707_v7 = vpop.eup %9706  ;;  %v7203_v21 = vadd.f32 1.0, %v9705_v54  ;;  %4749 = vmatpush.bf16.msrb.mxu3 %v8345_v40 }
 0x52d   :  { %7644 = vst [vmem:[#allocation16 + $0x8] sm:$0xff] %v9707_v7  ;;  %9708 = vpow2.f32 %v6777_v29  ;;  %v13524_v7 = vld [vmem:[#allocation43_spill] sm:$0xff] }
 0x52e   :  { %9710 = vrcp.f32 %v7203_v21  ;;  %v4670_v9 = vpop.f32.mrf.mxu2 }
 0x52f   :  { %v4671_v12 = vadd.f32 %v4670_v9, %v4582_v51 }
 0x530   :  { %4460 = vmatmul.bf16.gmra.mxu3 %v11176_v20  ;;  %v4584_v22 = vpop.f32.mrf.mxu1  ;;  %v8568_v20 = vld [vmem:[#allocation14 + $0x200] sm:$0xf] }
 0x531   :  { %v6545_v24 = vsub.f32 0.0, %v4671_v12  ;;  %v4585_v51 = vadd.f32 %v4584_v22, %v4496_v34 }
 0x533   :  { %v9709_v56 = vpop.eup %9708  ;;  %v6791_v46 = vmul.f32 1.442695, %v6545_v24  ;;  %v11789_v54 = vpop.f32.mrf.mxu3  ;;  %4623 = vmatmul.bf16.gmra.mxu1 %v11340_v5  ;;  %4712 = vmatmul.bf16.gmra.mxu2 %v13523_v44  ;;  %v8316_v24 = vld [vmem:[#allocation14 + $0x8] sm:$0xf]  ;;  %v9310_v44 = vld [vmem:[#allocation14 + $0x20] sm:$0xf0] }
 0x534   :  { %v11791_v48 = vpop.f32.mrf.mxu0  ;;  %v9711_v29 = vpop.eup %9710  ;;  %v7210_v36 = vadd.f32 1.0, %v9709_v56 }
 0x535   :  { %7651 = vst [vmem:[#allocation16 + $0x40] sm:$0xff] %v9711_v29  ;;  %9712 = vpow2.f32 %v6791_v46  ;;  %v4498_v46 = vadd.f32 %v11747_v17, %v4409_v28  ;;  %v4412_v17 = vadd.f32 %v11753_v49, %v11743_v13 }
 0x536   :  { %9714 = vrcp.f32 %v7210_v36  ;;  %4549 = vmatmul.bf16.gmra.mxu0 %v13524_v7  ;;  %v4673_v21 = vpop.f32.mrf.mxu2  ;;  %v8317_v36 = vor.u32 %v9310_v44, %v8316_v24  ;;  %v8540_v44 = vld [vmem:[#allocation14 + $0x1c8] sm:$0xf] }
 0x537   :  { %v4674_v9 = vadd.f32 %v4673_v21, %v4585_v51  ;;  %v8569_v21 = vor.u32 %v9373_v50, %v8568_v20 }
 0x538   :  { %v4586_v59 = vpop.f32.mrf.mxu1  ;;  %4750 = vmatpush.bf16.msrb.mxu3 %v8317_v36  ;;  %v9485_v36 = vld [vmem:[#allocation14 + $0x598] sm:$0xf0] }
 0x539   :  { %v6552_v12 = vsub.f32 0.0, %v4674_v9  ;;  %v4587_v51 = vadd.f32 %v4586_v59, %v4498_v46  ;;  %4838 = vmatpush.bf16.msrb.mxu0 %v8569_v21  ;;  %v9366_v9 = vld [vmem:[#allocation14 + $0x1e0] sm:$0xf0] }
 0x53b   :  { %v9713_v56 = vpop.eup %9712  ;;  %v6805_v22 = vmul.f32 1.442695, %v6552_v12  ;;  %v11799_v34 = vpop.f32.mrf.mxu3  ;;  %v8541_v12 = vor.u32 %v9366_v9, %v8540_v44 }
 0x53c   :  { %v11801_v29 = vpop.f32.mrf.mxu0  ;;  %v9715_v7 = vpop.eup %9714  ;;  %v7217_v5 = vadd.f32 1.0, %v9713_v56 }
 0x53d   :  { %7658 = vst [vmem:[#allocation16 + $0x78] sm:$0xff] %v9715_v7  ;;  %9716 = vpow2.f32 %v6805_v22  ;;  %v4501_v7 = vadd.f32 %v11755_v32, %v4412_v17  ;;  %4839 = vmatpush.bf16.msrb.mxu0 %v8541_v12  ;;  %v9016_v22 = vld [vmem:[#allocation14 + $0x580] sm:$0xf] }
 0x53e   :  { %9718 = vrcp.f32 %v7217_v5  ;;  %v4675_v53 = vpop.f32.mrf.mxu2  ;;  %v9017_v50 = vor.u32 %v9485_v36, %v9016_v22 }
 0x53f   :  { %v4676_v2 = vadd.f32 %v4675_v53, %v4587_v51  ;;  %v4414_v51 = vadd.f32 %v11763_v63, %v11743_v13 }
 0x540   :  { %4465 = vmatmul.bf16.gmra.mxu3 %v13492_v55  ;;  %v4589_v28 = vpop.f32.mrf.mxu1  ;;  %5016 = vmatpush.bf16.msrb.mxu2 %v9017_v50 }
 0x541   :  { %v6559_v40 = vsub.f32 0.0, %v4676_v2  ;;  %v4590_v46 = vadd.f32 %v4589_v28, %v4501_v7  ;;  %v4503_v44 = vadd.f32 %v11765_v43, %v4414_v51 }
 0x543   :  { %v9717_v24 = vpop.eup %9716  ;;  %v6819_v59 = vmul.f32 1.442695, %v6559_v40  ;;  %v11807_v20 = vpop.f32.mrf.mxu3  ;;  %4628 = vmatmul.bf16.gmra.mxu1 %v11352_v31  ;;  %4717 = vmatmul.bf16.gmra.mxu2 %v11392_v45 }
 0x544   :  { %v11809_v5 = vpop.f32.mrf.mxu0  ;;  %v9719_v49 = vpop.eup %9718  ;;  %v7224_v56 = vadd.f32 1.0, %v9717_v24 }
 0x545   :  { %7665 = vst [vmem:[#allocation16 + $0xb0] sm:$0xff] %v9719_v49  ;;  %9720 = vpow2.f32 %v6819_v59  ;;  %v8792_v59 = vld [vmem:[#allocation14 + $0x3c0] sm:$0xf]  ;;  %v9429_v49 = vld [vmem:[#allocation14 + $0x3d8] sm:$0xf0] }
 0x546   :  { %9722 = vrcp.f32 %v7224_v56  ;;  %4554 = vmatmul.bf16.gmra.mxu0 %v11233_v47  ;;  %v4678_v32 = vpop.f32.mrf.mxu2  ;;  %v8793_v56 = vor.u32 %v9429_v49, %v8792_v59 }
 0x547   :  { %v4679_v21 = vadd.f32 %v4678_v32, %v4590_v46  ;;  %v4417_v46 = vadd.f32 %v11771_v18, %v11743_v13 }
 0x548   :  { %v4591_v53 = vpop.f32.mrf.mxu1  ;;  %4927 = vmatpush.bf16.msrb.mxu1 %v8793_v56 }
 0x549   :  { %v6566_v17 = vsub.f32 0.0, %v4679_v21  ;;  %v4592_v7 = vadd.f32 %v4591_v53, %v4503_v44  ;;  %v4506_v50 = vadd.f32 %v11773_v10, %v4417_v46  ;;  %v4419_v10 = vadd.f32 %v11781_v14, %v11743_v13 }
 0x54a   :  { %v4422_v14 = vadd.f32 %v11789_v54, %v11743_v13 }
 0x54b   :  { %v9721_v2 = vpop.eup %9720  ;;  %v6833_v9 = vmul.f32 1.442695, %v6566_v17  ;;  %v11817_v40 = vpop.f32.mrf.mxu3  ;;  %v4508_v59 = vadd.f32 %v11783_v8, %v4419_v10 }
 0x54c   :  { %v11819_v28 = vpop.f32.mrf.mxu0  ;;  %v9723_v12 = vpop.eup %9722  ;;  %v7231_v24 = vadd.f32 1.0, %v9721_v2 }
 0x54d   :  { %7672 = vst [vmem:[#allocation16 + $0xe8] sm:$0xff] %v9723_v12  ;;  %9724 = vpow2.f32 %v6833_v9 }
 0x54e   :  { %9726 = vrcp.f32 %v7231_v24  ;;  %v4680_v63 = vpop.f32.mrf.mxu2 }
 0x54f   :  { %v4681_v22 = vadd.f32 %v4680_v63, %v4592_v7 }
 0x550   :  { %4470 = vmatmul.bf16.gmra.mxu3 %v11205_v35  ;;  %v4594_v43 = vpop.f32.mrf.mxu1 }
 0x551   :  { %v6573_v36 = vsub.f32 0.0, %v4681_v22  ;;  %v4595_v2 = vadd.f32 %v4594_v43, %v4506_v50 }
 0x553   :  { %v9725_v32 = vpop.eup %9724  ;;  %v6847_v51 = vmul.f32 1.442695, %v6573_v36  ;;  %v11825_v21 = vpop.f32.mrf.mxu3  ;;  %4633 = vmatmul.bf16.gmra.mxu1 %v11364_v23  ;;  %4722 = vmatmul.bf16.gmra.mxu2 %v11408_v19 }
 0x554   :  { %v11827_v53 = vpop.f32.mrf.mxu0  ;;  %v9727_v17 = vpop.eup %9726  ;;  %v7238_v18 = vadd.f32 1.0, %v9725_v32 }
 0x555   :  { %7679 = vst [vmem:[#allocation16 + $0x120] sm:$0xff] %v9727_v17  ;;  %9728 = vpow2.f32 %v6847_v51  ;;  %v4511_v17 = vadd.f32 %v11791_v48, %v4422_v14 }
 0x556   :  { %9730 = vrcp.f32 %v7238_v18  ;;  %4559 = vmatmul.bf16.gmra.mxu0 %v11248_v4  ;;  %v4683_v44 = vpop.f32.mrf.mxu2 }
 0x557   :  { %v4684_v9 = vadd.f32 %v4683_v44, %v4595_v2 }
 0x558   :  { %v4596_v12 = vpop.f32.mrf.mxu1 }
 0x559   :  { %v6580_v24 = vsub.f32 0.0, %v4684_v9  ;;  %v4597_v43 = vadd.f32 %v4596_v12, %v4508_v59  ;;  %v8988_v12 = vld [vmem:[#allocation14 + $0x548] sm:$0xf]  ;;  %v4424_v59 = vadd.f32 %v11799_v34, %v11743_v13 }
 0x55b   :  { %v9729_v7 = vpop.eup %9728  ;;  %v6861_v49 = vmul.f32 1.442695, %v6580_v24  ;;  %v11835_v63 = vpop.f32.mrf.mxu3  ;;  %v9478_v24 = vld [vmem:[#allocation14 + $0x560] sm:$0xf0] }
 0x55c   :  { %v11837_v56 = vpop.f32.mrf.mxu0  ;;  %v9731_v46 = vpop.eup %9730  ;;  %v7245_v22 = vadd.f32 1.0, %v9729_v7  ;;  %v8989_v48 = vor.u32 %v9478_v24, %v8988_v12 }
 0x55d   :  { %7686 = vst [vmem:[#allocation16 + $0x158] sm:$0xff] %v9731_v46  ;;  %9732 = vpow2.f32 %v6861_v49 }
 0x55e   :  { %9734 = vrcp.f32 %v7245_v22  ;;  %v4685_v36 = vpop.f32.mrf.mxu2  ;;  %5017 = vmatpush.bf16.msrb.mxu2 %v8989_v48 }
 0x55f   :  { %v4686_v32 = vadd.f32 %v4685_v36, %v4597_v43  ;;  %v4513_v36 = vadd.f32 %v11801_v29, %v4424_v59 }
 0x560   :  { %v4599_v50 = vpop.f32.mrf.mxu1  ;;  %4751 = vmatmul.bf16.vlgmr.msrb.gmra.mxu3 %v11009_v30 }
 0x561   :  { %v6587_v8 = vsub.f32 0.0, %v4686_v32  ;;  %v4600_v54 = vadd.f32 %v4599_v50, %v4511_v17 }
 0x563   :  { %v9733_v51 = vpop.eup %9732  ;;  %v6875_v18 = vmul.f32 1.442695, %v6587_v8  ;;  %v11843_v2 = vpop.f32.mrf.mxu3  ;;  %4638 = vmatmul.bf16.gmra.mxu1 %v11376_v27  ;;  %4727 = vmatmul.bf16.gmra.mxu2 %v11424_v52 }
 0x564   :  { %v11845_v44 = vpop.f32.mrf.mxu0  ;;  %v9735_v10 = vpop.eup %9734  ;;  %v7252_v9 = vadd.f32 1.0, %v9733_v51 }
 0x565   :  { %7693 = vst [vmem:[#allocation16 + $0x190] sm:$0xff] %v9735_v10  ;;  %9736 = vpow2.f32 %v6875_v18  ;;  %v8764_v18 = vld [vmem:[#allocation14 + $0x388] sm:$0xf]  ;;  %v9422_v10 = vld [vmem:[#allocation14 + $0x3a0] sm:$0xf0] }
 0x566   :  { %9738 = vrcp.f32 %v7252_v9  ;;  %v4688_v7 = vpop.f32.mrf.mxu2  ;;  %4840 = vmatmul.bf16.vlgmr.msrb.gmra.mxu0 %v11061_v26  ;;  %v8765_v9 = vor.u32 %v9422_v10, %v8764_v18 }
 0x567   :  { %v4689_v49 = vadd.f32 %v4688_v7, %v4600_v54  ;;  %v4427_v54 = vadd.f32 %v11807_v20, %v11743_v13 }
 0x568   :  { %v4601_v46 = vpop.f32.mrf.mxu1  ;;  %4928 = vmatpush.bf16.msrb.mxu1 %v8765_v9 }
 0x569   :  { %v6594_v22 = vsub.f32 0.0, %v4689_v49  ;;  %v4602_v17 = vadd.f32 %v4601_v46, %v4513_v36  ;;  %v4516_v48 = vadd.f32 %v11809_v5, %v4427_v54  ;;  %v4429_v5 = vadd.f32 %v11817_v40, %v11743_v13 }
 0x56b   :  { %v9737_v43 = vpop.eup %9736  ;;  %v6889_v14 = vmul.f32 1.442695, %v6594_v22  ;;  %v11853_v32 = vpop.f32.mrf.mxu3  ;;  %v4518_v18 = vadd.f32 %v11819_v28, %v4429_v5 }
 0x56c   :  { %v11855_v50 = vpop.f32.mrf.mxu0  ;;  %v9739_v8 = vpop.eup %9738  ;;  %v7259_v51 = vadd.f32 1.0, %v9737_v43 }
 0x56d   :  { %7700 = vst [vmem:[#allocation16 + $0x1c8] sm:$0xff] %v9739_v8  ;;  %9740 = vpow2.f32 %v6889_v14 }
 0x56e   :  { %9742 = vrcp.f32 %v7259_v51  ;;  %v4690_v34 = vpop.f32.mrf.mxu2 }
 0x56f   :  { %v4691_v12 = vadd.f32 %v4690_v34, %v4602_v17 }
 0x570   :  { %v4604_v29 = vpop.f32.mrf.mxu1  ;;  %4756 = vmatmul.bf16.gmra.mxu3 %v11025_v57 }
 0x571   :  { %v6601_v24 = vsub.f32 0.0, %v4691_v12  ;;  %v4605_v43 = vadd.f32 %v4604_v29, %v4516_v48 }
 0x573   :  { %v9741_v7 = vpop.eup %9740  ;;  %v6903_v59 = vmul.f32 1.442695, %v6601_v24  ;;  %v11861_v49 = vpop.f32.mrf.mxu3  ;;  %4643 = vmatmul.bf16.gmra.mxu1 %v11388_v25  ;;  %4732 = vmatmul.bf16.gmra.mxu2 %v11440_v1  ;;  %v9356_v24 = vld [vmem:[#allocation14 + $0x194] sm:$0xf] }
 0x574   :  { %v11863_v46 = vpop.f32.mrf.mxu0  ;;  %v9743_v22 = vpop.eup %9742  ;;  %v7266_v20 = vadd.f32 1.0, %v9741_v7  ;;  %v8514_v7 = vld [vmem:[#allocation14 + $0x1ac] sm:$0xf0] }
 0x575   :  { %7707 = vst [vmem:[#allocation16 + $0x200] sm:$0xff] %v9743_v22  ;;  %9744 = vpow2.f32 %v6903_v59  ;;  %v8517_v48 = vor.u32 %v9356_v24, %v8514_v7  ;;  %v4432_v59 = vadd.f32 %v11825_v21, %v11743_v13  ;;  %v4434_v24 = vadd.f32 %v11835_v63, %v11743_v13  ;;  %v9468_v63 = vld [vmem:[#allocation14 + $0x514] sm:$0xf] }
 0x576   :  { %9746 = vrcp.f32 %v7266_v20  ;;  %v4693_v36 = vpop.f32.mrf.mxu2  ;;  %4845 = vmatmul.bf16.gmra.mxu0 %v11073_v42 }
 0x577   :  { %v4694_v14 = vadd.f32 %v4693_v36, %v4605_v43  ;;  %5099 = vmatpush.bf16.msra.mxu3 %v8517_v48  ;;  %v4521_v36 = vadd.f32 %v11827_v53, %v4432_v59 }
 0x578   :  { %v4606_v8 = vpop.f32.mrf.mxu1 }
 0x579   :  { %v6608_v51 = vsub.f32 0.0, %v4694_v14  ;;  %v4607_v29 = vadd.f32 %v4606_v8, %v4518_v18  ;;  %v9524_v18 = vld [vmem:[#allocation14 + $0x6d4] sm:$0xf] }
 0x57b   :  { %v9745_v17 = vpop.eup %9744  ;;  %v6917_v10 = vmul.f32 1.442695, %v6608_v51  ;;  %v11871_v34 = vpop.f32.mrf.mxu3 }
 0x57c   :  { %v11873_v9 = vpop.f32.mrf.mxu0  ;;  %v9747_v54 = vpop.eup %9746  ;;  %v7273_v12 = vadd.f32 1.0, %v9745_v17 }
 0x57d   :  { %7714 = vst [vmem:[#allocation16 + $0x238] sm:$0xff] %v9747_v54  ;;  %9748 = vpow2.f32 %v6917_v10  ;;  %v9186_v10 = vld [vmem:[#allocation14 + $0x6ec] sm:$0xf0] }
 0x57e   :  { %9750 = vrcp.f32 %v7273_v12  ;;  %v4695_v40 = vpop.f32.mrf.mxu2  ;;  %v9189_v53 = vor.u32 %v9524_v18, %v9186_v10  ;;  %v9412_v12 = vld [vmem:[#allocation14 + $0x354] sm:$0xf] }
 0x57f   :  { %v4696_v22 = vadd.f32 %v4695_v40, %v4607_v29  ;;  %v8738_v29 = vld [vmem:[#allocation14 + $0x36c] sm:$0xf0] }
 0x580   :  { %v4609_v28 = vpop.f32.mrf.mxu1  ;;  %4761 = vmatmul.bf16.gmra.mxu3 %v11044_v62  ;;  %v8741_v40 = vor.u32 %v9412_v12, %v8738_v29  ;;  %5366 = vmatpush.bf16.msra.mxu2 %v9189_v53 }
 0x581   :  { %v6615_v20 = vsub.f32 0.0, %v4696_v22  ;;  %v4610_v17 = vadd.f32 %v4609_v28, %v4521_v36  ;;  %v4523_v28 = vadd.f32 %v11837_v56, %v4434_v24 }
 0x582   :  { %5188 = vmatpush.bf16.msra.mxu0 %v8741_v40 }
 0x583   :  { %v9749_v43 = vpop.eup %9748  ;;  %v6931_v5 = vmul.f32 1.442695, %v6615_v20  ;;  %v11879_v14 = vpop.f32.mrf.mxu3  ;;  %4648 = vmatmul.bf16.gmra.mxu1 %v11400_v38  ;;  %4737 = vmatmul.bf16.gmra.mxu2 %v11464_v15 }
 0x584   :  { %v11881_v8 = vpop.f32.mrf.mxu0  ;;  %v9751_v51 = vpop.eup %9750  ;;  %v7280_v21 = vadd.f32 1.0, %v9749_v43 }
 0x585   :  { %7721 = vst [vmem:[#allocation16 + $0x270] sm:$0xff] %v9751_v51  ;;  %9752 = vpow2.f32 %v6931_v5 }
 0x586   :  { %9754 = vrcp.f32 %v7280_v21  ;;  %v4698_v54 = vpop.f32.mrf.mxu2  ;;  %4850 = vmatmul.bf16.gmra.mxu0 %v11085_v33 }
 0x587   :  { %v4699_v7 = vadd.f32 %v4698_v54, %v4610_v17  ;;  %v8962_v17 = vld [vmem:[#allocation14 + $0x52c] sm:$0xf0]  ;;  %v4437_v54 = vadd.f32 %v11843_v2, %v11743_v13 }
 0x588   :  { %v4611_v48 = vpop.f32.mrf.mxu1  ;;  %v8965_v10 = vor.u32 %v9468_v63, %v8962_v17 }
 0x589   :  { %v6622_v59 = vsub.f32 0.0, %v4699_v7  ;;  %v4612_v21 = vadd.f32 %v4611_v48, %v4523_v28  ;;  %v4526_v24 = vadd.f32 %v11845_v44, %v4437_v54  ;;  %v4439_v44 = vadd.f32 %v11853_v32, %v11743_v13 }
 0x58a   :  { %5277 = vmatpush.bf16.msra.mxu1 %v8965_v10 }
 0x58b   :  { %v9753_v22 = vpop.eup %9752  ;;  %v6945_v20 = vmul.f32 1.442695, %v6622_v59  ;;  %v11889_v43 = vpop.f32.mrf.mxu3  ;;  %v4528_v63 = vadd.f32 %v11855_v50, %v4439_v44 }
 0x58c   :  { %v11891_v36 = vpop.f32.mrf.mxu0  ;;  %v9755_v5 = vpop.eup %9754  ;;  %v7287_v51 = vadd.f32 1.0, %v9753_v22 }
 0x58d   :  { %7728 = vst [vmem:[#allocation16 + $0x2a8] sm:$0xff] %v9755_v5  ;;  %9756 = vpow2.f32 %v6945_v20 }
 0x58e   :  { %9758 = vrcp.f32 %v7287_v51  ;;  %v4700_v18 = vpop.f32.mrf.mxu2 }
 0x58f   :  { %v4701_v53 = vadd.f32 %v4700_v18, %v4612_v21 }
 0x590   :  { %v4614_v56 = vpop.f32.mrf.mxu1  ;;  %4766 = vmatmul.bf16.gmra.mxu3 %v11056_v11 }
 0x591   :  { %v6629_v12 = vsub.f32 0.0, %v4701_v53  ;;  %v4615_v22 = vadd.f32 %v4614_v56, %v4526_v24 }
 0x593   :  { %v9757_v29 = vpop.eup %9756  ;;  %v6959_v7 = vmul.f32 1.442695, %v6629_v12  ;;  %v11897_v40 = vpop.f32.mrf.mxu3  ;;  %4929 = vmatmul.bf16.vlgmr.msrb.gmra.mxu1 %v11217_v6  ;;  %5018 = vmatmul.bf16.vlgmr.msrb.gmra.mxu2 %v13493_v37  ;;  %v9349_v12 = vld [vmem:[#allocation14 + $0x15c] sm:$0xf] }
 0x594   :  { %v11899_v48 = vpop.f32.mrf.mxu0  ;;  %v9759_v59 = vpop.eup %9758  ;;  %v7294_v2 = vadd.f32 1.0, %v9757_v29  ;;  %v8486_v29 = vld [vmem:[#allocation14 + $0x174] sm:$0xf0] }
 0x595   :  { %7735 = vst [vmem:[#allocation16 + $0x2e0] sm:$0xff] %v9759_v59  ;;  %9760 = vpow2.f32 %v6959_v7  ;;  %v8489_v24 = vor.u32 %v9349_v12, %v8486_v29  ;;  %v4442_v7 = vadd.f32 %v11861_v49, %v11743_v13  ;;  %v13528_v29 = vld [vmem:[#allocation27_spill] sm:$0xff] }
 0x596   :  { %9762 = vrcp.f32 %v7294_v2  ;;  %v4703_v28 = vpop.f32.mrf.mxu2  ;;  %4855 = vmatmul.bf16.gmra.mxu0 %v11097_v16  ;;  %v13525_v2 = vld [vmem:[#allocation23_spill] sm:$0xff] }
 0x597   :  { %v4704_v20 = vadd.f32 %v4703_v28, %v4615_v22  ;;  %5100 = vmatpush.bf16.msra.mxu3 %v8489_v24  ;;  %v4531_v44 = vadd.f32 %v11863_v46, %v4442_v7  ;;  %v8710_v24 = vld [vmem:[#allocation14 + $0x334] sm:$0xf0]  ;;  %v4444_v7 = vadd.f32 %v11871_v34, %v11743_v13  ;;  %v9461_v34 = vld [vmem:[#allocation14 + $0x4dc] sm:$0xf] }
 0x598   :  { %v4616_v5 = vpop.f32.mrf.mxu1 }
 0x599   :  { %v6636_v51 = vsub.f32 0.0, %v4704_v20  ;;  %v4617_v56 = vadd.f32 %v4616_v5, %v4528_v63  ;;  %v13527_v63 = vld [vmem:[#allocation49_spill] sm:$0xff] }
 0x59b   :  { %v9761_v21 = vpop.eup %9760  ;;  %v6973_v17 = vmul.f32 1.442695, %v6636_v51  ;;  %v11907_v18 = vpop.f32.mrf.mxu3 }
 0x59c   :  { %v11909_v10 = vpop.f32.mrf.mxu0  ;;  %v9763_v54 = vpop.eup %9762  ;;  %v7301_v53 = vadd.f32 1.0, %v9761_v21  ;;  %v13526_v21 = vld [vmem:[#allocation44_spill] sm:$0xff] }
 0x59d   :  { %7742 = vst [vmem:[#allocation16 + $0x318] sm:$0xff] %v9763_v54  ;;  %9764 = vpow2.f32 %v6973_v17 }
 0x59e   :  { %9766 = vrcp.f32 %v7301_v53  ;;  %v4705_v32 = vpop.f32.mrf.mxu2  ;;  %v9517_v53 = vld [vmem:[#allocation14 + $0x69c] sm:$0xf] }
 0x59f   :  { %v4706_v59 = vadd.f32 %v4705_v32, %v4617_v56  ;;  %v9158_v56 = vld [vmem:[#allocation14 + $0x6b4] sm:$0xf0]  ;;  %v9405_v32 = vld [vmem:[#allocation14 + $0x31c] sm:$0xf] }
 0x5a0   :  { %v4619_v50 = vpop.f32.mrf.mxu1  ;;  %4771 = vmatmul.bf16.gmra.mxu3 %v13525_v2  ;;  %v9161_v46 = vor.u32 %v9517_v53, %v9158_v56 }
 0x5a1   :  { %v6643_v22 = vsub.f32 0.0, %v4706_v59  ;;  %v4620_v54 = vadd.f32 %v4619_v50, %v4531_v44  ;;  %v4533_v50 = vadd.f32 %v11873_v9, %v4444_v7  ;;  %v13529_v7 = vld [vmem:[#allocation24_spill] sm:$0xff] }
 0x5a2   :  { %5367 = vmatpush.bf16.msra.mxu2 %v9161_v46 }
 0x5a3   :  { %v9765_v28 = vpop.eup %9764  ;;  %v6987_v20 = vmul.f32 1.442695, %v6643_v22  ;;  %v11915_v51 = vpop.f32.mrf.mxu3  ;;  %4934 = vmatmul.bf16.gmra.mxu1 %v13526_v21  ;;  %5023 = vmatmul.bf16.gmra.mxu2 %v13527_v63  ;;  %v8713_v22 = vor.u32 %v9405_v32, %v8710_v24  ;;  %v4447_v32 = vadd.f32 %v11879_v14, %v11743_v13 }
 0x5a4   :  { %v11917_v5 = vpop.f32.mrf.mxu0  ;;  %v9767_v17 = vpop.eup %9766  ;;  %v7308_v49 = vadd.f32 1.0, %v9765_v28 }
 0x5a5   :  { %7749 = vst [vmem:[#allocation16 + $0x350] sm:$0xff] %v9767_v17  ;;  %9768 = vpow2.f32 %v6987_v20  ;;  %5189 = vmatpush.bf16.msra.mxu0 %v8713_v22 }
 0x5a6   :  { %9770 = vrcp.f32 %v7308_v49  ;;  %v4708_v12 = vpop.f32.mrf.mxu2  ;;  %4860 = vmatmul.bf16.gmra.mxu0 %v13528_v29 }
 0x5a7   :  { %v4709_v59 = vadd.f32 %v4708_v12, %v4620_v54  ;;  %v8934_v54 = vld [vmem:[#allocation14 + $0x4f4] sm:$0xf0] }
 0x5a8   :  { %v4621_v63 = vpop.f32.mrf.mxu1  ;;  %v8937_v46 = vor.u32 %v9461_v34, %v8934_v54  ;;  %v13532_v54 = vld [vmem:[#allocation29_spill] sm:$0xff] }
 0x5a9   :  { %v6650_v28 = vsub.f32 0.0, %v4709_v59  ;;  %v4622_v29 = vadd.f32 %v4621_v63, %v4533_v50  ;;  %v13530_v50 = vld [vmem:[#allocation45_spill] sm:$0xff] }
 0x5aa   :  { %5278 = vmatpush.bf16.msra.mxu1 %v8937_v46 }
 0x5ab   :  { %v9769_v20 = vpop.eup %9768  ;;  %v7001_v44 = vmul.f32 1.442695, %v6650_v28  ;;  %v11925_v17 = vpop.f32.mrf.mxu3  ;;  %v4536_v28 = vadd.f32 %v11881_v8, %v4447_v32  ;;  %v4449_v8 = vadd.f32 %v11889_v43, %v11743_v13 }
 0x5ac   :  { %v11927_v49 = vpop.f32.mrf.mxu0  ;;  %v9771_v53 = vpop.eup %9770  ;;  %v7315_v56 = vadd.f32 1.0, %v9769_v20 }
 0x5ad   :  { %7756 = vst [vmem:[#allocation16 + $0x388] sm:$0xff] %v9771_v53  ;;  %9772 = vpow2.f32 %v7001_v44  ;;  %v13531_v53 = vld [vmem:[#allocation51_spill] sm:$0xff] }
 0x5ae   :  { %9774 = vrcp.f32 %v7315_v56  ;;  %v4710_v12 = vpop.f32.mrf.mxu2 }
 0x5af   :  { %v4711_v24 = vadd.f32 %v4710_v12, %v4622_v29 }
 0x5b0   :  { %v4624_v9 = vpop.f32.mrf.mxu1  ;;  %4776 = vmatmul.bf16.gmra.mxu3 %v13529_v7 }
 0x5b1   :  { %v6657_v59 = vsub.f32 0.0, %v4711_v24  ;;  %v4625_v29 = vadd.f32 %v4624_v9, %v4536_v28 }
 0x5b3   :  { %v9773_v22 = vpop.eup %9772  ;;  %v7015_v20 = vmul.f32 1.442695, %v6657_v59  ;;  %v11933_v44 = vpop.f32.mrf.mxu3  ;;  %4939 = vmatmul.bf16.gmra.mxu1 %v13530_v50  ;;  %5028 = vmatmul.bf16.gmra.mxu2 %v13531_v53  ;;  %v4538_v59 = vadd.f32 %v11891_v36, %v4449_v8  ;;  %v13533_v8 = vld [vmem:[#allocation25_spill] sm:$0xff] }
 0x5b4   :  { %v11935_v63 = vpop.f32.mrf.mxu0  ;;  %v9775_v56 = vpop.eup %9774  ;;  %v7322_v14 = vadd.f32 1.0, %v9773_v22 }
 0x5b5   :  { %7763 = vst [vmem:[#allocation16 + $0x3c0] sm:$0xff] %v9775_v56  ;;  %9776 = vpow2.f32 %v7015_v20  ;;  %v9342_v56 = vld [vmem:[#allocation14 + $0x124] sm:$0xf] }
 0x5b6   :  { %9778 = vrcp.f32 %v7322_v14  ;;  %v4713_v34 = vpop.f32.mrf.mxu2  ;;  %4865 = vmatmul.bf16.gmra.mxu0 %v13532_v54  ;;  %v8458_v14 = vld [vmem:[#allocation14 + $0x13c] sm:$0xf0] }
 0x5b7   :  { %v4714_v12 = vadd.f32 %v4713_v34, %v4625_v29  ;;  %v8461_v29 = vor.u32 %v9342_v56, %v8458_v14  ;;  %v4452_v34 = vadd.f32 %v11897_v40, %v11743_v13  ;;  %v9510_v14 = vld [vmem:[#allocation14 + $0x664] sm:$0xf] }
 0x5b8   :  { %v4626_v46 = vpop.f32.mrf.mxu1 }
 0x5b9   :  { %v6664_v32 = vsub.f32 0.0, %v4714_v12  ;;  %v4627_v28 = vadd.f32 %v4626_v46, %v4538_v59  ;;  %5101 = vmatpush.bf16.msra.mxu3 %v8461_v29  ;;  %v13534_v59 = vld [vmem:[#allocation46_spill] sm:$0xff] }
 0x5bb   :  { %v9777_v24 = vpop.eup %9776  ;;  %v7029_v50 = vmul.f32 1.442695, %v6664_v32  ;;  %v11943_v53 = vpop.f32.mrf.mxu3 }
 0x5bc   :  { %v11945_v22 = vpop.f32.mrf.mxu0  ;;  %v9779_v20 = vpop.eup %9778  ;;  %v7329_v9 = vadd.f32 1.0, %v9777_v24  ;;  %v4541_v24 = vadd.f32 %v11899_v48, %v4452_v34  ;;  %v9398_v34 = vld [vmem:[#allocation14 + $0x2e4] sm:$0xf] }
 0x5bd   :  { %7770 = vst [vmem:[#allocation16 + $0x3f8] sm:$0xff] %v9779_v20  ;;  %9780 = vpow2.f32 %v7029_v50 }
 0x5be   :  { %9782 = vrcp.f32 %v7329_v9  ;;  %v4715_v43 = vpop.f32.mrf.mxu2  ;;  %v13535_v9 = vld [vmem:[#allocation53_spill] sm:$0xff] }
 0x5bf   :  { %v4716_v12 = vadd.f32 %v4715_v43, %v4627_v28  ;;  %v9130_v43 = vld [vmem:[#allocation14 + $0x67c] sm:$0xf0] }
 0x5c0   :  { %v4629_v36 = vpop.f32.mrf.mxu1  ;;  %4781 = vmatmul.bf16.gmra.mxu3 %v13533_v8  ;;  %v9133_v48 = vor.u32 %v9510_v14, %v9130_v43  ;;  %v4454_v8 = vadd.f32 %v11907_v18, %v11743_v13  ;;  %v9454_v18 = vld [vmem:[#allocation14 + $0x4a4] sm:$0xf] }
 0x5c1   :  { %v6671_v32 = vsub.f32 0.0, %v4716_v12  ;;  %v4630_v28 = vadd.f32 %v4629_v36, %v4541_v24  ;;  %v13536_v12 = vld [vmem:[#allocation31_spill] sm:$0xff] }
 0x5c2   :  { %5368 = vmatpush.bf16.msra.mxu2 %v9133_v48  ;;  %v4543_v36 = vadd.f32 %v11909_v10, %v4454_v8 }
 0x5c3   :  { %v9781_v54 = vpop.eup %9780  ;;  %v7043_v20 = vmul.f32 1.442695, %v6671_v32  ;;  %v11951_v50 = vpop.f32.mrf.mxu3  ;;  %4944 = vmatmul.bf16.gmra.mxu1 %v13534_v59  ;;  %5033 = vmatmul.bf16.gmra.mxu2 %v13535_v9  ;;  %v8682_v32 = vld [vmem:[#allocation14 + $0x2fc] sm:$0xf0] }
 0x5c4   :  { %v11953_v46 = vpop.f32.mrf.mxu0  ;;  %v9783_v56 = vpop.eup %9782  ;;  %v7336_v40 = vadd.f32 1.0, %v9781_v54  ;;  %v8685_v7 = vor.u32 %v9398_v34, %v8682_v32 }
 0x5c5   :  { %7777 = vst [vmem:[#allocation16 + $0x430] sm:$0xff] %v9783_v56  ;;  %9784 = vpow2.f32 %v7043_v20 }
 0x5c6   :  { %9786 = vrcp.f32 %v7336_v40  ;;  %v4718_v29 = vpop.f32.mrf.mxu2  ;;  %4870 = vmatmul.bf16.gmra.mxu0 %v13536_v12 }
 0x5c7   :  { %v4719_v59 = vadd.f32 %v4718_v29, %v4630_v28  ;;  %5190 = vmatpush.bf16.msra.mxu0 %v8685_v7  ;;  %v8906_v28 = vld [vmem:[#allocation14 + $0x4bc] sm:$0xf0]  ;;  %v4457_v7 = vadd.f32 %v11915_v51, %v11743_v13 }
 0x5c8   :  { %v4631_v9 = vpop.f32.mrf.mxu1  ;;  %v8909_v48 = vor.u32 %v9454_v18, %v8906_v28 }
 0x5c9   :  { %v6678_v54 = vsub.f32 0.0, %v4719_v59  ;;  %v4632_v12 = vadd.f32 %v4631_v9, %v4543_v36  ;;  %v4546_v32 = vadd.f32 %v11917_v5, %v4457_v7  ;;  %v13537_v36 = vld [vmem:[#allocation55_spill] sm:$0xff]  ;;  %v4459_v5 = vadd.f32 %v11925_v17, %v11743_v13 }
 0x5ca   :  { %5279 = vmatpush.bf16.msra.mxu1 %v8909_v48 }
 0x5cb   :  { %v9785_v20 = vpop.eup %9784  ;;  %v7057_v24 = vmul.f32 1.442695, %v6678_v54  ;;  %v11961_v56 = vpop.f32.mrf.mxu3  ;;  %v4548_v7 = vadd.f32 %v11927_v49, %v4459_v5  ;;  %v13539_v5 = vld [vmem:[#allocation28_spill] sm:$0xff] }
 0x5cc   :  { %v11963_v40 = vpop.f32.mrf.mxu0  ;;  %v9787_v14 = vpop.eup %9786  ;;  %v7343_v43 = vadd.f32 1.0, %v9785_v20 }
 0x5cd   :  { %7784 = vst [vmem:[#allocation16 + $0x468] sm:$0xff] %v9787_v14  ;;  %9788 = vpow2.f32 %v7057_v24 }
 0x5ce   :  { %9790 = vrcp.f32 %v7343_v43  ;;  %v4720_v29 = vpop.f32.mrf.mxu2  ;;  %v13538_v43 = vld [vmem:[#allocation33_spill] sm:$0xff] }
 0x5cf   :  { %v4721_v59 = vadd.f32 %v4720_v29, %v4632_v12 }
 0x5d0   :  { %v4634_v10 = vpop.f32.mrf.mxu1  ;;  %4786 = vmatmul.bf16.gmra.mxu3 %v13489_v3 }
 0x5d1   :  { %v6685_v8 = vsub.f32 0.0, %v4721_v59  ;;  %v4635_v12 = vadd.f32 %v4634_v10, %v4546_v32 }
 0x5d3   :  { %v9789_v34 = vpop.eup %9788  ;;  %v7071_v54 = vmul.f32 1.442695, %v6685_v8  ;;  %v11969_v20 = vpop.f32.mrf.mxu3  ;;  %4949 = vmatmul.bf16.gmra.mxu1 %v11268_v60  ;;  %5038 = vmatmul.bf16.gmra.mxu2 %v13537_v36 }
 0x5d4   :  { %v11971_v9 = vpop.f32.mrf.mxu0  ;;  %v9791_v24 = vpop.eup %9790  ;;  %v7350_v51 = vadd.f32 1.0, %v9789_v34 }
 0x5d5   :  { %7791 = vst [vmem:[#allocation16 + $0x4a0] sm:$0xff] %v9791_v24  ;;  %9792 = vpow2.f32 %v7071_v54  ;;  %v9335_v24 = vld [vmem:[#allocation14 + $0xec] sm:$0xf] }
 0x5d6   :  { %9794 = vrcp.f32 %v7350_v51  ;;  %v4723_v14 = vpop.f32.mrf.mxu2  ;;  %4875 = vmatmul.bf16.gmra.mxu0 %v13538_v43  ;;  %v8430_v51 = vld [vmem:[#allocation14 + $0x104] sm:$0xf0] }
 0x5d7   :  { %v4724_v18 = vadd.f32 %v4723_v14, %v4635_v12  ;;  %v8433_v12 = vor.u32 %v9335_v24, %v8430_v51  ;;  %v4462_v14 = vadd.f32 %v11933_v44, %v11743_v13  ;;  %v9503_v51 = vld [vmem:[#allocation14 + $0x62c] sm:$0xf] }
 0x5d8   :  { %v4636_v28 = vpop.f32.mrf.mxu1 }
 0x5d9   :  { %v6692_v29 = vsub.f32 0.0, %v4724_v18  ;;  %v4637_v32 = vadd.f32 %v4636_v28, %v4548_v7  ;;  %5102 = vmatpush.bf16.msra.mxu3 %v8433_v12  ;;  %v13540_v7 = vld [vmem:[#allocation50_spill] sm:$0xff] }
 0x5db   :  { %v9793_v48 = vpop.eup %9792  ;;  %v7085_v59 = vmul.f32 1.442695, %v6692_v29  ;;  %v11979_v8 = vpop.f32.mrf.mxu3 }
 0x5dc   :  { %v11981_v34 = vpop.f32.mrf.mxu0  ;;  %v9795_v54 = vpop.eup %9794  ;;  %v7357_v10 = vadd.f32 1.0, %v9793_v48  ;;  %v4551_v48 = vadd.f32 %v11935_v63, %v4462_v14  ;;  %v9391_v14 = vld [vmem:[#allocation14 + $0x2ac] sm:$0xf] }
 0x5dd   :  { %7798 = vst [vmem:[#allocation16 + $0x4d8] sm:$0xff] %v9795_v54  ;;  %9796 = vpow2.f32 %v7085_v59 }
 0x5de   :  { %9798 = vrcp.f32 %v7357_v10  ;;  %v4725_v17 = vpop.f32.mrf.mxu2  ;;  %v13541_v10 = vld [vmem:[#allocation57_spill] sm:$0xff] }
 0x5df   :  { %v4726_v18 = vadd.f32 %v4725_v17, %v4637_v32  ;;  %v9102_v17 = vld [vmem:[#allocation14 + $0x644] sm:$0xf0] }
 0x5e0   :  { %v4639_v49 = vpop.f32.mrf.mxu1  ;;  %4791 = vmatmul.bf16.gmra.mxu3 %v13539_v5  ;;  %v9105_v63 = vor.u32 %v9503_v51, %v9102_v17  ;;  %v4464_v5 = vadd.f32 %v11943_v53, %v11743_v13  ;;  %v9447_v53 = vld [vmem:[#allocation14 + $0x46c] sm:$0xf] }
 0x5e1   :  { %v6699_v29 = vsub.f32 0.0, %v4726_v18  ;;  %v4640_v32 = vadd.f32 %v4639_v49, %v4551_v48  ;;  %v13542_v18 = vld [vmem:[#allocation35_spill] sm:$0xff] }
 0x5e2   :  { %5369 = vmatpush.bf16.msra.mxu2 %v9105_v63  ;;  %v4553_v49 = vadd.f32 %v11945_v22, %v4464_v5  ;;  %v13543_v5 = vld [vmem:[#allocation30_spill] sm:$0xff] }
 0x5e3   :  { %v9797_v43 = vpop.eup %9796  ;;  %v7099_v54 = vmul.f32 1.442695, %v6699_v29  ;;  %v11987_v59 = vpop.f32.mrf.mxu3  ;;  %4954 = vmatmul.bf16.gmra.mxu1 %v13540_v7  ;;  %5043 = vmatmul.bf16.gmra.mxu2 %v13541_v10  ;;  %v8654_v29 = vld [vmem:[#allocation14 + $0x2c4] sm:$0xf0] }
 0x5e4   :  { %v11989_v28 = vpop.f32.mrf.mxu0  ;;  %v9799_v24 = vpop.eup %9798  ;;  %v7364_v44 = vadd.f32 1.0, %v9797_v43  ;;  %v8657_v36 = vor.u32 %v9391_v14, %v8654_v29 }
 0x5e5   :  { %7805 = vst [vmem:[#allocation16 + $0x510] sm:$0xff] %v9799_v24  ;;  %9800 = vpow2.f32 %v7099_v54 }
 0x5e6   :  { %9802 = vrcp.f32 %v7364_v44  ;;  %v4728_v12 = vpop.f32.mrf.mxu2  ;;  %4880 = vmatmul.bf16.gmra.mxu0 %v13542_v18 }
 0x5e7   :  { %v4729_v7 = vadd.f32 %v4728_v12, %v4640_v32  ;;  %5191 = vmatpush.bf16.msra.mxu0 %v8657_v36  ;;  %v8878_v32 = vld [vmem:[#allocation14 + $0x484] sm:$0xf0]  ;;  %v4467_v36 = vadd.f32 %v11951_v50, %v11743_v13 }
 0x5e8   :  { %v4641_v10 = vpop.f32.mrf.mxu1  ;;  %v8881_v63 = vor.u32 %v9447_v53, %v8878_v32  ;;  %v13546_v32 = vld [vmem:[#allocation37_spill] sm:$0xff] }
 0x5e9   :  { %v6706_v43 = vsub.f32 0.0, %v4729_v7  ;;  %v4642_v18 = vadd.f32 %v4641_v10, %v4553_v49  ;;  %v13544_v49 = vld [vmem:[#allocation52_spill] sm:$0xff] }
 0x5ea   :  { %5280 = vmatpush.bf16.msra.mxu1 %v8881_v63 }
 0x5eb   :  { %v9801_v54 = vpop.eup %9800  ;;  %v7113_v48 = vmul.f32 1.442695, %v6706_v43  ;;  %v11997_v24 = vpop.f32.mrf.mxu3  ;;  %v4556_v43 = vadd.f32 %v11953_v46, %v4467_v36  ;;  %v4469_v46 = vadd.f32 %v11961_v56, %v11743_v13 }
 0x5ec   :  { %v11999_v44 = vpop.f32.mrf.mxu0  ;;  %v9803_v51 = vpop.eup %9802  ;;  %v7371_v17 = vadd.f32 1.0, %v9801_v54 }
 0x5ed   :  { %7812 = vst [vmem:[#allocation16 + $0x548] sm:$0xff] %v9803_v51  ;;  %9804 = vpow2.f32 %v7113_v48  ;;  %v13545_v51 = vld [vmem:[#allocation59_spill] sm:$0xff] }
 0x5ee   :  { %9806 = vrcp.f32 %v7371_v17  ;;  %v4730_v12 = vpop.f32.mrf.mxu2 }
 0x5ef   :  { %v4731_v7 = vadd.f32 %v4730_v12, %v4642_v18 }
 0x5f0   :  { %v4644_v22 = vpop.f32.mrf.mxu1  ;;  %4796 = vmatmul.bf16.gmra.mxu3 %v13543_v5 }
 0x5f1   :  { %v6713_v14 = vsub.f32 0.0, %v4731_v7  ;;  %v4645_v18 = vadd.f32 %v4644_v22, %v4556_v43 }
 0x5f3   :  { %v9805_v29 = vpop.eup %9804  ;;  %v7127_v54 = vmul.f32 1.442695, %v6713_v14  ;;  %v12005_v48 = vpop.f32.mrf.mxu3  ;;  %4959 = vmatmul.bf16.gmra.mxu1 %v13544_v49  ;;  %5048 = vmatmul.bf16.gmra.mxu2 %v13545_v51  ;;  %v4558_v14 = vadd.f32 %v11963_v40, %v4469_v46  ;;  %v13547_v46 = vld [vmem:[#allocation32_spill] sm:$0xff] }
 0x5f4   :  { %v12007_v10 = vpop.f32.mrf.mxu0  ;;  %v9807_v17 = vpop.eup %9806  ;;  %v7378_v50 = vadd.f32 1.0, %v9805_v29 }
 0x5f5   :  { %7819 = vst [vmem:[#allocation16 + $0x580] sm:$0xff] %v9807_v17  ;;  %9808 = vpow2.f32 %v7127_v54  ;;  %v9328_v17 = vld [vmem:[#allocation14 + $0xb4] sm:$0xf] }
 0x5f6   :  { %9810 = vrcp.f32 %v7378_v50  ;;  %v4733_v53 = vpop.f32.mrf.mxu2  ;;  %4885 = vmatmul.bf16.gmra.mxu0 %v13546_v32  ;;  %v8402_v50 = vld [vmem:[#allocation14 + $0xcc] sm:$0xf0] }
 0x5f7   :  { %v4734_v12 = vadd.f32 %v4733_v53, %v4645_v18  ;;  %v8405_v18 = vor.u32 %v9328_v17, %v8402_v50  ;;  %v4472_v53 = vadd.f32 %v11969_v20, %v11743_v13  ;;  %v9496_v50 = vld [vmem:[#allocation14 + $0x5f4] sm:$0xf] }
 0x5f8   :  { %v4646_v63 = vpop.f32.mrf.mxu1 }
 0x5f9   :  { %v6720_v36 = vsub.f32 0.0, %v4734_v12  ;;  %v4647_v43 = vadd.f32 %v4646_v63, %v4558_v14  ;;  %5103 = vmatpush.bf16.msra.mxu3 %v8405_v18  ;;  %v13548_v14 = vld [vmem:[#allocation54_spill] sm:$0xff] }
 0x5fb   :  { %v9809_v7 = vpop.eup %9808  ;;  %v7141_v49 = vmul.f32 1.442695, %v6720_v36  ;;  %v12015_v51 = vpop.f32.mrf.mxu3 }
 0x5fc   :  { %v12017_v29 = vpop.f32.mrf.mxu0  ;;  %v9811_v54 = vpop.eup %9810  ;;  %v7385_v22 = vadd.f32 1.0, %v9809_v7  ;;  %v4561_v7 = vadd.f32 %v11971_v9, %v4472_v53  ;;  %v9384_v53 = vld [vmem:[#allocation14 + $0x274] sm:$0xf] }
 0x5fd   :  { %7826 = vst [vmem:[#allocation16 + $0x5b8] sm:$0xff] %v9811_v54  ;;  %9812 = vpow2.f32 %v7141_v49 }
 0x5fe   :  { %9814 = vrcp.f32 %v7385_v22  ;;  %v4735_v56 = vpop.f32.mrf.mxu2  ;;  %v13549_v22 = vld [vmem:[#allocation61_spill] sm:$0xff] }
 0x5ff   :  { %v4736_v12 = vadd.f32 %v4735_v56, %v4647_v43  ;;  %v9074_v56 = vld [vmem:[#allocation14 + $0x60c] sm:$0xf0] }
 0x600   :  { %v4649_v40 = vpop.f32.mrf.mxu1  ;;  %4801 = vmatmul.bf16.gmra.mxu3 %v13547_v46  ;;  %v9077_v9 = vor.u32 %v9496_v50, %v9074_v56 }
 0x601   :  { %v6727_v36 = vsub.f32 0.0, %v4736_v12  ;;  %v4650_v43 = vadd.f32 %v4649_v40, %v4561_v7  ;;  %v8626_v12 = vld [vmem:[#allocation14 + $0x28c] sm:$0xf0]  ;;  %v10472_v7 = vld [vmem:[%s13361_s8] sm:$0xff] }
 0x602   :  { %v8629_v46 = vor.u32 %v9384_v53, %v8626_v12  ;;  %5370 = vmatpush.bf16.msra.mxu2 %v9077_v9 }
 0x603   :  { %v9813_v32 = vpop.eup %9812  ;;  %v7155_v54 = vmul.f32 1.442695, %v6727_v36  ;;  %v12023_v49 = vpop.f32.mrf.mxu3  ;;  %4964 = vmatmul.bf16.gmra.mxu1 %v13548_v14  ;;  %5053 = vmatmul.bf16.gmra.mxu2 %v13549_v22  ;;  %v4474_v36 = vadd.f32 %v11979_v8, %v11743_v13 }
 0x604   :  { %v12025_v63 = vpop.f32.mrf.mxu0  ;;  %v9815_v17 = vpop.eup %9814  ;;  %v7392_v20 = vadd.f32 1.0, %v9813_v32  ;;  %5192 = vmatpush.bf16.msra.mxu0 %v8629_v46  ;;  %v9440_v46 = vld [vmem:[#allocation14 + $0x434] sm:$0xf] }
 0x605   :  { %7833 = vst [vmem:[#allocation16 + $0x5f0] sm:$0xff] %v9815_v17  ;;  %9816 = vpow2.f32 %v7155_v54  ;;  %v4563_v40 = vadd.f32 %v11981_v34, %v4474_v36  ;;  %v12036_v17 = vperm.slane %v10472_v7, 2 }
 0x606   :  { %9818 = vrcp.f32 %v7392_v20  ;;  %v4738_v18 = vpop.f32.mrf.mxu2  ;;  %4890 = vmatmul.bf16.gmra.mxu0 %v13519_v39 }
 0x607   :  { %v4739_v14 = vadd.f32 %v4738_v18, %v4650_v43  ;;  %v8850_v43 = vld [vmem:[#allocation14 + $0x44c] sm:$0xf0]  ;;  %v4753_v9 = vadd.f32 %v11987_v59, %v12036_v17 }
 0x608   :  { %v4651_v22 = vpop.f32.mrf.mxu1  ;;  %v8853_v18 = vor.u32 %v9440_v46, %v8850_v43 }
 0x609   :  { %v6734_v32 = vsub.f32 0.0, %v4739_v14  ;;  %v4652_v14 = vadd.f32 %v4651_v22, %v4563_v40 }
 0x60a   :  { %5281 = vmatpush.bf16.msra.mxu1 %v8853_v18 }
 0x60b   :  { %v9817_v54 = vpop.eup %9816  ;;  %v7169_v20 = vmul.f32 1.442695, %v6734_v32  ;;  %v12038_v50 = vpop.f32.mrf.mxu3 }
 0x60c   :  { %v12040_v56 = vpop.f32.mrf.mxu0  ;;  %v9819_v13 = vpop.eup %9818  ;;  %v7399_v8 = vadd.f32 1.0, %v9817_v54  ;;  %v4842_v54 = vadd.f32 %v11989_v28, %v4753_v9  ;;  %v4755_v28 = vadd.f32 %v11997_v24, %v12036_v17 }
 0x60d   :  { %7840 = vst [vmem:[#allocation16 + $0x628] sm:$0xff] %v9819_v13  ;;  %9820 = vpow2.f32 %v7169_v20 }
 0x60e   :  { %9822 = vrcp.f32 %v7399_v8  ;;  %v4740_v34 = vpop.f32.mrf.mxu2  ;;  %v4844_v18 = vadd.f32 %v11999_v44, %v4755_v28  ;;  %v13550_v44 = vld [vmem:[#allocation36_spill] sm:$0xff] }
 0x60f   :  { %v4741_v53 = vadd.f32 %v4740_v34, %v4652_v14 }
 0x610   :  { %4806 = vmatmul.bf16.gmra.mxu3 %v11152_v41  ;;  %v4930_v12 = vpop.f32.mrf.mxu1 }
 0x611   :  { %v6741_v36 = vsub.f32 0.0, %v4741_v53  ;;  %v4931_v13 = vadd.f32 %v4930_v12, %v4842_v54 }
 0x613   :  { %v9821_v32 = vpop.eup %9820  ;;  %v7183_v7 = vmul.f32 1.442695, %v6741_v36  ;;  %v12046_v20 = vpop.f32.mrf.mxu3  ;;  %4969 = vmatmul.bf16.gmra.mxu1 %v11316_v58  ;;  %5058 = vmatmul.bf16.gmra.mxu2 %v11356_v61  ;;  %v9370_v58 = vld [vmem:[#allocation14 + $0x204] sm:$0xf] }
 0x614   :  { %v12048_v22 = vpop.f32.mrf.mxu0  ;;  %v9823_v40 = vpop.eup %9822  ;;  %v7406_v59 = vadd.f32 1.0, %v9821_v32 }
 0x615   :  { %7847 = vst [vmem:[#allocation16 + $0x660] sm:$0xff] %v9823_v40  ;;  %9824 = vpow2.f32 %v7183_v7  ;;  %v9321_v7 = vld [vmem:[#allocation14 + $0x7c] sm:$0xf]  ;;  %v8374_v40 = vld [vmem:[#allocation14 + $0x94] sm:$0xf0] }
 0x616   :  { %9826 = vrcp.f32 %v7406_v59  ;;  %4895 = vmatmul.bf16.gmra.mxu0 %v13520_v0  ;;  %v5019_v8 = vpop.f32.mrf.mxu2  ;;  %v8377_v59 = vor.u32 %v9321_v7, %v8374_v40  ;;  %v9489_v40 = vld [vmem:[#allocation14 + $0x5bc] sm:$0xf] }
 0x617   :  { %v5020_v14 = vadd.f32 %v5019_v8, %v4931_v13  ;;  %v4758_v13 = vadd.f32 %v12005_v48, %v12036_v17 }
 0x618   :  { %v4932_v46 = vpop.f32.mrf.mxu1  ;;  %5104 = vmatpush.bf16.msra.mxu3 %v8377_v59  ;;  %v13553_v59 = vld [vmem:[#allocation42_spill] sm:$0xff] }
 0x619   :  { %v6525_v43 = vsub.f32 0.0, %v5020_v14  ;;  %v4933_v54 = vadd.f32 %v4932_v46, %v4844_v18  ;;  %v13551_v18 = vld [vmem:[#allocation58_spill] sm:$0xff] }
 0x61b   :  { %v9825_v34 = vpop.eup %9824  ;;  %v6751_v9 = vmul.f32 1.442695, %v6525_v43  ;;  %v12056_v53 = vpop.f32.mrf.mxu3 }
 0x61c   :  { %v12058_v36 = vpop.f32.mrf.mxu0  ;;  %v9827_v32 = vpop.eup %9826  ;;  %v7413_v12 = vadd.f32 1.0, %v9825_v34  ;;  %v4847_v34 = vadd.f32 %v12007_v10, %v4758_v13 }
 0x61d   :  { %7854 = vst [vmem:[#allocation16 + $0x698] sm:$0xff] %v9827_v32  ;;  %9828 = vpow2.f32 %v6751_v9 }
 0x61e   :  { %9830 = vrcp.f32 %v7413_v12  ;;  %v5021_v24 = vpop.f32.mrf.mxu2  ;;  %v13552_v12 = vld [vmem:[#allocation63_spill] sm:$0xff] }
 0x61f   :  { %v5022_v8 = vadd.f32 %v5021_v24, %v4933_v54  ;;  %v9046_v24 = vld [vmem:[#allocation14 + $0x5d4] sm:$0xf0] }
 0x620   :  { %4811 = vmatmul.bf16.gmra.mxu3 %v13550_v44  ;;  %v4935_v28 = vpop.f32.mrf.mxu1  ;;  %v9049_v13 = vor.u32 %v9489_v40, %v9046_v24  ;;  %v4760_v44 = vadd.f32 %v12015_v51, %v12036_v17  ;;  %v9433_v51 = vld [vmem:[#allocation14 + $0x3fc] sm:$0xf] }
 0x621   :  { %v6532_v14 = vsub.f32 0.0, %v5022_v8  ;;  %v4936_v54 = vadd.f32 %v4935_v28, %v4847_v34  ;;  %v9377_v8 = vld [vmem:[#allocation14 + $0x23c] sm:$0xf] }
 0x622   :  { %5371 = vmatpush.bf16.msra.mxu2 %v9049_v13  ;;  %v4849_v28 = vadd.f32 %v12017_v29, %v4760_v44  ;;  %v13554_v29 = vld [vmem:[#allocation38_spill] sm:$0xff] }
 0x623   :  { %v9829_v43 = vpop.eup %9828  ;;  %v6765_v32 = vmul.f32 1.442695, %v6532_v14  ;;  %v12064_v9 = vpop.f32.mrf.mxu3  ;;  %4974 = vmatmul.bf16.gmra.mxu1 %v13551_v18  ;;  %5063 = vmatmul.bf16.gmra.mxu2 %v13552_v12  ;;  %v8598_v14 = vld [vmem:[#allocation14 + $0x254] sm:$0xf0] }
 0x624   :  { %v12066_v46 = vpop.f32.mrf.mxu0  ;;  %v9831_v7 = vpop.eup %9830  ;;  %v7197_v48 = vadd.f32 1.0, %v9829_v43  ;;  %v8601_v0 = vor.u32 %v9377_v8, %v8598_v14 }
 0x625   :  { %7861 = vst [vmem:[#allocation16 + $0x6d0] sm:$0xff] %v9831_v7  ;;  %9832 = vpow2.f32 %v6765_v32 }
 0x626   :  { %9834 = vrcp.f32 %v7197_v48  ;;  %4900 = vmatmul.bf16.gmra.mxu0 %v13553_v59  ;;  %v5024_v10 = vpop.f32.mrf.mxu2 }
 0x627   :  { %v5025_v18 = vadd.f32 %v5024_v10, %v4936_v54  ;;  %5193 = vmatpush.bf16.msra.mxu0 %v8601_v0  ;;  %v8822_v54 = vld [vmem:[#allocation14 + $0x414] sm:$0xf0]  ;;  %v4763_v0 = vadd.f32 %v12023_v49, %v12036_v17 }
 0x628   :  { %v4937_v12 = vpop.f32.mrf.mxu1  ;;  %v8825_v13 = vor.u32 %v9433_v51, %v8822_v54  ;;  %v13557_v51 = vld [vmem:[#allocation43_spill] sm:$0xff] }
 0x629   :  { %v6539_v43 = vsub.f32 0.0, %v5025_v18  ;;  %v4938_v59 = vadd.f32 %v4937_v12, %v4849_v28  ;;  %v13555_v28 = vld [vmem:[#allocation60_spill] sm:$0xff] }
 0x62a   :  { %5282 = vmatpush.bf16.msra.mxu1 %v8825_v13  ;;  %v4765_v13 = vadd.f32 %v12038_v50, %v12036_v17  ;;  %v8570_v50 = vld [vmem:[#allocation14 + $0x21c] sm:$0xf0] }
 0x62b   :  { %v9833_v32 = vpop.eup %9832  ;;  %v6779_v34 = vmul.f32 1.442695, %v6539_v43  ;;  %v12074_v7 = vpop.f32.mrf.mxu3  ;;  %v4852_v43 = vadd.f32 %v12025_v63, %v4763_v0  ;;  %v8346_v63 = vld [vmem:[#allocation14 + $0x5c] sm:$0xf0] }
 0x62c   :  { %v12076_v48 = vpop.f32.mrf.mxu0  ;;  %v9835_v40 = vpop.eup %9834  ;;  %v7204_v24 = vadd.f32 1.0, %v9833_v32 }
 0x62d   :  { %7645 = vst [vmem:[#allocation16 + $0x10] sm:$0xff] %v9835_v40  ;;  %9836 = vpow2.f32 %v6779_v34  ;;  %v13556_v40 = vld [vmem:[#allocation64_spill] sm:$0xff] }
 0x62e   :  { %9838 = vrcp.f32 %v7204_v24  ;;  %v5026_v10 = vpop.f32.mrf.mxu2 }
 0x62f   :  { %v5027_v18 = vadd.f32 %v5026_v10, %v4938_v59  ;;  %v9314_v10 = vld [vmem:[#allocation14 + $0x44] sm:$0xf] }
 0x630   :  { %4816 = vmatmul.bf16.gmra.mxu3 %v13554_v29  ;;  %v4940_v44 = vpop.f32.mrf.mxu1  ;;  %v8318_v29 = vld [vmem:[#allocation14 + $0x24] sm:$0xf0] }
 0x631   :  { %v6546_v8 = vsub.f32 0.0, %v5027_v18  ;;  %v4941_v59 = vadd.f32 %v4940_v44, %v4852_v43  ;;  %v8349_v18 = vor.u32 %v9314_v10, %v8346_v63 }
 0x633   :  { %v9837_v14 = vpop.eup %9836  ;;  %v6793_v32 = vmul.f32 1.442695, %v6546_v8  ;;  %v12082_v34 = vpop.f32.mrf.mxu3  ;;  %4979 = vmatmul.bf16.gmra.mxu1 %v13555_v28  ;;  %5068 = vmatmul.bf16.gmra.mxu2 %v13556_v40  ;;  %v9307_v40 = vld [vmem:[#allocation14 + $0xc] sm:$0xf] }
 0x634   :  { %v12084_v12 = vpop.f32.mrf.mxu0  ;;  %v9839_v24 = vpop.eup %9838  ;;  %v7211_v49 = vadd.f32 1.0, %v9837_v14  ;;  %5105 = vmatpush.bf16.msra.mxu3 %v8349_v18 }
 0x635   :  { %7652 = vst [vmem:[#allocation16 + $0x48] sm:$0xff] %v9839_v24  ;;  %9840 = vpow2.f32 %v6793_v32  ;;  %v4854_v32 = vadd.f32 %v12040_v56, %v4765_v13  ;;  %v4768_v56 = vadd.f32 %v12046_v20, %v12036_v17 }
 0x636   :  { %9842 = vrcp.f32 %v7211_v49  ;;  %4905 = vmatmul.bf16.gmra.mxu0 %v13557_v51  ;;  %v5029_v54 = vpop.f32.mrf.mxu2  ;;  %v8321_v49 = vor.u32 %v9307_v40, %v8318_v29  ;;  %v9363_v29 = vld [vmem:[#allocation14 + $0x1cc] sm:$0xf]  ;;  %v8542_v40 = vld [vmem:[#allocation14 + $0x1e4] sm:$0xf0] }
 0x637   :  { %v5030_v0 = vadd.f32 %v5029_v54, %v4941_v59  ;;  %v8573_v54 = vor.u32 %v9370_v58, %v8570_v50 }
 0x638   :  { %v4942_v8 = vpop.f32.mrf.mxu1  ;;  %5106 = vmatpush.bf16.msra.mxu3 %v8321_v49  ;;  %v9018_v49 = vld [vmem:[#allocation14 + $0x59c] sm:$0xf0] }
 0x639   :  { %v6553_v28 = vsub.f32 0.0, %v5030_v0  ;;  %v4943_v59 = vadd.f32 %v4942_v8, %v4854_v32  ;;  %5194 = vmatpush.bf16.msra.mxu0 %v8573_v54  ;;  %v8545_v0 = vor.u32 %v9363_v29, %v8542_v40 }
 0x63b   :  { %v9841_v14 = vpop.eup %9840  ;;  %v6807_v44 = vmul.f32 1.442695, %v6553_v28  ;;  %v12092_v43 = vpop.f32.mrf.mxu3 }
 0x63c   :  { %v12094_v24 = vpop.f32.mrf.mxu0  ;;  %v9843_v51 = vpop.eup %9842  ;;  %v7218_v61 = vadd.f32 1.0, %v9841_v14 }
 0x63d   :  { %7659 = vst [vmem:[#allocation16 + $0x80] sm:$0xff] %v9843_v51  ;;  %9844 = vpow2.f32 %v6807_v44  ;;  %v4857_v51 = vadd.f32 %v12048_v22, %v4768_v56  ;;  %5195 = vmatpush.bf16.msra.mxu0 %v8545_v0  ;;  %v9482_v44 = vld [vmem:[#allocation14 + $0x584] sm:$0xf] }
 0x63e   :  { %9846 = vrcp.f32 %v7218_v61  ;;  %v5031_v10 = vpop.f32.mrf.mxu2  ;;  %v9021_v50 = vor.u32 %v9482_v44, %v9018_v49 }
 0x63f   :  { %v5032_v28 = vadd.f32 %v5031_v10, %v4943_v59  ;;  %v4770_v59 = vadd.f32 %v12056_v53, %v12036_v17 }
 0x640   :  { %4821 = vmatmul.bf16.gmra.mxu3 %v13492_v55  ;;  %v4945_v63 = vpop.f32.mrf.mxu1  ;;  %5372 = vmatpush.bf16.msra.mxu2 %v9021_v50 }
 0x641   :  { %v6560_v13 = vsub.f32 0.0, %v5032_v28  ;;  %v4946_v32 = vadd.f32 %v4945_v63, %v4857_v51  ;;  %v4859_v29 = vadd.f32 %v12058_v36, %v4770_v59 }
 0x643   :  { %v9845_v18 = vpop.eup %9844  ;;  %v6821_v8 = vmul.f32 1.442695, %v6560_v13  ;;  %v12100_v58 = vpop.f32.mrf.mxu3  ;;  %4984 = vmatmul.bf16.gmra.mxu1 %v11352_v31  ;;  %5073 = vmatmul.bf16.gmra.mxu2 %v11392_v45 }
 0x644   :  { %v12102_v61 = vpop.f32.mrf.mxu0  ;;  %v9847_v20 = vpop.eup %9846  ;;  %v7225_v14 = vadd.f32 1.0, %v9845_v18 }
 0x645   :  { %7666 = vst [vmem:[#allocation16 + $0xb8] sm:$0xff] %v9847_v20  ;;  %9848 = vpow2.f32 %v6821_v8  ;;  %v9426_v8 = vld [vmem:[#allocation14 + $0x3c4] sm:$0xf]  ;;  %v8794_v20 = vld [vmem:[#allocation14 + $0x3dc] sm:$0xf0] }
 0x646   :  { %9850 = vrcp.f32 %v7225_v14  ;;  %4910 = vmatmul.bf16.gmra.mxu0 %v11233_v47  ;;  %v5034_v22 = vpop.f32.mrf.mxu2  ;;  %v8797_v14 = vor.u32 %v9426_v8, %v8794_v20 }
 0x647   :  { %v5035_v54 = vadd.f32 %v5034_v22, %v4946_v32  ;;  %v4773_v32 = vadd.f32 %v12064_v9, %v12036_v17 }
 0x648   :  { %v4947_v10 = vpop.f32.mrf.mxu1  ;;  %5283 = vmatpush.bf16.msra.mxu1 %v8797_v14 }
 0x649   :  { %v6567_v56 = vsub.f32 0.0, %v5035_v54  ;;  %v4948_v51 = vadd.f32 %v4947_v10, %v4859_v29  ;;  %v4862_v50 = vadd.f32 %v12066_v46, %v4773_v32  ;;  %v4775_v46 = vadd.f32 %v12074_v7, %v12036_v17 }
 0x64a   :  { %v4778_v7 = vadd.f32 %v12082_v34, %v12036_v17 }
 0x64b   :  { %v9849_v28 = vpop.eup %9848  ;;  %v6835_v40 = vmul.f32 1.442695, %v6567_v56  ;;  %v12110_v13 = vpop.f32.mrf.mxu3  ;;  %v4864_v8 = vadd.f32 %v12076_v48, %v4775_v46 }
 0x64c   :  { %v12112_v63 = vpop.f32.mrf.mxu0  ;;  %v9851_v0 = vpop.eup %9850  ;;  %v7232_v18 = vadd.f32 1.0, %v9849_v28 }
 0x64d   :  { %7673 = vst [vmem:[#allocation16 + $0xf0] sm:$0xff] %v9851_v0  ;;  %9852 = vpow2.f32 %v6835_v40 }
 0x64e   :  { %9854 = vrcp.f32 %v7232_v18  ;;  %v5036_v53 = vpop.f32.mrf.mxu2 }
 0x64f   :  { %v5037_v44 = vadd.f32 %v5036_v53, %v4948_v51 }
 0x650   :  { %4826 = vmatmul.bf16.gmra.mxu3 %v11205_v35  ;;  %v4950_v36 = vpop.f32.mrf.mxu1 }
 0x651   :  { %v6574_v49 = vsub.f32 0.0, %v5037_v44  ;;  %v4951_v28 = vadd.f32 %v4950_v36, %v4862_v50 }
 0x653   :  { %v9853_v22 = vpop.eup %9852  ;;  %v6849_v59 = vmul.f32 1.442695, %v6574_v49  ;;  %v12118_v54 = vpop.f32.mrf.mxu3  ;;  %4989 = vmatmul.bf16.gmra.mxu1 %v11364_v23  ;;  %5078 = vmatmul.bf16.gmra.mxu2 %v11408_v19 }
 0x654   :  { %v12120_v10 = vpop.f32.mrf.mxu0  ;;  %v9855_v56 = vpop.eup %9854  ;;  %v7239_v9 = vadd.f32 1.0, %v9853_v22 }
 0x655   :  { %7680 = vst [vmem:[#allocation16 + $0x128] sm:$0xff] %v9855_v56  ;;  %9856 = vpow2.f32 %v6849_v59  ;;  %v4867_v56 = vadd.f32 %v12084_v12, %v4778_v7 }
 0x656   :  { %9858 = vrcp.f32 %v7239_v9  ;;  %4915 = vmatmul.bf16.gmra.mxu0 %v11248_v4  ;;  %v5039_v29 = vpop.f32.mrf.mxu2 }
 0x657   :  { %v5040_v40 = vadd.f32 %v5039_v29, %v4951_v28 }
 0x658   :  { %v4952_v0 = vpop.f32.mrf.mxu1 }
 0x659   :  { %v6581_v18 = vsub.f32 0.0, %v5040_v40  ;;  %v4953_v36 = vadd.f32 %v4952_v0, %v4864_v8  ;;  %v9475_v0 = vld [vmem:[#allocation14 + $0x54c] sm:$0xf]  ;;  %v4780_v8 = vadd.f32 %v12092_v43, %v12036_v17 }
 0x65b   :  { %v9857_v51 = vpop.eup %9856  ;;  %v6863_v20 = vmul.f32 1.442695, %v6581_v18  ;;  %v12128_v53 = vpop.f32.mrf.mxu3  ;;  %v8990_v18 = vld [vmem:[#allocation14 + $0x564] sm:$0xf0] }
 0x65c   :  { %v12130_v14 = vpop.f32.mrf.mxu0  ;;  %v9859_v32 = vpop.eup %9858  ;;  %v7246_v44 = vadd.f32 1.0, %v9857_v51  ;;  %v8993_v12 = vor.u32 %v9475_v0, %v8990_v18 }
 0x65d   :  { %7687 = vst [vmem:[#allocation16 + $0x160] sm:$0xff] %v9859_v32  ;;  %9860 = vpow2.f32 %v6863_v20 }
 0x65e   :  { %9862 = vrcp.f32 %v7246_v44  ;;  %v5041_v49 = vpop.f32.mrf.mxu2  ;;  %5373 = vmatpush.bf16.msra.mxu2 %v8993_v12 }
 0x65f   :  { %v5042_v22 = vadd.f32 %v5041_v49, %v4953_v36  ;;  %v4869_v49 = vadd.f32 %v12094_v24, %v4780_v8 }
 0x660   :  { %v4955_v50 = vpop.f32.mrf.mxu1  ;;  %5107 = vmatmul.bf16.vlgmr.msra.gmra.mxu3 %v11009_v30 }
 0x661   :  { %v6588_v48 = vsub.f32 0.0, %v5042_v22  ;;  %v4956_v34 = vadd.f32 %v4955_v50, %v4867_v56 }
 0x663   :  { %v9861_v59 = vpop.eup %9860  ;;  %v6877_v9 = vmul.f32 1.442695, %v6588_v48  ;;  %v12136_v28 = vpop.f32.mrf.mxu3  ;;  %4994 = vmatmul.bf16.gmra.mxu1 %v11376_v27  ;;  %5083 = vmatmul.bf16.gmra.mxu2 %v11424_v52 }
 0x664   :  { %v12138_v29 = vpop.f32.mrf.mxu0  ;;  %v9863_v46 = vpop.eup %9862  ;;  %v7253_v40 = vadd.f32 1.0, %v9861_v59 }
 0x665   :  { %7694 = vst [vmem:[#allocation16 + $0x198] sm:$0xff] %v9863_v46  ;;  %9864 = vpow2.f32 %v6877_v9  ;;  %v9419_v9 = vld [vmem:[#allocation14 + $0x38c] sm:$0xf]  ;;  %v8766_v46 = vld [vmem:[#allocation14 + $0x3a4] sm:$0xf0] }
 0x666   :  { %9866 = vrcp.f32 %v7253_v40  ;;  %v5044_v51 = vpop.f32.mrf.mxu2  ;;  %5196 = vmatmul.bf16.vlgmr.msra.gmra.mxu0 %v11061_v26  ;;  %v8769_v40 = vor.u32 %v9419_v9, %v8766_v46 }
 0x667   :  { %v5045_v20 = vadd.f32 %v5044_v51, %v4956_v34  ;;  %v4783_v34 = vadd.f32 %v12100_v58, %v12036_v17 }
 0x668   :  { %v4957_v32 = vpop.f32.mrf.mxu1  ;;  %5284 = vmatpush.bf16.msra.mxu1 %v8769_v40 }
 0x669   :  { %v6595_v44 = vsub.f32 0.0, %v5045_v20  ;;  %v4958_v56 = vadd.f32 %v4957_v32, %v4869_v49  ;;  %v4872_v12 = vadd.f32 %v12102_v61, %v4783_v34  ;;  %v4785_v61 = vadd.f32 %v12110_v13, %v12036_v17 }
 0x66b   :  { %v9865_v36 = vpop.eup %9864  ;;  %v6891_v7 = vmul.f32 1.442695, %v6595_v44  ;;  %v12146_v22 = vpop.f32.mrf.mxu3  ;;  %v4874_v9 = vadd.f32 %v12112_v63, %v4785_v61 }
 0x66c   :  { %v12148_v50 = vpop.f32.mrf.mxu0  ;;  %v9867_v48 = vpop.eup %9866  ;;  %v7260_v59 = vadd.f32 1.0, %v9865_v36 }
 0x66d   :  { %7701 = vst [vmem:[#allocation16 + $0x1d0] sm:$0xff] %v9867_v48  ;;  %9868 = vpow2.f32 %v6891_v7 }
 0x66e   :  { %9870 = vrcp.f32 %v7260_v59  ;;  %v5046_v43 = vpop.f32.mrf.mxu2 }
 0x66f   :  { %v5047_v0 = vadd.f32 %v5046_v43, %v4958_v56 }
 0x670   :  { %v4960_v24 = vpop.f32.mrf.mxu1  ;;  %5112 = vmatmul.bf16.gmra.mxu3 %v11025_v57 }
 0x671   :  { %v6602_v18 = vsub.f32 0.0, %v5047_v0  ;;  %v4961_v36 = vadd.f32 %v4960_v24, %v4872_v12 }
 0x673   :  { %v9869_v51 = vpop.eup %9868  ;;  %v6905_v8 = vmul.f32 1.442695, %v6602_v18  ;;  %v12154_v20 = vpop.f32.mrf.mxu3  ;;  %4999 = vmatmul.bf16.gmra.mxu1 %v11388_v25  ;;  %5088 = vmatmul.bf16.gmra.mxu2 %v11440_v1  ;;  %v8520_v18 = vld [vmem:[#allocation14 + $0x198] sm:$0xf] }
 0x674   :  { %v12156_v32 = vpop.f32.mrf.mxu0  ;;  %v9871_v44 = vpop.eup %9870  ;;  %v7267_v58 = vadd.f32 1.0, %v9869_v51  ;;  %v9360_v51 = vld [vmem:[#allocation14 + $0x1b0] sm:$0xf0] }
 0x675   :  { %7708 = vst [vmem:[#allocation16 + $0x208] sm:$0xff] %v9871_v44  ;;  %9872 = vpow2.f32 %v6905_v8  ;;  %v8521_v12 = vor.u32 %v9360_v51, %v8520_v18  ;;  %v4788_v8 = vadd.f32 %v12118_v54, %v12036_v17  ;;  %v4790_v18 = vadd.f32 %v12128_v53, %v12036_v17  ;;  %v8968_v53 = vld [vmem:[#allocation14 + $0x518] sm:$0xf] }
 0x676   :  { %9874 = vrcp.f32 %v7267_v58  ;;  %v5049_v49 = vpop.f32.mrf.mxu2  ;;  %5201 = vmatmul.bf16.gmra.mxu0 %v11073_v42 }
 0x677   :  { %v5050_v7 = vadd.f32 %v5049_v49, %v4961_v36  ;;  %5455 = vmatpush.bf16.msrb.mxu3 %v8521_v12  ;;  %v4877_v49 = vadd.f32 %v12120_v10, %v4788_v8 }
 0x678   :  { %v4962_v48 = vpop.f32.mrf.mxu1 }
 0x679   :  { %v6609_v59 = vsub.f32 0.0, %v5050_v7  ;;  %v4963_v24 = vadd.f32 %v4962_v48, %v4874_v9  ;;  %v9192_v9 = vld [vmem:[#allocation14 + $0x6d8] sm:$0xf] }
 0x67b   :  { %v9873_v56 = vpop.eup %9872  ;;  %v6919_v46 = vmul.f32 1.442695, %v6609_v59  ;;  %v12164_v43 = vpop.f32.mrf.mxu3 }
 0x67c   :  { %v12166_v40 = vpop.f32.mrf.mxu0  ;;  %v9875_v34 = vpop.eup %9874  ;;  %v7274_v0 = vadd.f32 1.0, %v9873_v56 }
 0x67d   :  { %7715 = vst [vmem:[#allocation16 + $0x240] sm:$0xff] %v9875_v34  ;;  %9876 = vpow2.f32 %v6919_v46  ;;  %v9528_v46 = vld [vmem:[#allocation14 + $0x6f0] sm:$0xf0] }
 0x67e   :  { %9878 = vrcp.f32 %v7274_v0  ;;  %v5051_v13 = vpop.f32.mrf.mxu2  ;;  %v9193_v10 = vor.u32 %v9528_v46, %v9192_v9  ;;  %v8744_v0 = vld [vmem:[#allocation14 + $0x358] sm:$0xf] }
 0x67f   :  { %v5052_v44 = vadd.f32 %v5051_v13, %v4963_v24  ;;  %v9416_v24 = vld [vmem:[#allocation14 + $0x370] sm:$0xf0] }
 0x680   :  { %v4965_v63 = vpop.f32.mrf.mxu1  ;;  %5117 = vmatmul.bf16.gmra.mxu3 %v11044_v62  ;;  %v8745_v13 = vor.u32 %v9416_v24, %v8744_v0  ;;  %5722 = vmatpush.bf16.msrb.mxu2 %v9193_v10 }
 0x681   :  { %v6616_v58 = vsub.f32 0.0, %v5052_v44  ;;  %v4966_v56 = vadd.f32 %v4965_v63, %v4877_v49  ;;  %v4879_v63 = vadd.f32 %v12130_v14, %v4790_v18 }
 0x682   :  { %5544 = vmatpush.bf16.msrb.mxu0 %v8745_v13 }
 0x683   :  { %v9877_v36 = vpop.eup %9876  ;;  %v6933_v61 = vmul.f32 1.442695, %v6616_v58  ;;  %v12172_v7 = vpop.f32.mrf.mxu3  ;;  %5004 = vmatmul.bf16.gmra.mxu1 %v11400_v38  ;;  %5093 = vmatmul.bf16.gmra.mxu2 %v11464_v15 }
 0x684   :  { %v12174_v48 = vpop.f32.mrf.mxu0  ;;  %v9879_v59 = vpop.eup %9878  ;;  %v7281_v54 = vadd.f32 1.0, %v9877_v36 }
 0x685   :  { %7722 = vst [vmem:[#allocation16 + $0x278] sm:$0xff] %v9879_v59  ;;  %9880 = vpow2.f32 %v6933_v61 }
 0x686   :  { %9882 = vrcp.f32 %v7281_v54  ;;  %v5054_v34 = vpop.f32.mrf.mxu2  ;;  %5206 = vmatmul.bf16.gmra.mxu0 %v11085_v33 }
 0x687   :  { %v5055_v51 = vadd.f32 %v5054_v34, %v4966_v56  ;;  %v9472_v56 = vld [vmem:[#allocation14 + $0x530] sm:$0xf0]  ;;  %v4793_v34 = vadd.f32 %v12136_v28, %v12036_v17 }
 0x688   :  { %v4967_v12 = vpop.f32.mrf.mxu1  ;;  %v8969_v46 = vor.u32 %v9472_v56, %v8968_v53 }
 0x689   :  { %v6623_v8 = vsub.f32 0.0, %v5055_v51  ;;  %v4968_v54 = vadd.f32 %v4967_v12, %v4879_v63  ;;  %v4882_v18 = vadd.f32 %v12138_v29, %v4793_v34  ;;  %v4795_v29 = vadd.f32 %v12146_v22, %v12036_v17 }
 0x68a   :  { %5633 = vmatpush.bf16.msrb.mxu1 %v8969_v46 }
 0x68b   :  { %v9881_v44 = vpop.eup %9880  ;;  %v6947_v58 = vmul.f32 1.442695, %v6623_v8  ;;  %v12182_v36 = vpop.f32.mrf.mxu3  ;;  %v4884_v53 = vadd.f32 %v12148_v50, %v4795_v29 }
 0x68c   :  { %v12184_v49 = vpop.f32.mrf.mxu0  ;;  %v9883_v61 = vpop.eup %9882  ;;  %v7288_v59 = vadd.f32 1.0, %v9881_v44 }
 0x68d   :  { %7729 = vst [vmem:[#allocation16 + $0x2b0] sm:$0xff] %v9883_v61  ;;  %9884 = vpow2.f32 %v6947_v58 }
 0x68e   :  { %9886 = vrcp.f32 %v7288_v59  ;;  %v5056_v9 = vpop.f32.mrf.mxu2 }
 0x68f   :  { %v5057_v10 = vadd.f32 %v5056_v9, %v4968_v54 }
 0x690   :  { %v4970_v14 = vpop.f32.mrf.mxu1  ;;  %5122 = vmatmul.bf16.gmra.mxu3 %v11056_v11 }
 0x691   :  { %v6630_v0 = vsub.f32 0.0, %v5057_v10  ;;  %v4971_v44 = vadd.f32 %v4970_v14, %v4882_v18 }
 0x693   :  { %v9885_v24 = vpop.eup %9884  ;;  %v6961_v51 = vmul.f32 1.442695, %v6630_v0  ;;  %v12190_v13 = vpop.f32.mrf.mxu3  ;;  %5285 = vmatmul.bf16.vlgmr.msra.gmra.mxu1 %v11217_v6  ;;  %5374 = vmatmul.bf16.vlgmr.msra.gmra.mxu2 %v13493_v37  ;;  %v8492_v0 = vld [vmem:[#allocation14 + $0x160] sm:$0xf] }
 0x694   :  { %v12192_v12 = vpop.f32.mrf.mxu0  ;;  %v9887_v8 = vpop.eup %9886  ;;  %v7295_v28 = vadd.f32 1.0, %v9885_v24  ;;  %v9353_v24 = vld [vmem:[#allocation14 + $0x178] sm:$0xf0] }
 0x695   :  { %7736 = vst [vmem:[#allocation16 + $0x2e8] sm:$0xff] %v9887_v8  ;;  %9888 = vpow2.f32 %v6961_v51  ;;  %v8493_v18 = vor.u32 %v9353_v24, %v8492_v0  ;;  %v4798_v51 = vadd.f32 %v12154_v20, %v12036_v17  ;;  %v8716_v0 = vld [vmem:[#allocation14 + $0x320] sm:$0xf]  ;;  %v9409_v24 = vld [vmem:[#allocation14 + $0x338] sm:$0xf0] }
 0x696   :  { %9890 = vrcp.f32 %v7295_v28  ;;  %v5059_v63 = vpop.f32.mrf.mxu2  ;;  %5211 = vmatmul.bf16.gmra.mxu0 %v11097_v16 }
 0x697   :  { %v5060_v58 = vadd.f32 %v5059_v63, %v4971_v44  ;;  %5456 = vmatpush.bf16.msrb.mxu3 %v8493_v18  ;;  %v4887_v63 = vadd.f32 %v12156_v32, %v4798_v51  ;;  %v8717_v51 = vor.u32 %v9409_v24, %v8716_v0  ;;  %v4803_v0 = vadd.f32 %v12172_v7, %v12036_v17 }
 0x698   :  { %v4972_v61 = vpop.f32.mrf.mxu1 }
 0x699   :  { %v6637_v59 = vsub.f32 0.0, %v5060_v58  ;;  %v4973_v14 = vadd.f32 %v4972_v61, %v4884_v53  ;;  %5545 = vmatpush.bf16.msrb.mxu0 %v8717_v51 }
 0x69b   :  { %v9889_v54 = vpop.eup %9888  ;;  %v6975_v56 = vmul.f32 1.442695, %v6637_v59  ;;  %v12200_v9 = vpop.f32.mrf.mxu3  ;;  %v13558_v59 = vld [vmem:[#allocation49_spill] sm:$0xff] }
 0x69c   :  { %v12202_v46 = vpop.f32.mrf.mxu0  ;;  %v9891_v34 = vpop.eup %9890  ;;  %v7302_v10 = vadd.f32 1.0, %v9889_v54 }
 0x69d   :  { %7743 = vst [vmem:[#allocation16 + $0x320] sm:$0xff] %v9891_v34  ;;  %9892 = vpow2.f32 %v6975_v56  ;;  %v9164_v56 = vld [vmem:[#allocation14 + $0x6a0] sm:$0xf]  ;;  %v9521_v34 = vld [vmem:[#allocation14 + $0x6b8] sm:$0xf0] }
 0x69e   :  { %9894 = vrcp.f32 %v7302_v10  ;;  %v5061_v22 = vpop.f32.mrf.mxu2  ;;  %v9165_v32 = vor.u32 %v9521_v34, %v9164_v56 }
 0x69f   :  { %v5062_v8 = vadd.f32 %v5061_v22, %v4973_v14  ;;  %v13559_v14 = vld [vmem:[#allocation27_spill] sm:$0xff]  ;;  %v4800_v22 = vadd.f32 %v12164_v43, %v12036_v17 }
 0x6a0   :  { %v4975_v50 = vpop.f32.mrf.mxu1  ;;  %5127 = vmatmul.bf16.gmra.mxu3 %v13525_v2  ;;  %5723 = vmatpush.bf16.msrb.mxu2 %v9165_v32  ;;  %v8940_v43 = vld [vmem:[#allocation14 + $0x4e0] sm:$0xf] }
 0x6a1   :  { %v6644_v28 = vsub.f32 0.0, %v5062_v8  ;;  %v4976_v53 = vadd.f32 %v4975_v50, %v4887_v63  ;;  %v4889_v50 = vadd.f32 %v12166_v40, %v4800_v22  ;;  %v13560_v22 = vld [vmem:[#allocation24_spill] sm:$0xff] }
 0x6a3   :  { %v9893_v44 = vpop.eup %9892  ;;  %v6989_v29 = vmul.f32 1.442695, %v6644_v28  ;;  %v12208_v58 = vpop.f32.mrf.mxu3  ;;  %5290 = vmatmul.bf16.gmra.mxu1 %v13526_v21  ;;  %5379 = vmatmul.bf16.gmra.mxu2 %v13558_v59 }
 0x6a4   :  { %v12210_v61 = vpop.f32.mrf.mxu0  ;;  %v9895_v54 = vpop.eup %9894  ;;  %v7309_v20 = vadd.f32 1.0, %v9893_v44 }
 0x6a5   :  { %7750 = vst [vmem:[#allocation16 + $0x358] sm:$0xff] %v9895_v54  ;;  %9896 = vpow2.f32 %v6989_v29 }
 0x6a6   :  { %9898 = vrcp.f32 %v7309_v20  ;;  %v5064_v10 = vpop.f32.mrf.mxu2  ;;  %5216 = vmatmul.bf16.gmra.mxu0 %v13559_v14 }
 0x6a7   :  { %v5065_v18 = vadd.f32 %v5064_v10, %v4976_v53  ;;  %v9465_v53 = vld [vmem:[#allocation14 + $0x4f8] sm:$0xf0] }
 0x6a8   :  { %v4977_v8 = vpop.f32.mrf.mxu1  ;;  %v8941_v32 = vor.u32 %v9465_v53, %v8940_v43  ;;  %v13563_v53 = vld [vmem:[#allocation29_spill] sm:$0xff] }
 0x6a9   :  { %v6651_v28 = vsub.f32 0.0, %v5065_v18  ;;  %v4978_v34 = vadd.f32 %v4977_v8, %v4889_v50  ;;  %v13561_v50 = vld [vmem:[#allocation45_spill] sm:$0xff] }
 0x6aa   :  { %5634 = vmatpush.bf16.msrb.mxu1 %v8941_v32 }
 0x6ab   :  { %v9897_v44 = vpop.eup %9896  ;;  %v7003_v63 = vmul.f32 1.442695, %v6651_v28  ;;  %v12218_v29 = vpop.f32.mrf.mxu3  ;;  %v4892_v28 = vadd.f32 %v12174_v48, %v4803_v0  ;;  %v4805_v48 = vadd.f32 %v12182_v36, %v12036_v17 }
 0x6ac   :  { %v12220_v54 = vpop.f32.mrf.mxu0  ;;  %v9899_v20 = vpop.eup %9898  ;;  %v7316_v56 = vadd.f32 1.0, %v9897_v44 }
 0x6ad   :  { %7757 = vst [vmem:[#allocation16 + $0x390] sm:$0xff] %v9899_v20  ;;  %9900 = vpow2.f32 %v7003_v63  ;;  %v13562_v20 = vld [vmem:[#allocation51_spill] sm:$0xff] }
 0x6ae   :  { %9902 = vrcp.f32 %v7316_v56  ;;  %v5066_v10 = vpop.f32.mrf.mxu2 }
 0x6af   :  { %v5067_v24 = vadd.f32 %v5066_v10, %v4978_v34 }
 0x6b0   :  { %v4980_v40 = vpop.f32.mrf.mxu1  ;;  %5132 = vmatmul.bf16.gmra.mxu3 %v13560_v22 }
 0x6b1   :  { %v6658_v18 = vsub.f32 0.0, %v5067_v24  ;;  %v4981_v34 = vadd.f32 %v4980_v40, %v4892_v28 }
 0x6b3   :  { %v9901_v51 = vpop.eup %9900  ;;  %v7017_v44 = vmul.f32 1.442695, %v6658_v18  ;;  %v12226_v63 = vpop.f32.mrf.mxu3  ;;  %5295 = vmatmul.bf16.gmra.mxu1 %v13561_v50  ;;  %5384 = vmatmul.bf16.gmra.mxu2 %v13562_v20  ;;  %v4894_v18 = vadd.f32 %v12184_v49, %v4805_v48  ;;  %v13564_v48 = vld [vmem:[#allocation25_spill] sm:$0xff] }
 0x6b4   :  { %v12228_v8 = vpop.f32.mrf.mxu0  ;;  %v9903_v56 = vpop.eup %9902  ;;  %v7323_v7 = vadd.f32 1.0, %v9901_v51 }
 0x6b5   :  { %7764 = vst [vmem:[#allocation16 + $0x3c8] sm:$0xff] %v9903_v56  ;;  %9904 = vpow2.f32 %v7017_v44  ;;  %v8464_v56 = vld [vmem:[#allocation14 + $0x128] sm:$0xf] }
 0x6b6   :  { %9906 = vrcp.f32 %v7323_v7  ;;  %v5069_v43 = vpop.f32.mrf.mxu2  ;;  %5221 = vmatmul.bf16.gmra.mxu0 %v13563_v53  ;;  %v9346_v7 = vld [vmem:[#allocation14 + $0x140] sm:$0xf0] }
 0x6b7   :  { %v5070_v10 = vadd.f32 %v5069_v43, %v4981_v34  ;;  %v8465_v34 = vor.u32 %v9346_v7, %v8464_v56  ;;  %v4808_v43 = vadd.f32 %v12190_v13, %v12036_v17  ;;  %v9136_v7 = vld [vmem:[#allocation14 + $0x668] sm:$0xf] }
 0x6b8   :  { %v4982_v32 = vpop.f32.mrf.mxu1 }
 0x6b9   :  { %v6665_v0 = vsub.f32 0.0, %v5070_v10  ;;  %v4983_v28 = vadd.f32 %v4982_v32, %v4894_v18  ;;  %5457 = vmatpush.bf16.msrb.mxu3 %v8465_v34  ;;  %v13565_v18 = vld [vmem:[#allocation46_spill] sm:$0xff] }
 0x6bb   :  { %v9905_v24 = vpop.eup %9904  ;;  %v7031_v50 = vmul.f32 1.442695, %v6665_v0  ;;  %v12236_v20 = vpop.f32.mrf.mxu3 }
 0x6bc   :  { %v12238_v51 = vpop.f32.mrf.mxu0  ;;  %v9907_v44 = vpop.eup %9906  ;;  %v7330_v40 = vadd.f32 1.0, %v9905_v24  ;;  %v4897_v24 = vadd.f32 %v12192_v12, %v4808_v43  ;;  %v8688_v43 = vld [vmem:[#allocation14 + $0x2e8] sm:$0xf] }
 0x6bd   :  { %7771 = vst [vmem:[#allocation16 + $0x400] sm:$0xff] %v9907_v44  ;;  %9908 = vpow2.f32 %v7031_v50 }
 0x6be   :  { %9910 = vrcp.f32 %v7330_v40  ;;  %v5071_v36 = vpop.f32.mrf.mxu2  ;;  %v13566_v40 = vld [vmem:[#allocation53_spill] sm:$0xff] }
 0x6bf   :  { %v5072_v10 = vadd.f32 %v5071_v36, %v4983_v28  ;;  %v9514_v36 = vld [vmem:[#allocation14 + $0x680] sm:$0xf0] }
 0x6c0   :  { %v4985_v49 = vpop.f32.mrf.mxu1  ;;  %5137 = vmatmul.bf16.gmra.mxu3 %v13564_v48  ;;  %v9137_v12 = vor.u32 %v9514_v36, %v9136_v7  ;;  %v4810_v48 = vadd.f32 %v12200_v9, %v12036_v17  ;;  %v8912_v9 = vld [vmem:[#allocation14 + $0x4a8] sm:$0xf] }
 0x6c1   :  { %v6672_v0 = vsub.f32 0.0, %v5072_v10  ;;  %v4986_v28 = vadd.f32 %v4985_v49, %v4897_v24  ;;  %v13567_v10 = vld [vmem:[#allocation31_spill] sm:$0xff] }
 0x6c2   :  { %5724 = vmatpush.bf16.msrb.mxu2 %v9137_v12  ;;  %v4899_v49 = vadd.f32 %v12202_v46, %v4810_v48 }
 0x6c3   :  { %v9909_v53 = vpop.eup %9908  ;;  %v7045_v44 = vmul.f32 1.442695, %v6672_v0  ;;  %v12244_v50 = vpop.f32.mrf.mxu3  ;;  %5300 = vmatmul.bf16.gmra.mxu1 %v13565_v18  ;;  %5389 = vmatmul.bf16.gmra.mxu2 %v13566_v40  ;;  %v9402_v0 = vld [vmem:[#allocation14 + $0x300] sm:$0xf0] }
 0x6c4   :  { %v12246_v32 = vpop.f32.mrf.mxu0  ;;  %v9911_v56 = vpop.eup %9910  ;;  %v7337_v13 = vadd.f32 1.0, %v9909_v53  ;;  %v8689_v22 = vor.u32 %v9402_v0, %v8688_v43 }
 0x6c5   :  { %7778 = vst [vmem:[#allocation16 + $0x438] sm:$0xff] %v9911_v56  ;;  %9912 = vpow2.f32 %v7045_v44 }
 0x6c6   :  { %9914 = vrcp.f32 %v7337_v13  ;;  %v5074_v34 = vpop.f32.mrf.mxu2  ;;  %5226 = vmatmul.bf16.gmra.mxu0 %v13567_v10 }
 0x6c7   :  { %v5075_v18 = vadd.f32 %v5074_v34, %v4986_v28  ;;  %5546 = vmatpush.bf16.msrb.mxu0 %v8689_v22  ;;  %v9458_v28 = vld [vmem:[#allocation14 + $0x4c0] sm:$0xf0]  ;;  %v4813_v22 = vadd.f32 %v12208_v58, %v12036_v17 }
 0x6c8   :  { %v4987_v40 = vpop.f32.mrf.mxu1  ;;  %v8913_v12 = vor.u32 %v9458_v28, %v8912_v9 }
 0x6c9   :  { %v6679_v53 = vsub.f32 0.0, %v5075_v18  ;;  %v4988_v10 = vadd.f32 %v4987_v40, %v4899_v49  ;;  %v4902_v0 = vadd.f32 %v12210_v61, %v4813_v22  ;;  %v13568_v49 = vld [vmem:[#allocation55_spill] sm:$0xff]  ;;  %v4815_v61 = vadd.f32 %v12218_v29, %v12036_v17 }
 0x6ca   :  { %5635 = vmatpush.bf16.msrb.mxu1 %v8913_v12 }
 0x6cb   :  { %v9913_v44 = vpop.eup %9912  ;;  %v7059_v24 = vmul.f32 1.442695, %v6679_v53  ;;  %v12254_v56 = vpop.f32.mrf.mxu3  ;;  %v4904_v22 = vadd.f32 %v12220_v54, %v4815_v61  ;;  %v13570_v61 = vld [vmem:[#allocation28_spill] sm:$0xff] }
 0x6cc   :  { %v12256_v13 = vpop.f32.mrf.mxu0  ;;  %v9915_v7 = vpop.eup %9914  ;;  %v7344_v36 = vadd.f32 1.0, %v9913_v44 }
 0x6cd   :  { %7785 = vst [vmem:[#allocation16 + $0x470] sm:$0xff] %v9915_v7  ;;  %9916 = vpow2.f32 %v7059_v24 }
 0x6ce   :  { %9918 = vrcp.f32 %v7344_v36  ;;  %v5076_v34 = vpop.f32.mrf.mxu2  ;;  %v13569_v36 = vld [vmem:[#allocation33_spill] sm:$0xff] }
 0x6cf   :  { %v5077_v18 = vadd.f32 %v5076_v34, %v4988_v10 }
 0x6d0   :  { %v4990_v46 = vpop.f32.mrf.mxu1  ;;  %5142 = vmatmul.bf16.gmra.mxu3 %v13489_v3 }
 0x6d1   :  { %v6686_v48 = vsub.f32 0.0, %v5077_v18  ;;  %v4991_v10 = vadd.f32 %v4990_v46, %v4902_v0 }
 0x6d3   :  { %v9917_v43 = vpop.eup %9916  ;;  %v7073_v53 = vmul.f32 1.442695, %v6686_v48  ;;  %v12262_v44 = vpop.f32.mrf.mxu3  ;;  %5305 = vmatmul.bf16.gmra.mxu1 %v11268_v60  ;;  %5394 = vmatmul.bf16.gmra.mxu2 %v13568_v49 }
 0x6d4   :  { %v12264_v40 = vpop.f32.mrf.mxu0  ;;  %v9919_v24 = vpop.eup %9918  ;;  %v7351_v58 = vadd.f32 1.0, %v9917_v43 }
 0x6d5   :  { %7792 = vst [vmem:[#allocation16 + $0x4a8] sm:$0xff] %v9919_v24  ;;  %9920 = vpow2.f32 %v7073_v53  ;;  %v8436_v24 = vld [vmem:[#allocation14 + $0xf0] sm:$0xf] }
 0x6d6   :  { %9922 = vrcp.f32 %v7351_v58  ;;  %v5079_v7 = vpop.f32.mrf.mxu2  ;;  %5231 = vmatmul.bf16.gmra.mxu0 %v13569_v36  ;;  %v9339_v58 = vld [vmem:[#allocation14 + $0x108] sm:$0xf0] }
 0x6d7   :  { %v5080_v9 = vadd.f32 %v5079_v7, %v4991_v10  ;;  %v8437_v10 = vor.u32 %v9339_v58, %v8436_v24  ;;  %v4818_v7 = vadd.f32 %v12226_v63, %v12036_v17  ;;  %v9108_v58 = vld [vmem:[#allocation14 + $0x630] sm:$0xf] }
 0x6d8   :  { %v4992_v28 = vpop.f32.mrf.mxu1 }
 0x6d9   :  { %v6693_v34 = vsub.f32 0.0, %v5080_v9  ;;  %v4993_v0 = vadd.f32 %v4992_v28, %v4904_v22  ;;  %5458 = vmatpush.bf16.msrb.mxu3 %v8437_v10  ;;  %v13571_v22 = vld [vmem:[#allocation50_spill] sm:$0xff] }
 0x6db   :  { %v9921_v12 = vpop.eup %9920  ;;  %v7087_v18 = vmul.f32 1.442695, %v6693_v34  ;;  %v12272_v48 = vpop.f32.mrf.mxu3 }
 0x6dc   :  { %v12274_v43 = vpop.f32.mrf.mxu0  ;;  %v9923_v53 = vpop.eup %9922  ;;  %v7358_v46 = vadd.f32 1.0, %v9921_v12  ;;  %v4907_v12 = vadd.f32 %v12228_v8, %v4818_v7  ;;  %v8660_v7 = vld [vmem:[#allocation14 + $0x2b0] sm:$0xf] }
 0x6dd   :  { %7799 = vst [vmem:[#allocation16 + $0x4e0] sm:$0xff] %v9923_v53  ;;  %9924 = vpow2.f32 %v7087_v18 }
 0x6de   :  { %9926 = vrcp.f32 %v7358_v46  ;;  %v5081_v29 = vpop.f32.mrf.mxu2  ;;  %v13572_v46 = vld [vmem:[#allocation57_spill] sm:$0xff] }
 0x6df   :  { %v5082_v9 = vadd.f32 %v5081_v29, %v4993_v0  ;;  %v9507_v29 = vld [vmem:[#allocation14 + $0x648] sm:$0xf0] }
 0x6e0   :  { %v4995_v54 = vpop.f32.mrf.mxu1  ;;  %5147 = vmatmul.bf16.gmra.mxu3 %v13570_v61  ;;  %v9109_v8 = vor.u32 %v9507_v29, %v9108_v58  ;;  %v4820_v61 = vadd.f32 %v12236_v20, %v12036_v17  ;;  %v8884_v20 = vld [vmem:[#allocation14 + $0x470] sm:$0xf] }
 0x6e1   :  { %v6700_v34 = vsub.f32 0.0, %v5082_v9  ;;  %v4996_v0 = vadd.f32 %v4995_v54, %v4907_v12  ;;  %v13573_v9 = vld [vmem:[#allocation35_spill] sm:$0xff] }
 0x6e2   :  { %5725 = vmatpush.bf16.msrb.mxu2 %v9109_v8  ;;  %v4909_v54 = vadd.f32 %v12238_v51, %v4820_v61 }
 0x6e3   :  { %v9925_v36 = vpop.eup %9924  ;;  %v7101_v53 = vmul.f32 1.442695, %v6700_v34  ;;  %v12280_v18 = vpop.f32.mrf.mxu3  ;;  %5310 = vmatmul.bf16.gmra.mxu1 %v13571_v22  ;;  %5399 = vmatmul.bf16.gmra.mxu2 %v13572_v46  ;;  %v9395_v34 = vld [vmem:[#allocation14 + $0x2c8] sm:$0xf0] }
 0x6e4   :  { %v12282_v28 = vpop.f32.mrf.mxu0  ;;  %v9927_v24 = vpop.eup %9926  ;;  %v7365_v63 = vadd.f32 1.0, %v9925_v36  ;;  %v8661_v49 = vor.u32 %v9395_v34, %v8660_v7 }
 0x6e5   :  { %7806 = vst [vmem:[#allocation16 + $0x518] sm:$0xff] %v9927_v24  ;;  %9928 = vpow2.f32 %v7101_v53 }
 0x6e6   :  { %9930 = vrcp.f32 %v7365_v63  ;;  %v5084_v10 = vpop.f32.mrf.mxu2  ;;  %5236 = vmatmul.bf16.gmra.mxu0 %v13573_v9 }
 0x6e7   :  { %v5085_v22 = vadd.f32 %v5084_v10, %v4996_v0  ;;  %5547 = vmatpush.bf16.msrb.mxu0 %v8661_v49  ;;  %v9451_v0 = vld [vmem:[#allocation14 + $0x488] sm:$0xf0]  ;;  %v4823_v49 = vadd.f32 %v12244_v50, %v12036_v17 }
 0x6e8   :  { %v4997_v46 = vpop.f32.mrf.mxu1  ;;  %v8885_v8 = vor.u32 %v9451_v0, %v8884_v20  ;;  %v13576_v20 = vld [vmem:[#allocation37_spill] sm:$0xff] }
 0x6e9   :  { %v6707_v36 = vsub.f32 0.0, %v5085_v22  ;;  %v4998_v9 = vadd.f32 %v4997_v46, %v4909_v54  ;;  %v4912_v34 = vadd.f32 %v12246_v32, %v4823_v49  ;;  %v13574_v54 = vld [vmem:[#allocation52_spill] sm:$0xff]  ;;  %v4825_v32 = vadd.f32 %v12254_v56, %v12036_v17 }
 0x6ea   :  { %5636 = vmatpush.bf16.msrb.mxu1 %v8885_v8 }
 0x6eb   :  { %v9929_v53 = vpop.eup %9928  ;;  %v7115_v12 = vmul.f32 1.442695, %v6707_v36  ;;  %v12290_v24 = vpop.f32.mrf.mxu3 }
 0x6ec   :  { %v12292_v63 = vpop.f32.mrf.mxu0  ;;  %v9931_v58 = vpop.eup %9930  ;;  %v7372_v29 = vadd.f32 1.0, %v9929_v53 }
 0x6ed   :  { %7813 = vst [vmem:[#allocation16 + $0x550] sm:$0xff] %v9931_v58  ;;  %9932 = vpow2.f32 %v7115_v12  ;;  %v13575_v12 = vld [vmem:[#allocation59_spill] sm:$0xff] }
 0x6ee   :  { %9934 = vrcp.f32 %v7372_v29  ;;  %v5086_v10 = vpop.f32.mrf.mxu2 }
 0x6ef   :  { %v5087_v22 = vadd.f32 %v5086_v10, %v4998_v9 }
 0x6f0   :  { %v5000_v51 = vpop.f32.mrf.mxu1  ;;  %5152 = vmatmul.bf16.gmra.mxu3 %v13543_v5 }
 0x6f1   :  { %v6714_v61 = vsub.f32 0.0, %v5087_v22  ;;  %v5001_v9 = vadd.f32 %v5000_v51, %v4912_v34  ;;  %v4914_v22 = vadd.f32 %v12256_v13, %v4825_v32  ;;  %v13577_v32 = vld [vmem:[#allocation32_spill] sm:$0xff] }
 0x6f3   :  { %v9933_v7 = vpop.eup %9932  ;;  %v7129_v36 = vmul.f32 1.442695, %v6714_v61  ;;  %v12298_v53 = vpop.f32.mrf.mxu3  ;;  %5315 = vmatmul.bf16.gmra.mxu1 %v13574_v54  ;;  %5404 = vmatmul.bf16.gmra.mxu2 %v13575_v12  ;;  %v8576_v54 = vld [vmem:[#allocation14 + $0x208] sm:$0xf] }
 0x6f4   :  { %v12300_v46 = vpop.f32.mrf.mxu0  ;;  %v9935_v58 = vpop.eup %9934  ;;  %v7379_v50 = vadd.f32 1.0, %v9933_v7 }
 0x6f5   :  { %7820 = vst [vmem:[#allocation16 + $0x588] sm:$0xff] %v9935_v58  ;;  %9936 = vpow2.f32 %v7129_v36  ;;  %v8408_v58 = vld [vmem:[#allocation14 + $0xb8] sm:$0xf] }
 0x6f6   :  { %9938 = vrcp.f32 %v7379_v50  ;;  %v5089_v29 = vpop.f32.mrf.mxu2  ;;  %5241 = vmatmul.bf16.gmra.mxu0 %v13576_v20  ;;  %v9332_v50 = vld [vmem:[#allocation14 + $0xd0] sm:$0xf0] }
 0x6f7   :  { %v5090_v0 = vadd.f32 %v5089_v29, %v5001_v9  ;;  %v8409_v9 = vor.u32 %v9332_v50, %v8408_v58  ;;  %v4828_v29 = vadd.f32 %v12262_v44, %v12036_v17  ;;  %v9080_v50 = vld [vmem:[#allocation14 + $0x5f8] sm:$0xf] }
 0x6f8   :  { %v5002_v10 = vpop.f32.mrf.mxu1 }
 0x6f9   :  { %v6721_v8 = vsub.f32 0.0, %v5090_v0  ;;  %v5003_v34 = vadd.f32 %v5002_v10, %v4914_v22  ;;  %5459 = vmatpush.bf16.msrb.mxu3 %v8409_v9  ;;  %v13578_v22 = vld [vmem:[#allocation54_spill] sm:$0xff] }
 0x6fb   :  { %v9937_v49 = vpop.eup %9936  ;;  %v7143_v61 = vmul.f32 1.442695, %v6721_v8  ;;  %v12308_v12 = vpop.f32.mrf.mxu3 }
 0x6fc   :  { %v12310_v7 = vpop.f32.mrf.mxu0  ;;  %v9939_v36 = vpop.eup %9938  ;;  %v7386_v51 = vadd.f32 1.0, %v9937_v49  ;;  %v4917_v49 = vadd.f32 %v12264_v40, %v4828_v29  ;;  %v8632_v29 = vld [vmem:[#allocation14 + $0x278] sm:$0xf] }
 0x6fd   :  { %7827 = vst [vmem:[#allocation16 + $0x5c0] sm:$0xff] %v9939_v36  ;;  %9940 = vpow2.f32 %v7143_v61 }
 0x6fe   :  { %9942 = vrcp.f32 %v7386_v51  ;;  %v5091_v56 = vpop.f32.mrf.mxu2  ;;  %v13579_v51 = vld [vmem:[#allocation61_spill] sm:$0xff] }
 0x6ff   :  { %v5092_v0 = vadd.f32 %v5091_v56, %v5003_v34  ;;  %v9500_v56 = vld [vmem:[#allocation14 + $0x610] sm:$0xf0] }
 0x700   :  { %v5005_v13 = vpop.f32.mrf.mxu1  ;;  %5157 = vmatmul.bf16.gmra.mxu3 %v13577_v32  ;;  %v9081_v40 = vor.u32 %v9500_v56, %v9080_v50 }
 0x701   :  { %v6728_v8 = vsub.f32 0.0, %v5092_v0  ;;  %v5006_v34 = vadd.f32 %v5005_v13, %v4917_v49  ;;  %v9388_v0 = vld [vmem:[#allocation14 + $0x290] sm:$0xf0]  ;;  %v10473_v49 = vld [vmem:[%s13361_s8] sm:$0xff] }
 0x702   :  { %v8633_v32 = vor.u32 %v9388_v0, %v8632_v29  ;;  %5726 = vmatpush.bf16.msrb.mxu2 %v9081_v40 }
 0x703   :  { %v9941_v20 = vpop.eup %9940  ;;  %v7157_v36 = vmul.f32 1.442695, %v6728_v8  ;;  %v12316_v61 = vpop.f32.mrf.mxu3  ;;  %5320 = vmatmul.bf16.gmra.mxu1 %v13578_v22  ;;  %5409 = vmatmul.bf16.gmra.mxu2 %v13579_v51  ;;  %v4830_v8 = vadd.f32 %v12272_v48, %v12036_v17 }
 0x704   :  { %v12318_v10 = vpop.f32.mrf.mxu0  ;;  %v9943_v58 = vpop.eup %9942  ;;  %v7393_v44 = vadd.f32 1.0, %v9941_v20  ;;  %5548 = vmatpush.bf16.msrb.mxu0 %v8633_v32  ;;  %v8856_v32 = vld [vmem:[#allocation14 + $0x438] sm:$0xf] }
 0x705   :  { %7834 = vst [vmem:[#allocation16 + $0x5f8] sm:$0xff] %v9943_v58  ;;  %9944 = vpow2.f32 %v7157_v36  ;;  %v4919_v13 = vadd.f32 %v12274_v43, %v4830_v8  ;;  %v12329_v58 = vperm.slane %v10473_v49, 3 }
 0x706   :  { %9946 = vrcp.f32 %v7393_v44  ;;  %v5094_v9 = vpop.f32.mrf.mxu2  ;;  %5246 = vmatmul.bf16.gmra.mxu0 %v13519_v39 }
 0x707   :  { %v5095_v22 = vadd.f32 %v5094_v9, %v5006_v34  ;;  %v9444_v34 = vld [vmem:[#allocation14 + $0x450] sm:$0xf0]  ;;  %v5109_v40 = vadd.f32 %v12280_v18, %v12329_v58 }
 0x708   :  { %v5007_v51 = vpop.f32.mrf.mxu1  ;;  %v8857_v9 = vor.u32 %v9444_v34, %v8856_v32  ;;  %v13582_v32 = vld [vmem:[#allocation41_spill] sm:$0xff] }
 0x709   :  { %v6735_v20 = vsub.f32 0.0, %v5095_v22  ;;  %v5008_v22 = vadd.f32 %v5007_v51, %v4919_v13  ;;  %v13580_v13 = vld [vmem:[#allocation56_spill] sm:$0xff] }
 0x70a   :  { %5637 = vmatpush.bf16.msrb.mxu1 %v8857_v9 }
 0x70b   :  { %v9945_v36 = vpop.eup %9944  ;;  %v7171_v44 = vmul.f32 1.442695, %v6735_v20  ;;  %v12331_v50 = vpop.f32.mrf.mxu3 }
 0x70c   :  { %v12333_v56 = vpop.f32.mrf.mxu0  ;;  %v9947_v17 = vpop.eup %9946  ;;  %v7400_v48 = vadd.f32 1.0, %v9945_v36  ;;  %v5198_v36 = vadd.f32 %v12282_v28, %v5109_v40  ;;  %v5111_v28 = vadd.f32 %v12290_v24, %v12329_v58 }
 0x70d   :  { %7841 = vst [vmem:[#allocation16 + $0x630] sm:$0xff] %v9947_v17  ;;  %9948 = vpow2.f32 %v7171_v44  ;;  %v13581_v17 = vld [vmem:[#allocation62_spill] sm:$0xff] }
 0x70e   :  { %9950 = vrcp.f32 %v7400_v48  ;;  %v5096_v43 = vpop.f32.mrf.mxu2 }
 0x70f   :  { %v5097_v29 = vadd.f32 %v5096_v43, %v5008_v22 }
 0x710   :  { %5162 = vmatmul.bf16.gmra.mxu3 %v11152_v41  ;;  %v5286_v0 = vpop.f32.mrf.mxu1 }
 0x711   :  { %v6742_v8 = vsub.f32 0.0, %v5097_v29  ;;  %v5287_v22 = vadd.f32 %v5286_v0, %v5198_v36 }
 0x713   :  { %v9949_v20 = vpop.eup %9948  ;;  %v7185_v49 = vmul.f32 1.442695, %v6742_v8  ;;  %v12339_v44 = vpop.f32.mrf.mxu3  ;;  %5325 = vmatmul.bf16.gmra.mxu1 %v13580_v13  ;;  %5414 = vmatmul.bf16.gmra.mxu2 %v13581_v17  ;;  %v5200_v8 = vadd.f32 %v12292_v63, %v5111_v28  ;;  %v13583_v63 = vld [vmem:[#allocation36_spill] sm:$0xff] }
 0x714   :  { %v12341_v51 = vpop.f32.mrf.mxu0  ;;  %v9951_v48 = vpop.eup %9950  ;;  %v7407_v18 = vadd.f32 1.0, %v9949_v20 }
 0x715   :  { %7848 = vst [vmem:[#allocation16 + $0x668] sm:$0xff] %v9951_v48  ;;  %9952 = vpow2.f32 %v7185_v49  ;;  %v8380_v48 = vld [vmem:[#allocation14 + $0x80] sm:$0xf] }
 0x716   :  { %9954 = vrcp.f32 %v7407_v18  ;;  %5251 = vmatmul.bf16.gmra.mxu0 %v13582_v32  ;;  %v5375_v34 = vpop.f32.mrf.mxu2  ;;  %v9325_v18 = vld [vmem:[#allocation14 + $0x98] sm:$0xf0] }
 0x717   :  { %v5376_v43 = vadd.f32 %v5375_v34, %v5287_v22  ;;  %v8381_v22 = vor.u32 %v9325_v18, %v8380_v48  ;;  %v5114_v34 = vadd.f32 %v12298_v53, %v12329_v58  ;;  %v9052_v18 = vld [vmem:[#allocation14 + $0x5c0] sm:$0xf] }
 0x718   :  { %v5288_v9 = vpop.f32.mrf.mxu1 }
 0x719   :  { %v6526_v40 = vsub.f32 0.0, %v5376_v43  ;;  %v5289_v36 = vadd.f32 %v5288_v9, %v5200_v8  ;;  %5460 = vmatpush.bf16.msrb.mxu3 %v8381_v22  ;;  %v13584_v8 = vld [vmem:[#allocation58_spill] sm:$0xff] }
 0x71a   :  { %v13586_v22 = vld [vmem:[#allocation42_spill] sm:$0xff] }
 0x71b   :  { %v9953_v29 = vpop.eup %9952  ;;  %v6753_v13 = vmul.f32 1.442695, %v6526_v40  ;;  %v12349_v17 = vpop.f32.mrf.mxu3 }
 0x71c   :  { %v12351_v20 = vpop.f32.mrf.mxu0  ;;  %v9955_v49 = vpop.eup %9954  ;;  %v7414_v0 = vadd.f32 1.0, %v9953_v29  ;;  %v5203_v29 = vadd.f32 %v12300_v46, %v5114_v34 }
 0x71d   :  { %7855 = vst [vmem:[#allocation16 + $0x6a0] sm:$0xff] %v9955_v49  ;;  %9956 = vpow2.f32 %v6753_v13 }
 0x71e   :  { %9958 = vrcp.f32 %v7414_v0  ;;  %v5377_v24 = vpop.f32.mrf.mxu2  ;;  %v13585_v0 = vld [vmem:[#allocation63_spill] sm:$0xff] }
 0x71f   :  { %v5378_v43 = vadd.f32 %v5377_v24, %v5289_v36  ;;  %v9493_v24 = vld [vmem:[#allocation14 + $0x5d8] sm:$0xf0] }
 0x720   :  { %5167 = vmatmul.bf16.gmra.mxu3 %v13583_v63  ;;  %v5291_v28 = vpop.f32.mrf.mxu1  ;;  %v9053_v34 = vor.u32 %v9493_v24, %v9052_v18  ;;  %v5116_v63 = vadd.f32 %v12308_v12, %v12329_v58  ;;  %v8828_v12 = vld [vmem:[#allocation14 + $0x400] sm:$0xf] }
 0x721   :  { %v6533_v40 = vsub.f32 0.0, %v5378_v43  ;;  %v5292_v36 = vadd.f32 %v5291_v28, %v5203_v29  ;;  %v8604_v43 = vld [vmem:[#allocation14 + $0x240] sm:$0xf] }
 0x722   :  { %5727 = vmatpush.bf16.msrb.mxu2 %v9053_v34  ;;  %v5205_v28 = vadd.f32 %v12310_v7, %v5116_v63  ;;  %v13587_v7 = vld [vmem:[#allocation38_spill] sm:$0xff] }
 0x723   :  { %v9957_v32 = vpop.eup %9956  ;;  %v6767_v49 = vmul.f32 1.442695, %v6533_v40  ;;  %v12357_v13 = vpop.f32.mrf.mxu3  ;;  %5330 = vmatmul.bf16.gmra.mxu1 %v13584_v8  ;;  %5419 = vmatmul.bf16.gmra.mxu2 %v13585_v0  ;;  %v9381_v40 = vld [vmem:[#allocation14 + $0x258] sm:$0xf0] }
 0x724   :  { %v12359_v9 = vpop.f32.mrf.mxu0  ;;  %v9959_v48 = vpop.eup %9958  ;;  %v7198_v53 = vadd.f32 1.0, %v9957_v32  ;;  %v8605_v41 = vor.u32 %v9381_v40, %v8604_v43 }
 0x725   :  { %7862 = vst [vmem:[#allocation16 + $0x6d8] sm:$0xff] %v9959_v48  ;;  %9960 = vpow2.f32 %v6767_v49 }
 0x726   :  { %9962 = vrcp.f32 %v7198_v53  ;;  %5256 = vmatmul.bf16.gmra.mxu0 %v13586_v22  ;;  %v5380_v46 = vpop.f32.mrf.mxu2 }
 0x727   :  { %v5381_v8 = vadd.f32 %v5380_v46, %v5292_v36  ;;  %5549 = vmatpush.bf16.msrb.mxu0 %v8605_v41  ;;  %v9437_v36 = vld [vmem:[#allocation14 + $0x418] sm:$0xf0]  ;;  %v5119_v41 = vadd.f32 %v12316_v61, %v12329_v58 }
 0x728   :  { %v5293_v0 = vpop.f32.mrf.mxu1  ;;  %v8829_v34 = vor.u32 %v9437_v36, %v8828_v12  ;;  %v13590_v12 = vld [vmem:[#allocation43_spill] sm:$0xff] }
 0x729   :  { %v6540_v32 = vsub.f32 0.0, %v5381_v8  ;;  %v5294_v22 = vadd.f32 %v5293_v0, %v5205_v28  ;;  %v13588_v28 = vld [vmem:[#allocation60_spill] sm:$0xff] }
 0x72a   :  { %5638 = vmatpush.bf16.msrb.mxu1 %v8829_v34  ;;  %v5121_v34 = vadd.f32 %v12331_v50, %v12329_v58  ;;  %v9374_v50 = vld [vmem:[#allocation14 + $0x220] sm:$0xf0] }
 0x72b   :  { %v9961_v49 = vpop.eup %9960  ;;  %v6781_v29 = vmul.f32 1.442695, %v6540_v32  ;;  %v12367_v48 = vpop.f32.mrf.mxu3  ;;  %v5208_v32 = vadd.f32 %v12318_v10, %v5119_v41  ;;  %v9318_v10 = vld [vmem:[#allocation14 + $0x60] sm:$0xf0] }
 0x72c   :  { %v12369_v53 = vpop.f32.mrf.mxu0  ;;  %v9963_v18 = vpop.eup %9962  ;;  %v7205_v24 = vadd.f32 1.0, %v9961_v49 }
 0x72d   :  { %7646 = vst [vmem:[#allocation16 + $0x18] sm:$0xff] %v9963_v18  ;;  %9964 = vpow2.f32 %v6781_v29  ;;  %v13589_v18 = vld [vmem:[#allocation64_spill] sm:$0xff] }
 0x72e   :  { %9966 = vrcp.f32 %v7205_v24  ;;  %v5382_v46 = vpop.f32.mrf.mxu2 }
 0x72f   :  { %v5383_v8 = vadd.f32 %v5382_v46, %v5294_v22  ;;  %v8352_v46 = vld [vmem:[#allocation14 + $0x48] sm:$0xf] }
 0x730   :  { %5172 = vmatmul.bf16.gmra.mxu3 %v13587_v7  ;;  %v5296_v63 = vpop.f32.mrf.mxu1  ;;  %v9311_v7 = vld [vmem:[#allocation14 + $0x28] sm:$0xf0] }
 0x731   :  { %v6547_v43 = vsub.f32 0.0, %v5383_v8  ;;  %v5297_v22 = vadd.f32 %v5296_v63, %v5208_v32  ;;  %v8353_v8 = vor.u32 %v9318_v10, %v8352_v46 }
 0x733   :  { %v9965_v40 = vpop.eup %9964  ;;  %v6795_v49 = vmul.f32 1.442695, %v6547_v43  ;;  %v12375_v29 = vpop.f32.mrf.mxu3  ;;  %5335 = vmatmul.bf16.gmra.mxu1 %v13588_v28  ;;  %5424 = vmatmul.bf16.gmra.mxu2 %v13589_v18  ;;  %v8324_v18 = vld [vmem:[#allocation14 + $0x10] sm:$0xf] }
 0x734   :  { %v12377_v0 = vpop.f32.mrf.mxu0  ;;  %v9967_v24 = vpop.eup %9966  ;;  %v7212_v61 = vadd.f32 1.0, %v9965_v40  ;;  %5461 = vmatpush.bf16.msrb.mxu3 %v8353_v8 }
 0x735   :  { %7653 = vst [vmem:[#allocation16 + $0x50] sm:$0xff] %v9967_v24  ;;  %9968 = vpow2.f32 %v6795_v49  ;;  %v5210_v49 = vadd.f32 %v12333_v56, %v5121_v34  ;;  %v5124_v56 = vadd.f32 %v12339_v44, %v12329_v58 }
 0x736   :  { %9970 = vrcp.f32 %v7212_v61  ;;  %5261 = vmatmul.bf16.gmra.mxu0 %v13590_v12  ;;  %v5385_v36 = vpop.f32.mrf.mxu2  ;;  %v8325_v61 = vor.u32 %v9311_v7, %v8324_v18  ;;  %v8548_v7 = vld [vmem:[#allocation14 + $0x1d0] sm:$0xf]  ;;  %v9367_v18 = vld [vmem:[#allocation14 + $0x1e8] sm:$0xf0] }
 0x737   :  { %v5386_v41 = vadd.f32 %v5385_v36, %v5297_v22  ;;  %v8577_v36 = vor.u32 %v9374_v50, %v8576_v54 }
 0x738   :  { %v5298_v43 = vpop.f32.mrf.mxu1  ;;  %5462 = vmatpush.bf16.msrb.mxu3 %v8325_v61  ;;  %v9486_v61 = vld [vmem:[#allocation14 + $0x5a0] sm:$0xf0] }
 0x739   :  { %v6554_v28 = vsub.f32 0.0, %v5386_v41  ;;  %v5299_v22 = vadd.f32 %v5298_v43, %v5210_v49  ;;  %5550 = vmatpush.bf16.msrb.mxu0 %v8577_v36  ;;  %v8549_v41 = vor.u32 %v9367_v18, %v8548_v7 }
 0x73b   :  { %v9969_v40 = vpop.eup %9968  ;;  %v6809_v63 = vmul.f32 1.442695, %v6554_v28  ;;  %v12385_v32 = vpop.f32.mrf.mxu3 }
 0x73c   :  { %v12387_v24 = vpop.f32.mrf.mxu0  ;;  %v9971_v12 = vpop.eup %9970  ;;  %v7219_v39 = vadd.f32 1.0, %v9969_v40 }
 0x73d   :  { %7660 = vst [vmem:[#allocation16 + $0x88] sm:$0xff] %v9971_v12  ;;  %9972 = vpow2.f32 %v6809_v63  ;;  %v5213_v12 = vadd.f32 %v12341_v51, %v5124_v56  ;;  %5551 = vmatpush.bf16.msrb.mxu0 %v8549_v41  ;;  %v9024_v63 = vld [vmem:[#allocation14 + $0x588] sm:$0xf] }
 0x73e   :  { %9974 = vrcp.f32 %v7219_v39  ;;  %v5387_v46 = vpop.f32.mrf.mxu2  ;;  %v9025_v50 = vor.u32 %v9486_v61, %v9024_v63 }
 0x73f   :  { %v5388_v28 = vadd.f32 %v5387_v46, %v5299_v22  ;;  %v5126_v22 = vadd.f32 %v12349_v17, %v12329_v58 }
 0x740   :  { %5177 = vmatmul.bf16.gmra.mxu3 %v13492_v55  ;;  %v5301_v10 = vpop.f32.mrf.mxu1  ;;  %5728 = vmatpush.bf16.msrb.mxu2 %v9025_v50 }
 0x741   :  { %v6561_v34 = vsub.f32 0.0, %v5388_v28  ;;  %v5302_v49 = vadd.f32 %v5301_v10, %v5213_v12  ;;  %v5215_v7 = vadd.f32 %v12351_v20, %v5126_v22 }
 0x743   :  { %v9973_v8 = vpop.eup %9972  ;;  %v6823_v43 = vmul.f32 1.442695, %v6561_v34  ;;  %v12393_v54 = vpop.f32.mrf.mxu3  ;;  %5340 = vmatmul.bf16.gmra.mxu1 %v11352_v31  ;;  %5429 = vmatmul.bf16.gmra.mxu2 %v11392_v45 }
 0x744   :  { %v12395_v39 = vpop.f32.mrf.mxu0  ;;  %v9975_v44 = vpop.eup %9974  ;;  %v7226_v40 = vadd.f32 1.0, %v9973_v8 }
 0x745   :  { %7667 = vst [vmem:[#allocation16 + $0xc0] sm:$0xff] %v9975_v44  ;;  %9976 = vpow2.f32 %v6823_v43  ;;  %v8800_v43 = vld [vmem:[#allocation14 + $0x3c8] sm:$0xf]  ;;  %v9430_v44 = vld [vmem:[#allocation14 + $0x3e0] sm:$0xf0] }
 0x746   :  { %9978 = vrcp.f32 %v7226_v40  ;;  %5266 = vmatmul.bf16.gmra.mxu0 %v11233_v47  ;;  %v5390_v51 = vpop.f32.mrf.mxu2  ;;  %v8801_v40 = vor.u32 %v9430_v44, %v8800_v43 }
 0x747   :  { %v5391_v36 = vadd.f32 %v5390_v51, %v5302_v49  ;;  %v5129_v49 = vadd.f32 %v12357_v13, %v12329_v58 }
 0x748   :  { %v5303_v46 = vpop.f32.mrf.mxu1  ;;  %5639 = vmatpush.bf16.msrb.mxu1 %v8801_v40 }
 0x749   :  { %v6568_v56 = vsub.f32 0.0, %v5391_v36  ;;  %v5304_v12 = vadd.f32 %v5303_v46, %v5215_v7  ;;  %v5218_v50 = vadd.f32 %v12359_v9, %v5129_v49  ;;  %v5131_v9 = vadd.f32 %v12367_v48, %v12329_v58 }
 0x74a   :  { %v5134_v48 = vadd.f32 %v12375_v29, %v12329_v58 }
 0x74b   :  { %v9977_v28 = vpop.eup %9976  ;;  %v6837_v18 = vmul.f32 1.442695, %v6568_v56  ;;  %v12403_v34 = vpop.f32.mrf.mxu3  ;;  %v5220_v43 = vadd.f32 %v12369_v53, %v5131_v9 }
 0x74c   :  { %v12405_v10 = vpop.f32.mrf.mxu0  ;;  %v9979_v41 = vpop.eup %9978  ;;  %v7233_v8 = vadd.f32 1.0, %v9977_v28 }
 0x74d   :  { %7674 = vst [vmem:[#allocation16 + $0xf8] sm:$0xff] %v9979_v41  ;;  %9980 = vpow2.f32 %v6837_v18 }
 0x74e   :  { %9982 = vrcp.f32 %v7233_v8  ;;  %v5392_v17 = vpop.f32.mrf.mxu2 }
 0x74f   :  { %v5393_v63 = vadd.f32 %v5392_v17, %v5304_v12 }
 0x750   :  { %5182 = vmatmul.bf16.gmra.mxu3 %v11205_v35  ;;  %v5306_v20 = vpop.f32.mrf.mxu1 }
 0x751   :  { %v6575_v61 = vsub.f32 0.0, %v5393_v63  ;;  %v5307_v28 = vadd.f32 %v5306_v20, %v5218_v50 }
 0x753   :  { %v9981_v51 = vpop.eup %9980  ;;  %v6851_v22 = vmul.f32 1.442695, %v6575_v61  ;;  %v12411_v36 = vpop.f32.mrf.mxu3  ;;  %5345 = vmatmul.bf16.gmra.mxu1 %v11364_v23  ;;  %5434 = vmatmul.bf16.gmra.mxu2 %v11408_v19 }
 0x754   :  { %v12413_v46 = vpop.f32.mrf.mxu0  ;;  %v9983_v56 = vpop.eup %9982  ;;  %v7240_v13 = vadd.f32 1.0, %v9981_v51 }
 0x755   :  { %7681 = vst [vmem:[#allocation16 + $0x130] sm:$0xff] %v9983_v56  ;;  %9984 = vpow2.f32 %v6851_v22  ;;  %v5223_v56 = vadd.f32 %v12377_v0, %v5134_v48 }
 0x756   :  { %9986 = vrcp.f32 %v7240_v13  ;;  %5271 = vmatmul.bf16.gmra.mxu0 %v11248_v4  ;;  %v5395_v7 = vpop.f32.mrf.mxu2 }
 0x757   :  { %v5396_v18 = vadd.f32 %v5395_v7, %v5307_v28 }
 0x758   :  { %v5308_v41 = vpop.f32.mrf.mxu1 }
 0x759   :  { %v6582_v8 = vsub.f32 0.0, %v5396_v18  ;;  %v5309_v20 = vadd.f32 %v5308_v41, %v5220_v43  ;;  %v8996_v41 = vld [vmem:[#allocation14 + $0x550] sm:$0xf]  ;;  %v5136_v43 = vadd.f32 %v12385_v32, %v12329_v58 }
 0x75b   :  { %v9985_v12 = vpop.eup %9984  ;;  %v6865_v44 = vmul.f32 1.442695, %v6582_v8  ;;  %v12421_v17 = vpop.f32.mrf.mxu3  ;;  %v9479_v8 = vld [vmem:[#allocation14 + $0x568] sm:$0xf0] }
 0x75c   :  { %v12423_v40 = vpop.f32.mrf.mxu0  ;;  %v9987_v49 = vpop.eup %9986  ;;  %v7247_v63 = vadd.f32 1.0, %v9985_v12  ;;  %v8997_v0 = vor.u32 %v9479_v8, %v8996_v41 }
 0x75d   :  { %7688 = vst [vmem:[#allocation16 + $0x168] sm:$0xff] %v9987_v49  ;;  %9988 = vpow2.f32 %v6865_v44 }
 0x75e   :  { %9990 = vrcp.f32 %v7247_v63  ;;  %v5397_v61 = vpop.f32.mrf.mxu2  ;;  %5729 = vmatpush.bf16.msrb.mxu2 %v8997_v0 }
 0x75f   :  { %v5398_v51 = vadd.f32 %v5397_v61, %v5309_v20  ;;  %v5225_v61 = vadd.f32 %v12387_v24, %v5136_v43 }
 0x760   :  { %v5311_v50 = vpop.f32.mrf.mxu1  ;;  %5463 = vmatmul.bf16.vlgmr.msrb.gmra.mxu3 %v11009_v30 }
 0x761   :  { %v6589_v53 = vsub.f32 0.0, %v5398_v51  ;;  %v5312_v29 = vadd.f32 %v5311_v50, %v5223_v56 }
 0x763   :  { %v9989_v22 = vpop.eup %9988  ;;  %v6879_v13 = vmul.f32 1.442695, %v6589_v53  ;;  %v12429_v28 = vpop.f32.mrf.mxu3  ;;  %5350 = vmatmul.bf16.gmra.mxu1 %v11376_v27  ;;  %5439 = vmatmul.bf16.gmra.mxu2 %v11424_v52 }
 0x764   :  { %v12431_v7 = vpop.f32.mrf.mxu0  ;;  %v9991_v9 = vpop.eup %9990  ;;  %v7254_v18 = vadd.f32 1.0, %v9989_v22 }
 0x765   :  { %7695 = vst [vmem:[#allocation16 + $0x1a0] sm:$0xff] %v9991_v9  ;;  %9992 = vpow2.f32 %v6879_v13  ;;  %v8772_v13 = vld [vmem:[#allocation14 + $0x390] sm:$0xf]  ;;  %v9423_v9 = vld [vmem:[#allocation14 + $0x3a8] sm:$0xf0] }
 0x766   :  { %9994 = vrcp.f32 %v7254_v18  ;;  %v5400_v12 = vpop.f32.mrf.mxu2  ;;  %5552 = vmatmul.bf16.vlgmr.msrb.gmra.mxu0 %v11061_v26  ;;  %v8773_v18 = vor.u32 %v9423_v9, %v8772_v13 }
 0x767   :  { %v5401_v44 = vadd.f32 %v5400_v12, %v5312_v29  ;;  %v5139_v29 = vadd.f32 %v12393_v54, %v12329_v58 }
 0x768   :  { %v5313_v49 = vpop.f32.mrf.mxu1  ;;  %5640 = vmatpush.bf16.msrb.mxu1 %v8773_v18 }
 0x769   :  { %v6596_v63 = vsub.f32 0.0, %v5401_v44  ;;  %v5314_v56 = vadd.f32 %v5313_v49, %v5225_v61  ;;  %v5228_v0 = vadd.f32 %v12395_v39, %v5139_v29  ;;  %v5141_v39 = vadd.f32 %v12403_v34, %v12329_v58 }
 0x76b   :  { %v9993_v20 = vpop.eup %9992  ;;  %v6893_v48 = vmul.f32 1.442695, %v6596_v63  ;;  %v12439_v51 = vpop.f32.mrf.mxu3  ;;  %v5230_v13 = vadd.f32 %v12405_v10, %v5141_v39 }
 0x76c   :  { %v12441_v50 = vpop.f32.mrf.mxu0  ;;  %v9995_v53 = vpop.eup %9994  ;;  %v7261_v22 = vadd.f32 1.0, %v9993_v20 }
 0x76d   :  { %7702 = vst [vmem:[#allocation16 + $0x1d8] sm:$0xff] %v9995_v53  ;;  %9996 = vpow2.f32 %v6893_v48 }
 0x76e   :  { %9998 = vrcp.f32 %v7261_v22  ;;  %v5402_v32 = vpop.f32.mrf.mxu2 }
 0x76f   :  { %v5403_v41 = vadd.f32 %v5402_v32, %v5314_v56 }
 0x770   :  { %v5316_v24 = vpop.f32.mrf.mxu1  ;;  %5468 = vmatmul.bf16.gmra.mxu3 %v11025_v57 }
 0x771   :  { %v6603_v8 = vsub.f32 0.0, %v5403_v41  ;;  %v5317_v20 = vadd.f32 %v5316_v24, %v5228_v0 }
 0x773   :  { %v9997_v12 = vpop.eup %9996  ;;  %v6907_v43 = vmul.f32 1.442695, %v6603_v8  ;;  %v12447_v44 = vpop.f32.mrf.mxu3  ;;  %5355 = vmatmul.bf16.gmra.mxu1 %v11388_v25  ;;  %5444 = vmatmul.bf16.gmra.mxu2 %v11440_v1  ;;  %v9357_v8 = vld [vmem:[#allocation14 + $0x19c] sm:$0xf] }
 0x774   :  { %v12449_v49 = vpop.f32.mrf.mxu0  ;;  %v9999_v63 = vpop.eup %9998  ;;  %v7268_v54 = vadd.f32 1.0, %v9997_v12  ;;  %v8522_v12 = vld [vmem:[#allocation14 + $0x1b4] sm:$0xf0] }
 0x775   :  { %7709 = vst [vmem:[#allocation16 + $0x210] sm:$0xff] %v9999_v63  ;;  %10000 = vpow2.f32 %v6907_v43  ;;  %v8525_v0 = vor.u32 %v9357_v8, %v8522_v12  ;;  %v5144_v43 = vadd.f32 %v12411_v36, %v12329_v58  ;;  %v5146_v8 = vadd.f32 %v12421_v17, %v12329_v58  ;;  %v9469_v17 = vld [vmem:[#allocation14 + $0x51c] sm:$0xf] }
 0x776   :  { %10002 = vrcp.f32 %v7268_v54  ;;  %v5405_v61 = vpop.f32.mrf.mxu2  ;;  %5557 = vmatmul.bf16.gmra.mxu0 %v11073_v42 }
 0x777   :  { %v5406_v48 = vadd.f32 %v5405_v61, %v5317_v20  ;;  %5811 = vmatpush.bf16.msra.mxu3 %v8525_v0  ;;  %v5233_v61 = vadd.f32 %v12413_v46, %v5144_v43 }
 0x778   :  { %v5318_v53 = vpop.f32.mrf.mxu1 }
 0x779   :  { %v6610_v22 = vsub.f32 0.0, %v5406_v48  ;;  %v5319_v24 = vadd.f32 %v5318_v53, %v5230_v13  ;;  %v9525_v13 = vld [vmem:[#allocation14 + $0x6dc] sm:$0xf] }
 0x77b   :  { %v10001_v56 = vpop.eup %10000  ;;  %v6921_v9 = vmul.f32 1.442695, %v6610_v22  ;;  %v12457_v32 = vpop.f32.mrf.mxu3 }
 0x77c   :  { %v12459_v18 = vpop.f32.mrf.mxu0  ;;  %v10003_v29 = vpop.eup %10002  ;;  %v7275_v41 = vadd.f32 1.0, %v10001_v56 }
 0x77d   :  { %7716 = vst [vmem:[#allocation16 + $0x248] sm:$0xff] %v10003_v29  ;;  %10004 = vpow2.f32 %v6921_v9  ;;  %v9194_v9 = vld [vmem:[#allocation14 + $0x6f4] sm:$0xf0] }
 0x77e   :  { %10006 = vrcp.f32 %v7275_v41  ;;  %v5407_v34 = vpop.f32.mrf.mxu2  ;;  %v9197_v46 = vor.u32 %v9525_v13, %v9194_v9  ;;  %v9413_v41 = vld [vmem:[#allocation14 + $0x35c] sm:$0xf] }
 0x77f   :  { %v5408_v63 = vadd.f32 %v5407_v34, %v5319_v24  ;;  %v8746_v24 = vld [vmem:[#allocation14 + $0x374] sm:$0xf0] }
 0x780   :  { %v5321_v10 = vpop.f32.mrf.mxu1  ;;  %5473 = vmatmul.bf16.gmra.mxu3 %v11044_v62  ;;  %v8749_v34 = vor.u32 %v9413_v41, %v8746_v24  ;;  %6078 = vmatpush.bf16.msra.mxu2 %v9197_v46 }
 0x781   :  { %v6617_v54 = vsub.f32 0.0, %v5408_v63  ;;  %v5322_v56 = vadd.f32 %v5321_v10, %v5233_v61  ;;  %v5235_v10 = vadd.f32 %v12423_v40, %v5146_v8 }
 0x782   :  { %5900 = vmatpush.bf16.msra.mxu0 %v8749_v34 }
 0x783   :  { %v10005_v20 = vpop.eup %10004  ;;  %v6935_v39 = vmul.f32 1.442695, %v6617_v54  ;;  %v12465_v48 = vpop.f32.mrf.mxu3  ;;  %5360 = vmatmul.bf16.gmra.mxu1 %v11400_v38  ;;  %5449 = vmatmul.bf16.gmra.mxu2 %v11464_v15 }
 0x784   :  { %v12467_v53 = vpop.f32.mrf.mxu0  ;;  %v10007_v22 = vpop.eup %10006  ;;  %v7282_v36 = vadd.f32 1.0, %v10005_v20 }
 0x785   :  { %7723 = vst [vmem:[#allocation16 + $0x280] sm:$0xff] %v10007_v22  ;;  %10008 = vpow2.f32 %v6935_v39 }
 0x786   :  { %10010 = vrcp.f32 %v7282_v36  ;;  %v5410_v29 = vpop.f32.mrf.mxu2  ;;  %5562 = vmatmul.bf16.gmra.mxu0 %v11085_v33 }
 0x787   :  { %v5411_v12 = vadd.f32 %v5410_v29, %v5322_v56  ;;  %v8970_v56 = vld [vmem:[#allocation14 + $0x534] sm:$0xf0]  ;;  %v5149_v29 = vadd.f32 %v12429_v28, %v12329_v58 }
 0x788   :  { %v5323_v0 = vpop.f32.mrf.mxu1  ;;  %v8973_v9 = vor.u32 %v9469_v17, %v8970_v56 }
 0x789   :  { %v6624_v43 = vsub.f32 0.0, %v5411_v12  ;;  %v5324_v36 = vadd.f32 %v5323_v0, %v5235_v10  ;;  %v5238_v8 = vadd.f32 %v12431_v7, %v5149_v29  ;;  %v5151_v7 = vadd.f32 %v12439_v51, %v12329_v58 }
 0x78a   :  { %5989 = vmatpush.bf16.msra.mxu1 %v8973_v9 }
 0x78b   :  { %v10009_v63 = vpop.eup %10008  ;;  %v6949_v54 = vmul.f32 1.442695, %v6624_v43  ;;  %v12475_v20 = vpop.f32.mrf.mxu3  ;;  %v5240_v17 = vadd.f32 %v12441_v50, %v5151_v7 }
 0x78c   :  { %v12477_v61 = vpop.f32.mrf.mxu0  ;;  %v10011_v39 = vpop.eup %10010  ;;  %v7289_v22 = vadd.f32 1.0, %v10009_v63 }
 0x78d   :  { %7730 = vst [vmem:[#allocation16 + $0x2b8] sm:$0xff] %v10011_v39  ;;  %10012 = vpow2.f32 %v6949_v54 }
 0x78e   :  { %10014 = vrcp.f32 %v7289_v22  ;;  %v5412_v13 = vpop.f32.mrf.mxu2 }
 0x78f   :  { %v5413_v46 = vadd.f32 %v5412_v13, %v5324_v36 }
 0x790   :  { %v5326_v40 = vpop.f32.mrf.mxu1  ;;  %5478 = vmatmul.bf16.gmra.mxu3 %v11056_v11 }
 0x791   :  { %v6631_v41 = vsub.f32 0.0, %v5413_v46  ;;  %v5327_v63 = vadd.f32 %v5326_v40, %v5238_v8 }
 0x793   :  { %v10013_v24 = vpop.eup %10012  ;;  %v6963_v12 = vmul.f32 1.442695, %v6631_v41  ;;  %v12483_v34 = vpop.f32.mrf.mxu3  ;;  %5641 = vmatmul.bf16.vlgmr.msrb.gmra.mxu1 %v11217_v6  ;;  %5730 = vmatmul.bf16.vlgmr.msrb.gmra.mxu2 %v13493_v37  ;;  %v9350_v41 = vld [vmem:[#allocation14 + $0x164] sm:$0xf] }
 0x794   :  { %v12485_v0 = vpop.f32.mrf.mxu0  ;;  %v10015_v43 = vpop.eup %10014  ;;  %v7296_v28 = vadd.f32 1.0, %v10013_v24  ;;  %v8494_v24 = vld [vmem:[#allocation14 + $0x17c] sm:$0xf0] }
 0x795   :  { %7737 = vst [vmem:[#allocation16 + $0x2f0] sm:$0xff] %v10015_v43  ;;  %10016 = vpow2.f32 %v6963_v12  ;;  %v8497_v8 = vor.u32 %v9350_v41, %v8494_v24  ;;  %v5154_v12 = vadd.f32 %v12447_v44, %v12329_v58  ;;  %v5156_v41 = vadd.f32 %v12457_v32, %v12329_v58  ;;  %v9462_v32 = vld [vmem:[#allocation14 + $0x4e4] sm:$0xf] }
 0x796   :  { %10018 = vrcp.f32 %v7296_v28  ;;  %v5415_v10 = vpop.f32.mrf.mxu2  ;;  %5567 = vmatmul.bf16.gmra.mxu0 %v11097_v16 }
 0x797   :  { %v5416_v54 = vadd.f32 %v5415_v10, %v5327_v63  ;;  %5812 = vmatpush.bf16.msra.mxu3 %v8497_v8  ;;  %v5243_v10 = vadd.f32 %v12449_v49, %v5154_v12 }
 0x798   :  { %v5328_v39 = vpop.f32.mrf.mxu1 }
 0x799   :  { %v6638_v22 = vsub.f32 0.0, %v5416_v54  ;;  %v5329_v40 = vadd.f32 %v5328_v39, %v5240_v17  ;;  %v9518_v17 = vld [vmem:[#allocation14 + $0x6a4] sm:$0xf] }
 0x79b   :  { %v10017_v36 = vpop.eup %10016  ;;  %v6977_v56 = vmul.f32 1.442695, %v6638_v22  ;;  %v12493_v13 = vpop.f32.mrf.mxu3 }
 0x79c   :  { %v12495_v9 = vpop.f32.mrf.mxu0  ;;  %v10019_v29 = vpop.eup %10018  ;;  %v7303_v46 = vadd.f32 1.0, %v10017_v36 }
 0x79d   :  { %7744 = vst [vmem:[#allocation16 + $0x328] sm:$0xff] %v10019_v29  ;;  %10020 = vpow2.f32 %v6977_v56  ;;  %v9166_v56 = vld [vmem:[#allocation14 + $0x6bc] sm:$0xf0] }
 0x79e   :  { %10022 = vrcp.f32 %v7303_v46  ;;  %v5417_v51 = vpop.f32.mrf.mxu2  ;;  %v9169_v49 = vor.u32 %v9518_v17, %v9166_v56  ;;  %v9406_v46 = vld [vmem:[#allocation14 + $0x324] sm:$0xf] }
 0x79f   :  { %v5418_v43 = vadd.f32 %v5417_v51, %v5329_v40  ;;  %v8718_v40 = vld [vmem:[#allocation14 + $0x33c] sm:$0xf0] }
 0x7a0   :  { %v5331_v50 = vpop.f32.mrf.mxu1  ;;  %5483 = vmatmul.bf16.gmra.mxu3 %v13525_v2  ;;  %v8721_v51 = vor.u32 %v9406_v46, %v8718_v40  ;;  %6079 = vmatpush.bf16.msra.mxu2 %v9169_v49  ;;  %v13591_v46 = vld [vmem:[#allocation24_spill] sm:$0xff] }
 0x7a1   :  { %v6645_v28 = vsub.f32 0.0, %v5418_v43  ;;  %v5332_v36 = vadd.f32 %v5331_v50, %v5243_v10  ;;  %v5245_v50 = vadd.f32 %v12459_v18, %v5156_v41 }
 0x7a2   :  { %5901 = vmatpush.bf16.msra.mxu0 %v8721_v51 }
 0x7a3   :  { %v10021_v63 = vpop.eup %10020  ;;  %v6991_v7 = vmul.f32 1.442695, %v6645_v28  ;;  %v12501_v54 = vpop.f32.mrf.mxu3  ;;  %5646 = vmatmul.bf16.gmra.mxu1 %v13526_v21  ;;  %5735 = vmatmul.bf16.gmra.mxu2 %v13558_v59 }
 0x7a4   :  { %v12503_v39 = vpop.f32.mrf.mxu0  ;;  %v10023_v22 = vpop.eup %10022  ;;  %v7310_v44 = vadd.f32 1.0, %v10021_v63 }
 0x7a5   :  { %7751 = vst [vmem:[#allocation16 + $0x360] sm:$0xff] %v10023_v22  ;;  %10024 = vpow2.f32 %v6991_v7 }
 0x7a6   :  { %10026 = vrcp.f32 %v7310_v44  ;;  %v5420_v29 = vpop.f32.mrf.mxu2  ;;  %5572 = vmatmul.bf16.gmra.mxu0 %v13559_v14 }
 0x7a7   :  { %v5421_v24 = vadd.f32 %v5420_v29, %v5332_v36  ;;  %v8942_v36 = vld [vmem:[#allocation14 + $0x4fc] sm:$0xf0]  ;;  %v5159_v29 = vadd.f32 %v12465_v48, %v12329_v58 }
 0x7a8   :  { %v5333_v8 = vpop.f32.mrf.mxu1  ;;  %v8945_v56 = vor.u32 %v9462_v32, %v8942_v36 }
 0x7a9   :  { %v6652_v12 = vsub.f32 0.0, %v5421_v24  ;;  %v5334_v44 = vadd.f32 %v5333_v8, %v5245_v50  ;;  %v5248_v24 = vadd.f32 %v12467_v53, %v5159_v29  ;;  %v13593_v50 = vld [vmem:[#allocation51_spill] sm:$0xff]  ;;  %v5161_v53 = vadd.f32 %v12475_v20, %v12329_v58 }
 0x7aa   :  { %5990 = vmatpush.bf16.msra.mxu1 %v8945_v56 }
 0x7ab   :  { %v10025_v43 = vpop.eup %10024  ;;  %v7005_v28 = vmul.f32 1.442695, %v6652_v12  ;;  %v12511_v63 = vpop.f32.mrf.mxu3  ;;  %v5250_v29 = vadd.f32 %v12477_v61, %v5161_v53  ;;  %v13595_v53 = vld [vmem:[#allocation25_spill] sm:$0xff] }
 0x7ac   :  { %v12513_v10 = vpop.f32.mrf.mxu0  ;;  %v10027_v7 = vpop.eup %10026  ;;  %v7317_v22 = vadd.f32 1.0, %v10025_v43  ;;  %v13592_v43 = vld [vmem:[#allocation45_spill] sm:$0xff] }
 0x7ad   :  { %7758 = vst [vmem:[#allocation16 + $0x398] sm:$0xff] %v10027_v7  ;;  %10028 = vpow2.f32 %v7005_v28 }
 0x7ae   :  { %10030 = vrcp.f32 %v7317_v22  ;;  %v5422_v17 = vpop.f32.mrf.mxu2 }
 0x7af   :  { %v5423_v49 = vadd.f32 %v5422_v17, %v5334_v44  ;;  %v13594_v44 = vld [vmem:[#allocation29_spill] sm:$0xff] }
 0x7b0   :  { %v5336_v18 = vpop.f32.mrf.mxu1  ;;  %5488 = vmatmul.bf16.gmra.mxu3 %v13591_v46 }
 0x7b1   :  { %v6659_v40 = vsub.f32 0.0, %v5423_v49  ;;  %v5337_v7 = vadd.f32 %v5336_v18, %v5248_v24 }
 0x7b3   :  { %v10029_v41 = vpop.eup %10028  ;;  %v7019_v51 = vmul.f32 1.442695, %v6659_v40  ;;  %v12519_v12 = vpop.f32.mrf.mxu3  ;;  %5651 = vmatmul.bf16.gmra.mxu1 %v13592_v43  ;;  %5740 = vmatmul.bf16.gmra.mxu2 %v13593_v50 }
 0x7b4   :  { %v12521_v8 = vpop.f32.mrf.mxu0  ;;  %v10031_v28 = vpop.eup %10030  ;;  %v7324_v48 = vadd.f32 1.0, %v10029_v41 }
 0x7b5   :  { %7765 = vst [vmem:[#allocation16 + $0x3d0] sm:$0xff] %v10031_v28  ;;  %10032 = vpow2.f32 %v7019_v51  ;;  %v9343_v28 = vld [vmem:[#allocation14 + $0x12c] sm:$0xf] }
 0x7b6   :  { %10034 = vrcp.f32 %v7324_v48  ;;  %v5425_v22 = vpop.f32.mrf.mxu2  ;;  %5577 = vmatmul.bf16.gmra.mxu0 %v13594_v44  ;;  %v8466_v48 = vld [vmem:[#allocation14 + $0x144] sm:$0xf0] }
 0x7b7   :  { %v5426_v32 = vadd.f32 %v5425_v22, %v5337_v7  ;;  %v8469_v7 = vor.u32 %v9343_v28, %v8466_v48  ;;  %v5164_v22 = vadd.f32 %v12483_v34, %v12329_v58  ;;  %v9511_v48 = vld [vmem:[#allocation14 + $0x66c] sm:$0xf] }
 0x7b8   :  { %v5338_v36 = vpop.f32.mrf.mxu1 }
 0x7b9   :  { %v6666_v17 = vsub.f32 0.0, %v5426_v32  ;;  %v5339_v24 = vadd.f32 %v5338_v36, %v5250_v29  ;;  %5813 = vmatpush.bf16.msra.mxu3 %v8469_v7  ;;  %v13596_v29 = vld [vmem:[#allocation46_spill] sm:$0xff] }
 0x7bb   :  { %v10033_v56 = vpop.eup %10032  ;;  %v7033_v49 = vmul.f32 1.442695, %v6666_v17  ;;  %v12529_v40 = vpop.f32.mrf.mxu3 }
 0x7bc   :  { %v12531_v41 = vpop.f32.mrf.mxu0  ;;  %v10035_v51 = vpop.eup %10034  ;;  %v7331_v18 = vadd.f32 1.0, %v10033_v56  ;;  %v5253_v56 = vadd.f32 %v12485_v0, %v5164_v22  ;;  %v9399_v22 = vld [vmem:[#allocation14 + $0x2ec] sm:$0xf] }
 0x7bd   :  { %7772 = vst [vmem:[#allocation16 + $0x408] sm:$0xff] %v10035_v51  ;;  %10036 = vpow2.f32 %v7033_v49 }
 0x7be   :  { %10038 = vrcp.f32 %v7331_v18  ;;  %v5427_v20 = vpop.f32.mrf.mxu2  ;;  %v13597_v18 = vld [vmem:[#allocation53_spill] sm:$0xff] }
 0x7bf   :  { %v5428_v32 = vadd.f32 %v5427_v20, %v5339_v24  ;;  %v9138_v20 = vld [vmem:[#allocation14 + $0x684] sm:$0xf0] }
 0x7c0   :  { %v5341_v61 = vpop.f32.mrf.mxu1  ;;  %5493 = vmatmul.bf16.gmra.mxu3 %v13595_v53  ;;  %v9141_v0 = vor.u32 %v9511_v48, %v9138_v20  ;;  %v5166_v53 = vadd.f32 %v12493_v13, %v12329_v58  ;;  %v9455_v13 = vld [vmem:[#allocation14 + $0x4ac] sm:$0xf] }
 0x7c1   :  { %v6673_v17 = vsub.f32 0.0, %v5428_v32  ;;  %v5342_v24 = vadd.f32 %v5341_v61, %v5253_v56  ;;  %v13598_v32 = vld [vmem:[#allocation31_spill] sm:$0xff] }
 0x7c2   :  { %6080 = vmatpush.bf16.msra.mxu2 %v9141_v0  ;;  %v5255_v61 = vadd.f32 %v12495_v9, %v5166_v53 }
 0x7c3   :  { %v10037_v44 = vpop.eup %10036  ;;  %v7047_v51 = vmul.f32 1.442695, %v6673_v17  ;;  %v12537_v49 = vpop.f32.mrf.mxu3  ;;  %5656 = vmatmul.bf16.gmra.mxu1 %v13596_v29  ;;  %5745 = vmatmul.bf16.gmra.mxu2 %v13597_v18  ;;  %v8690_v17 = vld [vmem:[#allocation14 + $0x304] sm:$0xf0] }
 0x7c4   :  { %v12539_v36 = vpop.f32.mrf.mxu0  ;;  %v10039_v28 = vpop.eup %10038  ;;  %v7338_v34 = vadd.f32 1.0, %v10037_v44  ;;  %v8693_v50 = vor.u32 %v9399_v22, %v8690_v17 }
 0x7c5   :  { %7779 = vst [vmem:[#allocation16 + $0x440] sm:$0xff] %v10039_v28  ;;  %10040 = vpow2.f32 %v7047_v51 }
 0x7c6   :  { %10042 = vrcp.f32 %v7338_v34  ;;  %v5430_v7 = vpop.f32.mrf.mxu2  ;;  %5582 = vmatmul.bf16.gmra.mxu0 %v13598_v32 }
 0x7c7   :  { %v5431_v29 = vadd.f32 %v5430_v7, %v5342_v24  ;;  %5902 = vmatpush.bf16.msra.mxu0 %v8693_v50  ;;  %v8914_v24 = vld [vmem:[#allocation14 + $0x4c4] sm:$0xf0]  ;;  %v5169_v50 = vadd.f32 %v12501_v54, %v12329_v58 }
 0x7c8   :  { %v5343_v18 = vpop.f32.mrf.mxu1  ;;  %v8917_v0 = vor.u32 %v9455_v13, %v8914_v24 }
 0x7c9   :  { %v6680_v44 = vsub.f32 0.0, %v5431_v29  ;;  %v5344_v32 = vadd.f32 %v5343_v18, %v5255_v61  ;;  %v5258_v17 = vadd.f32 %v12503_v39, %v5169_v50  ;;  %v13599_v61 = vld [vmem:[#allocation55_spill] sm:$0xff]  ;;  %v5171_v39 = vadd.f32 %v12511_v63, %v12329_v58 }
 0x7ca   :  { %5991 = vmatpush.bf16.msra.mxu1 %v8917_v0 }
 0x7cb   :  { %v10041_v51 = vpop.eup %10040  ;;  %v7061_v56 = vmul.f32 1.442695, %v6680_v44  ;;  %v12547_v28 = vpop.f32.mrf.mxu3  ;;  %v5260_v50 = vadd.f32 %v12513_v10, %v5171_v39  ;;  %v13601_v39 = vld [vmem:[#allocation28_spill] sm:$0xff] }
 0x7cc   :  { %v12549_v34 = vpop.f32.mrf.mxu0  ;;  %v10043_v48 = vpop.eup %10042  ;;  %v7345_v20 = vadd.f32 1.0, %v10041_v51 }
 0x7cd   :  { %7786 = vst [vmem:[#allocation16 + $0x478] sm:$0xff] %v10043_v48  ;;  %10044 = vpow2.f32 %v7061_v56 }
 0x7ce   :  { %10046 = vrcp.f32 %v7345_v20  ;;  %v5432_v7 = vpop.f32.mrf.mxu2  ;;  %v13600_v20 = vld [vmem:[#allocation33_spill] sm:$0xff] }
 0x7cf   :  { %v5433_v29 = vadd.f32 %v5432_v7, %v5344_v32 }
 0x7d0   :  { %v5346_v9 = vpop.f32.mrf.mxu1  ;;  %5498 = vmatmul.bf16.gmra.mxu3 %v13489_v3 }
 0x7d1   :  { %v6687_v53 = vsub.f32 0.0, %v5433_v29  ;;  %v5347_v32 = vadd.f32 %v5346_v9, %v5258_v17 }
 0x7d3   :  { %v10045_v22 = vpop.eup %10044  ;;  %v7075_v44 = vmul.f32 1.442695, %v6687_v53  ;;  %v12555_v51 = vpop.f32.mrf.mxu3  ;;  %5661 = vmatmul.bf16.gmra.mxu1 %v11268_v60  ;;  %5750 = vmatmul.bf16.gmra.mxu2 %v13599_v61  ;;  %v9371_v60 = vld [vmem:[#allocation14 + $0x20c] sm:$0xf] }
 0x7d4   :  { %v12557_v18 = vpop.f32.mrf.mxu0  ;;  %v10047_v56 = vpop.eup %10046  ;;  %v7352_v54 = vadd.f32 1.0, %v10045_v22 }
 0x7d5   :  { %7793 = vst [vmem:[#allocation16 + $0x4b0] sm:$0xff] %v10047_v56  ;;  %10048 = vpow2.f32 %v7075_v44  ;;  %v9336_v56 = vld [vmem:[#allocation14 + $0xf4] sm:$0xf] }
 0x7d6   :  { %10050 = vrcp.f32 %v7352_v54  ;;  %v5435_v48 = vpop.f32.mrf.mxu2  ;;  %5587 = vmatmul.bf16.gmra.mxu0 %v13600_v20  ;;  %v8438_v54 = vld [vmem:[#allocation14 + $0x10c] sm:$0xf0] }
 0x7d7   :  { %v5436_v13 = vadd.f32 %v5435_v48, %v5347_v32  ;;  %v8441_v32 = vor.u32 %v9336_v56, %v8438_v54  ;;  %v5174_v48 = vadd.f32 %v12519_v12, %v12329_v58  ;;  %v9504_v54 = vld [vmem:[#allocation14 + $0x634] sm:$0xf] }
 0x7d8   :  { %v5348_v24 = vpop.f32.mrf.mxu1 }
 0x7d9   :  { %v6694_v7 = vsub.f32 0.0, %v5436_v13  ;;  %v5349_v17 = vadd.f32 %v5348_v24, %v5260_v50  ;;  %5814 = vmatpush.bf16.msra.mxu3 %v8441_v32  ;;  %v13602_v50 = vld [vmem:[#allocation50_spill] sm:$0xff] }
 0x7db   :  { %v10049_v0 = vpop.eup %10048  ;;  %v7089_v29 = vmul.f32 1.442695, %v6694_v7  ;;  %v12565_v53 = vpop.f32.mrf.mxu3 }
 0x7dc   :  { %v12567_v22 = vpop.f32.mrf.mxu0  ;;  %v10051_v44 = vpop.eup %10050  ;;  %v7359_v9 = vadd.f32 1.0, %v10049_v0  ;;  %v5263_v0 = vadd.f32 %v12521_v8, %v5174_v48  ;;  %v9392_v48 = vld [vmem:[#allocation14 + $0x2b4] sm:$0xf] }
 0x7dd   :  { %7800 = vst [vmem:[#allocation16 + $0x4e8] sm:$0xff] %v10051_v44  ;;  %10052 = vpow2.f32 %v7089_v29 }
 0x7de   :  { %10054 = vrcp.f32 %v7359_v9  ;;  %v5437_v63 = vpop.f32.mrf.mxu2  ;;  %v13603_v9 = vld [vmem:[#allocation57_spill] sm:$0xff] }
 0x7df   :  { %v5438_v13 = vadd.f32 %v5437_v63, %v5349_v17  ;;  %v9110_v63 = vld [vmem:[#allocation14 + $0x64c] sm:$0xf0] }
 0x7e0   :  { %v5351_v10 = vpop.f32.mrf.mxu1  ;;  %5503 = vmatmul.bf16.gmra.mxu3 %v13601_v39  ;;  %v9113_v8 = vor.u32 %v9504_v54, %v9110_v63  ;;  %v5176_v39 = vadd.f32 %v12529_v40, %v12329_v58  ;;  %v9448_v40 = vld [vmem:[#allocation14 + $0x474] sm:$0xf] }
 0x7e1   :  { %v6701_v7 = vsub.f32 0.0, %v5438_v13  ;;  %v5352_v17 = vadd.f32 %v5351_v10, %v5263_v0  ;;  %v13604_v13 = vld [vmem:[#allocation35_spill] sm:$0xff] }
 0x7e2   :  { %6081 = vmatpush.bf16.msra.mxu2 %v9113_v8  ;;  %v5265_v10 = vadd.f32 %v12531_v41, %v5176_v39 }
 0x7e3   :  { %v10053_v20 = vpop.eup %10052  ;;  %v7103_v44 = vmul.f32 1.442695, %v6701_v7  ;;  %v12573_v29 = vpop.f32.mrf.mxu3  ;;  %5666 = vmatmul.bf16.gmra.mxu1 %v13602_v50  ;;  %5755 = vmatmul.bf16.gmra.mxu2 %v13603_v9  ;;  %v8662_v7 = vld [vmem:[#allocation14 + $0x2cc] sm:$0xf0] }
 0x7e4   :  { %v12575_v24 = vpop.f32.mrf.mxu0  ;;  %v10055_v56 = vpop.eup %10054  ;;  %v7366_v12 = vadd.f32 1.0, %v10053_v20  ;;  %v8665_v61 = vor.u32 %v9392_v48, %v8662_v7 }
 0x7e5   :  { %7807 = vst [vmem:[#allocation16 + $0x520] sm:$0xff] %v10055_v56  ;;  %10056 = vpow2.f32 %v7103_v44 }
 0x7e6   :  { %10058 = vrcp.f32 %v7366_v12  ;;  %v5440_v32 = vpop.f32.mrf.mxu2  ;;  %5592 = vmatmul.bf16.gmra.mxu0 %v13604_v13 }
 0x7e7   :  { %v5441_v50 = vadd.f32 %v5440_v32, %v5352_v17  ;;  %5903 = vmatpush.bf16.msra.mxu0 %v8665_v61  ;;  %v8886_v17 = vld [vmem:[#allocation14 + $0x48c] sm:$0xf0]  ;;  %v5179_v61 = vadd.f32 %v12537_v49, %v12329_v58 }
 0x7e8   :  { %v5353_v9 = vpop.f32.mrf.mxu1  ;;  %v8889_v8 = vor.u32 %v9448_v40, %v8886_v17  ;;  %v13607_v40 = vld [vmem:[#allocation37_spill] sm:$0xff] }
 0x7e9   :  { %v6708_v20 = vsub.f32 0.0, %v5441_v50  ;;  %v5354_v13 = vadd.f32 %v5353_v9, %v5265_v10  ;;  %v5268_v7 = vadd.f32 %v12539_v36, %v5179_v61  ;;  %v13605_v10 = vld [vmem:[#allocation52_spill] sm:$0xff]  ;;  %v5181_v36 = vadd.f32 %v12547_v28, %v12329_v58 }
 0x7ea   :  { %5992 = vmatpush.bf16.msra.mxu1 %v8889_v8 }
 0x7eb   :  { %v10057_v44 = vpop.eup %10056  ;;  %v7117_v0 = vmul.f32 1.442695, %v6708_v20  ;;  %v12583_v56 = vpop.f32.mrf.mxu3 }
 0x7ec   :  { %v12585_v12 = vpop.f32.mrf.mxu0  ;;  %v10059_v54 = vpop.eup %10058  ;;  %v7373_v63 = vadd.f32 1.0, %v10057_v44 }
 0x7ed   :  { %7814 = vst [vmem:[#allocation16 + $0x558] sm:$0xff] %v10059_v54  ;;  %10060 = vpow2.f32 %v7117_v0  ;;  %v13606_v0 = vld [vmem:[#allocation59_spill] sm:$0xff] }
 0x7ee   :  { %10062 = vrcp.f32 %v7373_v63  ;;  %v5442_v32 = vpop.f32.mrf.mxu2 }
 0x7ef   :  { %v5443_v50 = vadd.f32 %v5442_v32, %v5354_v13 }
 0x7f0   :  { %v5356_v41 = vpop.f32.mrf.mxu1  ;;  %5508 = vmatmul.bf16.gmra.mxu3 %v13543_v5 }
 0x7f1   :  { %v6715_v39 = vsub.f32 0.0, %v5443_v50  ;;  %v5357_v13 = vadd.f32 %v5356_v41, %v5268_v7  ;;  %v5270_v50 = vadd.f32 %v12549_v34, %v5181_v36  ;;  %v13608_v36 = vld [vmem:[#allocation32_spill] sm:$0xff] }
 0x7f3   :  { %v10061_v48 = vpop.eup %10060  ;;  %v7131_v20 = vmul.f32 1.442695, %v6715_v39  ;;  %v12591_v44 = vpop.f32.mrf.mxu3  ;;  %5671 = vmatmul.bf16.gmra.mxu1 %v13605_v10  ;;  %5760 = vmatmul.bf16.gmra.mxu2 %v13606_v0 }
 0x7f4   :  { %v12593_v9 = vpop.f32.mrf.mxu0  ;;  %v10063_v54 = vpop.eup %10062  ;;  %v7380_v49 = vadd.f32 1.0, %v10061_v48 }
 0x7f5   :  { %7821 = vst [vmem:[#allocation16 + $0x590] sm:$0xff] %v10063_v54  ;;  %10064 = vpow2.f32 %v7131_v20  ;;  %v9329_v54 = vld [vmem:[#allocation14 + $0xbc] sm:$0xf] }
 0x7f6   :  { %10066 = vrcp.f32 %v7380_v49  ;;  %v5445_v63 = vpop.f32.mrf.mxu2  ;;  %5597 = vmatmul.bf16.gmra.mxu0 %v13607_v40  ;;  %v8410_v49 = vld [vmem:[#allocation14 + $0xd4] sm:$0xf0] }
 0x7f7   :  { %v5446_v17 = vadd.f32 %v5445_v63, %v5357_v13  ;;  %v8413_v13 = vor.u32 %v9329_v54, %v8410_v49  ;;  %v5184_v63 = vadd.f32 %v12555_v51, %v12329_v58  ;;  %v9497_v49 = vld [vmem:[#allocation14 + $0x5fc] sm:$0xf] }
 0x7f8   :  { %v5358_v32 = vpop.f32.mrf.mxu1 }
 0x7f9   :  { %v6722_v8 = vsub.f32 0.0, %v5446_v17  ;;  %v5359_v7 = vadd.f32 %v5358_v32, %v5270_v50  ;;  %5815 = vmatpush.bf16.msra.mxu3 %v8413_v13  ;;  %v13609_v50 = vld [vmem:[#allocation54_spill] sm:$0xff] }
 0x7fb   :  { %v10065_v61 = vpop.eup %10064  ;;  %v7145_v39 = vmul.f32 1.442695, %v6722_v8  ;;  %v12601_v0 = vpop.f32.mrf.mxu3 }
 0x7fc   :  { %v12603_v48 = vpop.f32.mrf.mxu0  ;;  %v10067_v20 = vpop.eup %10066  ;;  %v7387_v41 = vadd.f32 1.0, %v10065_v61  ;;  %v5273_v61 = vadd.f32 %v12557_v18, %v5184_v63  ;;  %v9385_v63 = vld [vmem:[#allocation14 + $0x27c] sm:$0xf] }
 0x7fd   :  { %7828 = vst [vmem:[#allocation16 + $0x5c8] sm:$0xff] %v10067_v20  ;;  %10068 = vpow2.f32 %v7145_v39 }
 0x7fe   :  { %10070 = vrcp.f32 %v7387_v41  ;;  %v5447_v28 = vpop.f32.mrf.mxu2  ;;  %v13610_v41 = vld [vmem:[#allocation61_spill] sm:$0xff] }
 0x7ff   :  { %v5448_v17 = vadd.f32 %v5447_v28, %v5359_v7  ;;  %v9082_v28 = vld [vmem:[#allocation14 + $0x614] sm:$0xf0] }
 0x800   :  { %v5361_v34 = vpop.f32.mrf.mxu1  ;;  %5513 = vmatmul.bf16.gmra.mxu3 %v13608_v36  ;;  %v9085_v18 = vor.u32 %v9497_v49, %v9082_v28  ;;  %v5186_v36 = vadd.f32 %v12565_v53, %v12329_v58 }
 0x801   :  { %v6729_v8 = vsub.f32 0.0, %v5448_v17  ;;  %v5362_v7 = vadd.f32 %v5361_v34, %v5273_v61  ;;  %v13611_v17 = vld [vmem:[#allocation39_spill] sm:$0xff]  ;;  %v10474_v61 = vld [vmem:[%s13361_s8] sm:$0xff] }
 0x802   :  { %6082 = vmatpush.bf16.msra.mxu2 %v9085_v18  ;;  %v5275_v34 = vadd.f32 %v12567_v22, %v5186_v36 }
 0x803   :  { %v10069_v40 = vpop.eup %10068  ;;  %v7159_v20 = vmul.f32 1.442695, %v6729_v8  ;;  %v12609_v39 = vpop.f32.mrf.mxu3  ;;  %5676 = vmatmul.bf16.gmra.mxu1 %v13609_v50  ;;  %5765 = vmatmul.bf16.gmra.mxu2 %v13610_v41  ;;  %v8634_v8 = vld [vmem:[#allocation14 + $0x294] sm:$0xf0] }
 0x804   :  { %v12611_v32 = vpop.f32.mrf.mxu0  ;;  %v10071_v54 = vpop.eup %10070  ;;  %v7394_v51 = vadd.f32 1.0, %v10069_v40  ;;  %v8637_v10 = vor.u32 %v9385_v63, %v8634_v8  ;;  %v13612_v63 = vld [vmem:[#allocation34_spill] sm:$0xff] }
 0x805   :  { %7835 = vst [vmem:[#allocation16 + $0x600] sm:$0xff] %v10071_v54  ;;  %10072 = vpow2.f32 %v7159_v20  ;;  %v12622_v54 = vperm.slane %v10474_v61, 4 }
 0x806   :  { %10074 = vrcp.f32 %v7394_v51  ;;  %v5450_v13 = vpop.f32.mrf.mxu2  ;;  %5602 = vmatmul.bf16.gmra.mxu0 %v13611_v17 }
 0x807   :  { %v5451_v50 = vadd.f32 %v5450_v13, %v5362_v7  ;;  %5904 = vmatpush.bf16.msra.mxu0 %v8637_v10  ;;  %v9441_v10 = vld [vmem:[#allocation14 + $0x43c] sm:$0xf]  ;;  %v8858_v7 = vld [vmem:[#allocation14 + $0x454] sm:$0xf0]  ;;  %v5465_v13 = vadd.f32 %v12573_v29, %v12622_v54 }
 0x808   :  { %v5363_v41 = vpop.f32.mrf.mxu1  ;;  %v8861_v36 = vor.u32 %v9441_v10, %v8858_v7  ;;  %v13615_v7 = vld [vmem:[#allocation41_spill] sm:$0xff] }
 0x809   :  { %v6736_v40 = vsub.f32 0.0, %v5451_v50  ;;  %v5364_v50 = vadd.f32 %v5363_v41, %v5275_v34  ;;  %v13613_v34 = vld [vmem:[#allocation56_spill] sm:$0xff] }
 0x80a   :  { %5993 = vmatpush.bf16.msra.mxu1 %v8861_v36 }
 0x80b   :  { %v10073_v20 = vpop.eup %10072  ;;  %v7173_v51 = vmul.f32 1.442695, %v6736_v40  ;;  %v12624_v49 = vpop.f32.mrf.mxu3 }
 0x80c   :  { %v12626_v28 = vpop.f32.mrf.mxu0  ;;  %v10075_v58 = vpop.eup %10074  ;;  %v7401_v53 = vadd.f32 1.0, %v10073_v20  ;;  %v5554_v20 = vadd.f32 %v12575_v24, %v5465_v13  ;;  %v5467_v24 = vadd.f32 %v12583_v56, %v12622_v54 }
 0x80d   :  { %7842 = vst [vmem:[#allocation16 + $0x638] sm:$0xff] %v10075_v58  ;;  %10076 = vpow2.f32 %v7173_v51 }
 0x80e   :  { %10078 = vrcp.f32 %v7401_v53  ;;  %v5452_v22 = vpop.f32.mrf.mxu2  ;;  %v13614_v53 = vld [vmem:[#allocation62_spill] sm:$0xff] }
 0x80f   :  { %v5453_v18 = vadd.f32 %v5452_v22, %v5364_v50 }
 0x810   :  { %5518 = vmatmul.bf16.gmra.mxu3 %v13612_v63  ;;  %v5642_v8 = vpop.f32.mrf.mxu1 }
 0x811   :  { %v6743_v40 = vsub.f32 0.0, %v5453_v18  ;;  %v5643_v50 = vadd.f32 %v5642_v8, %v5554_v20 }
 0x813   :  { %v10077_v61 = vpop.eup %10076  ;;  %v7187_v58 = vmul.f32 1.442695, %v6743_v40  ;;  %v12632_v51 = vpop.f32.mrf.mxu3  ;;  %5681 = vmatmul.bf16.gmra.mxu1 %v13613_v34  ;;  %5770 = vmatmul.bf16.gmra.mxu2 %v13614_v53  ;;  %v5556_v34 = vadd.f32 %v12585_v12, %v5467_v24  ;;  %v13616_v12 = vld [vmem:[#allocation36_spill] sm:$0xff] }
 0x814   :  { %v12634_v41 = vpop.f32.mrf.mxu0  ;;  %v10079_v10 = vpop.eup %10078  ;;  %v7408_v29 = vadd.f32 1.0, %v10077_v61 }
 0x815   :  { %7849 = vst [vmem:[#allocation16 + $0x670] sm:$0xff] %v10079_v10  ;;  %10080 = vpow2.f32 %v7187_v58  ;;  %v9322_v10 = vld [vmem:[#allocation14 + $0x84] sm:$0xf] }
 0x816   :  { %10082 = vrcp.f32 %v7408_v29  ;;  %5607 = vmatmul.bf16.gmra.mxu0 %v13615_v7  ;;  %v5731_v22 = vpop.f32.mrf.mxu2  ;;  %v8382_v29 = vld [vmem:[#allocation14 + $0x9c] sm:$0xf0] }
 0x817   :  { %v5732_v36 = vadd.f32 %v5731_v22, %v5643_v50  ;;  %v8385_v50 = vor.u32 %v9322_v10, %v8382_v29  ;;  %v5470_v22 = vadd.f32 %v12591_v44, %v12622_v54  ;;  %v9490_v29 = vld [vmem:[#allocation14 + $0x5c4] sm:$0xf] }
 0x818   :  { %v5644_v13 = vpop.f32.mrf.mxu1 }
 0x819   :  { %v6527_v18 = vsub.f32 0.0, %v5732_v36  ;;  %v5645_v20 = vadd.f32 %v5644_v13, %v5556_v34  ;;  %5816 = vmatpush.bf16.msra.mxu3 %v8385_v50  ;;  %v13617_v13 = vld [vmem:[#allocation58_spill] sm:$0xff] }
 0x81a   :  { %v13619_v50 = vld [vmem:[#allocation42_spill] sm:$0xff] }
 0x81b   :  { %v10081_v40 = vpop.eup %10080  ;;  %v6755_v63 = vmul.f32 1.442695, %v6527_v18  ;;  %v12642_v53 = vpop.f32.mrf.mxu3 }
 0x81c   :  { %v12644_v61 = vpop.f32.mrf.mxu0  ;;  %v10083_v58 = vpop.eup %10082  ;;  %v7415_v8 = vadd.f32 1.0, %v10081_v40  ;;  %v5559_v40 = vadd.f32 %v12593_v9, %v5470_v22 }
 0x81d   :  { %7856 = vst [vmem:[#allocation16 + $0x6a8] sm:$0xff] %v10083_v58  ;;  %10084 = vpow2.f32 %v6755_v63 }
 0x81e   :  { %10086 = vrcp.f32 %v7415_v8  ;;  %v5733_v56 = vpop.f32.mrf.mxu2  ;;  %v13618_v8 = vld [vmem:[#allocation63_spill] sm:$0xff] }
 0x81f   :  { %v5734_v36 = vadd.f32 %v5733_v56, %v5645_v20  ;;  %v9054_v56 = vld [vmem:[#allocation14 + $0x5dc] sm:$0xf0] }
 0x820   :  { %5523 = vmatmul.bf16.gmra.mxu3 %v13616_v12  ;;  %v5647_v24 = vpop.f32.mrf.mxu1  ;;  %v9057_v22 = vor.u32 %v9490_v29, %v9054_v56  ;;  %v5472_v12 = vadd.f32 %v12601_v0, %v12622_v54  ;;  %v9434_v0 = vld [vmem:[#allocation14 + $0x404] sm:$0xf] }
 0x821   :  { %v6534_v18 = vsub.f32 0.0, %v5734_v36  ;;  %v5648_v20 = vadd.f32 %v5647_v24, %v5559_v40  ;;  %v9378_v36 = vld [vmem:[#allocation14 + $0x244] sm:$0xf] }
 0x822   :  { %6083 = vmatpush.bf16.msra.mxu2 %v9057_v22  ;;  %v5561_v24 = vadd.f32 %v12603_v48, %v5472_v12  ;;  %v13620_v48 = vld [vmem:[#allocation38_spill] sm:$0xff] }
 0x823   :  { %v10085_v7 = vpop.eup %10084  ;;  %v6769_v58 = vmul.f32 1.442695, %v6534_v18  ;;  %v12650_v63 = vpop.f32.mrf.mxu3  ;;  %5686 = vmatmul.bf16.gmra.mxu1 %v13617_v13  ;;  %5775 = vmatmul.bf16.gmra.mxu2 %v13618_v8  ;;  %v8606_v18 = vld [vmem:[#allocation14 + $0x25c] sm:$0xf0] }
 0x824   :  { %v12652_v34 = vpop.f32.mrf.mxu0  ;;  %v10087_v10 = vpop.eup %10086  ;;  %v7199_v44 = vadd.f32 1.0, %v10085_v7  ;;  %v8609_v17 = vor.u32 %v9378_v36, %v8606_v18 }
 0x825   :  { %7863 = vst [vmem:[#allocation16 + $0x6e0] sm:$0xff] %v10087_v10  ;;  %10088 = vpow2.f32 %v6769_v58 }
 0x826   :  { %10090 = vrcp.f32 %v7199_v44  ;;  %5612 = vmatmul.bf16.gmra.mxu0 %v13619_v50  ;;  %v5736_v9 = vpop.f32.mrf.mxu2 }
 0x827   :  { %v5737_v13 = vadd.f32 %v5736_v9, %v5648_v20  ;;  %5905 = vmatpush.bf16.msra.mxu0 %v8609_v17  ;;  %v8830_v20 = vld [vmem:[#allocation14 + $0x41c] sm:$0xf0]  ;;  %v5475_v17 = vadd.f32 %v12609_v39, %v12622_v54 }
 0x828   :  { %v5649_v8 = vpop.f32.mrf.mxu1  ;;  %v8833_v22 = vor.u32 %v9434_v0, %v8830_v20  ;;  %v13623_v0 = vld [vmem:[#allocation43_spill] sm:$0xff] }
 0x829   :  { %v6541_v7 = vsub.f32 0.0, %v5737_v13  ;;  %v5650_v50 = vadd.f32 %v5649_v8, %v5561_v24  ;;  %v13621_v24 = vld [vmem:[#allocation60_spill] sm:$0xff] }
 0x82a   :  { %5994 = vmatpush.bf16.msra.mxu1 %v8833_v22  ;;  %v5477_v22 = vadd.f32 %v12624_v49, %v12622_v54  ;;  %v8578_v49 = vld [vmem:[#allocation14 + $0x224] sm:$0xf0] }
 0x82b   :  { %v10089_v58 = vpop.eup %10088  ;;  %v6783_v40 = vmul.f32 1.442695, %v6541_v7  ;;  %v12660_v10 = vpop.f32.mrf.mxu3  ;;  %v5564_v7 = vadd.f32 %v12611_v32, %v5475_v17  ;;  %v8354_v32 = vld [vmem:[#allocation14 + $0x64] sm:$0xf0] }
 0x82c   :  { %v12662_v44 = vpop.f32.mrf.mxu0  ;;  %v10091_v29 = vpop.eup %10090  ;;  %v7206_v56 = vadd.f32 1.0, %v10089_v58 }
 0x82d   :  { %7647 = vst [vmem:[#allocation16 + $0x20] sm:$0xff] %v10091_v29  ;;  %10092 = vpow2.f32 %v6783_v40  ;;  %v13622_v29 = vld [vmem:[#allocation64_spill] sm:$0xff] }
 0x82e   :  { %10094 = vrcp.f32 %v7206_v56  ;;  %v5738_v9 = vpop.f32.mrf.mxu2 }
 0x82f   :  { %v5739_v13 = vadd.f32 %v5738_v9, %v5650_v50  ;;  %v9315_v9 = vld [vmem:[#allocation14 + $0x4c] sm:$0xf] }
 0x830   :  { %5528 = vmatmul.bf16.gmra.mxu3 %v13620_v48  ;;  %v5652_v12 = vpop.f32.mrf.mxu1  ;;  %v8326_v48 = vld [vmem:[#allocation14 + $0x2c] sm:$0xf0] }
 0x831   :  { %v6548_v36 = vsub.f32 0.0, %v5739_v13  ;;  %v5653_v50 = vadd.f32 %v5652_v12, %v5564_v7  ;;  %v8357_v13 = vor.u32 %v9315_v9, %v8354_v32 }
 0x833   :  { %v10093_v18 = vpop.eup %10092  ;;  %v6797_v58 = vmul.f32 1.442695, %v6548_v36  ;;  %v12668_v40 = vpop.f32.mrf.mxu3  ;;  %5691 = vmatmul.bf16.gmra.mxu1 %v13621_v24  ;;  %5780 = vmatmul.bf16.gmra.mxu2 %v13622_v29  ;;  %v9308_v29 = vld [vmem:[#allocation14 + $0x14] sm:$0xf] }
 0x834   :  { %v12670_v8 = vpop.f32.mrf.mxu0  ;;  %v10095_v56 = vpop.eup %10094  ;;  %v7213_v39 = vadd.f32 1.0, %v10093_v18  ;;  %5817 = vmatpush.bf16.msra.mxu3 %v8357_v13 }
 0x835   :  { %7654 = vst [vmem:[#allocation16 + $0x58] sm:$0xff] %v10095_v56  ;;  %10096 = vpow2.f32 %v6797_v58  ;;  %v5566_v58 = vadd.f32 %v12626_v28, %v5477_v22  ;;  %v5480_v28 = vadd.f32 %v12632_v51, %v12622_v54 }
 0x836   :  { %10098 = vrcp.f32 %v7213_v39  ;;  %5617 = vmatmul.bf16.gmra.mxu0 %v13623_v0  ;;  %v5741_v20 = vpop.f32.mrf.mxu2  ;;  %v8329_v39 = vor.u32 %v9308_v29, %v8326_v48  ;;  %v9364_v48 = vld [vmem:[#allocation14 + $0x1d4] sm:$0xf]  ;;  %v8550_v29 = vld [vmem:[#allocation14 + $0x1ec] sm:$0xf0] }
 0x837   :  { %v5742_v17 = vadd.f32 %v5741_v20, %v5653_v50  ;;  %v8581_v20 = vor.u32 %v9371_v60, %v8578_v49 }
 0x838   :  { %v5654_v36 = vpop.f32.mrf.mxu1  ;;  %5818 = vmatpush.bf16.msra.mxu3 %v8329_v39  ;;  %v9026_v39 = vld [vmem:[#allocation14 + $0x5a4] sm:$0xf0] }
 0x839   :  { %v6555_v24 = vsub.f32 0.0, %v5742_v17  ;;  %v5655_v50 = vadd.f32 %v5654_v36, %v5566_v58  ;;  %5906 = vmatpush.bf16.msra.mxu0 %v8581_v20  ;;  %v8553_v17 = vor.u32 %v9364_v48, %v8550_v29 }
 0x83b   :  { %v10097_v18 = vpop.eup %10096  ;;  %v6811_v12 = vmul.f32 1.442695, %v6555_v24  ;;  %v12678_v7 = vpop.f32.mrf.mxu3 }
 0x83c   :  { %v12680_v56 = vpop.f32.mrf.mxu0  ;;  %v10099_v0 = vpop.eup %10098  ;;  %v7220_v5 = vadd.f32 1.0, %v10097_v18 }
 0x83d   :  { %7661 = vst [vmem:[#allocation16 + $0x90] sm:$0xff] %v10099_v0  ;;  %10100 = vpow2.f32 %v6811_v12  ;;  %v5569_v0 = vadd.f32 %v12634_v41, %v5480_v28  ;;  %5907 = vmatpush.bf16.msra.mxu0 %v8553_v17  ;;  %v9483_v12 = vld [vmem:[#allocation14 + $0x58c] sm:$0xf] }
 0x83e   :  { %10102 = vrcp.f32 %v7220_v5  ;;  %v5743_v9 = vpop.f32.mrf.mxu2  ;;  %v9029_v49 = vor.u32 %v9483_v12, %v9026_v39 }
 0x83f   :  { %v5744_v24 = vadd.f32 %v5743_v9, %v5655_v50  ;;  %v5482_v50 = vadd.f32 %v12642_v53, %v12622_v54 }
 0x840   :  { %5533 = vmatmul.bf16.gmra.mxu3 %v13492_v55  ;;  %v5657_v32 = vpop.f32.mrf.mxu1  ;;  %6084 = vmatpush.bf16.msra.mxu2 %v9029_v49 }
 0x841   :  { %v6562_v22 = vsub.f32 0.0, %v5744_v24  ;;  %v5658_v58 = vadd.f32 %v5657_v32, %v5569_v0  ;;  %v5571_v48 = vadd.f32 %v12644_v61, %v5482_v50 }
 0x843   :  { %v10101_v13 = vpop.eup %10100  ;;  %v6825_v36 = vmul.f32 1.442695, %v6562_v22  ;;  %v12686_v60 = vpop.f32.mrf.mxu3  ;;  %5696 = vmatmul.bf16.gmra.mxu1 %v11352_v31  ;;  %5785 = vmatmul.bf16.gmra.mxu2 %v11392_v45 }
 0x844   :  { %v12688_v5 = vpop.f32.mrf.mxu0  ;;  %v10103_v51 = vpop.eup %10102  ;;  %v7227_v18 = vadd.f32 1.0, %v10101_v13 }
 0x845   :  { %7668 = vst [vmem:[#allocation16 + $0xc8] sm:$0xff] %v10103_v51  ;;  %10104 = vpow2.f32 %v6825_v36  ;;  %v9427_v36 = vld [vmem:[#allocation14 + $0x3cc] sm:$0xf]  ;;  %v8802_v51 = vld [vmem:[#allocation14 + $0x3e4] sm:$0xf0] }
 0x846   :  { %10106 = vrcp.f32 %v7227_v18  ;;  %5622 = vmatmul.bf16.gmra.mxu0 %v11233_v47  ;;  %v5746_v41 = vpop.f32.mrf.mxu2  ;;  %v8805_v18 = vor.u32 %v9427_v36, %v8802_v51 }
 0x847   :  { %v5747_v20 = vadd.f32 %v5746_v41, %v5658_v58  ;;  %v5485_v58 = vadd.f32 %v12650_v63, %v12622_v54 }
 0x848   :  { %v5659_v9 = vpop.f32.mrf.mxu1  ;;  %5995 = vmatpush.bf16.msra.mxu1 %v8805_v18 }
 0x849   :  { %v6569_v28 = vsub.f32 0.0, %v5747_v20  ;;  %v5660_v0 = vadd.f32 %v5659_v9, %v5571_v48  ;;  %v5574_v49 = vadd.f32 %v12652_v34, %v5485_v58  ;;  %v5487_v34 = vadd.f32 %v12660_v10, %v12622_v54 }
 0x84a   :  { %v5490_v10 = vadd.f32 %v12668_v40, %v12622_v54 }
 0x84b   :  { %v10105_v24 = vpop.eup %10104  ;;  %v6839_v29 = vmul.f32 1.442695, %v6569_v28  ;;  %v12696_v22 = vpop.f32.mrf.mxu3  ;;  %v5576_v36 = vadd.f32 %v12662_v44, %v5487_v34 }
 0x84c   :  { %v12698_v32 = vpop.f32.mrf.mxu0  ;;  %v10107_v17 = vpop.eup %10106  ;;  %v7234_v13 = vadd.f32 1.0, %v10105_v24 }
 0x84d   :  { %7675 = vst [vmem:[#allocation16 + $0x100] sm:$0xff] %v10107_v17  ;;  %10108 = vpow2.f32 %v6839_v29 }
 0x84e   :  { %10110 = vrcp.f32 %v7234_v13  ;;  %v5748_v53 = vpop.f32.mrf.mxu2 }
 0x84f   :  { %v5749_v12 = vadd.f32 %v5748_v53, %v5660_v0 }
 0x850   :  { %5538 = vmatmul.bf16.gmra.mxu3 %v11205_v35  ;;  %v5662_v61 = vpop.f32.mrf.mxu1 }
 0x851   :  { %v6576_v39 = vsub.f32 0.0, %v5749_v12  ;;  %v5663_v24 = vadd.f32 %v5662_v61, %v5574_v49 }
 0x853   :  { %v10109_v41 = vpop.eup %10108  ;;  %v6853_v50 = vmul.f32 1.442695, %v6576_v39  ;;  %v12704_v20 = vpop.f32.mrf.mxu3  ;;  %5701 = vmatmul.bf16.gmra.mxu1 %v11364_v23  ;;  %5790 = vmatmul.bf16.gmra.mxu2 %v11408_v19 }
 0x854   :  { %v12706_v9 = vpop.f32.mrf.mxu0  ;;  %v10111_v28 = vpop.eup %10110  ;;  %v7241_v63 = vadd.f32 1.0, %v10109_v41 }
 0x855   :  { %7682 = vst [vmem:[#allocation16 + $0x138] sm:$0xff] %v10111_v28  ;;  %10112 = vpow2.f32 %v6853_v50  ;;  %v5579_v28 = vadd.f32 %v12670_v8, %v5490_v10 }
 0x856   :  { %10114 = vrcp.f32 %v7241_v63  ;;  %5627 = vmatmul.bf16.gmra.mxu0 %v11248_v4  ;;  %v5751_v48 = vpop.f32.mrf.mxu2 }
 0x857   :  { %v5752_v29 = vadd.f32 %v5751_v48, %v5663_v24 }
 0x858   :  { %v5664_v17 = vpop.f32.mrf.mxu1 }
 0x859   :  { %v6583_v13 = vsub.f32 0.0, %v5752_v29  ;;  %v5665_v61 = vadd.f32 %v5664_v17, %v5576_v36  ;;  %v9476_v17 = vld [vmem:[#allocation14 + $0x554] sm:$0xf]  ;;  %v5492_v36 = vadd.f32 %v12678_v7, %v12622_v54 }
 0x85b   :  { %v10113_v0 = vpop.eup %10112  ;;  %v6867_v51 = vmul.f32 1.442695, %v6583_v13  ;;  %v12714_v53 = vpop.f32.mrf.mxu3  ;;  %v8998_v13 = vld [vmem:[#allocation14 + $0x56c] sm:$0xf0] }
 0x85c   :  { %v12716_v18 = vpop.f32.mrf.mxu0  ;;  %v10115_v58 = vpop.eup %10114  ;;  %v7248_v12 = vadd.f32 1.0, %v10113_v0  ;;  %v9001_v8 = vor.u32 %v9476_v17, %v8998_v13 }
 0x85d   :  { %7689 = vst [vmem:[#allocation16 + $0x170] sm:$0xff] %v10115_v58  ;;  %10116 = vpow2.f32 %v6867_v51 }
 0x85e   :  { %10118 = vrcp.f32 %v7248_v12  ;;  %v5753_v39 = vpop.f32.mrf.mxu2  ;;  %6085 = vmatpush.bf16.msra.mxu2 %v9001_v8 }
 0x85f   :  { %v5754_v41 = vadd.f32 %v5753_v39, %v5665_v61  ;;  %v5581_v39 = vadd.f32 %v12680_v56, %v5492_v36 }
 0x860   :  { %v5667_v49 = vpop.f32.mrf.mxu1  ;;  %5819 = vmatmul.bf16.vlgmr.msra.gmra.mxu3 %v11009_v30 }
 0x861   :  { %v6590_v44 = vsub.f32 0.0, %v5754_v41  ;;  %v5668_v40 = vadd.f32 %v5667_v49, %v5579_v28 }
 0x863   :  { %v10117_v50 = vpop.eup %10116  ;;  %v6881_v63 = vmul.f32 1.442695, %v6590_v44  ;;  %v12722_v24 = vpop.f32.mrf.mxu3  ;;  %5706 = vmatmul.bf16.gmra.mxu1 %v11376_v27  ;;  %5795 = vmatmul.bf16.gmra.mxu2 %v11424_v52 }
 0x864   :  { %v12724_v48 = vpop.f32.mrf.mxu0  ;;  %v10119_v34 = vpop.eup %10118  ;;  %v7255_v29 = vadd.f32 1.0, %v10117_v50 }
 0x865   :  { %7696 = vst [vmem:[#allocation16 + $0x1a8] sm:$0xff] %v10119_v34  ;;  %10120 = vpow2.f32 %v6881_v63  ;;  %v9420_v63 = vld [vmem:[#allocation14 + $0x394] sm:$0xf]  ;;  %v8774_v34 = vld [vmem:[#allocation14 + $0x3ac] sm:$0xf0] }
 0x866   :  { %10122 = vrcp.f32 %v7255_v29  ;;  %v5756_v0 = vpop.f32.mrf.mxu2  ;;  %5908 = vmatmul.bf16.vlgmr.msra.gmra.mxu0 %v11061_v26  ;;  %v8777_v29 = vor.u32 %v9420_v63, %v8774_v34 }
 0x867   :  { %v5757_v51 = vadd.f32 %v5756_v0, %v5668_v40  ;;  %v5495_v40 = vadd.f32 %v12686_v60, %v12622_v54 }
 0x868   :  { %v5669_v58 = vpop.f32.mrf.mxu1  ;;  %5996 = vmatpush.bf16.msra.mxu1 %v8777_v29 }
 0x869   :  { %v6597_v12 = vsub.f32 0.0, %v5757_v51  ;;  %v5670_v28 = vadd.f32 %v5669_v58, %v5581_v39  ;;  %v5584_v8 = vadd.f32 %v12688_v5, %v5495_v40  ;;  %v5497_v5 = vadd.f32 %v12696_v22, %v12622_v54 }
 0x86b   :  { %v10121_v61 = vpop.eup %10120  ;;  %v6895_v10 = vmul.f32 1.442695, %v6597_v12  ;;  %v12732_v41 = vpop.f32.mrf.mxu3  ;;  %v5586_v63 = vadd.f32 %v12698_v32, %v5497_v5 }
 0x86c   :  { %v12734_v49 = vpop.f32.mrf.mxu0  ;;  %v10123_v44 = vpop.eup %10122  ;;  %v7262_v50 = vadd.f32 1.0, %v10121_v61 }
 0x86d   :  { %7703 = vst [vmem:[#allocation16 + $0x1e0] sm:$0xff] %v10123_v44  ;;  %10124 = vpow2.f32 %v6895_v10 }
 0x86e   :  { %10126 = vrcp.f32 %v7262_v50  ;;  %v5758_v7 = vpop.f32.mrf.mxu2 }
 0x86f   :  { %v5759_v17 = vadd.f32 %v5758_v7, %v5670_v28 }
 0x870   :  { %v5672_v56 = vpop.f32.mrf.mxu1  ;;  %5824 = vmatmul.bf16.gmra.mxu3 %v11025_v57 }
 0x871   :  { %v6604_v13 = vsub.f32 0.0, %v5759_v17  ;;  %v5673_v61 = vadd.f32 %v5672_v56, %v5584_v8 }
 0x873   :  { %v10125_v0 = vpop.eup %10124  ;;  %v6909_v36 = vmul.f32 1.442695, %v6604_v13  ;;  %v12740_v51 = vpop.f32.mrf.mxu3  ;;  %5711 = vmatmul.bf16.gmra.mxu1 %v11388_v25  ;;  %5800 = vmatmul.bf16.gmra.mxu2 %v11440_v1  ;;  %v8528_v13 = vld [vmem:[#allocation14 + $0x1a0] sm:$0xf] }
 0x874   :  { %v12742_v58 = vpop.f32.mrf.mxu0  ;;  %v10127_v12 = vpop.eup %10126  ;;  %v7269_v60 = vadd.f32 1.0, %v10125_v0  ;;  %v9361_v0 = vld [vmem:[#allocation14 + $0x1b8] sm:$0xf0] }
 0x875   :  { %7710 = vst [vmem:[#allocation16 + $0x218] sm:$0xff] %v10127_v12  ;;  %10128 = vpow2.f32 %v6909_v36  ;;  %v8529_v8 = vor.u32 %v9361_v0, %v8528_v13  ;;  %v5500_v36 = vadd.f32 %v12704_v20, %v12622_v54  ;;  %v5502_v13 = vadd.f32 %v12714_v53, %v12622_v54  ;;  %v8976_v53 = vld [vmem:[#allocation14 + $0x520] sm:$0xf] }
 0x876   :  { %10130 = vrcp.f32 %v7269_v60  ;;  %v5761_v39 = vpop.f32.mrf.mxu2  ;;  %5913 = vmatmul.bf16.gmra.mxu0 %v11073_v42 }
 0x877   :  { %v5762_v10 = vadd.f32 %v5761_v39, %v5673_v61  ;;  %6167 = vmatpush.bf16.msrb.mxu3 %v8529_v8  ;;  %v5589_v39 = vadd.f32 %v12706_v9, %v5500_v36 }
 0x878   :  { %v5674_v44 = vpop.f32.mrf.mxu1 }
 0x879   :  { %v6611_v50 = vsub.f32 0.0, %v5762_v10  ;;  %v5675_v56 = vadd.f32 %v5674_v44, %v5586_v63  ;;  %v9200_v63 = vld [vmem:[#allocation14 + $0x6e0] sm:$0xf] }
 0x87b   :  { %v10129_v28 = vpop.eup %10128  ;;  %v6923_v34 = vmul.f32 1.442695, %v6611_v50  ;;  %v12750_v7 = vpop.f32.mrf.mxu3 }
 0x87c   :  { %v12752_v29 = vpop.f32.mrf.mxu0  ;;  %v10131_v40 = vpop.eup %10130  ;;  %v7276_v17 = vadd.f32 1.0, %v10129_v28 }
 0x87d   :  { %7717 = vst [vmem:[#allocation16 + $0x250] sm:$0xff] %v10131_v40  ;;  %10132 = vpow2.f32 %v6923_v34  ;;  %v9529_v34 = vld [vmem:[#allocation14 + $0x6f8] sm:$0xf0] }
 0x87e   :  { %10134 = vrcp.f32 %v7276_v17  ;;  %v5763_v22 = vpop.f32.mrf.mxu2  ;;  %v9201_v9 = vor.u32 %v9529_v34, %v9200_v63  ;;  %v8752_v17 = vld [vmem:[#allocation14 + $0x360] sm:$0xf] }
 0x87f   :  { %v5764_v12 = vadd.f32 %v5763_v22, %v5675_v56  ;;  %v9417_v56 = vld [vmem:[#allocation14 + $0x378] sm:$0xf0] }
 0x880   :  { %v5677_v32 = vpop.f32.mrf.mxu1  ;;  %5829 = vmatmul.bf16.gmra.mxu3 %v11044_v62  ;;  %v8753_v22 = vor.u32 %v9417_v56, %v8752_v17  ;;  %6434 = vmatpush.bf16.msrb.mxu2 %v9201_v9 }
 0x881   :  { %v6618_v60 = vsub.f32 0.0, %v5764_v12  ;;  %v5678_v28 = vadd.f32 %v5677_v32, %v5589_v39  ;;  %v5591_v32 = vadd.f32 %v12716_v18, %v5502_v13 }
 0x882   :  { %6256 = vmatpush.bf16.msrb.mxu0 %v8753_v22 }
 0x883   :  { %v10133_v61 = vpop.eup %10132  ;;  %v6937_v5 = vmul.f32 1.442695, %v6618_v60  ;;  %v12758_v10 = vpop.f32.mrf.mxu3  ;;  %5716 = vmatmul.bf16.gmra.mxu1 %v11400_v38  ;;  %5805 = vmatmul.bf16.gmra.mxu2 %v11464_v15 }
 0x884   :  { %v12760_v44 = vpop.f32.mrf.mxu0  ;;  %v10135_v50 = vpop.eup %10134  ;;  %v7283_v20 = vadd.f32 1.0, %v10133_v61 }
 0x885   :  { %7724 = vst [vmem:[#allocation16 + $0x288] sm:$0xff] %v10135_v50  ;;  %10136 = vpow2.f32 %v6937_v5 }
 0x886   :  { %10138 = vrcp.f32 %v7283_v20  ;;  %v5766_v40 = vpop.f32.mrf.mxu2  ;;  %5918 = vmatmul.bf16.gmra.mxu0 %v11085_v33 }
 0x887   :  { %v5767_v0 = vadd.f32 %v5766_v40, %v5678_v28  ;;  %v9473_v28 = vld [vmem:[#allocation14 + $0x538] sm:$0xf0]  ;;  %v5505_v40 = vadd.f32 %v12722_v24, %v12622_v54 }
 0x888   :  { %v5679_v8 = vpop.f32.mrf.mxu1  ;;  %v8977_v34 = vor.u32 %v9473_v28, %v8976_v53 }
 0x889   :  { %v6625_v36 = vsub.f32 0.0, %v5767_v0  ;;  %v5680_v20 = vadd.f32 %v5679_v8, %v5591_v32  ;;  %v5594_v13 = vadd.f32 %v12724_v48, %v5505_v40  ;;  %v5507_v48 = vadd.f32 %v12732_v41, %v12622_v54 }
 0x88a   :  { %6345 = vmatpush.bf16.msrb.mxu1 %v8977_v34 }
 0x88b   :  { %v10137_v12 = vpop.eup %10136  ;;  %v6951_v60 = vmul.f32 1.442695, %v6625_v36  ;;  %v12768_v61 = vpop.f32.mrf.mxu3  ;;  %v5596_v53 = vadd.f32 %v12734_v49, %v5507_v48 }
 0x88c   :  { %v12770_v39 = vpop.f32.mrf.mxu0  ;;  %v10139_v5 = vpop.eup %10138  ;;  %v7290_v50 = vadd.f32 1.0, %v10137_v12 }
 0x88d   :  { %7731 = vst [vmem:[#allocation16 + $0x2c0] sm:$0xff] %v10139_v5  ;;  %10140 = vpow2.f32 %v6951_v60 }
 0x88e   :  { %10142 = vrcp.f32 %v7290_v50  ;;  %v5768_v63 = vpop.f32.mrf.mxu2 }
 0x88f   :  { %v5769_v9 = vadd.f32 %v5768_v63, %v5680_v20 }
 0x890   :  { %v5682_v18 = vpop.f32.mrf.mxu1  ;;  %5834 = vmatmul.bf16.gmra.mxu3 %v11056_v11 }
 0x891   :  { %v6632_v17 = vsub.f32 0.0, %v5769_v9  ;;  %v5683_v12 = vadd.f32 %v5682_v18, %v5594_v13 }
 0x893   :  { %v10141_v56 = vpop.eup %10140  ;;  %v6965_v0 = vmul.f32 1.442695, %v6632_v17  ;;  %v12776_v22 = vpop.f32.mrf.mxu3  ;;  %5997 = vmatmul.bf16.vlgmr.msra.gmra.mxu1 %v11217_v6  ;;  %6086 = vmatmul.bf16.vlgmr.msra.gmra.mxu2 %v13493_v37  ;;  %v8500_v17 = vld [vmem:[#allocation14 + $0x168] sm:$0xf] }
 0x894   :  { %v12778_v8 = vpop.f32.mrf.mxu0  ;;  %v10143_v36 = vpop.eup %10142  ;;  %v7297_v24 = vadd.f32 1.0, %v10141_v56  ;;  %v9354_v56 = vld [vmem:[#allocation14 + $0x180] sm:$0xf0] }
 0x895   :  { %7738 = vst [vmem:[#allocation16 + $0x2f8] sm:$0xff] %v10143_v36  ;;  %10144 = vpow2.f32 %v6965_v0  ;;  %v8501_v13 = vor.u32 %v9354_v56, %v8500_v17  ;;  %v5510_v0 = vadd.f32 %v12740_v51, %v12622_v54  ;;  %v5512_v17 = vadd.f32 %v12750_v7, %v12622_v54  ;;  %v8948_v7 = vld [vmem:[#allocation14 + $0x4e8] sm:$0xf] }
 0x896   :  { %10146 = vrcp.f32 %v7297_v24  ;;  %v5771_v32 = vpop.f32.mrf.mxu2  ;;  %5923 = vmatmul.bf16.gmra.mxu0 %v11097_v16 }
 0x897   :  { %v5772_v60 = vadd.f32 %v5771_v32, %v5683_v12  ;;  %6168 = vmatpush.bf16.msrb.mxu3 %v8501_v13  ;;  %v5599_v32 = vadd.f32 %v12742_v58, %v5510_v0 }
 0x898   :  { %v5684_v5 = vpop.f32.mrf.mxu1 }
 0x899   :  { %v6639_v50 = vsub.f32 0.0, %v5772_v60  ;;  %v5685_v18 = vadd.f32 %v5684_v5, %v5596_v53  ;;  %v9172_v53 = vld [vmem:[#allocation14 + $0x6a8] sm:$0xf] }
 0x89b   :  { %v10145_v20 = vpop.eup %10144  ;;  %v6979_v28 = vmul.f32 1.442695, %v6639_v50  ;;  %v12786_v63 = vpop.f32.mrf.mxu3 }
 0x89c   :  { %v12788_v34 = vpop.f32.mrf.mxu0  ;;  %v10147_v40 = vpop.eup %10146  ;;  %v7304_v9 = vadd.f32 1.0, %v10145_v20 }
 0x89d   :  { %7745 = vst [vmem:[#allocation16 + $0x330] sm:$0xff] %v10147_v40  ;;  %10148 = vpow2.f32 %v6979_v28  ;;  %v9522_v28 = vld [vmem:[#allocation14 + $0x6c0] sm:$0xf0] }
 0x89e   :  { %10150 = vrcp.f32 %v7304_v9  ;;  %v5773_v41 = vpop.f32.mrf.mxu2  ;;  %v9173_v58 = vor.u32 %v9522_v28, %v9172_v53  ;;  %v8724_v9 = vld [vmem:[#allocation14 + $0x328] sm:$0xf] }
 0x89f   :  { %v5774_v36 = vadd.f32 %v5773_v41, %v5685_v18  ;;  %v9410_v18 = vld [vmem:[#allocation14 + $0x340] sm:$0xf0] }
 0x8a0   :  { %v5687_v49 = vpop.f32.mrf.mxu1  ;;  %5839 = vmatmul.bf16.gmra.mxu3 %v13525_v2  ;;  %v8725_v41 = vor.u32 %v9410_v18, %v8724_v9  ;;  %6435 = vmatpush.bf16.msrb.mxu2 %v9173_v58 }
 0x8a1   :  { %v6646_v24 = vsub.f32 0.0, %v5774_v36  ;;  %v5688_v20 = vadd.f32 %v5687_v49, %v5599_v32  ;;  %v5601_v49 = vadd.f32 %v12752_v29, %v5512_v17 }
 0x8a2   :  { %6257 = vmatpush.bf16.msrb.mxu0 %v8725_v41 }
 0x8a3   :  { %v10149_v12 = vpop.eup %10148  ;;  %v6993_v48 = vmul.f32 1.442695, %v6646_v24  ;;  %v12794_v60 = vpop.f32.mrf.mxu3  ;;  %6002 = vmatmul.bf16.gmra.mxu1 %v13526_v21  ;;  %6091 = vmatmul.bf16.gmra.mxu2 %v13558_v59 }
 0x8a4   :  { %v12796_v5 = vpop.f32.mrf.mxu0  ;;  %v10151_v50 = vpop.eup %10150  ;;  %v7311_v51 = vadd.f32 1.0, %v10149_v12 }
 0x8a5   :  { %7752 = vst [vmem:[#allocation16 + $0x368] sm:$0xff] %v10151_v50  ;;  %10152 = vpow2.f32 %v6993_v48 }
 0x8a6   :  { %10154 = vrcp.f32 %v7311_v51  ;;  %v5776_v40 = vpop.f32.mrf.mxu2  ;;  %5928 = vmatmul.bf16.gmra.mxu0 %v13559_v14 }
 0x8a7   :  { %v5777_v56 = vadd.f32 %v5776_v40, %v5688_v20  ;;  %v9466_v20 = vld [vmem:[#allocation14 + $0x500] sm:$0xf0]  ;;  %v5515_v40 = vadd.f32 %v12758_v10, %v12622_v54 }
 0x8a8   :  { %v5689_v13 = vpop.f32.mrf.mxu1  ;;  %v8949_v28 = vor.u32 %v9466_v20, %v8948_v7 }
 0x8a9   :  { %v6653_v0 = vsub.f32 0.0, %v5777_v56  ;;  %v5690_v51 = vadd.f32 %v5689_v13, %v5601_v49  ;;  %v5604_v17 = vadd.f32 %v12760_v44, %v5515_v40  ;;  %v5517_v44 = vadd.f32 %v12768_v61, %v12622_v54 }
 0x8aa   :  { %6346 = vmatpush.bf16.msrb.mxu1 %v8949_v28 }
 0x8ab   :  { %v10153_v36 = vpop.eup %10152  ;;  %v7007_v24 = vmul.f32 1.442695, %v6653_v0  ;;  %v12804_v12 = vpop.f32.mrf.mxu3  ;;  %v13624_v0 = vld [vmem:[#allocation51_spill] sm:$0xff] }
 0x8ac   :  { %v12806_v32 = vpop.f32.mrf.mxu0  ;;  %v10155_v48 = vpop.eup %10154  ;;  %v7318_v50 = vadd.f32 1.0, %v10153_v36 }
 0x8ad   :  { %7759 = vst [vmem:[#allocation16 + $0x3a0] sm:$0xff] %v10155_v48  ;;  %10156 = vpow2.f32 %v7007_v24  ;;  %v13625_v48 = vld [vmem:[#allocation29_spill] sm:$0xff] }
 0x8ae   :  { %10158 = vrcp.f32 %v7318_v50  ;;  %v5778_v53 = vpop.f32.mrf.mxu2 }
 0x8af   :  { %v5779_v58 = vadd.f32 %v5778_v53, %v5690_v51  ;;  %v5606_v53 = vadd.f32 %v12770_v39, %v5517_v44 }
 0x8b0   :  { %v5692_v29 = vpop.f32.mrf.mxu1  ;;  %5844 = vmatmul.bf16.gmra.mxu3 %v13591_v46 }
 0x8b1   :  { %v6660_v9 = vsub.f32 0.0, %v5779_v58  ;;  %v5693_v49 = vadd.f32 %v5692_v29, %v5604_v17  ;;  %v8472_v17 = vld [vmem:[#allocation14 + $0x130] sm:$0xf] }
 0x8b3   :  { %v10157_v18 = vpop.eup %10156  ;;  %v7021_v56 = vmul.f32 1.442695, %v6660_v9  ;;  %v12812_v41 = vpop.f32.mrf.mxu3  ;;  %6007 = vmatmul.bf16.gmra.mxu1 %v13592_v43  ;;  %6096 = vmatmul.bf16.gmra.mxu2 %v13624_v0 }
 0x8b4   :  { %v12814_v13 = vpop.f32.mrf.mxu0  ;;  %v10159_v36 = vpop.eup %10158  ;;  %v7325_v10 = vadd.f32 1.0, %v10157_v18 }
 0x8b5   :  { %7766 = vst [vmem:[#allocation16 + $0x3d8] sm:$0xff] %v10159_v36  ;;  %10160 = vpow2.f32 %v7021_v56  ;;  %v9347_v56 = vld [vmem:[#allocation14 + $0x148] sm:$0xf0] }
 0x8b6   :  { %10162 = vrcp.f32 %v7325_v10  ;;  %v5781_v24 = vpop.f32.mrf.mxu2  ;;  %5933 = vmatmul.bf16.gmra.mxu0 %v13625_v48  ;;  %v8473_v36 = vor.u32 %v9347_v56, %v8472_v17  ;;  %v5520_v10 = vadd.f32 %v12776_v22, %v12622_v54  ;;  %v9144_v17 = vld [vmem:[#allocation14 + $0x670] sm:$0xf]  ;;  %v9515_v56 = vld [vmem:[#allocation14 + $0x688] sm:$0xf0] }
 0x8b7   :  { %v5782_v50 = vadd.f32 %v5781_v24, %v5693_v49  ;;  %v13626_v24 = vld [vmem:[#allocation25_spill] sm:$0xff] }
 0x8b8   :  { %v5694_v51 = vpop.f32.mrf.mxu1  ;;  %6169 = vmatpush.bf16.msrb.mxu3 %v8473_v36  ;;  %v13629_v36 = vld [vmem:[#allocation31_spill] sm:$0xff]  ;;  %v8584_v48 = vld [vmem:[#allocation14 + $0x210] sm:$0xf] }
 0x8b9   :  { %v6667_v7 = vsub.f32 0.0, %v5782_v50  ;;  %v5695_v18 = vadd.f32 %v5694_v51, %v5606_v53  ;;  %v13627_v53 = vld [vmem:[#allocation46_spill] sm:$0xff] }
 0x8bb   :  { %v10161_v20 = vpop.eup %10160  ;;  %v7035_v28 = vmul.f32 1.442695, %v6667_v7  ;;  %v12822_v40 = vpop.f32.mrf.mxu3  ;;  %v5609_v7 = vadd.f32 %v12778_v8, %v5520_v10  ;;  %v9145_v8 = vor.u32 %v9515_v56, %v9144_v17  ;;  %v8696_v10 = vld [vmem:[#allocation14 + $0x2f0] sm:$0xf] }
 0x8bc   :  { %v12824_v58 = vpop.f32.mrf.mxu0  ;;  %v10163_v9 = vpop.eup %10162  ;;  %v7332_v29 = vadd.f32 1.0, %v10161_v20 }
 0x8bd   :  { %7773 = vst [vmem:[#allocation16 + $0x410] sm:$0xff] %v10163_v9  ;;  %10164 = vpow2.f32 %v7035_v28  ;;  %v13628_v9 = vld [vmem:[#allocation53_spill] sm:$0xff]  ;;  %6436 = vmatpush.bf16.msrb.mxu2 %v9145_v8 }
 0x8be   :  { %10166 = vrcp.f32 %v7332_v29  ;;  %v5783_v61 = vpop.f32.mrf.mxu2 }
 0x8bf   :  { %v5784_v49 = vadd.f32 %v5783_v61, %v5695_v18 }
 0x8c0   :  { %v5697_v39 = vpop.f32.mrf.mxu1  ;;  %5849 = vmatmul.bf16.gmra.mxu3 %v13626_v24 }
 0x8c1   :  { %v6674_v44 = vsub.f32 0.0, %v5784_v49  ;;  %v5698_v18 = vadd.f32 %v5697_v39, %v5609_v7  ;;  %v9403_v49 = vld [vmem:[#allocation14 + $0x308] sm:$0xf0] }
 0x8c2   :  { %v8697_v24 = vor.u32 %v9403_v49, %v8696_v10 }
 0x8c3   :  { %v10165_v50 = vpop.eup %10164  ;;  %v7049_v20 = vmul.f32 1.442695, %v6674_v44  ;;  %v12830_v28 = vpop.f32.mrf.mxu3  ;;  %6012 = vmatmul.bf16.gmra.mxu1 %v13627_v53  ;;  %6101 = vmatmul.bf16.gmra.mxu2 %v13628_v9  ;;  %v5522_v44 = vadd.f32 %v12786_v63, %v12622_v54  ;;  %v8920_v63 = vld [vmem:[#allocation14 + $0x4b0] sm:$0xf] }
 0x8c4   :  { %v12832_v51 = vpop.f32.mrf.mxu0  ;;  %v10167_v29 = vpop.eup %10166  ;;  %v7339_v22 = vadd.f32 1.0, %v10165_v50  ;;  %6258 = vmatpush.bf16.msrb.mxu0 %v8697_v24  ;;  %v5525_v24 = vadd.f32 %v12794_v60, %v12622_v54 }
 0x8c5   :  { %7780 = vst [vmem:[#allocation16 + $0x448] sm:$0xff] %v10167_v29  ;;  %10168 = vpow2.f32 %v7049_v20  ;;  %v5611_v39 = vadd.f32 %v12788_v34, %v5522_v44 }
 0x8c6   :  { %10170 = vrcp.f32 %v7339_v22  ;;  %v5786_v61 = vpop.f32.mrf.mxu2  ;;  %5938 = vmatmul.bf16.gmra.mxu0 %v13629_v36  ;;  %v5614_v44 = vadd.f32 %v12796_v5, %v5525_v24  ;;  %v5527_v5 = vadd.f32 %v12804_v12, %v12622_v54 }
 0x8c7   :  { %v5787_v53 = vadd.f32 %v5786_v61, %v5698_v18  ;;  %v9459_v18 = vld [vmem:[#allocation14 + $0x4c8] sm:$0xf0] }
 0x8c8   :  { %v5699_v9 = vpop.f32.mrf.mxu1  ;;  %v8921_v8 = vor.u32 %v9459_v18, %v8920_v63  ;;  %v13632_v63 = vld [vmem:[#allocation33_spill] sm:$0xff] }
 0x8c9   :  { %v6681_v50 = vsub.f32 0.0, %v5787_v53  ;;  %v5700_v36 = vadd.f32 %v5699_v9, %v5611_v39  ;;  %v13630_v39 = vld [vmem:[#allocation48_spill] sm:$0xff] }
 0x8ca   :  { %6347 = vmatpush.bf16.msrb.mxu1 %v8921_v8 }
 0x8cb   :  { %v10169_v20 = vpop.eup %10168  ;;  %v7063_v7 = vmul.f32 1.442695, %v6681_v50  ;;  %v12840_v29 = vpop.f32.mrf.mxu3 }
 0x8cc   :  { %v12842_v22 = vpop.f32.mrf.mxu0  ;;  %v10171_v17 = vpop.eup %10170  ;;  %v7346_v56 = vadd.f32 1.0, %v10169_v20 }
 0x8cd   :  { %7787 = vst [vmem:[#allocation16 + $0x480] sm:$0xff] %v10171_v17  ;;  %10172 = vpow2.f32 %v7063_v7  ;;  %v13631_v7 = vld [vmem:[#allocation55_spill] sm:$0xff] }
 0x8ce   :  { %10174 = vrcp.f32 %v7346_v56  ;;  %v5788_v61 = vpop.f32.mrf.mxu2 }
 0x8cf   :  { %v5789_v53 = vadd.f32 %v5788_v61, %v5700_v36 }
 0x8d0   :  { %v5702_v34 = vpop.f32.mrf.mxu1  ;;  %5854 = vmatmul.bf16.gmra.mxu3 %v13489_v3 }
 0x8d1   :  { %v6688_v10 = vsub.f32 0.0, %v5789_v53  ;;  %v5703_v36 = vadd.f32 %v5702_v34, %v5614_v44  ;;  %v5616_v53 = vadd.f32 %v12806_v32, %v5527_v5  ;;  %v13633_v5 = vld [vmem:[#allocation28_spill] sm:$0xff] }
 0x8d3   :  { %v10173_v49 = vpop.eup %10172  ;;  %v7077_v50 = vmul.f32 1.442695, %v6688_v10  ;;  %v12848_v20 = vpop.f32.mrf.mxu3  ;;  %6017 = vmatmul.bf16.gmra.mxu1 %v13630_v39  ;;  %6106 = vmatmul.bf16.gmra.mxu2 %v13631_v7 }
 0x8d4   :  { %v12850_v9 = vpop.f32.mrf.mxu0  ;;  %v10175_v17 = vpop.eup %10174  ;;  %v7353_v60 = vadd.f32 1.0, %v10173_v49 }
 0x8d5   :  { %7794 = vst [vmem:[#allocation16 + $0x4b8] sm:$0xff] %v10175_v17  ;;  %10176 = vpow2.f32 %v7077_v50  ;;  %v8444_v17 = vld [vmem:[#allocation14 + $0xf8] sm:$0xf] }
 0x8d6   :  { %10178 = vrcp.f32 %v7353_v60  ;;  %v5791_v56 = vpop.f32.mrf.mxu2  ;;  %5943 = vmatmul.bf16.gmra.mxu0 %v13632_v63  ;;  %v9340_v60 = vld [vmem:[#allocation14 + $0x110] sm:$0xf0] }
 0x8d7   :  { %v5792_v18 = vadd.f32 %v5791_v56, %v5703_v36  ;;  %v8445_v36 = vor.u32 %v9340_v60, %v8444_v17  ;;  %v5530_v56 = vadd.f32 %v12812_v41, %v12622_v54  ;;  %v9116_v60 = vld [vmem:[#allocation14 + $0x638] sm:$0xf] }
 0x8d8   :  { %v5704_v61 = vpop.f32.mrf.mxu1 }
 0x8d9   :  { %v6695_v8 = vsub.f32 0.0, %v5792_v18  ;;  %v5705_v44 = vadd.f32 %v5704_v61, %v5616_v53  ;;  %6170 = vmatpush.bf16.msrb.mxu3 %v8445_v36  ;;  %v13634_v53 = vld [vmem:[#allocation50_spill] sm:$0xff] }
 0x8db   :  { %v10177_v24 = vpop.eup %10176  ;;  %v7091_v10 = vmul.f32 1.442695, %v6695_v8  ;;  %v12858_v7 = vpop.f32.mrf.mxu3 }
 0x8dc   :  { %v12860_v49 = vpop.f32.mrf.mxu0  ;;  %v10179_v50 = vpop.eup %10178  ;;  %v7360_v34 = vadd.f32 1.0, %v10177_v24  ;;  %v5619_v24 = vadd.f32 %v12814_v13, %v5530_v56  ;;  %v8668_v56 = vld [vmem:[#allocation14 + $0x2b8] sm:$0xf] }
 0x8dd   :  { %7801 = vst [vmem:[#allocation16 + $0x4f0] sm:$0xff] %v10179_v50  ;;  %10180 = vpow2.f32 %v7091_v10 }
 0x8de   :  { %10182 = vrcp.f32 %v7360_v34  ;;  %v5793_v12 = vpop.f32.mrf.mxu2  ;;  %v13635_v34 = vld [vmem:[#allocation57_spill] sm:$0xff] }
 0x8df   :  { %v5794_v18 = vadd.f32 %v5793_v12, %v5705_v44  ;;  %v9508_v12 = vld [vmem:[#allocation14 + $0x650] sm:$0xf0] }
 0x8e0   :  { %v5707_v32 = vpop.f32.mrf.mxu1  ;;  %5859 = vmatmul.bf16.gmra.mxu3 %v13633_v5  ;;  %v9117_v13 = vor.u32 %v9508_v12, %v9116_v60  ;;  %v5532_v5 = vadd.f32 %v12822_v40, %v12622_v54  ;;  %v8892_v40 = vld [vmem:[#allocation14 + $0x478] sm:$0xf] }
 0x8e1   :  { %v6702_v8 = vsub.f32 0.0, %v5794_v18  ;;  %v5708_v44 = vadd.f32 %v5707_v32, %v5619_v24  ;;  %v13636_v18 = vld [vmem:[#allocation35_spill] sm:$0xff] }
 0x8e2   :  { %6437 = vmatpush.bf16.msrb.mxu2 %v9117_v13  ;;  %v5621_v32 = vadd.f32 %v12824_v58, %v5532_v5  ;;  %v13637_v5 = vld [vmem:[#allocation30_spill] sm:$0xff] }
 0x8e3   :  { %v10181_v63 = vpop.eup %10180  ;;  %v7105_v50 = vmul.f32 1.442695, %v6702_v8  ;;  %v12866_v10 = vpop.f32.mrf.mxu3  ;;  %6022 = vmatmul.bf16.gmra.mxu1 %v13634_v53  ;;  %6111 = vmatmul.bf16.gmra.mxu2 %v13635_v34  ;;  %v9396_v8 = vld [vmem:[#allocation14 + $0x2d0] sm:$0xf0] }
 0x8e4   :  { %v12868_v61 = vpop.f32.mrf.mxu0  ;;  %v10183_v17 = vpop.eup %10182  ;;  %v7367_v41 = vadd.f32 1.0, %v10181_v63  ;;  %v8669_v39 = vor.u32 %v9396_v8, %v8668_v56 }
 0x8e5   :  { %7808 = vst [vmem:[#allocation16 + $0x528] sm:$0xff] %v10183_v17  ;;  %10184 = vpow2.f32 %v7105_v50 }
 0x8e6   :  { %10186 = vrcp.f32 %v7367_v41  ;;  %v5796_v36 = vpop.f32.mrf.mxu2  ;;  %5948 = vmatmul.bf16.gmra.mxu0 %v13636_v18 }
 0x8e7   :  { %v5797_v53 = vadd.f32 %v5796_v36, %v5708_v44  ;;  %6259 = vmatpush.bf16.msrb.mxu0 %v8669_v39  ;;  %v9452_v44 = vld [vmem:[#allocation14 + $0x490] sm:$0xf0]  ;;  %v5535_v39 = vadd.f32 %v12830_v28, %v12622_v54 }
 0x8e8   :  { %v5709_v34 = vpop.f32.mrf.mxu1  ;;  %v8893_v13 = vor.u32 %v9452_v44, %v8892_v40  ;;  %v13640_v44 = vld [vmem:[#allocation37_spill] sm:$0xff] }
 0x8e9   :  { %v6709_v63 = vsub.f32 0.0, %v5797_v53  ;;  %v5710_v18 = vadd.f32 %v5709_v34, %v5621_v32  ;;  %v13638_v32 = vld [vmem:[#allocation52_spill] sm:$0xff] }
 0x8ea   :  { %6348 = vmatpush.bf16.msrb.mxu1 %v8893_v13 }
 0x8eb   :  { %v10185_v50 = vpop.eup %10184  ;;  %v7119_v24 = vmul.f32 1.442695, %v6709_v63  ;;  %v12876_v17 = vpop.f32.mrf.mxu3  ;;  %v5624_v63 = vadd.f32 %v12832_v51, %v5535_v39  ;;  %v5537_v51 = vadd.f32 %v12840_v29, %v12622_v54 }
 0x8ec   :  { %v12878_v41 = vpop.f32.mrf.mxu0  ;;  %v10187_v60 = vpop.eup %10186  ;;  %v7374_v12 = vadd.f32 1.0, %v10185_v50 }
 0x8ed   :  { %7815 = vst [vmem:[#allocation16 + $0x560] sm:$0xff] %v10187_v60  ;;  %10188 = vpow2.f32 %v7119_v24  ;;  %v13639_v60 = vld [vmem:[#allocation59_spill] sm:$0xff] }
 0x8ee   :  { %10190 = vrcp.f32 %v7374_v12  ;;  %v5798_v36 = vpop.f32.mrf.mxu2 }
 0x8ef   :  { %v5799_v53 = vadd.f32 %v5798_v36, %v5710_v18 }
 0x8f0   :  { %v5712_v58 = vpop.f32.mrf.mxu1  ;;  %5864 = vmatmul.bf16.gmra.mxu3 %v13637_v5 }
 0x8f1   :  { %v6716_v56 = vsub.f32 0.0, %v5799_v53  ;;  %v5713_v18 = vadd.f32 %v5712_v58, %v5624_v63 }
 0x8f3   :  { %v10189_v8 = vpop.eup %10188  ;;  %v7133_v50 = vmul.f32 1.442695, %v6716_v56  ;;  %v12884_v24 = vpop.f32.mrf.mxu3  ;;  %6027 = vmatmul.bf16.gmra.mxu1 %v13638_v32  ;;  %6116 = vmatmul.bf16.gmra.mxu2 %v13639_v60  ;;  %v5626_v56 = vadd.f32 %v12842_v22, %v5537_v51  ;;  %v13641_v51 = vld [vmem:[#allocation32_spill] sm:$0xff] }
 0x8f4   :  { %v12886_v34 = vpop.f32.mrf.mxu0  ;;  %v10191_v12 = vpop.eup %10190  ;;  %v7381_v28 = vadd.f32 1.0, %v10189_v8 }
 0x8f5   :  { %7822 = vst [vmem:[#allocation16 + $0x598] sm:$0xff] %v10191_v12  ;;  %10192 = vpow2.f32 %v7133_v50  ;;  %v8416_v12 = vld [vmem:[#allocation14 + $0xc0] sm:$0xf] }
 0x8f6   :  { %10194 = vrcp.f32 %v7381_v28  ;;  %v5801_v40 = vpop.f32.mrf.mxu2  ;;  %5953 = vmatmul.bf16.gmra.mxu0 %v13640_v44  ;;  %v9333_v28 = vld [vmem:[#allocation14 + $0xd8] sm:$0xf0] }
 0x8f7   :  { %v5802_v36 = vadd.f32 %v5801_v40, %v5713_v18  ;;  %v8417_v18 = vor.u32 %v9333_v28, %v8416_v12  ;;  %v5540_v40 = vadd.f32 %v12848_v20, %v12622_v54  ;;  %v9088_v28 = vld [vmem:[#allocation14 + $0x600] sm:$0xf] }
 0x8f8   :  { %v5714_v13 = vpop.f32.mrf.mxu1 }
 0x8f9   :  { %v6723_v39 = vsub.f32 0.0, %v5802_v36  ;;  %v5715_v63 = vadd.f32 %v5714_v13, %v5626_v56  ;;  %6171 = vmatpush.bf16.msrb.mxu3 %v8417_v18  ;;  %v13642_v56 = vld [vmem:[#allocation54_spill] sm:$0xff] }
 0x8fb   :  { %v10193_v53 = vpop.eup %10192  ;;  %v7147_v32 = vmul.f32 1.442695, %v6723_v39  ;;  %v12894_v60 = vpop.f32.mrf.mxu3 }
 0x8fc   :  { %v12896_v8 = vpop.f32.mrf.mxu0  ;;  %v10195_v50 = vpop.eup %10194  ;;  %v7388_v58 = vadd.f32 1.0, %v10193_v53  ;;  %v5629_v53 = vadd.f32 %v12850_v9, %v5540_v40  ;;  %v8640_v40 = vld [vmem:[#allocation14 + $0x280] sm:$0xf] }
 0x8fd   :  { %7829 = vst [vmem:[#allocation16 + $0x5d0] sm:$0xff] %v10195_v50  ;;  %10196 = vpow2.f32 %v7147_v32 }
 0x8fe   :  { %10198 = vrcp.f32 %v7388_v58  ;;  %v5803_v29 = vpop.f32.mrf.mxu2  ;;  %v13643_v58 = vld [vmem:[#allocation61_spill] sm:$0xff] }
 0x8ff   :  { %v5804_v36 = vadd.f32 %v5803_v29, %v5715_v63  ;;  %v9501_v29 = vld [vmem:[#allocation14 + $0x618] sm:$0xf0] }
 0x900   :  { %v5717_v22 = vpop.f32.mrf.mxu1  ;;  %5869 = vmatmul.bf16.gmra.mxu3 %v13641_v51  ;;  %v9089_v9 = vor.u32 %v9501_v29, %v9088_v28  ;;  %v5542_v51 = vadd.f32 %v12858_v7, %v12622_v54 }
 0x901   :  { %v6730_v39 = vsub.f32 0.0, %v5804_v36  ;;  %v5718_v63 = vadd.f32 %v5717_v22, %v5629_v53  ;;  %v13644_v36 = vld [vmem:[#allocation39_spill] sm:$0xff]  ;;  %v10475_v53 = vld [vmem:[%s13361_s8] sm:$0xff] }
 0x902   :  { %6438 = vmatpush.bf16.msrb.mxu2 %v9089_v9  ;;  %v5631_v22 = vadd.f32 %v12860_v49, %v5542_v51 }
 0x903   :  { %v10197_v44 = vpop.eup %10196  ;;  %v7161_v50 = vmul.f32 1.442695, %v6730_v39  ;;  %v12902_v32 = vpop.f32.mrf.mxu3  ;;  %6032 = vmatmul.bf16.gmra.mxu1 %v13642_v56  ;;  %6121 = vmatmul.bf16.gmra.mxu2 %v13643_v58  ;;  %v9389_v39 = vld [vmem:[#allocation14 + $0x298] sm:$0xf0] }
 0x904   :  { %v12904_v13 = vpop.f32.mrf.mxu0  ;;  %v10199_v12 = vpop.eup %10198  ;;  %v7395_v20 = vadd.f32 1.0, %v10197_v44  ;;  %v8641_v5 = vor.u32 %v9389_v39, %v8640_v40  ;;  %v13645_v40 = vld [vmem:[#allocation34_spill] sm:$0xff] }
 0x905   :  { %7836 = vst [vmem:[#allocation16 + $0x608] sm:$0xff] %v10199_v12  ;;  %10200 = vpow2.f32 %v7161_v50  ;;  %v12915_v12 = vperm.slane %v10475_v53, 5 }
 0x906   :  { %10202 = vrcp.f32 %v7395_v20  ;;  %v5806_v18 = vpop.f32.mrf.mxu2  ;;  %5958 = vmatmul.bf16.gmra.mxu0 %v13644_v36 }
 0x907   :  { %v5807_v56 = vadd.f32 %v5806_v18, %v5718_v63  ;;  %6260 = vmatpush.bf16.msrb.mxu0 %v8641_v5  ;;  %v8864_v5 = vld [vmem:[#allocation14 + $0x440] sm:$0xf]  ;;  %v9445_v63 = vld [vmem:[#allocation14 + $0x458] sm:$0xf0]  ;;  %v5821_v18 = vadd.f32 %v12866_v10, %v12915_v12 }
 0x908   :  { %v5719_v58 = vpop.f32.mrf.mxu1  ;;  %v8865_v51 = vor.u32 %v9445_v63, %v8864_v5  ;;  %v13648_v63 = vld [vmem:[#allocation41_spill] sm:$0xff] }
 0x909   :  { %v6737_v44 = vsub.f32 0.0, %v5807_v56  ;;  %v5720_v56 = vadd.f32 %v5719_v58, %v5631_v22  ;;  %v13646_v22 = vld [vmem:[#allocation56_spill] sm:$0xff] }
 0x90a   :  { %6349 = vmatpush.bf16.msrb.mxu1 %v8865_v51 }
 0x90b   :  { %v10201_v50 = vpop.eup %10200  ;;  %v7175_v20 = vmul.f32 1.442695, %v6737_v44  ;;  %v12917_v28 = vpop.f32.mrf.mxu3 }
 0x90c   :  { %v12919_v29 = vpop.f32.mrf.mxu0  ;;  %v10203_v54 = vpop.eup %10202  ;;  %v7402_v7 = vadd.f32 1.0, %v10201_v50  ;;  %v5910_v50 = vadd.f32 %v12868_v61, %v5821_v18  ;;  %v5823_v61 = vadd.f32 %v12876_v17, %v12915_v12 }
 0x90d   :  { %7843 = vst [vmem:[#allocation16 + $0x640] sm:$0xff] %v10203_v54  ;;  %10204 = vpow2.f32 %v7175_v20 }
 0x90e   :  { %10206 = vrcp.f32 %v7402_v7  ;;  %v5808_v49 = vpop.f32.mrf.mxu2  ;;  %v13647_v7 = vld [vmem:[#allocation62_spill] sm:$0xff] }
 0x90f   :  { %v5809_v9 = vadd.f32 %v5808_v49, %v5720_v56 }
 0x910   :  { %5874 = vmatmul.bf16.gmra.mxu3 %v13645_v40  ;;  %v5998_v39 = vpop.f32.mrf.mxu1 }
 0x911   :  { %v6744_v44 = vsub.f32 0.0, %v5809_v9  ;;  %v5999_v56 = vadd.f32 %v5998_v39, %v5910_v50 }
 0x913   :  { %v10205_v53 = vpop.eup %10204  ;;  %v7189_v54 = vmul.f32 1.442695, %v6744_v44  ;;  %v12925_v20 = vpop.f32.mrf.mxu3  ;;  %6037 = vmatmul.bf16.gmra.mxu1 %v13646_v22  ;;  %6126 = vmatmul.bf16.gmra.mxu2 %v13647_v7  ;;  %v5912_v22 = vadd.f32 %v12878_v41, %v5823_v61  ;;  %v13649_v41 = vld [vmem:[#allocation36_spill] sm:$0xff] }
 0x914   :  { %v12927_v58 = vpop.f32.mrf.mxu0  ;;  %v10207_v5 = vpop.eup %10206  ;;  %v7409_v10 = vadd.f32 1.0, %v10205_v53 }
 0x915   :  { %7850 = vst [vmem:[#allocation16 + $0x678] sm:$0xff] %v10207_v5  ;;  %10208 = vpow2.f32 %v7189_v54  ;;  %v8388_v5 = vld [vmem:[#allocation14 + $0x88] sm:$0xf] }
 0x916   :  { %10210 = vrcp.f32 %v7409_v10  ;;  %5963 = vmatmul.bf16.gmra.mxu0 %v13648_v63  ;;  %v6087_v49 = vpop.f32.mrf.mxu2  ;;  %v9326_v10 = vld [vmem:[#allocation14 + $0xa0] sm:$0xf0] }
 0x917   :  { %v6088_v51 = vadd.f32 %v6087_v49, %v5999_v56  ;;  %v8389_v56 = vor.u32 %v9326_v10, %v8388_v5  ;;  %v5826_v49 = vadd.f32 %v12884_v24, %v12915_v12  ;;  %v9060_v10 = vld [vmem:[#allocation14 + $0x5c8] sm:$0xf] }
 0x918   :  { %v6000_v18 = vpop.f32.mrf.mxu1 }
 0x919   :  { %v6528_v9 = vsub.f32 0.0, %v6088_v51  ;;  %v6001_v50 = vadd.f32 %v6000_v18, %v5912_v22  ;;  %6172 = vmatpush.bf16.msrb.mxu3 %v8389_v56  ;;  %v13650_v18 = vld [vmem:[#allocation58_spill] sm:$0xff] }
 0x91a   :  { %v13652_v56 = vld [vmem:[#allocation42_spill] sm:$0xff] }
 0x91b   :  { %v10209_v44 = vpop.eup %10208  ;;  %v6757_v40 = vmul.f32 1.442695, %v6528_v9  ;;  %v12935_v7 = vpop.f32.mrf.mxu3 }
 0x91c   :  { %v12937_v53 = vpop.f32.mrf.mxu0  ;;  %v10211_v54 = vpop.eup %10210  ;;  %v7416_v39 = vadd.f32 1.0, %v10209_v44  ;;  %v5915_v44 = vadd.f32 %v12886_v34, %v5826_v49 }
 0x91d   :  { %7857 = vst [vmem:[#allocation16 + $0x6b0] sm:$0xff] %v10211_v54  ;;  %10212 = vpow2.f32 %v6757_v40 }
 0x91e   :  { %10214 = vrcp.f32 %v7416_v39  ;;  %v6089_v17 = vpop.f32.mrf.mxu2  ;;  %v13651_v39 = vld [vmem:[#allocation63_spill] sm:$0xff] }
 0x91f   :  { %v6090_v51 = vadd.f32 %v6089_v17, %v6001_v50  ;;  %v9494_v17 = vld [vmem:[#allocation14 + $0x5e0] sm:$0xf0] }
 0x920   :  { %5879 = vmatmul.bf16.gmra.mxu3 %v13649_v41  ;;  %v6003_v61 = vpop.f32.mrf.mxu1  ;;  %v9061_v49 = vor.u32 %v9494_v17, %v9060_v10  ;;  %v5828_v41 = vadd.f32 %v12894_v60, %v12915_v12  ;;  %v8836_v60 = vld [vmem:[#allocation14 + $0x408] sm:$0xf] }
 0x921   :  { %v6535_v9 = vsub.f32 0.0, %v6090_v51  ;;  %v6004_v50 = vadd.f32 %v6003_v61, %v5915_v44  ;;  %v8612_v51 = vld [vmem:[#allocation14 + $0x248] sm:$0xf] }
 0x922   :  { %6439 = vmatpush.bf16.msrb.mxu2 %v9061_v49  ;;  %v5917_v61 = vadd.f32 %v12896_v8, %v5828_v41  ;;  %v13653_v8 = vld [vmem:[#allocation38_spill] sm:$0xff] }
 0x923   :  { %v10213_v63 = vpop.eup %10212  ;;  %v6771_v54 = vmul.f32 1.442695, %v6535_v9  ;;  %v12943_v40 = vpop.f32.mrf.mxu3  ;;  %6042 = vmatmul.bf16.gmra.mxu1 %v13650_v18  ;;  %6131 = vmatmul.bf16.gmra.mxu2 %v13651_v39  ;;  %v9382_v9 = vld [vmem:[#allocation14 + $0x260] sm:$0xf0] }
 0x924   :  { %v12945_v22 = vpop.f32.mrf.mxu0  ;;  %v10215_v5 = vpop.eup %10214  ;;  %v7200_v24 = vadd.f32 1.0, %v10213_v63  ;;  %v8613_v36 = vor.u32 %v9382_v9, %v8612_v51 }
 0x925   :  { %7864 = vst [vmem:[#allocation16 + $0x6e8] sm:$0xff] %v10215_v5  ;;  %10216 = vpow2.f32 %v6771_v54 }
 0x926   :  { %10218 = vrcp.f32 %v7200_v24  ;;  %5968 = vmatmul.bf16.gmra.mxu0 %v13652_v56  ;;  %v6092_v34 = vpop.f32.mrf.mxu2 }
 0x927   :  { %v6093_v18 = vadd.f32 %v6092_v34, %v6004_v50  ;;  %6261 = vmatpush.bf16.msrb.mxu0 %v8613_v36  ;;  %v9438_v50 = vld [vmem:[#allocation14 + $0x420] sm:$0xf0]  ;;  %v5831_v36 = vadd.f32 %v12902_v32, %v12915_v12 }
 0x928   :  { %v6005_v39 = vpop.f32.mrf.mxu1  ;;  %v8837_v49 = vor.u32 %v9438_v50, %v8836_v60  ;;  %v13656_v60 = vld [vmem:[#allocation43_spill] sm:$0xff] }
 0x929   :  { %v6542_v63 = vsub.f32 0.0, %v6093_v18  ;;  %v6006_v56 = vadd.f32 %v6005_v39, %v5917_v61  ;;  %v13654_v61 = vld [vmem:[#allocation60_spill] sm:$0xff] }
 0x92a   :  { %6350 = vmatpush.bf16.msrb.mxu1 %v8837_v49  ;;  %v5833_v49 = vadd.f32 %v12917_v28, %v12915_v12  ;;  %v9375_v28 = vld [vmem:[#allocation14 + $0x228] sm:$0xf0] }
 0x92b   :  { %v10217_v54 = vpop.eup %10216  ;;  %v6785_v44 = vmul.f32 1.442695, %v6542_v63  ;;  %v12953_v5 = vpop.f32.mrf.mxu3  ;;  %v5920_v63 = vadd.f32 %v12904_v13, %v5831_v36  ;;  %v9319_v13 = vld [vmem:[#allocation14 + $0x68] sm:$0xf0] }
 0x92c   :  { %v12955_v24 = vpop.f32.mrf.mxu0  ;;  %v10219_v10 = vpop.eup %10218  ;;  %v7207_v17 = vadd.f32 1.0, %v10217_v54 }
 0x92d   :  { %7648 = vst [vmem:[#allocation16 + $0x28] sm:$0xff] %v10219_v10  ;;  %10220 = vpow2.f32 %v6785_v44  ;;  %v13655_v10 = vld [vmem:[#allocation64_spill] sm:$0xff] }
 0x92e   :  { %10222 = vrcp.f32 %v7207_v17  ;;  %v6094_v34 = vpop.f32.mrf.mxu2 }
 0x92f   :  { %v6095_v18 = vadd.f32 %v6094_v34, %v6006_v56  ;;  %v8360_v34 = vld [vmem:[#allocation14 + $0x50] sm:$0xf] }
 0x930   :  { %5884 = vmatmul.bf16.gmra.mxu3 %v13653_v8  ;;  %v6008_v41 = vpop.f32.mrf.mxu1  ;;  %v9312_v8 = vld [vmem:[#allocation14 + $0x30] sm:$0xf0] }
 0x931   :  { %v6549_v51 = vsub.f32 0.0, %v6095_v18  ;;  %v6009_v56 = vadd.f32 %v6008_v41, %v5920_v63  ;;  %v8361_v18 = vor.u32 %v9319_v13, %v8360_v34 }
 0x933   :  { %v10221_v9 = vpop.eup %10220  ;;  %v6799_v54 = vmul.f32 1.442695, %v6549_v51  ;;  %v12961_v44 = vpop.f32.mrf.mxu3  ;;  %6047 = vmatmul.bf16.gmra.mxu1 %v13654_v61  ;;  %6136 = vmatmul.bf16.gmra.mxu2 %v13655_v10  ;;  %v8332_v10 = vld [vmem:[#allocation14 + $0x18] sm:$0xf] }
 0x934   :  { %v12963_v39 = vpop.f32.mrf.mxu0  ;;  %v10223_v17 = vpop.eup %10222  ;;  %v7214_v32 = vadd.f32 1.0, %v10221_v9  ;;  %6173 = vmatpush.bf16.msrb.mxu3 %v8361_v18 }
 0x935   :  { %7655 = vst [vmem:[#allocation16 + $0x60] sm:$0xff] %v10223_v17  ;;  %10224 = vpow2.f32 %v6799_v54  ;;  %v5922_v54 = vadd.f32 %v12919_v29, %v5833_v49  ;;  %v5836_v29 = vadd.f32 %v12925_v20, %v12915_v12 }
 0x936   :  { %10226 = vrcp.f32 %v7214_v32  ;;  %5973 = vmatmul.bf16.gmra.mxu0 %v13656_v60  ;;  %v6097_v50 = vpop.f32.mrf.mxu2  ;;  %v8333_v32 = vor.u32 %v9312_v8, %v8332_v10  ;;  %v8556_v8 = vld [vmem:[#allocation14 + $0x1d8] sm:$0xf]  ;;  %v9368_v10 = vld [vmem:[#allocation14 + $0x1f0] sm:$0xf0] }
 0x937   :  { %v6098_v36 = vadd.f32 %v6097_v50, %v6009_v56  ;;  %v8585_v50 = vor.u32 %v9375_v28, %v8584_v48 }
 0x938   :  { %v6010_v51 = vpop.f32.mrf.mxu1  ;;  %6174 = vmatpush.bf16.msrb.mxu3 %v8333_v32  ;;  %v9487_v32 = vld [vmem:[#allocation14 + $0x5a8] sm:$0xf0] }
 0x939   :  { %v6556_v61 = vsub.f32 0.0, %v6098_v36  ;;  %v6011_v56 = vadd.f32 %v6010_v51, %v5922_v54  ;;  %6262 = vmatpush.bf16.msrb.mxu0 %v8585_v50  ;;  %v8557_v36 = vor.u32 %v9368_v10, %v8556_v8 }
 0x93b   :  { %v10225_v9 = vpop.eup %10224  ;;  %v6813_v41 = vmul.f32 1.442695, %v6556_v61  ;;  %v12971_v63 = vpop.f32.mrf.mxu3 }
 0x93c   :  { %v12973_v17 = vpop.f32.mrf.mxu0  ;;  %v10227_v60 = vpop.eup %10226  ;;  %v7221_v3 = vadd.f32 1.0, %v10225_v9 }
 0x93d   :  { %7662 = vst [vmem:[#allocation16 + $0x98] sm:$0xff] %v10227_v60  ;;  %10228 = vpow2.f32 %v6813_v41  ;;  %v5925_v60 = vadd.f32 %v12927_v58, %v5836_v29  ;;  %6263 = vmatpush.bf16.msrb.mxu0 %v8557_v36  ;;  %v9032_v41 = vld [vmem:[#allocation14 + $0x590] sm:$0xf] }
 0x93e   :  { %10230 = vrcp.f32 %v7221_v3  ;;  %v6099_v34 = vpop.f32.mrf.mxu2  ;;  %v9033_v28 = vor.u32 %v9487_v32, %v9032_v41 }
 0x93f   :  { %v6100_v61 = vadd.f32 %v6099_v34, %v6011_v56  ;;  %v5838_v56 = vadd.f32 %v12935_v7, %v12915_v12 }
 0x940   :  { %5889 = vmatmul.bf16.gmra.mxu3 %v13492_v55  ;;  %v6013_v13 = vpop.f32.mrf.mxu1  ;;  %6440 = vmatpush.bf16.msrb.mxu2 %v9033_v28 }
 0x941   :  { %v6563_v49 = vsub.f32 0.0, %v6100_v61  ;;  %v6014_v54 = vadd.f32 %v6013_v13, %v5925_v60  ;;  %v5927_v8 = vadd.f32 %v12937_v53, %v5838_v56 }
 0x943   :  { %v10229_v18 = vpop.eup %10228  ;;  %v6827_v51 = vmul.f32 1.442695, %v6563_v49  ;;  %v12979_v48 = vpop.f32.mrf.mxu3  ;;  %6052 = vmatmul.bf16.gmra.mxu1 %v11352_v31  ;;  %6141 = vmatmul.bf16.gmra.mxu2 %v11392_v45 }
 0x944   :  { %v12981_v3 = vpop.f32.mrf.mxu0  ;;  %v10231_v20 = vpop.eup %10230  ;;  %v7228_v9 = vadd.f32 1.0, %v10229_v18 }
 0x945   :  { %7669 = vst [vmem:[#allocation16 + $0xd0] sm:$0xff] %v10231_v20  ;;  %10232 = vpow2.f32 %v6827_v51  ;;  %v8808_v51 = vld [vmem:[#allocation14 + $0x3d0] sm:$0xf]  ;;  %v9431_v20 = vld [vmem:[#allocation14 + $0x3e8] sm:$0xf0] }
 0x946   :  { %10234 = vrcp.f32 %v7228_v9  ;;  %5978 = vmatmul.bf16.gmra.mxu0 %v11233_v47  ;;  %v6102_v58 = vpop.f32.mrf.mxu2  ;;  %v8809_v9 = vor.u32 %v9431_v20, %v8808_v51 }
 0x947   :  { %v6103_v50 = vadd.f32 %v6102_v58, %v6014_v54  ;;  %v5841_v54 = vadd.f32 %v12943_v40, %v12915_v12 }
 0x948   :  { %v6015_v34 = vpop.f32.mrf.mxu1  ;;  %6351 = vmatpush.bf16.msrb.mxu1 %v8809_v9 }
 0x949   :  { %v6570_v29 = vsub.f32 0.0, %v6103_v50  ;;  %v6016_v60 = vadd.f32 %v6015_v34, %v5927_v8  ;;  %v5930_v28 = vadd.f32 %v12945_v22, %v5841_v54  ;;  %v5843_v22 = vadd.f32 %v12953_v5, %v12915_v12 }
 0x94a   :  { %v5846_v5 = vadd.f32 %v12961_v44, %v12915_v12 }
 0x94b   :  { %v10233_v61 = vpop.eup %10232  ;;  %v6841_v10 = vmul.f32 1.442695, %v6570_v29  ;;  %v12989_v49 = vpop.f32.mrf.mxu3  ;;  %v5932_v51 = vadd.f32 %v12955_v24, %v5843_v22 }
 0x94c   :  { %v12991_v13 = vpop.f32.mrf.mxu0  ;;  %v10235_v36 = vpop.eup %10234  ;;  %v7235_v18 = vadd.f32 1.0, %v10233_v61 }
 0x94d   :  { %7676 = vst [vmem:[#allocation16 + $0x108] sm:$0xff] %v10235_v36  ;;  %10236 = vpow2.f32 %v6841_v10 }
 0x94e   :  { %10238 = vrcp.f32 %v7235_v18  ;;  %v6104_v7 = vpop.f32.mrf.mxu2 }
 0x94f   :  { %v6105_v41 = vadd.f32 %v6104_v7, %v6016_v60 }
 0x950   :  { %5894 = vmatmul.bf16.gmra.mxu3 %v11205_v35  ;;  %v6018_v53 = vpop.f32.mrf.mxu1 }
 0x951   :  { %v6577_v32 = vsub.f32 0.0, %v6105_v41  ;;  %v6019_v61 = vadd.f32 %v6018_v53, %v5930_v28 }
 0x953   :  { %v10237_v58 = vpop.eup %10236  ;;  %v6855_v56 = vmul.f32 1.442695, %v6577_v32  ;;  %v12997_v50 = vpop.f32.mrf.mxu3  ;;  %6057 = vmatmul.bf16.gmra.mxu1 %v11364_v23  ;;  %6146 = vmatmul.bf16.gmra.mxu2 %v11408_v19 }
 0x954   :  { %v12999_v34 = vpop.f32.mrf.mxu0  ;;  %v10239_v29 = vpop.eup %10238  ;;  %v7242_v40 = vadd.f32 1.0, %v10237_v58 }
 0x955   :  { %7683 = vst [vmem:[#allocation16 + $0x140] sm:$0xff] %v10239_v29  ;;  %10240 = vpow2.f32 %v6855_v56  ;;  %v5935_v29 = vadd.f32 %v12963_v39, %v5846_v5 }
 0x956   :  { %10242 = vrcp.f32 %v7242_v40  ;;  %5983 = vmatmul.bf16.gmra.mxu0 %v11248_v4  ;;  %v6107_v8 = vpop.f32.mrf.mxu2 }
 0x957   :  { %v6108_v10 = vadd.f32 %v6107_v8, %v6019_v61 }
 0x958   :  { %v6020_v36 = vpop.f32.mrf.mxu1 }
 0x959   :  { %v6584_v18 = vsub.f32 0.0, %v6108_v10  ;;  %v6021_v53 = vadd.f32 %v6020_v36, %v5932_v51  ;;  %v9004_v36 = vld [vmem:[#allocation14 + $0x558] sm:$0xf] }
 0x95b   :  { %v10241_v60 = vpop.eup %10240  ;;  %v6869_v20 = vmul.f32 1.442695, %v6584_v18  ;;  %v13007_v7 = vpop.f32.mrf.mxu3 }
 0x95c   :  { %v13009_v9 = vpop.f32.mrf.mxu0  ;;  %v10243_v54 = vpop.eup %10242  ;;  %v7249_v41 = vadd.f32 1.0, %v10241_v60  ;;  %v5848_v60 = vadd.f32 %v12971_v63, %v12915_v12 }
 0x95d   :  { %7690 = vst [vmem:[#allocation16 + $0x178] sm:$0xff] %v10243_v54  ;;  %10244 = vpow2.f32 %v6869_v20 }
 0x95e   :  { %10246 = vrcp.f32 %v7249_v41  ;;  %v6109_v32 = vpop.f32.mrf.mxu2 }
 0x95f   :  { %v6110_v58 = vadd.f32 %v6109_v32, %v6021_v53  ;;  %v5937_v53 = vadd.f32 %v12973_v17, %v5848_v60 }
 0x960   :  { %v6023_v28 = vpop.f32.mrf.mxu1  ;;  %6175 = vmatmul.bf16.vlgmr.msrb.gmra.mxu3 %v11009_v30  ;;  %v9480_v30 = vld [vmem:[#allocation14 + $0x570] sm:$0xf0] }
 0x961   :  { %v6591_v24 = vsub.f32 0.0, %v6110_v58  ;;  %v6024_v44 = vadd.f32 %v6023_v28, %v5935_v29  ;;  %v9005_v39 = vor.u32 %v9480_v30, %v9004_v36  ;;  %v9424_v29 = vld [vmem:[#allocation14 + $0x3b0] sm:$0xf0] }
 0x963   :  { %v10245_v56 = vpop.eup %10244  ;;  %v6883_v40 = vmul.f32 1.442695, %v6591_v24  ;;  %v13015_v61 = vpop.f32.mrf.mxu3  ;;  %6062 = vmatmul.bf16.gmra.mxu1 %v11376_v27  ;;  %6151 = vmatmul.bf16.gmra.mxu2 %v11424_v52 }
 0x964   :  { %v13017_v8 = vpop.f32.mrf.mxu0  ;;  %v10247_v22 = vpop.eup %10246  ;;  %v7256_v10 = vadd.f32 1.0, %v10245_v56  ;;  %6441 = vmatpush.bf16.msrb.mxu2 %v9005_v39  ;;  %v8780_v56 = vld [vmem:[#allocation14 + $0x398] sm:$0xf] }
 0x965   :  { %7697 = vst [vmem:[#allocation16 + $0x1b0] sm:$0xff] %v10247_v22  ;;  %10248 = vpow2.f32 %v6883_v40  ;;  %v8781_v40 = vor.u32 %v9424_v29, %v8780_v56  ;;  %v5851_v22 = vadd.f32 %v12979_v48, %v12915_v12 }
 0x966   :  { %10250 = vrcp.f32 %v7256_v10  ;;  %v6112_v18 = vpop.f32.mrf.mxu2  ;;  %6264 = vmatmul.bf16.vlgmr.msrb.gmra.mxu0 %v11061_v26 }
 0x967   :  { %v6113_v51 = vadd.f32 %v6112_v18, %v6024_v44  ;;  %6352 = vmatpush.bf16.msrb.mxu1 %v8781_v40  ;;  %v5940_v30 = vadd.f32 %v12981_v3, %v5851_v22  ;;  %v5853_v3 = vadd.f32 %v12989_v49, %v12915_v12  ;;  %v5856_v49 = vadd.f32 %v12997_v50, %v12915_v12 }
 0x968   :  { %v6025_v20 = vpop.f32.mrf.mxu1 }
 0x969   :  { %v6598_v54 = vsub.f32 0.0, %v6113_v51  ;;  %v6026_v26 = vadd.f32 %v6025_v20, %v5937_v53 }
 0x96b   :  { %v10249_v41 = vpop.eup %10248  ;;  %v6897_v32 = vmul.f32 1.442695, %v6598_v54  ;;  %v13025_v5 = vpop.f32.mrf.mxu3 }
 0x96c   :  { %v13027_v58 = vpop.f32.mrf.mxu0  ;;  %v10251_v28 = vpop.eup %10250  ;;  %v7263_v24 = vadd.f32 1.0, %v10249_v41 }
 0x96d   :  { %7704 = vst [vmem:[#allocation16 + $0x1e8] sm:$0xff] %v10251_v28  ;;  %10252 = vpow2.f32 %v6897_v32  ;;  %v5942_v28 = vadd.f32 %v12991_v13, %v5853_v3 }
 0x96e   :  { %10254 = vrcp.f32 %v7263_v24  ;;  %v6114_v63 = vpop.f32.mrf.mxu2 }
 0x96f   :  { %v6115_v10 = vadd.f32 %v6114_v63, %v6026_v26 }
 0x970   :  { %v6028_v17 = vpop.f32.mrf.mxu1  ;;  %6180 = vmatmul.bf16.gmra.mxu3 %v11025_v57 }
 0x971   :  { %v6605_v44 = vsub.f32 0.0, %v6115_v10  ;;  %v6029_v20 = vadd.f32 %v6028_v17, %v5940_v30 }
 0x973   :  { %v10253_v36 = vpop.eup %10252  ;;  %v6911_v18 = vmul.f32 1.442695, %v6605_v44  ;;  %v13033_v39 = vpop.f32.mrf.mxu3  ;;  %6067 = vmatmul.bf16.gmra.mxu1 %v11388_v25  ;;  %6156 = vmatmul.bf16.gmra.mxu2 %v11440_v1  ;;  %v5945_v44 = vadd.f32 %v12999_v34, %v5856_v49  ;;  %v5858_v34 = vadd.f32 %v13007_v7, %v12915_v12  ;;  %v5861_v7 = vadd.f32 %v13015_v61, %v12915_v12 }
 0x974   :  { %v13035_v60 = vpop.f32.mrf.mxu0  ;;  %v10255_v51 = vpop.eup %10254  ;;  %v7270_v48 = vadd.f32 1.0, %v10253_v36 }
 0x975   :  { %7711 = vst [vmem:[#allocation16 + $0x220] sm:$0xff] %v10255_v51  ;;  %10256 = vpow2.f32 %v6911_v18 }
 0x976   :  { %10258 = vrcp.f32 %v7270_v48  ;;  %v6117_v57 = vpop.f32.mrf.mxu2  ;;  %6269 = vmatmul.bf16.gmra.mxu0 %v11073_v42 }
 0x977   :  { %v6118_v54 = vadd.f32 %v6117_v57, %v6029_v20 }
 0x978   :  { %v6030_v41 = vpop.f32.mrf.mxu1 }
 0x979   :  { %v6612_v53 = vsub.f32 0.0, %v6118_v54  ;;  %v6031_v40 = vadd.f32 %v6030_v41, %v5942_v28  ;;  %v5947_v41 = vadd.f32 %v13009_v9, %v5858_v34 }
 0x97b   :  { %v10257_v32 = vpop.eup %10256  ;;  %v6925_v24 = vmul.f32 1.442695, %v6612_v53  ;;  %v13043_v26 = vpop.f32.mrf.mxu3 }
 0x97c   :  { %v13045_v56 = vpop.f32.mrf.mxu0  ;;  %v10259_v29 = vpop.eup %10258  ;;  %v7277_v63 = vadd.f32 1.0, %v10257_v32 }
 0x97d   :  { %7718 = vst [vmem:[#allocation16 + $0x258] sm:$0xff] %v10259_v29  ;;  %10260 = vpow2.f32 %v6925_v24 }
 0x97e   :  { %10262 = vrcp.f32 %v7277_v63  ;;  %v6119_v42 = vpop.f32.mrf.mxu2 }
 0x97f   :  { %v6120_v22 = vadd.f32 %v6119_v42, %v6031_v40 }
 0x980   :  { %v6033_v10 = vpop.f32.mrf.mxu1  ;;  %6185 = vmatmul.bf16.gmra.mxu3 %v11044_v62 }
 0x981   :  { %v6619_v13 = vsub.f32 0.0, %v6120_v22  ;;  %v6034_v50 = vadd.f32 %v6033_v10, %v5945_v44  ;;  %v5950_v22 = vadd.f32 %v13017_v8, %v5861_v7  ;;  %v5863_v8 = vadd.f32 %v13025_v5, %v12915_v12 }
 0x982   :  { %v5866_v5 = vadd.f32 %v13033_v39, %v12915_v12 }
 0x983   :  { %v10261_v17 = vpop.eup %10260  ;;  %v6939_v36 = vmul.f32 1.442695, %v6619_v13  ;;  %v13051_v30 = vpop.f32.mrf.mxu3  ;;  %6072 = vmatmul.bf16.gmra.mxu1 %v11400_v38  ;;  %6161 = vmatmul.bf16.gmra.mxu2 %v11464_v15 }
 0x984   :  { %v13053_v18 = vpop.f32.mrf.mxu0  ;;  %v10263_v51 = vpop.eup %10262  ;;  %v7284_v48 = vadd.f32 1.0, %v10261_v17 }
 0x985   :  { %7725 = vst [vmem:[#allocation16 + $0x290] sm:$0xff] %v10263_v51  ;;  %10264 = vpow2.f32 %v6939_v36 }
 0x986   :  { %10266 = vrcp.f32 %v7284_v48  ;;  %v6122_v62 = vpop.f32.mrf.mxu2  ;;  %6274 = vmatmul.bf16.gmra.mxu0 %v11085_v33 }
 0x987   :  { %v6123_v20 = vadd.f32 %v6122_v62, %v6034_v50 }
 0x988   :  { %v6035_v57 = vpop.f32.mrf.mxu1 }
 0x989   :  { %v6626_v3 = vsub.f32 0.0, %v6123_v20  ;;  %v6036_v63 = vadd.f32 %v6035_v57, %v5947_v41 }
 0x98b   :  { %v10265_v54 = vpop.eup %10264  ;;  %v6953_v53 = vmul.f32 1.442695, %v6626_v3  ;;  %v13061_v32 = vpop.f32.mrf.mxu3 }
 0x98c   :  { %v13063_v28 = vpop.f32.mrf.mxu0  ;;  %v10267_v24 = vpop.eup %10266  ;;  %v7291_v29 = vadd.f32 1.0, %v10265_v54 }
 0x98d   :  { %7732 = vst [vmem:[#allocation16 + $0x2c8] sm:$0xff] %v10267_v24  ;;  %10268 = vpow2.f32 %v6953_v53 }
 0x98e   :  { %10270 = vrcp.f32 %v7291_v29  ;;  %v6124_v33 = vpop.f32.mrf.mxu2  ;;  %v5955_v29 = vadd.f32 %v13035_v60, %v5866_v5  ;;  %v5868_v60 = vadd.f32 %v13043_v26, %v12915_v12  ;;  %v5871_v26 = vadd.f32 %v13051_v30, %v12915_v12 }
 0x98f   :  { %v6125_v40 = vadd.f32 %v6124_v33, %v6036_v63 }
 0x990   :  { %v6038_v42 = vpop.f32.mrf.mxu1  ;;  %6190 = vmatmul.bf16.gmra.mxu3 %v11056_v11 }
 0x991   :  { %v6633_v9 = vsub.f32 0.0, %v6125_v40  ;;  %v6039_v61 = vadd.f32 %v6038_v42, %v5950_v22 }
 0x993   :  { %v10269_v49 = vpop.eup %10268  ;;  %v6967_v10 = vmul.f32 1.442695, %v6633_v9  ;;  %v13069_v13 = vpop.f32.mrf.mxu3  ;;  %6353 = vmatmul.bf16.vlgmr.msrb.gmra.mxu1 %v11217_v6  ;;  %6442 = vmatmul.bf16.vlgmr.msrb.gmra.mxu2 %v13493_v37  ;;  %v5952_v6 = vadd.f32 %v13027_v58, %v5863_v8 }
 0x994   :  { %v13071_v17 = vpop.f32.mrf.mxu0  ;;  %v10271_v44 = vpop.eup %10270  ;;  %v7298_v36 = vadd.f32 1.0, %v10269_v49 }
 0x995   :  { %7739 = vst [vmem:[#allocation16 + $0x300] sm:$0xff] %v10271_v44  ;;  %10272 = vpow2.f32 %v6967_v10 }
 0x996   :  { %10274 = vrcp.f32 %v7298_v36  ;;  %v6127_v11 = vpop.f32.mrf.mxu2  ;;  %6279 = vmatmul.bf16.gmra.mxu0 %v11097_v16 }
 0x997   :  { %v6128_v51 = vadd.f32 %v6127_v11, %v6039_v61 }
 0x998   :  { %v6040_v48 = vpop.f32.mrf.mxu1 }
 0x999   :  { %v6640_v50 = vsub.f32 0.0, %v6128_v51  ;;  %v6041_v54 = vadd.f32 %v6040_v48, %v5952_v6 }
 0x99b   :  { %v10273_v62 = vpop.eup %10272  ;;  %v6981_v34 = vmul.f32 1.442695, %v6640_v50  ;;  %v13079_v37 = vpop.f32.mrf.mxu3 }
 0x99c   :  { %v13081_v20 = vpop.f32.mrf.mxu0  ;;  %v10275_v57 = vpop.eup %10274  ;;  %v7305_v3 = vadd.f32 1.0, %v10273_v62  ;;  %v5960_v62 = vadd.f32 %v13053_v18, %v5871_v26  ;;  %v5873_v18 = vadd.f32 %v13061_v32, %v12915_v12  ;;  %v5876_v32 = vadd.f32 %v13069_v13, %v12915_v12 }
 0x99d   :  { %7746 = vst [vmem:[#allocation16 + $0x338] sm:$0xff] %v10275_v57  ;;  %10276 = vpow2.f32 %v6981_v34 }
 0x99e   :  { %10278 = vrcp.f32 %v7305_v3  ;;  %v6129_v16 = vpop.f32.mrf.mxu2 }
 0x99f   :  { %v6130_v41 = vadd.f32 %v6129_v16, %v6041_v54  ;;  %v13657_v16 = vld [vmem:[#allocation29_spill] sm:$0xff] }
 0x9a0   :  { %v6043_v53 = vpop.f32.mrf.mxu1  ;;  %6195 = vmatmul.bf16.gmra.mxu3 %v13525_v2 }
 0x9a1   :  { %v6647_v58 = vsub.f32 0.0, %v6130_v41  ;;  %v6044_v39 = vadd.f32 %v6043_v53, %v5955_v29 }
 0x9a3   :  { %v10277_v24 = vpop.eup %10276  ;;  %v6995_v63 = vmul.f32 1.442695, %v6647_v58  ;;  %v13087_v33 = vpop.f32.mrf.mxu3  ;;  %6358 = vmatmul.bf16.gmra.mxu1 %v13526_v21  ;;  %6447 = vmatmul.bf16.gmra.mxu2 %v13558_v59  ;;  %v5957_v21 = vadd.f32 %v13045_v56, %v5868_v60 }
 0x9a4   :  { %v13089_v7 = vpop.f32.mrf.mxu0  ;;  %v10279_v40 = vpop.eup %10278  ;;  %v7312_v42 = vadd.f32 1.0, %v10277_v24 }
 0x9a5   :  { %7753 = vst [vmem:[#allocation16 + $0x370] sm:$0xff] %v10279_v40  ;;  %10280 = vpow2.f32 %v6995_v63 }
 0x9a6   :  { %10282 = vrcp.f32 %v7312_v42  ;;  %v6132_v2 = vpop.f32.mrf.mxu2  ;;  %6284 = vmatmul.bf16.gmra.mxu0 %v13559_v14 }
 0x9a7   :  { %v6133_v9 = vadd.f32 %v6132_v2, %v6044_v39 }
 0x9a8   :  { %v6045_v49 = vpop.f32.mrf.mxu1 }
 0x9a9   :  { %v6654_v22 = vsub.f32 0.0, %v6133_v9  ;;  %v6046_v8 = vadd.f32 %v6045_v49, %v5957_v21  ;;  %v13658_v9 = vld [vmem:[#allocation25_spill] sm:$0xff] }
 0x9ab   :  { %v10281_v10 = vpop.eup %10280  ;;  %v7009_v44 = vmul.f32 1.442695, %v6654_v22  ;;  %v13097_v59 = vpop.f32.mrf.mxu3  ;;  %v5965_v22 = vadd.f32 %v13071_v17, %v5876_v32  ;;  %v5878_v17 = vadd.f32 %v13079_v37, %v12915_v12  ;;  %v5881_v37 = vadd.f32 %v13087_v33, %v12915_v12  ;;  %v13664_v32 = vld [vmem:[#allocation55_spill] sm:$0xff] }
 0x9ac   :  { %v13099_v36 = vpop.f32.mrf.mxu0  ;;  %v10283_v61 = vpop.eup %10282  ;;  %v7319_v11 = vadd.f32 1.0, %v10281_v10 }
 0x9ad   :  { %7760 = vst [vmem:[#allocation16 + $0x3a8] sm:$0xff] %v10283_v61  ;;  %10284 = vpow2.f32 %v7009_v44  ;;  %v13659_v61 = vld [vmem:[#allocation46_spill] sm:$0xff] }
 0x9ae   :  { %10286 = vrcp.f32 %v7319_v11  ;;  %v6134_v14 = vpop.f32.mrf.mxu2  ;;  %v13660_v11 = vld [vmem:[#allocation53_spill] sm:$0xff] }
 0x9af   :  { %v6135_v51 = vadd.f32 %v6134_v14, %v6046_v8 }
 0x9b0   :  { %v6048_v48 = vpop.f32.mrf.mxu1  ;;  %6200 = vmatmul.bf16.gmra.mxu3 %v13591_v46 }
 0x9b1   :  { %v6661_v56 = vsub.f32 0.0, %v6135_v51  ;;  %v6049_v30 = vadd.f32 %v6048_v48, %v5960_v62  ;;  %v13661_v51 = vld [vmem:[#allocation31_spill] sm:$0xff] }
 0x9b3   :  { %v10285_v50 = vpop.eup %10284  ;;  %v7023_v6 = vmul.f32 1.442695, %v6661_v56  ;;  %v13105_v34 = vpop.f32.mrf.mxu3  ;;  %6363 = vmatmul.bf16.gmra.mxu1 %v13592_v43  ;;  %6452 = vmatmul.bf16.gmra.mxu2 %v13624_v0  ;;  %v5962_v43 = vadd.f32 %v13063_v28, %v5873_v18 }
 0x9b4   :  { %v13107_v57 = vpop.f32.mrf.mxu0  ;;  %v10287_v3 = vpop.eup %10286  ;;  %v7326_v54 = vadd.f32 1.0, %v10285_v50 }
 0x9b5   :  { %7767 = vst [vmem:[#allocation16 + $0x3e0] sm:$0xff] %v10287_v3  ;;  %10288 = vpow2.f32 %v7023_v6  ;;  %v5967_v6 = vadd.f32 %v13081_v20, %v5878_v17 }
 0x9b6   :  { %10290 = vrcp.f32 %v7326_v54  ;;  %v6137_v46 = vpop.f32.mrf.mxu2  ;;  %6289 = vmatmul.bf16.gmra.mxu0 %v13657_v16 }
 0x9b7   :  { %v6138_v5 = vadd.f32 %v6137_v46, %v6049_v30 }
 0x9b8   :  { %v6050_v41 = vpop.f32.mrf.mxu1 }
 0x9b9   :  { %v6668_v53 = vsub.f32 0.0, %v6138_v5  ;;  %v6051_v42 = vadd.f32 %v6050_v41, %v5962_v43 }
 0x9bb   :  { %v10289_v58 = vpop.eup %10288  ;;  %v7037_v24 = vmul.f32 1.442695, %v6668_v53  ;;  %v13115_v0 = vpop.f32.mrf.mxu3 }
 0x9bc   :  { %v13117_v29 = vpop.f32.mrf.mxu0  ;;  %v10291_v63 = vpop.eup %10290  ;;  %v7333_v40 = vadd.f32 1.0, %v10289_v58  ;;  %v13662_v58 = vld [vmem:[#allocation26_spill] sm:$0xff] }
 0x9bd   :  { %7774 = vst [vmem:[#allocation16 + $0x418] sm:$0xff] %v10291_v63  ;;  %10292 = vpow2.f32 %v7037_v24  ;;  %v5970_v24 = vadd.f32 %v13089_v7, %v5881_v37  ;;  %v5883_v7 = vadd.f32 %v13097_v59, %v12915_v12  ;;  %v5886_v59 = vadd.f32 %v13105_v34, %v12915_v12  ;;  %v13668_v37 = vld [vmem:[#allocation57_spill] sm:$0xff] }
 0x9be   :  { %10294 = vrcp.f32 %v7333_v40  ;;  %v6139_v39 = vpop.f32.mrf.mxu2 }
 0x9bf   :  { %v6140_v2 = vadd.f32 %v6139_v39, %v6051_v42  ;;  %v13663_v39 = vld [vmem:[#allocation48_spill] sm:$0xff] }
 0x9c0   :  { %v6053_v60 = vpop.f32.mrf.mxu1  ;;  %6205 = vmatmul.bf16.gmra.mxu3 %v13658_v9 }
 0x9c1   :  { %v6675_v28 = vsub.f32 0.0, %v6140_v2  ;;  %v6054_v13 = vadd.f32 %v6053_v60, %v5965_v22 }
 0x9c3   :  { %v10293_v49 = vpop.eup %10292  ;;  %v7051_v10 = vmul.f32 1.442695, %v6675_v28  ;;  %v13123_v21 = vpop.f32.mrf.mxu3  ;;  %6368 = vmatmul.bf16.gmra.mxu1 %v13659_v61  ;;  %6457 = vmatmul.bf16.gmra.mxu2 %v13660_v11  ;;  %v13665_v28 = vld [vmem:[#allocation33_spill] sm:$0xff]  ;;  %v5972_v11 = vadd.f32 %v13099_v36, %v5883_v7 }
 0x9c4   :  { %v13125_v44 = vpop.f32.mrf.mxu0  ;;  %v10295_v8 = vpop.eup %10294  ;;  %v7340_v14 = vadd.f32 1.0, %v10293_v49 }
 0x9c5   :  { %7781 = vst [vmem:[#allocation16 + $0x450] sm:$0xff] %v10295_v8  ;;  %10296 = vpow2.f32 %v7051_v10 }
 0x9c6   :  { %10298 = vrcp.f32 %v7340_v14  ;;  %v6142_v26 = vpop.f32.mrf.mxu2  ;;  %6294 = vmatmul.bf16.gmra.mxu0 %v13661_v51 }
 0x9c7   :  { %v6143_v48 = vadd.f32 %v6142_v26, %v6054_v13 }
 0x9c8   :  { %v6055_v56 = vpop.f32.mrf.mxu1 }
 0x9c9   :  { %v6682_v50 = vsub.f32 0.0, %v6143_v48  ;;  %v6056_v18 = vadd.f32 %v6055_v56, %v5967_v6 }
 0x9cb   :  { %v10297_v62 = vpop.eup %10296  ;;  %v7065_v3 = vmul.f32 1.442695, %v6682_v50  ;;  %v13133_v54 = vpop.f32.mrf.mxu3 }
 0x9cc   :  { %v13135_v30 = vpop.f32.mrf.mxu0  ;;  %v10299_v46 = vpop.eup %10298  ;;  %v7347_v16 = vadd.f32 1.0, %v10297_v62  ;;  %v13666_v62 = vld [vmem:[#allocation28_spill] sm:$0xff] }
 0x9cd   :  { %7788 = vst [vmem:[#allocation16 + $0x488] sm:$0xff] %v10299_v46  ;;  %10300 = vpow2.f32 %v7065_v3  ;;  %v5975_v3 = vadd.f32 %v13107_v57, %v5886_v59  ;;  %v5888_v57 = vadd.f32 %v13115_v0, %v12915_v12  ;;  %v5891_v0 = vadd.f32 %v13123_v21, %v12915_v12  ;;  %v13672_v59 = vld [vmem:[#allocation59_spill] sm:$0xff] }
 0x9ce   :  { %10302 = vrcp.f32 %v7347_v16  ;;  %v6144_v5 = vpop.f32.mrf.mxu2 }
 0x9cf   :  { %v6145_v41 = vadd.f32 %v6144_v5, %v6056_v18  ;;  %v13667_v5 = vld [vmem:[#allocation50_spill] sm:$0xff] }
 0x9d0   :  { %v6058_v53 = vpop.f32.mrf.mxu1  ;;  %6210 = vmatmul.bf16.gmra.mxu3 %v13662_v58 }
 0x9d1   :  { %v6689_v20 = vsub.f32 0.0, %v6145_v41  ;;  %v6059_v33 = vadd.f32 %v6058_v53, %v5970_v24 }
 0x9d3   :  { %v10301_v43 = vpop.eup %10300  ;;  %v7079_v63 = vmul.f32 1.442695, %v6689_v20  ;;  %v13141_v40 = vpop.f32.mrf.mxu3  ;;  %6373 = vmatmul.bf16.gmra.mxu1 %v13663_v39  ;;  %6462 = vmatmul.bf16.gmra.mxu2 %v13664_v32  ;;  %v13669_v20 = vld [vmem:[#allocation35_spill] sm:$0xff]  ;;  %v5977_v32 = vadd.f32 %v13117_v29, %v5888_v57 }
 0x9d4   :  { %v13143_v42 = vpop.f32.mrf.mxu0  ;;  %v10303_v2 = vpop.eup %10302  ;;  %v7354_v60 = vadd.f32 1.0, %v10301_v43 }
 0x9d5   :  { %7795 = vst [vmem:[#allocation16 + $0x4c0] sm:$0xff] %v10303_v2  ;;  %10304 = vpow2.f32 %v7079_v63 }
 0x9d6   :  { %10306 = vrcp.f32 %v7354_v60  ;;  %v6147_v9 = vpop.f32.mrf.mxu2  ;;  %6299 = vmatmul.bf16.gmra.mxu0 %v13665_v28 }
 0x9d7   :  { %v6148_v49 = vadd.f32 %v6147_v9, %v6059_v33 }
 0x9d8   :  { %v6060_v22 = vpop.f32.mrf.mxu1 }
 0x9d9   :  { %v6696_v10 = vsub.f32 0.0, %v6148_v49  ;;  %v6061_v17 = vadd.f32 %v6060_v22, %v5972_v11 }
 0x9db   :  { %v10305_v61 = vpop.eup %10304  ;;  %v7093_v8 = vmul.f32 1.442695, %v6696_v10  ;;  %v13151_v14 = vpop.f32.mrf.mxu3 }
 0x9dc   :  { %v13153_v13 = vpop.f32.mrf.mxu0  ;;  %v10307_v26 = vpop.eup %10306  ;;  %v7361_v51 = vadd.f32 1.0, %v10305_v61  ;;  %v13670_v61 = vld [vmem:[#allocation30_spill] sm:$0xff] }
 0x9dd   :  { %7802 = vst [vmem:[#allocation16 + $0x4f8] sm:$0xff] %v10307_v26  ;;  %10308 = vpow2.f32 %v7093_v8  ;;  %v5980_v8 = vadd.f32 %v13125_v44, %v5891_v0  ;;  %v5893_v44 = vadd.f32 %v13133_v54, %v12915_v12  ;;  %v5896_v54 = vadd.f32 %v13141_v40, %v12915_v12  ;;  %v13676_v0 = vld [vmem:[#allocation61_spill] sm:$0xff] }
 0x9de   :  { %10310 = vrcp.f32 %v7361_v51  ;;  %v6149_v48 = vpop.f32.mrf.mxu2 }
 0x9df   :  { %v6150_v56 = vadd.f32 %v6149_v48, %v6061_v17  ;;  %v13671_v48 = vld [vmem:[#allocation52_spill] sm:$0xff] }
 0x9e0   :  { %v6063_v50 = vpop.f32.mrf.mxu1  ;;  %6215 = vmatmul.bf16.gmra.mxu3 %v13666_v62 }
 0x9e1   :  { %v6703_v36 = vsub.f32 0.0, %v6150_v56  ;;  %v6064_v34 = vadd.f32 %v6063_v50, %v5975_v3 }
 0x9e3   :  { %v10309_v6 = vpop.eup %10308  ;;  %v7107_v46 = vmul.f32 1.442695, %v6703_v36  ;;  %v13159_v16 = vpop.f32.mrf.mxu3  ;;  %6378 = vmatmul.bf16.gmra.mxu1 %v13667_v5  ;;  %6467 = vmatmul.bf16.gmra.mxu2 %v13668_v37  ;;  %v13673_v36 = vld [vmem:[#allocation37_spill] sm:$0xff]  ;;  %v5982_v37 = vadd.f32 %v13135_v30, %v5893_v44 }
 0x9e4   :  { %v13161_v18 = vpop.f32.mrf.mxu0  ;;  %v10311_v41 = vpop.eup %10310  ;;  %v7368_v53 = vadd.f32 1.0, %v10309_v6 }
 0x9e5   :  { %7809 = vst [vmem:[#allocation16 + $0x530] sm:$0xff] %v10311_v41  ;;  %10312 = vpow2.f32 %v7107_v46 }
 0x9e6   :  { %10314 = vrcp.f32 %v7368_v53  ;;  %v6152_v58 = vpop.f32.mrf.mxu2  ;;  %6304 = vmatmul.bf16.gmra.mxu0 %v13669_v20 }
 0x9e7   :  { %v6153_v43 = vadd.f32 %v6152_v58, %v6064_v34 }
 0x9e8   :  { %v6065_v24 = vpop.f32.mrf.mxu1 }
 0x9e9   :  { %v6710_v63 = vsub.f32 0.0, %v6153_v43  ;;  %v6066_v7 = vadd.f32 %v6065_v24, %v5977_v32 }
 0x9eb   :  { %v10313_v39 = vpop.eup %10312  ;;  %v7121_v2 = vmul.f32 1.442695, %v6710_v63  ;;  %v13169_v60 = vpop.f32.mrf.mxu3 }
 0x9ec   :  { %v13171_v33 = vpop.f32.mrf.mxu0  ;;  %v10315_v9 = vpop.eup %10314  ;;  %v7375_v28 = vadd.f32 1.0, %v10313_v39  ;;  %v13674_v39 = vld [vmem:[#allocation32_spill] sm:$0xff] }
 0x9ed   :  { %7816 = vst [vmem:[#allocation16 + $0x568] sm:$0xff] %v10315_v9  ;;  %10316 = vpow2.f32 %v7121_v2  ;;  %v5985_v2 = vadd.f32 %v13143_v42, %v5896_v54  ;;  %v5898_v42 = vadd.f32 %v13151_v14, %v12915_v12  ;;  %v13679_v54 = vld [vmem:[#allocation56_spill] sm:$0xff] }
 0x9ee   :  { %10318 = vrcp.f32 %v7375_v28  ;;  %v6154_v49 = vpop.f32.mrf.mxu2 }
 0x9ef   :  { %v6155_v22 = vadd.f32 %v6154_v49, %v6066_v7  ;;  %v13675_v49 = vld [vmem:[#allocation54_spill] sm:$0xff] }
 0x9f0   :  { %v6068_v10 = vpop.f32.mrf.mxu1  ;;  %6220 = vmatmul.bf16.gmra.mxu3 %v13670_v61 }
 0x9f1   :  { %v6717_v29 = vsub.f32 0.0, %v6155_v22  ;;  %v6069_v21 = vadd.f32 %v6068_v10, %v5980_v8 }
 0x9f3   :  { %v10317_v11 = vpop.eup %10316  ;;  %v7135_v26 = vmul.f32 1.442695, %v6717_v29  ;;  %v13177_v51 = vpop.f32.mrf.mxu3  ;;  %6383 = vmatmul.bf16.gmra.mxu1 %v13671_v48  ;;  %6472 = vmatmul.bf16.gmra.mxu2 %v13672_v59  ;;  %v13677_v29 = vld [vmem:[#allocation39_spill] sm:$0xff]  ;;  %v5987_v59 = vadd.f32 %v13153_v13, %v5898_v42 }
 0x9f4   :  { %v13179_v17 = vpop.f32.mrf.mxu0  ;;  %v10319_v56 = vpop.eup %10318  ;;  %v7382_v50 = vadd.f32 1.0, %v10317_v11 }
 0x9f5   :  { %7823 = vst [vmem:[#allocation16 + $0x5a0] sm:$0xff] %v10319_v56  ;;  %10320 = vpow2.f32 %v7135_v26  ;;  %v10476_v56 = vld [vmem:[%s13361_s8] sm:$0xff]  ;;  %s10721_s8 = smov [#allocation16]  }
 0x9f6   :  { %10322 = vrcp.f32 %v7382_v50  ;;  %v6157_v62 = vpop.f32.mrf.mxu2  ;;  %6309 = vmatmul.bf16.gmra.mxu0 %v13673_v36  ;;  %v13208_v50 = vperm.slane %v10476_v56, 6  ;;  %s7871_s20 = sshll.u32 %s10721_s8, 4  ;;  %s7872_s20 = int_to_ptr.vmem [resolvable:$true] %s7871_s20 }
 0x9f7   :  { %v6158_v6 = vadd.f32 %v6157_v62, %v6069_v21 }
 0x9f8   :  { %v6070_v3 = vpop.f32.mrf.mxu1  ;;  %v6177_v13 = vadd.f32 %v13159_v16, %v13208_v50 }
 0x9f9   :  { %v6724_v46 = vsub.f32 0.0, %v6158_v6  ;;  %v6071_v57 = vadd.f32 %v6070_v3, %v5982_v37 }
 0x9fb   :  { %v10321_v5 = vpop.eup %10320  ;;  %v7149_v41 = vmul.f32 1.442695, %v6724_v46  ;;  %v13187_v53 = vpop.f32.mrf.mxu3  ;;  %v13678_v46 = vld [vmem:[#allocation34_spill] sm:$0xff] }
 0x9fc   :  { %v13189_v34 = vpop.f32.mrf.mxu0  ;;  %v10323_v58 = vpop.eup %10322  ;;  %v7389_v20 = vadd.f32 1.0, %v10321_v5 }
 0x9fd   :  { %7830 = vst [vmem:[#allocation16 + $0x5d8] sm:$0xff] %v10323_v58  ;;  %10324 = vpow2.f32 %v7149_v41  ;;  %v6266_v58 = vadd.f32 %v13161_v18, %v6177_v13  ;;  %v6179_v18 = vadd.f32 %v13169_v60, %v13208_v50  ;;  %v6182_v60 = vadd.f32 %v13177_v51, %v13208_v50 }
 0x9fe   :  { %10326 = vrcp.f32 %v7389_v20  ;;  %v6159_v43 = vpop.f32.mrf.mxu2 }
 0x9ff   :  { %v6160_v24 = vadd.f32 %v6159_v43, %v6071_v57 }
 0xa00   :  { %v6073_v63 = vpop.f32.mrf.mxu1  ;;  %6225 = vmatmul.bf16.gmra.mxu3 %v13674_v39 }
 0xa01   :  { %v6731_v30 = vsub.f32 0.0, %v6160_v24  ;;  %v6074_v40 = vadd.f32 %v6073_v63, %v5985_v2  ;;  %v13680_v24 = vld [vmem:[#allocation62_spill] sm:$0xff] }
 0xa03   :  { %v10325_v32 = vpop.eup %10324  ;;  %v7163_v9 = vmul.f32 1.442695, %v6731_v30  ;;  %v13195_v28 = vpop.f32.mrf.mxu3  ;;  %6388 = vmatmul.bf16.gmra.mxu1 %v13675_v49  ;;  %6477 = vmatmul.bf16.gmra.mxu2 %v13676_v0  ;;  %v13681_v30 = vld [vmem:[#allocation41_spill] sm:$0xff] }
 0xa04   :  { %v13197_v7 = vpop.f32.mrf.mxu0  ;;  %v10327_v22 = vpop.eup %10326  ;;  %v7396_v10 = vadd.f32 1.0, %v10325_v32 }
 0xa05   :  { %7837 = vst [vmem:[#allocation16 + $0x610] sm:$0xff] %v10327_v22  ;;  %10328 = vpow2.f32 %v7163_v9  ;;  %v6268_v22 = vadd.f32 %v13171_v33, %v6179_v18 }
 0xa06   :  { %10330 = vrcp.f32 %v7396_v10  ;;  %v6162_v61 = vpop.f32.mrf.mxu2  ;;  %6314 = vmatmul.bf16.gmra.mxu0 %v13677_v29 }
 0xa07   :  { %v6163_v11 = vadd.f32 %v6162_v61, %v6074_v40 }
 0xa08   :  { %v6075_v8 = vpop.f32.mrf.mxu1 }
 0xa09   :  { %v6738_v26 = vsub.f32 0.0, %v6163_v11  ;;  %v6076_v12 = vadd.f32 %v6075_v8, %v5987_v59 }
 0xa0b   :  { %v10329_v48 = vpop.eup %10328  ;;  %v7177_v21 = vmul.f32 1.442695, %v6738_v26  ;;  %v13210_v62 = vpop.f32.mrf.mxu3 }
 0xa0c   :  { %v13212_v36 = vpop.f32.mrf.mxu0  ;;  %v10331_v44 = vpop.eup %10330  ;;  %v7403_v6 = vadd.f32 1.0, %v10329_v48  ;;  %v13682_v48 = vld [vmem:[#allocation36_spill] sm:$0xff] }
 0xa0d   :  { %7844 = vst [vmem:[#allocation16 + $0x648] sm:$0xff] %v10331_v44  ;;  %10332 = vpow2.f32 %v7177_v21  ;;  %v6271_v21 = vadd.f32 %v13179_v17, %v6182_v60  ;;  %v6184_v17 = vadd.f32 %v13187_v53, %v13208_v50  ;;  %v6187_v53 = vadd.f32 %v13195_v28, %v13208_v50 }
 0xa0e   :  { %10334 = vrcp.f32 %v7403_v6  ;;  %v6164_v14 = vpop.f32.mrf.mxu2 }
 0xa0f   :  { %v6165_v3 = vadd.f32 %v6164_v14, %v6076_v12  ;;  %v13683_v12 = vld [vmem:[#allocation58_spill] sm:$0xff]  ;;  %v13684_v14 = vld [vmem:[#allocation63_spill] sm:$0xff] }
 0xa10   :  { %6230 = vmatmul.bf16.gmra.mxu3 %v13678_v46  ;;  %v6354_v5 = vpop.f32.mrf.mxu1 }
 0xa11   :  { %v6745_v37 = vsub.f32 0.0, %v6165_v3  ;;  %v6355_v16 = vadd.f32 %v6354_v5, %v6266_v58  ;;  %v13685_v5 = vld [vmem:[#allocation42_spill] sm:$0xff] }
 0xa13   :  { %v10333_v41 = vpop.eup %10332  ;;  %v7191_v20 = vmul.f32 1.442695, %v6745_v37  ;;  %v13218_v57 = vpop.f32.mrf.mxu3  ;;  %6393 = vmatmul.bf16.gmra.mxu1 %v13679_v54  ;;  %6482 = vmatmul.bf16.gmra.mxu2 %v13680_v24  ;;  %v6273_v24 = vadd.f32 %v13189_v34, %v6184_v17 }
 0xa14   :  { %v13220_v43 = vpop.f32.mrf.mxu0  ;;  %v10335_v63 = vpop.eup %10334  ;;  %v7410_v39 = vadd.f32 1.0, %v10333_v41 }
 0xa15   :  { %7851 = vst [vmem:[#allocation16 + $0x680] sm:$0xff] %v10335_v63  ;;  %10336 = vpow2.f32 %v7191_v20 }
 0xa16   :  { %10338 = vrcp.f32 %v7410_v39  ;;  %6319 = vmatmul.bf16.gmra.mxu0 %v13681_v30  ;;  %v6443_v32 = vpop.f32.mrf.mxu2 }
 0xa17   :  { %v6444_v2 = vadd.f32 %v6443_v32, %v6355_v16 }
 0xa18   :  { %v6356_v9 = vpop.f32.mrf.mxu1 }
 0xa19   :  { %v6529_v49 = vsub.f32 0.0, %v6444_v2  ;;  %v6357_v11 = vadd.f32 %v6356_v9, %v6268_v22 }
 0xa1b   :  { %v10337_v0 = vpop.eup %10336  ;;  %v6759_v10 = vmul.f32 1.442695, %v6529_v49  ;;  %v13228_v40 = vpop.f32.mrf.mxu3  ;;  %v13686_v49 = vld [vmem:[#allocation38_spill] sm:$0xff] }
 0xa1c   :  { %v13230_v61 = vpop.f32.mrf.mxu0  ;;  %v10339_v29 = vpop.eup %10338  ;;  %v7417_v42 = vadd.f32 1.0, %v10337_v0 }
 0xa1d   :  { %7858 = vst [vmem:[#allocation16 + $0x6b8] sm:$0xff] %v10339_v29  ;;  %10340 = vpow2.f32 %v6759_v10  ;;  %v6276_v10 = vadd.f32 %v13197_v7, %v6187_v53 }
 0xa1e   :  { %10342 = vrcp.f32 %v7417_v42  ;;  %v6445_v8 = vpop.f32.mrf.mxu2 }
 0xa1f   :  { %v6446_v26 = vadd.f32 %v6445_v8, %v6357_v11  ;;  %v13687_v11 = vld [vmem:[#allocation60_spill] sm:$0xff] }
 0xa20   :  { %6235 = vmatmul.bf16.gmra.mxu3 %v13682_v48  ;;  %v6359_v59 = vpop.f32.mrf.mxu1  ;;  %v13688_v8 = vld [vmem:[#allocation64_spill] sm:$0xff]  ;;  %v13689_v48 = vld [vmem:[#allocation43_spill] sm:$0xff] }
 0xa21   :  { %v6536_v33 = vsub.f32 0.0, %v6446_v26  ;;  %v6360_v51 = vadd.f32 %v6359_v59, %v6271_v21 }
 0xa23   :  { %v10341_v56 = vpop.eup %10340  ;;  %v6773_v44 = vmul.f32 1.442695, %v6536_v33  ;;  %v13236_v6 = vpop.f32.mrf.mxu3  ;;  %6398 = vmatmul.bf16.gmra.mxu1 %v13683_v12  ;;  %6487 = vmatmul.bf16.gmra.mxu2 %v13684_v14  ;;  %v6189_v33 = vadd.f32 %v13210_v62, %v13208_v50  ;;  %v6192_v62 = vadd.f32 %v13218_v57, %v13208_v50 }
 0xa24   :  { %v10343_v13 = vpop.eup %10342  ;;  %v7201_v3 = vadd.f32 1.0, %v10341_v56  ;;  %v13240_v46 = vpop.f32.mrf.mxu0 }
 0xa25   :  { %7865 = vst [vmem:[#allocation16 + $0x6f0] sm:$0xff] %v10343_v13  ;;  %10344 = vpow2.f32 %v6773_v44  ;;  %v6278_v14 = vadd.f32 %v13212_v36, %v6189_v33 }
 0xa26   :  { %10346 = vrcp.f32 %v7201_v3  ;;  %6324 = vmatmul.bf16.gmra.mxu0 %v13685_v5  ;;  %v6448_v37 = vpop.f32.mrf.mxu2 }
 0xa27   :  { %v6449_v41 = vadd.f32 %v6448_v37, %v6360_v51 }
 0xa28   :  { %v6361_v58 = vpop.f32.mrf.mxu1 }
 0xa29   :  { %v6543_v20 = vsub.f32 0.0, %v6449_v41  ;;  %v6362_v32 = vadd.f32 %v6361_v58, %v6273_v24  ;;  %v6281_v24 = vadd.f32 %v13220_v43, %v6192_v62 }
 0xa2b   :  { %v10345_v54 = vpop.eup %10344  ;;  %v6787_v63 = vmul.f32 1.442695, %v6543_v20  ;;  %v13246_v39 = vpop.f32.mrf.mxu3 }
 0xa2c   :  { %v10347_v16 = vpop.eup %10346  ;;  %v7208_v30 = vadd.f32 1.0, %v10345_v54  ;;  %v13248_v18 = vpop.f32.mrf.mxu0 }
 0xa2d   :  { %7649 = vst [vmem:[#allocation16 + $0x30] sm:$0xff] %v10347_v16  ;;  %10348 = vpow2.f32 %v6787_v63 }
 0xa2e   :  { %10350 = vrcp.f32 %v7208_v30  ;;  %v6450_v2 = vpop.f32.mrf.mxu2 }
 0xa2f   :  { %v6451_v9 = vadd.f32 %v6450_v2, %v6362_v32  ;;  %v6194_v2 = vadd.f32 %v13228_v40, %v13208_v50 }
 0xa30   :  { %6240 = vmatmul.bf16.gmra.mxu3 %v13686_v49  ;;  %v6364_v0 = vpop.f32.mrf.mxu1 }
 0xa31   :  { %v6550_v34 = vsub.f32 0.0, %v6451_v9  ;;  %v6365_v28 = vadd.f32 %v6364_v0, %v6276_v10 }
 0xa33   :  { %v10349_v22 = vpop.eup %10348  ;;  %v6801_v29 = vmul.f32 1.442695, %v6550_v34  ;;  %v13254_v42 = vpop.f32.mrf.mxu3  ;;  %6403 = vmatmul.bf16.gmra.mxu1 %v13687_v11  ;;  %6492 = vmatmul.bf16.gmra.mxu2 %v13688_v8 }
 0xa34   :  { %v10351_v60 = vpop.eup %10350  ;;  %v7215_v26 = vadd.f32 1.0, %v10349_v22  ;;  %v13261_v56 = vpop.f32.mrf.mxu0 }
 0xa35   :  { %7656 = vst [vmem:[#allocation16 + $0x68] sm:$0xff] %v10351_v60  ;;  %10352 = vpow2.f32 %v6801_v29  ;;  %v6197_v29 = vadd.f32 %v13236_v6, %v13208_v50 }
 0xa36   :  { %10354 = vrcp.f32 %v7215_v26  ;;  %6329 = vmatmul.bf16.gmra.mxu0 %v13689_v48  ;;  %v6453_v59 = vpop.f32.mrf.mxu2 }
 0xa37   :  { %v6454_v7 = vadd.f32 %v6453_v59, %v6365_v28  ;;  %v6286_v26 = vadd.f32 %v13240_v46, %v6197_v29 }
 0xa38   :  { %v6366_v21 = vpop.f32.mrf.mxu1 }
 0xa39   :  { %v6557_v44 = vsub.f32 0.0, %v6454_v7  ;;  %v6367_v37 = vadd.f32 %v6366_v21, %v6278_v14  ;;  %v6199_v7 = vadd.f32 %v13246_v39, %v13208_v50 }
 0xa3b   :  { %v10353_v12 = vpop.eup %10352  ;;  %v6815_v13 = vmul.f32 1.442695, %v6557_v44  ;;  %v13264_v5 = vpop.f32.mrf.mxu3 }
 0xa3c   :  { %v10355_v3 = vpop.eup %10354  ;;  %v7222_v51 = vadd.f32 1.0, %v10353_v12  ;;  %v13269_v54 = vpop.f32.mrf.mxu0  ;;  %v6288_v12 = vadd.f32 %v13248_v18, %v6199_v7 }
 0xa3d   :  { %7663 = vst [vmem:[#allocation16 + $0xa0] sm:$0xff] %v10355_v3  ;;  %10356 = vpow2.f32 %v6815_v13 }
 0xa3e   :  { %10358 = vrcp.f32 %v7222_v51  ;;  %v6455_v17 = vpop.f32.mrf.mxu2 }
 0xa3f   :  { %v6456_v41 = vadd.f32 %v6455_v17, %v6367_v37  ;;  %v6202_v37 = vadd.f32 %v13254_v42, %v13208_v50 }
 0xa40   :  { %6245 = vmatmul.bf16.gmra.mxu3 %v13492_v55  ;;  %v6369_v58 = vpop.f32.mrf.mxu1 }
 0xa41   :  { %v6564_v20 = vsub.f32 0.0, %v6456_v41  ;;  %v6370_v57 = vadd.f32 %v6369_v58, %v6281_v24 }
 0xa43   :  { %v10357_v36 = vpop.eup %10356  ;;  %v6829_v63 = vmul.f32 1.442695, %v6564_v20  ;;  %6408 = vmatmul.bf16.gmra.mxu1 %v11352_v31  ;;  %6497 = vmatmul.bf16.gmra.mxu2 %v11392_v45  ;;  %v13274_v32 = vpop.f32.mrf.mxu3  ;;  %v6283_v45 = vadd.f32 %v13230_v61, %v6194_v2  ;;  %v6291_v20 = vadd.f32 %v13261_v56, %v6202_v37 }
 0xa44   :  { %v10359_v16 = vpop.eup %10358  ;;  %v7229_v30 = vadd.f32 1.0, %v10357_v36  ;;  %v13280_v22 = vpop.f32.mrf.mxu0 }
 0xa45   :  { %7670 = vst [vmem:[#allocation16 + $0xd8] sm:$0xff] %v10359_v16  ;;  %10360 = vpow2.f32 %v6829_v63 }
 0xa46   :  { %10362 = vrcp.f32 %v7229_v30  ;;  %6334 = vmatmul.bf16.gmra.mxu0 %v11233_v47  ;;  %v6458_v55 = vpop.f32.mrf.mxu2  ;;  %v6204_v30 = vadd.f32 %v13264_v5, %v13208_v50  ;;  %v6207_v5 = vadd.f32 %v13274_v32, %v13208_v50 }
 0xa47   :  { %v6459_v43 = vadd.f32 %v6458_v55, %v6370_v57 }
 0xa48   :  { %v6371_v53 = vpop.f32.mrf.mxu1  ;;  %v6296_v29 = vadd.f32 %v13280_v22, %v6207_v5 }
 0xa49   :  { %v6571_v9 = vsub.f32 0.0, %v6459_v43  ;;  %v6372_v10 = vadd.f32 %v6371_v53, %v6283_v45 }
 0xa4b   :  { %v10361_v31 = vpop.eup %10360  ;;  %v6843_v49 = vmul.f32 1.442695, %v6571_v9  ;;  %v13284_v11 = vpop.f32.mrf.mxu3 }
 0xa4c   :  { %v10363_v0 = vpop.eup %10362  ;;  %v7236_v34 = vadd.f32 1.0, %v10361_v31  ;;  %v13290_v33 = vpop.f32.mrf.mxu0  ;;  %v6209_v32 = vadd.f32 %v13284_v11, %v13208_v50 }
 0xa4d   :  { %7677 = vst [vmem:[#allocation16 + $0x110] sm:$0xff] %v10363_v0  ;;  %10364 = vpow2.f32 %v6843_v49 }
 0xa4e   :  { %10366 = vrcp.f32 %v7236_v34  ;;  %v6460_v47 = vpop.f32.mrf.mxu2 }
 0xa4f   :  { %v6461_v40 = vadd.f32 %v6460_v47, %v6372_v10 }
 0xa50   :  { %6250 = vmatmul.bf16.gmra.mxu3 %v11205_v35  ;;  %v6374_v8 = vpop.f32.mrf.mxu1 }
 0xa51   :  { %v6578_v61 = vsub.f32 0.0, %v6461_v40  ;;  %v6375_v6 = vadd.f32 %v6374_v8, %v6286_v26 }
 0xa53   :  { %v10365_v60 = vpop.eup %10364  ;;  %v6857_v28 = vmul.f32 1.442695, %v6578_v61  ;;  %6413 = vmatmul.bf16.gmra.mxu1 %v11364_v23  ;;  %6502 = vmatmul.bf16.gmra.mxu2 %v11408_v19  ;;  %v13295_v23 = vpop.f32.mrf.mxu3 }
 0xa54   :  { %v10367_v48 = vpop.eup %10366  ;;  %v7243_v59 = vadd.f32 1.0, %v10365_v60  ;;  %v13300_v17 = vpop.f32.mrf.mxu0  ;;  %v6212_v11 = vadd.f32 %v13295_v23, %v13208_v50 }
 0xa55   :  { %7684 = vst [vmem:[#allocation16 + $0x148] sm:$0xff] %v10367_v48  ;;  %10368 = vpow2.f32 %v6857_v28 }
 0xa56   :  { %10370 = vrcp.f32 %v7243_v59  ;;  %6339 = vmatmul.bf16.gmra.mxu0 %v11248_v4  ;;  %v6463_v35 = vpop.f32.mrf.mxu2 }
 0xa57   :  { %v6464_v46 = vadd.f32 %v6463_v35, %v6375_v6 }
 0xa58   :  { %v6376_v21 = vpop.f32.mrf.mxu1 }
 0xa59   :  { %v6585_v44 = vsub.f32 0.0, %v6464_v46  ;;  %v6377_v51 = vadd.f32 %v6376_v21, %v6288_v12 }
 0xa5b   :  { %v10369_v19 = vpop.eup %10368  ;;  %v6871_v14 = vmul.f32 1.442695, %v6585_v44  ;;  %v13305_v63 = vpop.f32.mrf.mxu3 }
 0xa5c   :  { %v10371_v13 = vpop.eup %10370  ;;  %v7250_v3 = vadd.f32 1.0, %v10369_v19  ;;  %v13309_v2 = vpop.f32.mrf.mxu0  ;;  %v6214_v23 = vadd.f32 %v13305_v63, %v13208_v50 }
 0xa5d   :  { %7691 = vst [vmem:[#allocation16 + $0x180] sm:$0xff] %v10371_v13  ;;  %10372 = vpow2.f32 %v6871_v14 }
 0xa5e   :  { %10374 = vrcp.f32 %v7250_v3  ;;  %v6465_v4 = vpop.f32.mrf.mxu2 }
 0xa5f   :  { %v6466_v39 = vadd.f32 %v6465_v4, %v6377_v51  ;;  %v6301_v51 = vadd.f32 %v13300_v17, %v6212_v11 }
 0xa60   :  { %v6379_v62 = vpop.f32.mrf.mxu1 }
 0xa61   :  { %v6592_v41 = vsub.f32 0.0, %v6466_v39  ;;  %v6380_v42 = vadd.f32 %v6379_v62, %v6291_v20 }
 0xa63   :  { %v10373_v58 = vpop.eup %10372  ;;  %v6885_v18 = vmul.f32 1.442695, %v6592_v41  ;;  %6418 = vmatmul.bf16.gmra.mxu1 %v11376_v27  ;;  %6507 = vmatmul.bf16.gmra.mxu2 %v11424_v52  ;;  %v6293_v52 = vadd.f32 %v13269_v54, %v6204_v30  ;;  %v13312_v45 = vpop.f32.mrf.mxu3 }
 0xa64   :  { %v10375_v36 = vpop.eup %10374  ;;  %v7257_v24 = vadd.f32 1.0, %v10373_v58  ;;  %v6305_v8 = vpop.f32.mrf.mxu0 }
 0xa65   :  { %7698 = vst [vmem:[#allocation16 + $0x1b8] sm:$0xff] %v10375_v36  ;;  %10376 = vpow2.f32 %v6885_v18  ;;  %v6303_v36 = vadd.f32 %v13309_v2, %v6214_v23 }
 0xa66   :  { %10378 = vrcp.f32 %v7257_v24  ;;  %v6468_v16 = vpop.f32.mrf.mxu2 }
 0xa67   :  { %v6469_v57 = vadd.f32 %v6468_v16, %v6380_v42 }
 0xa68   :  { %v6381_v55 = vpop.f32.mrf.mxu1 }
 0xa69   :  { %v6599_v56 = vsub.f32 0.0, %v6469_v57  ;;  %v6382_v31 = vadd.f32 %v6381_v55, %v6293_v52  ;;  %v6217_v57 = vadd.f32 %v13312_v45, %v13208_v50 }
 0xa6b   :  { %v10377_v27 = vpop.eup %10376  ;;  %v6899_v43 = vmul.f32 1.442695, %v6599_v56  ;;  %v13321_v48 = vpop.f32.mrf.mxu3 }
 0xa6c   :  { %v10379_v53 = vpop.eup %10378  ;;  %v7264_v9 = vadd.f32 1.0, %v10377_v27  ;;  %v6307_v21 = vpop.f32.mrf.mxu0 }
 0xa6d   :  { %7705 = vst [vmem:[#allocation16 + $0x1f0] sm:$0xff] %v10379_v53  ;;  %10380 = vpow2.f32 %v6899_v43  ;;  %v6306_v43 = vadd.f32 %v6305_v8, %v6217_v57 }
 0xa6e   :  { %10382 = vrcp.f32 %v7264_v9  ;;  %v6470_v49 = vpop.f32.mrf.mxu2 }
 0xa6f   :  { %v6471_v0 = vadd.f32 %v6470_v49, %v6382_v31 }
 0xa70   :  { %v6384_v34 = vpop.f32.mrf.mxu1 }
 0xa71   :  { %v6606_v10 = vsub.f32 0.0, %v6471_v0  ;;  %v6385_v60 = vadd.f32 %v6384_v34, %v6296_v29  ;;  %v6219_v0 = vadd.f32 %v13321_v48, %v13208_v50 }
 0xa73   :  { %v10381_v47 = vpop.eup %10380  ;;  %v6913_v54 = vmul.f32 1.442695, %v6606_v10  ;;  %6423 = vmatmul.bf16.gmra.mxu1 %v11388_v25  ;;  %6512 = vmatmul.bf16.gmra.mxu2 %v11440_v1  ;;  %v6298_v25 = vadd.f32 %v13290_v33, %v6209_v32  ;;  %v6221_v13 = vpop.f32.mrf.mxu3  ;;  %v6308_v29 = vadd.f32 %v6307_v21, %v6219_v0 }
 0xa74   :  { %v10383_v40 = vpop.eup %10382  ;;  %v7271_v61 = vadd.f32 1.0, %v10381_v47  ;;  %v6310_v58 = vpop.f32.mrf.mxu0  ;;  %v6222_v32 = vadd.f32 %v6221_v13, %v13208_v50 }
 0xa75   :  { %7712 = vst [vmem:[#allocation16 + $0x228] sm:$0xff] %v10383_v40  ;;  %10384 = vpow2.f32 %v6913_v54 }
 0xa76   :  { %10386 = vrcp.f32 %v7271_v61  ;;  %v6473_v26 = vpop.f32.mrf.mxu2 }
 0xa77   :  { %v6474_v28 = vadd.f32 %v6473_v26, %v6385_v60 }
 0xa78   :  { %v6386_v22 = vpop.f32.mrf.mxu1 }
 0xa79   :  { %v6613_v59 = vsub.f32 0.0, %v6474_v28  ;;  %v6387_v46 = vadd.f32 %v6386_v22, %v6298_v25  ;;  %v6311_v25 = vadd.f32 %v6310_v58, %v6222_v32 }
 0xa7b   :  { %v10385_v6 = vpop.eup %10384  ;;  %v6927_v1 = vmul.f32 1.442695, %v6613_v59 }
 0xa7c   :  { %v10387_v35 = vpop.eup %10386  ;;  %v7278_v7 = vadd.f32 1.0, %v10385_v6  ;;  %v6312_v27 = vpop.f32.mrf.mxu0 }
 0xa7d   :  { %7719 = vst [vmem:[#allocation16 + $0x260] sm:$0xff] %v10387_v35  ;;  %10388 = vpow2.f32 %v6927_v1 }
 0xa7e   :  { %10390 = vrcp.f32 %v7278_v7  ;;  %v6475_v44 = vpop.f32.mrf.mxu2 }
 0xa7f   :  { %v6476_v19 = vadd.f32 %v6475_v44, %v6387_v46 }
 0xa80   :  { %v6389_v12 = vpop.f32.mrf.mxu1 }
 0xa81   :  { %v6620_v14 = vsub.f32 0.0, %v6476_v19  ;;  %v6390_v39 = vadd.f32 %v6389_v12, %v6301_v51 }
 0xa83   :  { %v10389_v3 = vpop.eup %10388  ;;  %v6941_v33 = vmul.f32 1.442695, %v6620_v14  ;;  %6428 = vmatmul.bf16.gmra.mxu1 %v11400_v38  ;;  %6517 = vmatmul.bf16.gmra.mxu2 %v11464_v15  ;;  %v6223_v15 = vpop.f32.mrf.mxu3 }
 0xa84   :  { %v10391_v4 = vpop.eup %10390  ;;  %v7285_v37 = vadd.f32 1.0, %v10389_v3  ;;  %v6315_v8 = vpop.f32.mrf.mxu0  ;;  %v6224_v11 = vadd.f32 %v6223_v15, %v13208_v50 }
 0xa85   :  { %7726 = vst [vmem:[#allocation16 + $0x298] sm:$0xff] %v10391_v4  ;;  %10392 = vpow2.f32 %v6941_v33 }
 0xa86   :  { %10394 = vrcp.f32 %v7285_v37  ;;  %v6478_v62 = vpop.f32.mrf.mxu2  ;;  %v6313_v51 = vadd.f32 %v6312_v27, %v6224_v11 }
 0xa87   :  { %v6479_v41 = vadd.f32 %v6478_v62, %v6390_v39 }
 0xa88   :  { %v6391_v20 = vpop.f32.mrf.mxu1 }
 0xa89   :  { %v6627_v18 = vsub.f32 0.0, %v6479_v41  ;;  %v6392_v16 = vadd.f32 %v6391_v20, %v6303_v36 }
 0xa8b   :  { %v10393_v17 = vpop.eup %10392  ;;  %v6955_v38 = vmul.f32 1.442695, %v6627_v18  ;;  %v6226_v49 = vpop.f32.mrf.mxu3 }
 0xa8c   :  { %v10395_v24 = vpop.eup %10394  ;;  %v7292_v42 = vadd.f32 1.0, %v10393_v17  ;;  %v6317_v21 = vpop.f32.mrf.mxu0  ;;  %v6227_v23 = vadd.f32 %v6226_v49, %v13208_v50 }
 0xa8d   :  { %7733 = vst [vmem:[#allocation16 + $0x2d0] sm:$0xff] %v10395_v24  ;;  %10396 = vpow2.f32 %v6955_v38 }
 0xa8e   :  { %10398 = vrcp.f32 %v7292_v42  ;;  %v6480_v30 = vpop.f32.mrf.mxu2  ;;  %v6316_v36 = vadd.f32 %v6315_v8, %v6227_v23 }
 0xa8f   :  { %v6481_v63 = vadd.f32 %v6480_v30, %v6392_v16 }
 0xa90   :  { %v6394_v55 = vpop.f32.mrf.mxu1 }
 0xa91   :  { %v6634_v56 = vsub.f32 0.0, %v6481_v63  ;;  %v6395_v31 = vadd.f32 %v6394_v55, %v6306_v43 }
 0xa93   :  { %v10397_v52 = vpop.eup %10396  ;;  %v6969_v53 = vmul.f32 1.442695, %v6634_v56  ;;  %v6228_v22 = vpop.f32.mrf.mxu3 }
 0xa94   :  { %v10399_v2 = vpop.eup %10398  ;;  %v7299_v9 = vadd.f32 1.0, %v10397_v52  ;;  %v6320_v58 = vpop.f32.mrf.mxu0  ;;  %v6229_v57 = vadd.f32 %v6228_v22, %v13208_v50 }
 0xa95   :  { %7740 = vst [vmem:[#allocation16 + $0x308] sm:$0xff] %v10399_v2  ;;  %10400 = vpow2.f32 %v6969_v53 }
 0xa96   :  { %10402 = vrcp.f32 %v7299_v9  ;;  %v6483_v5 = vpop.f32.mrf.mxu2  ;;  %v6318_v43 = vadd.f32 %v6317_v21, %v6229_v57 }
 0xa97   :  { %v6484_v34 = vadd.f32 %v6483_v5, %v6395_v31 }
 0xa98   :  { %v6396_v45 = vpop.f32.mrf.mxu1 }
 0xa99   :  { %v6641_v10 = vsub.f32 0.0, %v6484_v34  ;;  %v6397_v60 = vadd.f32 %v6396_v45, %v6308_v29 }
 0xa9b   :  { %v10401_v47 = vpop.eup %10400  ;;  %v6983_v54 = vmul.f32 1.442695, %v6641_v10  ;;  %v6231_v13 = vpop.f32.mrf.mxu3 }
 0xa9c   :  { %v10403_v40 = vpop.eup %10402  ;;  %v7306_v61 = vadd.f32 1.0, %v10401_v47  ;;  %v6322_v27 = vpop.f32.mrf.mxu0  ;;  %v6232_v0 = vadd.f32 %v6231_v13, %v13208_v50 }
 0xa9d   :  { %7747 = vst [vmem:[#allocation16 + $0x340] sm:$0xff] %v10403_v40  ;;  %10404 = vpow2.f32 %v6983_v54 }
 0xa9e   :  { %10406 = vrcp.f32 %v7306_v61  ;;  %v6485_v26 = vpop.f32.mrf.mxu2  ;;  %v6321_v29 = vadd.f32 %v6320_v58, %v6232_v0 }
 0xa9f   :  { %v6486_v28 = vadd.f32 %v6485_v26, %v6397_v60 }
 0xaa0   :  { %v6399_v59 = vpop.f32.mrf.mxu1 }
 0xaa1   :  { %v6648_v48 = vsub.f32 0.0, %v6486_v28  ;;  %v6400_v46 = vadd.f32 %v6399_v59, %v6311_v25 }
 0xaa3   :  { %v10405_v6 = vpop.eup %10404  ;;  %v6997_v1 = vmul.f32 1.442695, %v6648_v48  ;;  %v6233_v15 = vpop.f32.mrf.mxu3 }
 0xaa4   :  { %v10407_v35 = vpop.eup %10406  ;;  %v7313_v7 = vadd.f32 1.0, %v10405_v6  ;;  %v6325_v8 = vpop.f32.mrf.mxu0  ;;  %v6234_v32 = vadd.f32 %v6233_v15, %v13208_v50 }
 0xaa5   :  { %7754 = vst [vmem:[#allocation16 + $0x378] sm:$0xff] %v10407_v35  ;;  %10408 = vpow2.f32 %v6997_v1 }
 0xaa6   :  { %10410 = vrcp.f32 %v7313_v7  ;;  %v6488_v44 = vpop.f32.mrf.mxu2  ;;  %v6323_v25 = vadd.f32 %v6322_v27, %v6234_v32 }
 0xaa7   :  { %v6489_v19 = vadd.f32 %v6488_v44, %v6400_v46 }
 0xaa8   :  { %v6401_v12 = vpop.f32.mrf.mxu1 }
 0xaa9   :  { %v6655_v14 = vsub.f32 0.0, %v6489_v19  ;;  %v6402_v39 = vadd.f32 %v6401_v12, %v6313_v51 }
 0xaab   :  { %v10409_v3 = vpop.eup %10408  ;;  %v7011_v33 = vmul.f32 1.442695, %v6655_v14  ;;  %v6236_v49 = vpop.f32.mrf.mxu3 }
 0xaac   :  { %v10411_v4 = vpop.eup %10410  ;;  %v7320_v37 = vadd.f32 1.0, %v10409_v3  ;;  %v6327_v21 = vpop.f32.mrf.mxu0  ;;  %v6237_v11 = vadd.f32 %v6236_v49, %v13208_v50 }
 0xaad   :  { %7761 = vst [vmem:[#allocation16 + $0x3b0] sm:$0xff] %v10411_v4  ;;  %10412 = vpow2.f32 %v7011_v33 }
 0xaae   :  { %10414 = vrcp.f32 %v7320_v37  ;;  %v6490_v62 = vpop.f32.mrf.mxu2  ;;  %v6326_v51 = vadd.f32 %v6325_v8, %v6237_v11 }
 0xaaf   :  { %v6491_v41 = vadd.f32 %v6490_v62, %v6402_v39 }
 0xab0   :  { %v6404_v20 = vpop.f32.mrf.mxu1 }
 0xab1   :  { %v6662_v18 = vsub.f32 0.0, %v6491_v41  ;;  %v6405_v16 = vadd.f32 %v6404_v20, %v6316_v36 }
 0xab3   :  { %v10413_v17 = vpop.eup %10412  ;;  %v7025_v38 = vmul.f32 1.442695, %v6662_v18  ;;  %v6238_v22 = vpop.f32.mrf.mxu3 }
 0xab4   :  { %v10415_v24 = vpop.eup %10414  ;;  %v7327_v42 = vadd.f32 1.0, %v10413_v17  ;;  %v6239_v23 = vadd.f32 %v6238_v22, %v13208_v50  ;;  %v6330_v58 = vpop.f32.mrf.mxu0 }
 0xab5   :  { %7768 = vst [vmem:[#allocation16 + $0x3e8] sm:$0xff] %v10415_v24  ;;  %10416 = vpow2.f32 %v7025_v38 }
 0xab6   :  { %10418 = vrcp.f32 %v7327_v42  ;;  %v6493_v30 = vpop.f32.mrf.mxu2  ;;  %v6328_v36 = vadd.f32 %v6327_v21, %v6239_v23 }
 0xab7   :  { %v6494_v63 = vadd.f32 %v6493_v30, %v6405_v16 }
 0xab8   :  { %v6406_v55 = vpop.f32.mrf.mxu1 }
 0xab9   :  { %v6669_v56 = vsub.f32 0.0, %v6494_v63  ;;  %v6407_v31 = vadd.f32 %v6406_v55, %v6318_v43 }
 0xabb   :  { %v10417_v52 = vpop.eup %10416  ;;  %v7039_v53 = vmul.f32 1.442695, %v6669_v56  ;;  %v6241_v13 = vpop.f32.mrf.mxu3 }
 0xabc   :  { %v10419_v2 = vpop.eup %10418  ;;  %v7334_v9 = vadd.f32 1.0, %v10417_v52  ;;  %v6242_v57 = vadd.f32 %v6241_v13, %v13208_v50  ;;  %v6332_v27 = vpop.f32.mrf.mxu0 }
 0xabd   :  { %7775 = vst [vmem:[#allocation16 + $0x420] sm:$0xff] %v10419_v2  ;;  %10420 = vpow2.f32 %v7039_v53 }
 0xabe   :  { %10422 = vrcp.f32 %v7334_v9  ;;  %v6495_v5 = vpop.f32.mrf.mxu2  ;;  %v6331_v43 = vadd.f32 %v6330_v58, %v6242_v57 }
 0xabf   :  { %v6496_v34 = vadd.f32 %v6495_v5, %v6407_v31 }
 0xac0   :  { %v6409_v45 = vpop.f32.mrf.mxu1 }
 0xac1   :  { %v6676_v10 = vsub.f32 0.0, %v6496_v34  ;;  %v6410_v60 = vadd.f32 %v6409_v45, %v6321_v29 }
 0xac3   :  { %v10421_v47 = vpop.eup %10420  ;;  %v7053_v54 = vmul.f32 1.442695, %v6676_v10  ;;  %v6243_v15 = vpop.f32.mrf.mxu3 }
 0xac4   :  { %v10423_v40 = vpop.eup %10422  ;;  %v7341_v61 = vadd.f32 1.0, %v10421_v47  ;;  %v6244_v0 = vadd.f32 %v6243_v15, %v13208_v50  ;;  %v6335_v8 = vpop.f32.mrf.mxu0 }
 0xac5   :  { %7782 = vst [vmem:[#allocation16 + $0x458] sm:$0xff] %v10423_v40  ;;  %10424 = vpow2.f32 %v7053_v54 }
 0xac6   :  { %10426 = vrcp.f32 %v7341_v61  ;;  %v6498_v26 = vpop.f32.mrf.mxu2  ;;  %v6333_v29 = vadd.f32 %v6332_v27, %v6244_v0 }
 0xac7   :  { %v6499_v28 = vadd.f32 %v6498_v26, %v6410_v60 }
 0xac8   :  { %v6411_v59 = vpop.f32.mrf.mxu1 }
 0xac9   :  { %v6683_v48 = vsub.f32 0.0, %v6499_v28  ;;  %v6412_v46 = vadd.f32 %v6411_v59, %v6323_v25 }
 0xacb   :  { %v10425_v6 = vpop.eup %10424  ;;  %v7067_v1 = vmul.f32 1.442695, %v6683_v48  ;;  %v6246_v49 = vpop.f32.mrf.mxu3 }
 0xacc   :  { %v10427_v35 = vpop.eup %10426  ;;  %v7348_v7 = vadd.f32 1.0, %v10425_v6  ;;  %v6247_v32 = vadd.f32 %v6246_v49, %v13208_v50  ;;  %v6337_v21 = vpop.f32.mrf.mxu0 }
 0xacd   :  { %7789 = vst [vmem:[#allocation16 + $0x490] sm:$0xff] %v10427_v35  ;;  %10428 = vpow2.f32 %v7067_v1 }
 0xace   :  { %10430 = vrcp.f32 %v7348_v7  ;;  %v6500_v44 = vpop.f32.mrf.mxu2  ;;  %v6336_v25 = vadd.f32 %v6335_v8, %v6247_v32 }
 0xacf   :  { %v6501_v19 = vadd.f32 %v6500_v44, %v6412_v46 }
 0xad0   :  { %v6414_v12 = vpop.f32.mrf.mxu1 }
 0xad1   :  { %v6690_v14 = vsub.f32 0.0, %v6501_v19  ;;  %v6415_v39 = vadd.f32 %v6414_v12, %v6326_v51 }
 0xad3   :  { %v10429_v3 = vpop.eup %10428  ;;  %v7081_v33 = vmul.f32 1.442695, %v6690_v14  ;;  %v6248_v22 = vpop.f32.mrf.mxu3 }
 0xad4   :  { %v10431_v4 = vpop.eup %10430  ;;  %v7355_v37 = vadd.f32 1.0, %v10429_v3  ;;  %v6249_v11 = vadd.f32 %v6248_v22, %v13208_v50  ;;  %v6340_v58 = vpop.f32.mrf.mxu0 }
 0xad5   :  { %7796 = vst [vmem:[#allocation16 + $0x4c8] sm:$0xff] %v10431_v4  ;;  %10432 = vpow2.f32 %v7081_v33 }
 0xad6   :  { %10434 = vrcp.f32 %v7355_v37  ;;  %v6503_v62 = vpop.f32.mrf.mxu2  ;;  %v6338_v51 = vadd.f32 %v6337_v21, %v6249_v11 }
 0xad7   :  { %v6504_v41 = vadd.f32 %v6503_v62, %v6415_v39 }
 0xad8   :  { %v6416_v20 = vpop.f32.mrf.mxu1 }
 0xad9   :  { %v6697_v18 = vsub.f32 0.0, %v6504_v41  ;;  %v6417_v16 = vadd.f32 %v6416_v20, %v6328_v36 }
 0xadb   :  { %v10433_v17 = vpop.eup %10432  ;;  %v7095_v38 = vmul.f32 1.442695, %v6697_v18  ;;  %v6251_v13 = vpop.f32.mrf.mxu3 }
 0xadc   :  { %v10435_v24 = vpop.eup %10434  ;;  %v7362_v42 = vadd.f32 1.0, %v10433_v17  ;;  %v6252_v23 = vadd.f32 %v6251_v13, %v13208_v50 }
 0xadd   :  { %7803 = vst [vmem:[#allocation16 + $0x500] sm:$0xff] %v10435_v24  ;;  %10436 = vpow2.f32 %v7095_v38 }
 0xade   :  { %10438 = vrcp.f32 %v7362_v42  ;;  %v6505_v30 = vpop.f32.mrf.mxu2  ;;  %v6341_v36 = vadd.f32 %v6340_v58, %v6252_v23 }
 0xadf   :  { %v6506_v63 = vadd.f32 %v6505_v30, %v6417_v16 }
 0xae0   :  { %v6419_v55 = vpop.f32.mrf.mxu1 }
 0xae1   :  { %v6704_v56 = vsub.f32 0.0, %v6506_v63  ;;  %v6420_v31 = vadd.f32 %v6419_v55, %v6331_v43 }
 0xae3   :  { %v10437_v52 = vpop.eup %10436  ;;  %v7109_v53 = vmul.f32 1.442695, %v6704_v56  ;;  %v6253_v15 = vpop.f32.mrf.mxu3 }
 0xae4   :  { %v10439_v2 = vpop.eup %10438  ;;  %v7369_v9 = vadd.f32 1.0, %v10437_v52  ;;  %v6254_v57 = vadd.f32 %v6253_v15, %v13208_v50  ;;  %v6342_v56 = vpop.f32.mrf.mxu0 }
 0xae5   :  { %7810 = vst [vmem:[#allocation16 + $0x538] sm:$0xff] %v10439_v2  ;;  %10440 = vpow2.f32 %v7109_v53 }
 0xae6   :  { %10442 = vrcp.f32 %v7369_v9  ;;  %v6508_v5 = vpop.f32.mrf.mxu2  ;;  %v6343_v43 = vadd.f32 %v6342_v56, %v6254_v57 }
 0xae7   :  { %v6509_v34 = vadd.f32 %v6508_v5, %v6420_v31 }
 0xae8   :  { %v6421_v45 = vpop.f32.mrf.mxu1 }
 0xae9   :  { %v6711_v10 = vsub.f32 0.0, %v6509_v34  ;;  %v6422_v60 = vadd.f32 %v6421_v45, %v6333_v29 }
 0xaeb   :  { %v10441_v47 = vpop.eup %10440  ;;  %v7123_v54 = vmul.f32 1.442695, %v6711_v10 }
 0xaec   :  { %v10443_v40 = vpop.eup %10442  ;;  %v7376_v61 = vadd.f32 1.0, %v10441_v47 }
 0xaed   :  { %7817 = vst [vmem:[#allocation16 + $0x570] sm:$0xff] %v10443_v40  ;;  %10444 = vpow2.f32 %v7123_v54 }
 0xaee   :  { %10446 = vrcp.f32 %v7376_v61  ;;  %v6510_v26 = vpop.f32.mrf.mxu2 }
 0xaef   :  { %v6511_v28 = vadd.f32 %v6510_v26, %v6422_v60 }
 0xaf0   :  { %v6424_v59 = vpop.f32.mrf.mxu1 }
 0xaf1   :  { %v6718_v48 = vsub.f32 0.0, %v6511_v28  ;;  %v6425_v46 = vadd.f32 %v6424_v59, %v6336_v25 }
 0xaf3   :  { %v10445_v6 = vpop.eup %10444  ;;  %v7137_v1 = vmul.f32 1.442695, %v6718_v48 }
 0xaf4   :  { %v10447_v35 = vpop.eup %10446  ;;  %v7383_v7 = vadd.f32 1.0, %v10445_v6 }
 0xaf5   :  { %7824 = vst [vmem:[#allocation16 + $0x5a8] sm:$0xff] %v10447_v35  ;;  %10448 = vpow2.f32 %v7137_v1 }
 0xaf6   :  { %10450 = vrcp.f32 %v7383_v7  ;;  %v6513_v44 = vpop.f32.mrf.mxu2 }
 0xaf7   :  { %v6514_v19 = vadd.f32 %v6513_v44, %v6425_v46 }
 0xaf8   :  { %v6426_v12 = vpop.f32.mrf.mxu1 }
 0xaf9   :  { %v6725_v14 = vsub.f32 0.0, %v6514_v19  ;;  %v6427_v39 = vadd.f32 %v6426_v12, %v6338_v51 }
 0xafb   :  { %v10449_v3 = vpop.eup %10448  ;;  %v7151_v33 = vmul.f32 1.442695, %v6725_v14 }
 0xafc   :  { %v10451_v4 = vpop.eup %10450  ;;  %v7390_v37 = vadd.f32 1.0, %v10449_v3 }
 0xafd   :  { %7831 = vst [vmem:[#allocation16 + $0x5e0] sm:$0xff] %v10451_v4  ;;  %10452 = vpow2.f32 %v7151_v33 }
 0xafe   :  { %10454 = vrcp.f32 %v7390_v37  ;;  %v6515_v62 = vpop.f32.mrf.mxu2 }
 0xaff   :  { %v6516_v41 = vadd.f32 %v6515_v62, %v6427_v39 }
 0xb00   :  { %v6429_v20 = vpop.f32.mrf.mxu1 }
 0xb01   :  { %v6732_v18 = vsub.f32 0.0, %v6516_v41  ;;  %v6430_v16 = vadd.f32 %v6429_v20, %v6341_v36 }
 0xb03   :  { %v10453_v17 = vpop.eup %10452  ;;  %v7165_v38 = vmul.f32 1.442695, %v6732_v18 }
 0xb04   :  { %v10455_v24 = vpop.eup %10454  ;;  %v7397_v42 = vadd.f32 1.0, %v10453_v17 }
 0xb05   :  { %7838 = vst [vmem:[#allocation16 + $0x618] sm:$0xff] %v10455_v24  ;;  %10456 = vpow2.f32 %v7165_v38 }
 0xb06   :  { %10458 = vrcp.f32 %v7397_v42  ;;  %v6518_v30 = vpop.f32.mrf.mxu2 }
 0xb07   :  { %v6519_v63 = vadd.f32 %v6518_v30, %v6430_v16 }
 0xb08   :  { %v6431_v27 = vpop.f32.mrf.mxu1 }
 0xb09   :  { %v6739_v55 = vsub.f32 0.0, %v6519_v63  ;;  %v6432_v31 = vadd.f32 %v6431_v27, %v6343_v43 }
 0xb0b   :  { %v10457_v52 = vpop.eup %10456  ;;  %v7179_v53 = vmul.f32 1.442695, %v6739_v55 }
 0xb0c   :  { %v10459_v2 = vpop.eup %10458  ;;  %v7404_v9 = vadd.f32 1.0, %v10457_v52 }
 0xb0d   :  { %7845 = vst [vmem:[#allocation16 + $0x650] sm:$0xff] %v10459_v2  ;;  %10460 = vpow2.f32 %v7179_v53 }
 0xb0e   :  { %10462 = vrcp.f32 %v7404_v9  ;;  %v6520_v49 = vpop.f32.mrf.mxu2 }
 0xb0f   :  { %v6521_v5 = vadd.f32 %v6520_v49, %v6432_v31 }
 0xb11   :  { %v6746_v0 = vsub.f32 0.0, %v6521_v5 }
 0xb13   :  { %v10461_v34 = vpop.eup %10460  ;;  %v7193_v45 = vmul.f32 1.442695, %v6746_v0 }
 0xb14   :  { %v10463_v10 = vpop.eup %10462  ;;  %v7411_v50 = vadd.f32 1.0, %v10461_v34 }
 0xb15   :  { %7852 = vst [vmem:[#allocation16 + $0x688] sm:$0xff] %v10463_v10  ;;  %10464 = vpow2.f32 %v7193_v45 }
 0xb16   :  { %10466 = vrcp.f32 %v7411_v50 }
 0xb1b   :  { %v10465_v47 = vpop.eup %10464 }
 0xb1c   :  { %v10467_v29 = vpop.eup %10466  ;;  %v7418_v54 = vadd.f32 1.0, %v10465_v47 }
 0xb1d   :  { %7859 = vst [vmem:[#allocation16 + $0x6c0] sm:$0xff] %v10467_v29 }
 0xb1e   :  { %10468 = vrcp.f32 %v7418_v54 }
 0xb24   :  { %v10469_v40 = vpop.eup %10468 }
 0xb25   :  { %7866 = vst [vmem:[#allocation16 + $0x6f8] sm:$0xff] %v10469_v40 }
 0xb26   :  { %7879 = dma.vmem_to_hbm [thread:$0]  %s7872_s20, 28672, %s7874_s22, [#allocation4], %s10722_s23, %s10722_s23, %s10723_s1  }
 0xb27   :  { %10703 = dma.done.wait [#allocation4], 28672  }
 0xb28   :  { %10704 = vsyncadd [#allocation4], 4294938624 }
 0xb29   :  { %7884 = vsyncpa [#allocation3], 1 }
 0xb2a   :  { %7885 = vsyncpa [#allocation6], 1 }
 0xb2b   :  { %7886 = vsyncpa [#allocation9], 1 }
 0xb2c   :  { %7887 = vsyncpa [#allocation12], 1 }
 0xb2d   :  { %7888 = vsyncpa [#allocation15], 1 }
 0xb2e   :  { %7889 = vsyncpa [#allocation4], 1 }

</bundles_post_ra>
